<compile_context>
chip_gen: v6e
topology: v6e:2x2x1
jax: 0.10.0
libtpu: 0.0.40
codegen_flags: <defaults>
</compile_context>

<pallas_src>
import numpy as np
import jax
import jax.numpy as jnp
from jax import lax
from jax.experimental import pallas as pl
from jax.experimental.pallas import tpu as pltpu


# ----------------------------------------------------------------------------- kernel
def basicblock_kernel(x_ref, w1_ref, w2_ref,
                      bn1s_ref, bn1b_ref, bn2s_ref, bn2b_ref,
                      out_ref, pad_ref):
    # x_ref:   (BB, H, W*C)     f32   BB images per grid step, lane-dense
    # w*_ref:  (3, W*C, W*C)    bf16  banded conv weights (one slab per kernel row ky)
    # bn*_ref: (1, W*C)         f32   folded BN scale/bias, tiled W times along lanes
    # out_ref: (BB, H, W*C)     f32
    # pad_ref: (BB, H+2, W*C)   bf16  per-image row-halo scratch
    BB, H, WC = x_ref.shape
    M = BB * H

    # Megacore-safe halo init: zero only the top/bottom halo row of every image,
    # unconditionally on every grid step (cheap), instead of a program_id(0)==0-guarded
    # full memset that the second TensorCore never runs under "parallel" semantics.
    zrow = jnp.zeros((BB, 1, WC), pad_ref.dtype)
    pad_ref[:, 0:1, :] = zrow
    pad_ref[:, H + 1:H + 2, :] = zrow

    # (BB, H, WC) -> (BB*H, WC): contiguous leading-dim merge, lane-dense.
    x = x_ref[...].reshape(M, WC)

    def conv3x3(v_f32, w_ref):
        # One f32->bf16 cast per conv input; the bf16 halo scratch is the only copy the
        # MXU LHS reads.  Width padding is baked into the banded weights; height padding
        # comes from the zero halo rows, so there is no cross-image leakage.
        v16 = v_f32.astype(jnp.bfloat16)                     # (M, WC) bf16
        pad_ref[:, 1:H + 1, :] = v16.reshape(BB, H, WC)
        acc = jnp.dot(pad_ref[:, 0:H, :].reshape(M, WC), w_ref[0],
                      preferred_element_type=jnp.float32)
        acc += jnp.dot(v16, w_ref[1],                        # ky=1 window == v16
                       preferred_element_type=jnp.float32)
        acc += jnp.dot(pad_ref[:, 2:H + 2, :].reshape(M, WC), w_ref[2],
                       preferred_element_type=jnp.float32)
        return acc                                           # (M, WC) f32

    # conv1 -> bn1 -> relu   (elementwise math stays f32; v5e has no bf16 VPU)
    h = conv3x3(x, w1_ref)
    h = h * bn1s_ref[...] + bn1b_ref[...]
    h = jnp.maximum(h, 0.0)

    # conv2 -> bn2
    h = conv3x3(h, w2_ref)
    h = h * bn2s_ref[...] + bn2b_ref[...]

    # residual add + final relu (downsample=None, stride=1) — lane-dense store
    out_ref[...] = jnp.maximum(h + x, 0.0).reshape(BB, H, WC)


# ----------------------------------------------------------------------------- wrapper
def _band_conv3x3_weights(w_oihw, W):
    """Repack PyTorch OIHW 3x3 weights into 3 banded (W*Cin, W*Cout) matrices.

    M[ky][wi*Ci + ci, wo*Co + co] = w[co, ci, ky, kx] with kx = wi - wo + 1 when valid,
    so `rows(h+ky-1) @ M[ky]` summed over ky reproduces the padded 3x3 conv while every
    matmul operand / result stays lane-dense.
    """
    w = np.asarray(jax.device_get(w_oihw)).astype(np.float32)   # (Co, Ci, 3, 3)
    Co, Ci, KH, KW = w.shape
    w_hwio = np.transpose(w, (2, 3, 1, 0))                      # (3, 3, Ci, Co)
    M = np.zeros((KH, W * Ci, W * Co), np.float32)
    for ky in range(KH):
        for kx in range(KW):
            for wo in range(W):
                wi = wo + kx - 1
                if 0 <= wi < W:
                    M[ky, wi * Ci:(wi + 1) * Ci, wo * Co:(wo + 1) * Co] = w_hwio[ky, kx]
    return jnp.asarray(M, dtype=jnp.bfloat16)


def pack_params(p, W):
    """Torch-layout params -> kernel-layout (banded bf16 conv weights, lane-tiled BN)."""
    return {
        'w1_band': _band_conv3x3_weights(p['w1'], W),
        'w2_band': _band_conv3x3_weights(p['w2'], W),
        'bn1_s': jnp.tile(p['bn1_s'], W)[None, :].astype(jnp.float32),
        'bn1_b': jnp.tile(p['bn1_b'], W)[None, :].astype(jnp.float32),
        'bn2_s': jnp.tile(p['bn2_s'], W)[None, :].astype(jnp.float32),
        'bn2_b': jnp.tile(p['bn2_b'], W)[None, :].astype(jnp.float32),
    }


def _pick_batch_block(B, H, target_m=256):
    """Largest BB dividing B with BB*H <= target_m, preferring >= 2 grid steps so the
    BlockSpec pipeline actually overlaps DMA with compute."""
    divs = [bb for bb in range(1, B + 1) if B % bb == 0]
    cands = [bb for bb in divs if bb * H <= target_m] or [1]
    piped = [bb for bb in cands if B // bb >= 2]
    return max(piped) if piped else max(cands)


def basicblock_forward(x_nhwc, kp, *, target_m=256):
    """x_nhwc: (B, H, W, C) channels-last (equivalent to PyTorch NCHW transposed)."""
    B, H, W, C = x_nhwc.shape
    WC = W * C
    BB = _pick_batch_block(B, H, target_m)          # e.g. BB=8, H=16 -> matmul M=128
    x2 = x_nhwc.reshape(B, H, WC).astype(jnp.float32)

    # NOTE: w1/w2/bn index_maps are constant, so they are DMA'd once; their default
    # 2-deep buffers (~3 MiB here) are accepted — revisit with pl.Buffered(1) / a manual
    # weight DMA when the weight slab grows at production shapes.
    out2 = pl.pallas_call(
        basicblock_kernel,
        out_shape=jax.ShapeDtypeStruct((B, H, WC), jnp.float32),
        grid_spec=pltpu.PrefetchScalarGridSpec(
            num_scalar_prefetch=0,
            grid=(B // BB,),
            in_specs=[
                pl.BlockSpec((BB, H, WC), lambda b: (b, 0, 0)),       # x (batch-blocked)
                pl.BlockSpec((3, WC, WC), lambda b: (0, 0, 0)),       # w1 (banded)
                pl.BlockSpec((3, WC, WC), lambda b: (0, 0, 0)),       # w2 (banded)
                pl.BlockSpec((1, WC), lambda b: (0, 0)),              # bn1 scale
                pl.BlockSpec((1, WC), lambda b: (0, 0)),              # bn1 bias
                pl.BlockSpec((1, WC), lambda b: (0, 0)),              # bn2 scale
                pl.BlockSpec((1, WC), lambda b: (0, 0)),              # bn2 bias
            ],
            out_specs=pl.BlockSpec((BB, H, WC), lambda b: (b, 0, 0)),
            scratch_shapes=[pltpu.VMEM((BB, H + 2, WC), jnp.bfloat16)],  # bf16 row-halo
        ),
        compiler_params=pltpu.CompilerParams(
            dimension_semantics=("parallel",),        # batch-block axis -> megacore
            vmem_limit_bytes=48 * 1024 * 1024,
        ),
    )(x2, kp['w1_band'], kp['w2_band'],
      kp['bn1_s'], kp['bn1_b'], kp['bn2_s'], kp['bn2_b'])

    return out2.reshape(B, H, W, C)


# ----------------------------------------------------------------------------- params / reference
def make_params(key, C):
    """Deterministic synthetic parameters matching BasicBlock(inplanes=C, planes=C)."""
    eps = 1e-5
    ks = jax.random.split(key, 4)

    def bn_fold(k):
        k1, k2, k3, k4 = jax.random.split(k, 4)
        gamma = 1.0 + 0.1 * jax.random.normal(k1, (C,), jnp.float32)
        beta = 0.1 * jax.random.normal(k2, (C,), jnp.float32)
        mean = 0.1 * jax.random.normal(k3, (C,), jnp.float32)
        var = jax.random.uniform(k4, (C,), jnp.float32, 0.5, 1.5)
        scale = gamma / jnp.sqrt(var + eps)
        bias = beta - mean * scale
        return scale, bias

    bn1_s, bn1_b = bn_fold(ks[0])
    bn2_s, bn2_b = bn_fold(ks[1])
    w1 = 0.1 * jax.random.normal(ks[2], (C, C, 3, 3), jnp.float32)   # OIHW
    w2 = 0.1 * jax.random.normal(ks[3], (C, C, 3, 3), jnp.float32)
    return {'w1': w1, 'w2': w2,
            'bn1_s': bn1_s, 'bn1_b': bn1_b, 'bn2_s': bn2_s, 'bn2_b': bn2_b}


def ref_forward(x_nhwc, p):
    """Pure-JAX reference mirroring the PyTorch forward (eval-mode BN, bf16 MXU operands
    with f32 accumulation, matching the kernel's matmul precision)."""
    def conv(v, w_oihw):
        w_hwio = jnp.transpose(w_oihw, (2, 3, 1, 0)).astype(jnp.bfloat16)
        return lax.conv_general_dilated(
            v.astype(jnp.bfloat16), w_hwio, (1, 1), ((1, 1), (1, 1)),
            dimension_numbers=('NHWC', 'HWIO', 'NHWC'),
            preferred_element_type=jnp.float32)

    x = x_nhwc.astype(jnp.float32)
    h = conv(x, p['w1'])
    h = h * p['bn1_s'] + p['bn1_b']
    h = jnp.maximum(h, 0.0)
    h = conv(h, p['w2'])
    h = h * p['bn2_s'] + p['bn2_b']
    return jnp.maximum(h + x, 0.0)


if __name__ == "__main__":
    key = jax.random.PRNGKey(0)
    kx, kparam = jax.random.split(key)
    # inplanes = planes = 32, stride = 1; B=16 so the batch-blocked grid has 2 steps of
    # BB=8 images each (matmul M = 8*16 = 128).
    B, C, H, W = 16, 32, 16, 16
    x = jax.random.normal(kx, (B, H, W, C), jnp.float32)   # channels-last input

    params = make_params(kparam, C)
    kernel_params = pack_params(params, W)

    out = basicblock_forward(x, kernel_params)
    out = jax.block_until_ready(out)

    ref = ref_forward(x, params)
    assert out.shape == (B, H, W, C)
    err = float(jnp.max(jnp.abs(out - ref)))
    scale = float(jnp.max(jnp.abs(ref)))
    # ~2% relative tolerance: bf16 MXU operands through two chained 3x3 convs.
    if err <= 2e-2 * max(1.0, scale):
        print("KERNEL_OK")
    else:
        print(f"MISMATCH max_abs_err={err} ref_scale={scale}")
</pallas_src>

<mosaic_0001>
module attributes {stable_mosaic.version = 11 : i64} {
  func.func @basicblock_kernel(%arg0: i32, %arg1: memref<8x16x512xf32, #tpu.memory_space<vmem>>, %arg2: memref<3x512x512xbf16, #tpu.memory_space<vmem>>, %arg3: memref<3x512x512xbf16, #tpu.memory_space<vmem>>, %arg4: memref<1x512xf32, #tpu.memory_space<vmem>>, %arg5: memref<1x512xf32, #tpu.memory_space<vmem>>, %arg6: memref<1x512xf32, #tpu.memory_space<vmem>>, %arg7: memref<1x512xf32, #tpu.memory_space<vmem>>, %arg8: memref<8x16x512xf32, #tpu.memory_space<vmem>>, %arg9: memref<8x18x512xbf16, #tpu.memory_space<vmem>>) attributes {dimension_semantics = [#tpu.dimension_semantics<parallel>], iteration_bounds = array<i64: 2>, scalar_prefetch = 0 : i64, scratch_operands = 1 : i64, tpu.core_type = #tpu.core_type<tc>, window_params = [{transform_indices = @transform_0, window_bounds = array<i64: 8, 16, 512>}, {pipeline_mode = #tpu.pipeline_mode<synchronous>, transform_indices = @transform_1, window_bounds = array<i64: 3, 512, 512>}, {pipeline_mode = #tpu.pipeline_mode<synchronous>, transform_indices = @transform_2, window_bounds = array<i64: 3, 512, 512>}, {pipeline_mode = #tpu.pipeline_mode<synchronous>, transform_indices = @transform_3, window_bounds = array<i64: 1, 512>}, {pipeline_mode = #tpu.pipeline_mode<synchronous>, transform_indices = @transform_4, window_bounds = array<i64: 1, 512>}, {pipeline_mode = #tpu.pipeline_mode<synchronous>, transform_indices = @transform_5, window_bounds = array<i64: 1, 512>}, {pipeline_mode = #tpu.pipeline_mode<synchronous>, transform_indices = @transform_6, window_bounds = array<i64: 1, 512>}, {transform_indices = @transform_7, window_bounds = array<i64: 8, 16, 512>}]} {
    %cst = arith.constant 0.000000e+00 : bf16
    %0 = vector.broadcast %cst : bf16 to vector<8x1x512xbf16>
    %c0 = arith.constant 0 : index
    %c0_0 = arith.constant 0 : index
    %c0_1 = arith.constant 0 : index
    %1 = vector.load %arg9[%c0, %c0_0, %c0_1] : memref<8x18x512xbf16, #tpu.memory_space<vmem>>, vector<8x1x512xbf16>
    tpu.vector_store %arg9[%c0, %c0_0, %c0_1], %0 {strides = array<i32>} : memref<8x18x512xbf16, #tpu.memory_space<vmem>>, vector<8x1x512xbf16>,
    %c0_2 = arith.constant 0 : index
    %c17 = arith.constant 17 : index
    %c0_3 = arith.constant 0 : index
    %2 = vector.load %arg9[%c0_2, %c17, %c0_3] : memref<8x18x512xbf16, #tpu.memory_space<vmem>>, vector<8x1x512xbf16>
    tpu.vector_store %arg9[%c0_2, %c17, %c0_3], %0 {strides = array<i32>} : memref<8x18x512xbf16, #tpu.memory_space<vmem>>, vector<8x1x512xbf16>,
    %c0_4 = arith.constant 0 : index
    %c0_5 = arith.constant 0 : index
    %c0_6 = arith.constant 0 : index
    %3 = vector.load %arg1[%c0_4, %c0_5, %c0_6] : memref<8x16x512xf32, #tpu.memory_space<vmem>>, vector<8x16x512xf32>
    %4 = vector.shape_cast %3 : vector<8x16x512xf32> to vector<128x512xf32>
    %5 = arith.truncf %4 : vector<128x512xf32> to vector<128x512xbf16>
    %6 = vector.shape_cast %5 : vector<128x512xbf16> to vector<8x16x512xbf16>
    %c0_7 = arith.constant 0 : index
    %c1 = arith.constant 1 : index
    %c0_8 = arith.constant 0 : index
    %7 = vector.load %arg9[%c0_7, %c1, %c0_8] : memref<8x18x512xbf16, #tpu.memory_space<vmem>>, vector<8x16x512xbf16>
    tpu.vector_store %arg9[%c0_7, %c1, %c0_8], %6 {strides = array<i32>} : memref<8x18x512xbf16, #tpu.memory_space<vmem>>, vector<8x16x512xbf16>,
    %c0_9 = arith.constant 0 : index
    %c0_10 = arith.constant 0 : index
    %c0_11 = arith.constant 0 : index
    %8 = vector.load %arg9[%c0_9, %c0_10, %c0_11] : memref<8x18x512xbf16, #tpu.memory_space<vmem>>, vector<8x16x512xbf16>
    %9 = vector.shape_cast %8 : vector<8x16x512xbf16> to vector<128x512xbf16>
    %c0_12 = arith.constant 0 : index
    %c0_13 = arith.constant 0 : index
    %c0_14 = arith.constant 0 : index
    %10 = vector.load %arg2[%c0_12, %c0_13, %c0_14] : memref<3x512x512xbf16, #tpu.memory_space<vmem>>, vector<1x512x512xbf16>
    %11 = vector.shape_cast %10 : vector<1x512x512xbf16> to vector<512x512xbf16>
    %cst_15 = arith.constant dense<0.000000e+00> : vector<128x512xf32>
    %12 = tpu.matmul %9, %11, %cst_15 {dimension_numbers = #tpu.dot_dimension_numbers<[1], [0], [0], [1], [0, 0, 1, 1], [], []>} : vector<128x512xbf16>, vector<512x512xbf16>, vector<128x512xf32> -> vector<128x512xf32>
    %c1_16 = arith.constant 1 : index
    %c0_17 = arith.constant 0 : index
    %c0_18 = arith.constant 0 : index
    %13 = vector.load %arg2[%c1_16, %c0_17, %c0_18] : memref<3x512x512xbf16, #tpu.memory_space<vmem>>, vector<1x512x512xbf16>
    %14 = vector.shape_cast %13 : vector<1x512x512xbf16> to vector<512x512xbf16>
    %cst_19 = arith.constant dense<0.000000e+00> : vector<128x512xf32>
    %15 = tpu.matmul %5, %14, %cst_19 {dimension_numbers = #tpu.dot_dimension_numbers<[1], [0], [0], [1], [0, 0, 1, 1], [], []>} : vector<128x512xbf16>, vector<512x512xbf16>, vector<128x512xf32> -> vector<128x512xf32>
    %16 = arith.addf %12, %15 : vector<128x512xf32>
    %c0_20 = arith.constant 0 : index
    %c2 = arith.constant 2 : index
    %c0_21 = arith.constant 0 : index
    %17 = vector.load %arg9[%c0_20, %c2, %c0_21] : memref<8x18x512xbf16, #tpu.memory_space<vmem>>, vector<8x16x512xbf16>
    %18 = vector.shape_cast %17 : vector<8x16x512xbf16> to vector<128x512xbf16>
    %c2_22 = arith.constant 2 : index
    %c0_23 = arith.constant 0 : index
    %c0_24 = arith.constant 0 : index
    %19 = vector.load %arg2[%c2_22, %c0_23, %c0_24] : memref<3x512x512xbf16, #tpu.memory_space<vmem>>, vector<1x512x512xbf16>
    %20 = vector.shape_cast %19 : vector<1x512x512xbf16> to vector<512x512xbf16>
    %cst_25 = arith.constant dense<0.000000e+00> : vector<128x512xf32>
    %21 = tpu.matmul %18, %20, %cst_25 {dimension_numbers = #tpu.dot_dimension_numbers<[1], [0], [0], [1], [0, 0, 1, 1], [], []>} : vector<128x512xbf16>, vector<512x512xbf16>, vector<128x512xf32> -> vector<128x512xf32>
    %22 = arith.addf %16, %21 : vector<128x512xf32>
    %c0_26 = arith.constant 0 : index
    %c0_27 = arith.constant 0 : index
    %23 = vector.load %arg4[%c0_26, %c0_27] : memref<1x512xf32, #tpu.memory_space<vmem>>, vector<1x512xf32>
    %24 = vector.broadcast %23 : vector<1x512xf32> to vector<128x512xf32>
    %25 = arith.mulf %22, %24 : vector<128x512xf32>
    %c0_28 = arith.constant 0 : index
    %c0_29 = arith.constant 0 : index
    %26 = vector.load %arg5[%c0_28, %c0_29] : memref<1x512xf32, #tpu.memory_space<vmem>>, vector<1x512xf32>
    %27 = vector.broadcast %26 : vector<1x512xf32> to vector<128x512xf32>
    %28 = arith.addf %25, %27 : vector<128x512xf32>
    %cst_30 = arith.constant 0.000000e+00 : f32
    %29 = vector.broadcast %cst_30 : f32 to vector<128x512xf32>
    %30 = arith.maximumf %28, %29 : vector<128x512xf32>
    %31 = arith.truncf %30 : vector<128x512xf32> to vector<128x512xbf16>
    %32 = vector.shape_cast %31 : vector<128x512xbf16> to vector<8x16x512xbf16>
    %c0_31 = arith.constant 0 : index
    %c1_32 = arith.constant 1 : index
    %c0_33 = arith.constant 0 : index
    %33 = vector.load %arg9[%c0_31, %c1_32, %c0_33] : memref<8x18x512xbf16, #tpu.memory_space<vmem>>, vector<8x16x512xbf16>
    tpu.vector_store %arg9[%c0_31, %c1_32, %c0_33], %32 {strides = array<i32>} : memref<8x18x512xbf16, #tpu.memory_space<vmem>>, vector<8x16x512xbf16>,
    %c0_34 = arith.constant 0 : index
    %c0_35 = arith.constant 0 : index
    %c0_36 = arith.constant 0 : index
    %34 = vector.load %arg9[%c0_34, %c0_35, %c0_36] : memref<8x18x512xbf16, #tpu.memory_space<vmem>>, vector<8x16x512xbf16>
    %35 = vector.shape_cast %34 : vector<8x16x512xbf16> to vector<128x512xbf16>
    %c0_37 = arith.constant 0 : index
    %c0_38 = arith.constant 0 : index
    %c0_39 = arith.constant 0 : index
    %36 = vector.load %arg3[%c0_37, %c0_38, %c0_39] : memref<3x512x512xbf16, #tpu.memory_space<vmem>>, vector<1x512x512xbf16>
    %37 = vector.shape_cast %36 : vector<1x512x512xbf16> to vector<512x512xbf16>
    %cst_40 = arith.constant dense<0.000000e+00> : vector<128x512xf32>
    %38 = tpu.matmul %35, %37, %cst_40 {dimension_numbers = #tpu.dot_dimension_numbers<[1], [0], [0], [1], [0, 0, 1, 1], [], []>} : vector<128x512xbf16>, vector<512x512xbf16>, vector<128x512xf32> -> vector<128x512xf32>
    %c1_41 = arith.constant 1 : index
    %c0_42 = arith.constant 0 : index
    %c0_43 = arith.constant 0 : index
    %39 = vector.load %arg3[%c1_41, %c0_42, %c0_43] : memref<3x512x512xbf16, #tpu.memory_space<vmem>>, vector<1x512x512xbf16>
    %40 = vector.shape_cast %39 : vector<1x512x512xbf16> to vector<512x512xbf16>
    %cst_44 = arith.constant dense<0.000000e+00> : vector<128x512xf32>
    %41 = tpu.matmul %31, %40, %cst_44 {dimension_numbers = #tpu.dot_dimension_numbers<[1], [0], [0], [1], [0, 0, 1, 1], [], []>} : vector<128x512xbf16>, vector<512x512xbf16>, vector<128x512xf32> -> vector<128x512xf32>
    %42 = arith.addf %38, %41 : vector<128x512xf32>
    %c0_45 = arith.constant 0 : index
    %c2_46 = arith.constant 2 : index
    %c0_47 = arith.constant 0 : index
    %43 = vector.load %arg9[%c0_45, %c2_46, %c0_47] : memref<8x18x512xbf16, #tpu.memory_space<vmem>>, vector<8x16x512xbf16>
    %44 = vector.shape_cast %43 : vector<8x16x512xbf16> to vector<128x512xbf16>
    %c2_48 = arith.constant 2 : index
    %c0_49 = arith.constant 0 : index
    %c0_50 = arith.constant 0 : index
    %45 = vector.load %arg3[%c2_48, %c0_49, %c0_50] : memref<3x512x512xbf16, #tpu.memory_space<vmem>>, vector<1x512x512xbf16>
    %46 = vector.shape_cast %45 : vector<1x512x512xbf16> to vector<512x512xbf16>
    %cst_51 = arith.constant dense<0.000000e+00> : vector<128x512xf32>
    %47 = tpu.matmul %44, %46, %cst_51 {dimension_numbers = #tpu.dot_dimension_numbers<[1], [0], [0], [1], [0, 0, 1, 1], [], []>} : vector<128x512xbf16>, vector<512x512xbf16>, vector<128x512xf32> -> vector<128x512xf32>
    %48 = arith.addf %42, %47 : vector<128x512xf32>
    %c0_52 = arith.constant 0 : index
    %c0_53 = arith.constant 0 : index
    %49 = vector.load %arg6[%c0_52, %c0_53] : memref<1x512xf32, #tpu.memory_space<vmem>>, vector<1x512xf32>
    %50 = vector.broadcast %49 : vector<1x512xf32> to vector<128x512xf32>
    %51 = arith.mulf %48, %50 : vector<128x512xf32>
    %c0_54 = arith.constant 0 : index
    %c0_55 = arith.constant 0 : index
    %52 = vector.load %arg7[%c0_54, %c0_55] : memref<1x512xf32, #tpu.memory_space<vmem>>, vector<1x512xf32>
    %53 = vector.broadcast %52 : vector<1x512xf32> to vector<128x512xf32>
    %54 = arith.addf %51, %53 : vector<128x512xf32>
    %55 = arith.addf %54, %4 : vector<128x512xf32>
    %cst_56 = arith.constant 0.000000e+00 : f32
    %56 = vector.broadcast %cst_56 : f32 to vector<128x512xf32>
    %57 = arith.maximumf %55, %56 : vector<128x512xf32>
    %58 = vector.shape_cast %57 : vector<128x512xf32> to vector<8x16x512xf32>
    %c0_57 = arith.constant 0 : index
    %c0_58 = arith.constant 0 : index
    %c0_59 = arith.constant 0 : index
    %59 = vector.load %arg8[%c0_57, %c0_58, %c0_59] : memref<8x16x512xf32, #tpu.memory_space<vmem>>, vector<8x16x512xf32>
    tpu.vector_store %arg8[%c0_57, %c0_58, %c0_59], %58 {strides = array<i32>} : memref<8x16x512xf32, #tpu.memory_space<vmem>>, vector<8x16x512xf32>,
    return
  }
  func.func @transform_0(%arg0: i32) -> (i32, i32, i32) {
    %c0_i32 = arith.constant 0 : i32
    %c0_i32_0 = arith.constant 0 : i32
    %c0_i32_1 = arith.constant 0 : i32
    return %arg0, %c0_i32, %c0_i32_0 : i32, i32, i32
  }
  func.func @transform_1(%arg0: i32) -> (i32, i32, i32) {
    %c0_i32 = arith.constant 0 : i32
    %c0_i32_0 = arith.constant 0 : i32
    %c0_i32_1 = arith.constant 0 : i32
    %c0_i32_2 = arith.constant 0 : i32
    return %c0_i32, %c0_i32_0, %c0_i32_1 : i32, i32, i32
  }
  func.func @transform_2(%arg0: i32) -> (i32, i32, i32) {
    %c0_i32 = arith.constant 0 : i32
    %c0_i32_0 = arith.constant 0 : i32
    %c0_i32_1 = arith.constant 0 : i32
    %c0_i32_2 = arith.constant 0 : i32
    return %c0_i32, %c0_i32_0, %c0_i32_1 : i32, i32, i32
  }
  func.func @transform_3(%arg0: i32) -> (i32, i32) {
    %c0_i32 = arith.constant 0 : i32
    %c0_i32_0 = arith.constant 0 : i32
    %c0_i32_1 = arith.constant 0 : i32
    return %c0_i32, %c0_i32_0 : i32, i32
  }
  func.func @transform_4(%arg0: i32) -> (i32, i32) {
    %c0_i32 = arith.constant 0 : i32
    %c0_i32_0 = arith.constant 0 : i32
    %c0_i32_1 = arith.constant 0 : i32
    return %c0_i32, %c0_i32_0 : i32, i32
  }
  func.func @transform_5(%arg0: i32) -> (i32, i32) {
    %c0_i32 = arith.constant 0 : i32
    %c0_i32_0 = arith.constant 0 : i32
    %c0_i32_1 = arith.constant 0 : i32
    return %c0_i32, %c0_i32_0 : i32, i32
  }
  func.func @transform_6(%arg0: i32) -> (i32, i32) {
    %c0_i32 = arith.constant 0 : i32
    %c0_i32_0 = arith.constant 0 : i32
    %c0_i32_1 = arith.constant 0 : i32
    return %c0_i32, %c0_i32_0 : i32, i32
  }
  func.func @transform_7(%arg0: i32) -> (i32, i32, i32) {
    %c0_i32 = arith.constant 0 : i32
    %c0_i32_0 = arith.constant 0 : i32
    %c0_i32_1 = arith.constant 0 : i32
    return %arg0, %c0_i32, %c0_i32_0 : i32, i32, i32
  }
}

</mosaic_0001>

<bundles_post_ra>
// kernel: tpu_custom_call.1
= control target key start
LH: loop header
LB: loop body
LE: loop exit
PB: predicated region body
PF: predicated region fallthrough
CT: control target
= control target key end

     0   :  { %s17609_s0 = inlined_call_operand.hbm [shape: f32[16,16,512], index: 0, kind: input, shape index: {}]   ;;  %s17610_s1 = inlined_call_operand.hbm [shape: bf16[3,512,512], index: 1, kind: input, shape index: {}]   ;;  %s17611_s2 = inlined_call_operand.hbm [shape: bf16[3,512,512], index: 2, kind: input, shape index: {}]   ;;  %s17612_s3 = inlined_call_operand.hbm [shape: f32[1,512], index: 3, kind: input, shape index: {}]   ;;  %s17613_s4 = inlined_call_operand.hbm [shape: f32[1,512], index: 4, kind: input, shape index: {}]   ;;  %s17614_s5 = inlined_call_operand.hbm [shape: f32[1,512], index: 5, kind: input, shape index: {}]   ;;  %s17615_s6 = inlined_call_operand.hbm [shape: f32[1,512], index: 6, kind: input, shape index: {}]   ;;  %s17616_s7 = inlined_call_operand.hbm [shape: f32[16,16,512], index: 7, kind: output, shape index: {}]  }
   0x1   :  { %17667 = sst [smem:[#allocation95_spill]] %s17610_s1 }
   0x2   :  { %12 = vsyncpa [#allocation4], 0 }
   0x3   :  { %14 = vsyncpa [#allocation4 + $0x1], 0 }
   0x4   :  { %15 = vsyncpa [#allocation7], 0 }
   0x5   :  { %16 = vsyncpa [#allocation10], 0 }
   0x6   :  { %17 = vsyncpa [#allocation13], 0 }
   0x7   :  { %18 = vsyncpa [#allocation5], 0 }
   0x8   :  { %20 = vsyncpa [#allocation5 + $0x1], 0  ;;  %s13795_s24 = smov 0   ;;  %s13797_s25 = smov 0  }
   0x9   :  { %s13799_s26 = smov 0   ;;  %s13801_s27 = smov 0  }
   0xa LB: > { %s13741_s28 = smov [#allocation6]   ;;  %s13816_s30 = sadd.s32 4294967295, %s13739_s27   ;;  %s13739_s27 = sphi %s13801_s27, %s18211_s27   ;;  %s13735_s26 = sphi %s13799_s26, %s18210_s26   ;;  %s13731_s25 = sphi %s13797_s25, %s18209_s25   ;;  %s13727_s24 = sphi %s13795_s24, %s18208_s24  }
   0xb   : > { %s221_s29 = sshll.u32 %s13741_s28, 4  ;;  %p11000_p0 = scmp.ge.s32.totalorder %s13739_s27, 1  ;;  %s222_s29 = int_to_ptr.vmem [resolvable:$true] %s221_s29 }
   0xc   : > { %p17617_p1 = scmp.eq.s32.totalorder %s13816_s30, 0  ;;  %p209_p2 = scmp.lt.s32.totalorder %s13739_s27, 3 }
   0xd   : > { %s13742_s9 = smov [#allocation9]   ;;  %s13743_s12 = smov [#allocation12]  }
   0xe   : > { %p13821_p3 = pnand %p11000_p0, %p209_p2  ;;  %s248_s10 = sshll.u32 %s13742_s9, 4  ;;  %s249_s10 = int_to_ptr.vmem [resolvable:$true] %s248_s10 }
   0xf   : > { %s270_s13 = sshll.u32 %s13743_s12, 4  ;;  %s13490_s15 = scalar_lea.vmem %s222_s29, 49152  ;;  %s13834_s13 = int_to_ptr.vmem [resolvable:$true] %s270_s13 }
  0x10   : > { %s17668_s8 = scalar_select %p13821_p3, 1, 0 }
  0x11   : > { %p12115_p5 = pneg %p13821_p3  ;;  %p13491_p8 = scmp.ne.s32.totalorder %s222_s29, %s13490_s15 }
  0x12   : > { %p13498_p11 = scmp.lt.s32.totalorder %s222_s29, %s222_s29  ;;  %p13499_p12 = scmp.lt.s32.totalorder %s13490_s15, %s13490_s15 }
  0x13   : > { %p13830_p6 = pnand %p12115_p5, %p17617_p1 }
  0x14   : > { %p13500_p13 = por %p13499_p12, %p13498_p11 }
  0x15   : > { %p13838_p7 = pneg %p13830_p6 }
  0x17   : > { %p13493_p9 = pnand %p13491_p8, %p13838_p7 }
  0x19   : > { %p13494_p10 = pneg %p13493_p9 }
  0x1b   : > { %p13501_p0 = pnand %p13500_p13, %p13494_p10 }
  0x1d   : > { %13504 = shalt.err (!%p13501_p0)
}
  0x1e   : > { %s13744_s16 = smov 256   ;;  %s13745_s17 = smov 16  }
  0x1f   : > { %s17671_s1 = sld [smem:[#allocation95_spill]]  ;;  %s13516_s20 = scalar_lea.vmem %s249_s10, 64 }
  0x20   : > { %p13517_p2 = scmp.ne.s32.totalorder %s249_s10, %s13516_s20  ;;  %p13524_p9 = scmp.lt.s32.totalorder %s249_s10, %s249_s10 }
  0x21   : > { %p13525_p10 = scmp.lt.s32.totalorder %s13516_s20, %s13516_s20 }
  0x22   : > { %p13519_p5 = pnand %p13517_p2, %p13838_p7 }
  0x23   : > { %p13526_p11 = por %p13525_p10, %p13524_p9 }
  0x24   : > { %p13520_p8 = pneg %p13519_p5 }
  0x25   : > { %12118 = dma.hbm_to_vmem [thread:$0]  (!%p13830_p6), %s17671_s1, 49152, %s222_s29, [#allocation7], %s13744_s16, %s13744_s16, %s13745_s17  }
  0x26   : > { %p13527_p12 = pnand %p13526_p11, %p13520_p8 }
  0x28   : > { %13530 = shalt.err (!%p13527_p12)
}
  0x29   : > { %12124 = dma.hbm_to_vmem [thread:$0]  (!%p13830_p6), %s17612_s3, 64, %s249_s10, [#allocation10]  }
  0x2a   : > { %s13542_s23 = scalar_lea.vmem %s13834_s13, 64  ;;  %p13550_p5 = scmp.lt.s32.totalorder %s13834_s13, %s13834_s13 }
  0x2b   : > { %p13543_p13 = scmp.ne.s32.totalorder %s13834_s13, %s13542_s23  ;;  %p13551_p9 = scmp.lt.s32.totalorder %s13542_s23, %s13542_s23 }
  0x2d   : > { %p13545_p0 = pnand %p13543_p13, %p13838_p7  ;;  %p13552_p8 = por %p13551_p9, %p13550_p5 }
  0x2f   : > { %p13546_p2 = pneg %p13545_p0 }
  0x31   : > { %p13553_p10 = pnand %p13552_p8, %p13546_p2 }
  0x33   : > { %13556 = shalt.err (!%p13553_p10)
}
  0x34   : > { %12130 = dma.hbm_to_vmem [thread:$0]  (!%p13830_p6), %s17614_s5, 64, %s13834_s13, [#allocation13]  }
  0x35   : > { %s13746_s9 = smov [#allocation8]   ;;  %s13747_s12 = smov [#allocation11]  }
  0x36   : > { %s234_s10 = sshll.u32 %s13746_s9, 4  ;;  %s259_s15 = sshll.u32 %s13747_s12, 4  ;;  %s235_s10 = int_to_ptr.vmem [resolvable:$true] %s234_s10  ;;  %s260_s15 = int_to_ptr.vmem [resolvable:$true] %s259_s15 }
  0x37   : > { %s13568_s18 = scalar_lea.vmem %s235_s10, 49152  ;;  %p13576_p0 = scmp.lt.s32.totalorder %s235_s10, %s235_s10 }
  0x38   : > { %p13569_p11 = scmp.ne.s32.totalorder %s235_s10, %s13568_s18  ;;  %p13577_p2 = scmp.lt.s32.totalorder %s13568_s18, %s13568_s18 }
  0x3a   : > { %p13571_p12 = pnand %p13569_p11, %p13838_p7  ;;  %p13578_p5 = por %p13577_p2, %p13576_p0 }
  0x3c   : > { %p13572_p13 = pneg %p13571_p12 }
  0x3e   : > { %p13579_p9 = pnand %p13578_p5, %p13572_p13 }
  0x40   : > { %13582 = shalt.err (!%p13579_p9)
}
  0x41   : > { %12121 = dma.hbm_to_vmem [thread:$0]  (!%p13830_p6), %s17611_s2, 49152, %s235_s10, [#allocation7], %s13744_s16, %s13744_s16, %s13745_s17  }
  0x42   : > { %s13594_s20 = scalar_lea.vmem %s260_s15, 64  ;;  %p13602_p12 = scmp.lt.s32.totalorder %s260_s15, %s260_s15 }
  0x43   : > { %p13595_p8 = scmp.ne.s32.totalorder %s260_s15, %s13594_s20  ;;  %p13603_p0 = scmp.lt.s32.totalorder %s13594_s20, %s13594_s20 }
  0x45   : > { %p13597_p10 = pnand %p13595_p8, %p13838_p7  ;;  %p13604_p13 = por %p13603_p0, %p13602_p12 }
  0x47   : > { %p13598_p11 = pneg %p13597_p10 }
  0x49   : > { %p13605_p2 = pnand %p13604_p13, %p13598_p11 }
  0x4b   : > { %13608 = shalt.err (!%p13605_p2)
}
  0x4c   : > { %12127 = dma.hbm_to_vmem [thread:$0]  (!%p13830_p6), %s17613_s4, 64, %s260_s15, [#allocation10]  }
  0x4d   : > { %s13748_s23 = smov [#allocation14]  }
  0x4e   : > { %s281_s16 = sshll.u32 %s13748_s23, 4  ;;  %s282_s16 = int_to_ptr.vmem [resolvable:$true] %s281_s16 }
  0x4f   : > { %s13620_s17 = scalar_lea.vmem %s282_s16, 64  ;;  %p13628_p10 = scmp.lt.s32.totalorder %s282_s16, %s282_s16 }
  0x50   : > { %p13621_p5 = scmp.ne.s32.totalorder %s282_s16, %s13620_s17  ;;  %p13629_p4 = scmp.lt.s32.totalorder %s13620_s17, %s13620_s17 }
  0x52   : > { %p13623_p9 = pnand %p13621_p5, %p13838_p7  ;;  %p13630_p12 = por %p13629_p4, %p13628_p10 }
  0x54   : > { %p13624_p8 = pneg %p13623_p9 }
  0x56   : > { %p13631_p11 = pnand %p13630_p12, %p13624_p8 }
  0x58   : > { %13634 = shalt.err (!%p13631_p11)
}
  0x59   : > { %12133 = dma.hbm_to_vmem [thread:$0]  (!%p13830_p6), %s17615_s6, 64, %s282_s16, [#allocation13]  }
  0x5a   : > { %s10999_s14 = sadd.s32 4294967294, %s13739_s27   ;;  %s13897_s11 = sadd.s32 1, %s13739_s27  }
  0x5b   : > { %s30_s9 = ssub.s32 %s13739_s27, %s13897_s11  ;;  %s33_s10 = sadd.s32 1, %s13735_s26 }
  0x5c   : > { %p31_p4 = scmp.eq.s32.totalorder %s30_s9, 0  ;;  %p40_p7 = scmp.ne.s32.totalorder %s13735_s26, %s13731_s25 }
  0x5d   : > { %p41_p0 = scmp.eq.s32.totalorder %s13739_s27, 0  ;;  %p46_p13 = scmp.ne.s32.totalorder %s13731_s25, %s13727_s24 }
  0x5e   : > { %s13908_s12 = scalar_select %p31_p4, %s13735_s26, %s33_s10  }
  0x5f   : > { %p13910_p2 = por %p41_p0, %p40_p7  ;;  %p13916_p6 = por %p17617_p1, %p46_p13 }
  0x60   : > { %p196_p5 = scmp.eq.s32.totalorder %s13816_s30, 1  ;;  %p202_p9 = scmp.eq.s32.totalorder %s10999_s14, 1 }
  0x61   : > { %s17673_s18 = scalar_select %p13916_p6, 1, 0 }
  0x62   : > { %p12148_p8 = scmp.lt.s32.totalorder %s13739_s27, 2  ;;  %s292_s13 = sand.u32 1, %s13735_s26  }
  0x63   : > { %p13923_p10 = por %p196_p5, %p40_p7  ;;  %p13927_p12 = por %p202_p9, %p46_p13 }
  0x64   : > { %s11008_s21 = sshll.u32 %s292_s13, 9  ;;  %s12020_s22 = sshll.u32 %s13739_s27, 13 }
  0x65   : > { %s17674_s19 = scalar_select %p13923_p10, 1, 0 }
  0x66   : > { %s17675_s20 = scalar_select %p13927_p12, 1, 0 }
  0x67   : > { %s13935_s17 = scalar_lea.hbm %s17609_s0, %s12020_s22  ;;  %s296_s28 = scalar_lea.vmem [#allocation3], %s11008_s21 }
  0x68   : > { %s304_s29 = sshll.u32 %s296_s28, 4  ;;  %p13941_p11 = pnand %p12148_p8, %p13910_p2  ;;  %s13937_s29 = int_to_ptr.vmem [resolvable:$true] %s304_s29 }
  0x69   : > { %s13945_s9 = scalar_lea.sflag [#allocation4], %s292_s13  ;;  %s13635_s10 = scalar_lea.hbm %s13935_s17, 8192 }
  0x6a   : > { %p13636_p4 = scmp.ne.s32.totalorder %s13935_s17, %s13635_s10  ;;  %p13637_p7 = pneg %p13941_p11 }
  0x6b   : > { %s13640_s21 = scalar_lea.hbm %s17609_s0, 16384  ;;  %p13641_p2 = scmp.lt.s32.totalorder %s13935_s17, %s17609_s0 }
  0x6c   : > { %p13638_p0 = pnand %p13637_p7, %p13636_p4  ;;  %p13642_p5 = scmp.lt.s32.totalorder %s13640_s21, %s13635_s10 }
  0x6e   : > { %p13639_p13 = pneg %p13638_p0  ;;  %p13643_p9 = por %p13642_p5, %p13641_p2 }
  0x70   : > { %p13644_p8 = pnand %p13643_p9, %p13639_p13 }
  0x72   : > { %13647 = shalt.err (!%p13644_p8)
}
  0x73   : > { %s13648_s15 = scalar_lea.vmem %s13937_s29, 8192  ;;  %s13749_s13 = smov [#allocation3]  }
  0x74   : > { %p13649_p1 = scmp.ne.s32.totalorder %s13937_s29, %s13648_s15  ;;  %s13653_s1 = sshll.u32 %s13749_s13, 4  ;;  %s13654_s1 = int_to_ptr.vmem [resolvable:$false] %s13653_s1 }
  0x75   : > { %s13655_s22 = scalar_lea.vmem %s13654_s1, 16384  ;;  %p13656_p0 = scmp.lt.s32.totalorder %s13937_s29, %s13654_s1 }
  0x76   : > { %p13651_p12 = pnand %p13649_p1, %p13637_p7  ;;  %p13657_p10 = scmp.lt.s32.totalorder %s13655_s22, %s13648_s15 }
  0x78   : > { %p13652_p4 = pneg %p13651_p12  ;;  %p13658_p6 = por %p13657_p10, %p13656_p0 }
  0x7a   : > { %p13659_p3 = pnand %p13658_p6, %p13652_p4 }
  0x7c   : > { %13662 = shalt.err (!%p13659_p3)
}
  0x7d   : > { %s13750_s10 = smov 512   ;;  %s13751_s23 = smov 32  }
  0x7e   : > { %12137 = dma.hbm_to_vmem [thread:$0]  (!%p13941_p11), %s13935_s17, 8192, %s13937_s29, %s13945_s9, %s13750_s10, %s13750_s10, %s13751_s23  }
  0x7f   : > { %p17677_p1 = scmp.ne.s32.totalorder %s17668_s8, 0 }
  0x81   : > { %316 = sbr.rel (%p17677_p1) target bundleno = 1382 (0x566), region = 48 }
  0x86   : > { %s13969_s21 = sand.u32 1, %s13731_s25   ;;  %p17678_p3 = scmp.ne.s32.totalorder %s17673_s18, 0 }
  0x87   : > { %s11013_s1 = sshll.u32 %s13969_s21, 9  ;;  %s319_s16 = scalar_lea.sflag [#allocation4], %s13969_s21 }
  0x88   : > { %s13975_s28 = scalar_lea.vmem [#allocation3], %s11013_s1 }
  0x89   : > { %13706 = dma.done.wait (%p17678_p3), %s319_s16, 8192  }
  0x8a   : > { %13708 = vsyncadd (%p17678_p3), %s319_s16, 4294959104  ;;  %p17679_p6 = scmp.eq.s32.totalorder %s13816_s30, 0 }
  0x8c   : > { %13710 = dma.done.wait (%p17679_p6), [#allocation7], 98304   ;;  %p17680_p10 = pmov %p17679_p6 }
  0x8d   : > { %p17681_p12 = pmov %p17679_p6 }
  0x8e   : > { %13712 = vsyncadd (%p17680_p10), [#allocation7], 4294868992 }
  0x8f   : > { %13714 = dma.done.wait (%p17681_p12), [#allocation10], 128   ;;  %p17682_p11 = pmov %p17679_p6 }
  0x90   : > { %p17683_p7 = pmov %p17679_p6 }
  0x91   : > { %13716 = vsyncadd (%p17682_p11), [#allocation10], 4294967168 }
  0x92   : > { %13718 = dma.done.wait (%p17683_p7), [#allocation13], 128   ;;  %p17684_p13 = pmov %p17679_p6 }
  0x93   : > { %v12200_v0 = vld [vmem:[#allocation6 + $0x4e4] ss:$16 sps:$4 sm:$0xff]   ;;  %v12204_v2 = vld [vmem:[#allocation6 + $0x4e0] ss:$16 sps:$4 sm:$0xff]   ;;  %vm380_vm0 = vcmask 1040384   ;;  %vm383_vm2 = vcmask 1044484  }
  0x94   : > { %13720 = vsyncadd (%p17684_p13), [#allocation13], 4294967168  ;;  %v12202_v1 = vld [vmem:[#allocation6 + $0x6e4] ss:$16 sps:$4 sm:$0xff]   ;;  %2080 = vmatprep.subr.bf16.mxu0 %v12200_v0  ;;  %v12205_v3 = vld [vmem:[#allocation6 + $0x6e0] ss:$16 sps:$4 sm:$0xff]  }
  0x95   : > { %2193 = vmatprep.subr.bf16.mxu1 %v12202_v1  ;;  %v12206_v4 = vld [vmem:[#allocation6 + $0x4c4] ss:$16 sps:$4 sm:$0xff]   ;;  %2081 = vmatpush1.bf16.msra.mxu0 %v12204_v2  ;;  %v12210_v6 = vld [vmem:[#allocation6 + $0x4c0] ss:$16 sps:$4 sm:$0xff]   ;;  %vm381_vm1 = vsmask.f32 256 }
  0x96   : > { %2194 = vmatpush1.bf16.msra.mxu1 %v12205_v3  ;;  %v12208_v5 = vld [vmem:[#allocation6 + $0x6c4] ss:$16 sps:$4 sm:$0xff]   ;;  %2082 = vmatprep.subr.bf16.mxu0 %v12206_v4  ;;  %v12211_v7 = vld [vmem:[#allocation6 + $0x6c0] ss:$16 sps:$4 sm:$0xff]   ;;  %vm13995_vm3 = vmand %vm380_vm0, %vm381_vm1  ;;  %vm384_vm4 = vsmask.f32 4352 }
  0x97   : > { %2195 = vmatprep.subr.bf16.mxu1 %v12208_v5  ;;  %v12212_v8 = vld [vmem:[#allocation6 + $0x4a4] ss:$16 sps:$4 sm:$0xff]   ;;  %v12216_v10 = vld [vmem:[#allocation6 + $0x4a0] ss:$16 sps:$4 sm:$0xff]   ;;  %vm14000_vm5 = vmand %vm383_vm2, %vm384_vm4  ;;  %vm435_vm6 = vsmask.f32 7938 }
  0x98   : > { %v12214_v9 = vld [vmem:[#allocation6 + $0x6a4] ss:$16 sps:$4 sm:$0xff]   ;;  %v12217_v11 = vld [vmem:[#allocation6 + $0x6a0] ss:$16 sps:$4 sm:$0xff]   ;;  %vm14006_vm7 = vmand %vm380_vm0, %vm435_vm6  ;;  %vm437_vm8 = vsmask.f32 7954 }
  0x99   : > { %2083 = vmatpush1.bf16.msra.mxu0 %v12210_v6  ;;  %v12218_v12 = vld [vmem:[#allocation6 + $0x484] ss:$16 sps:$4 sm:$0xff]   ;;  %v12222_v14 = vld [vmem:[#allocation6 + $0x480] ss:$16 sps:$4 sm:$0xff]   ;;  %vm438_vm9 = vmand %vm383_vm2, %vm437_vm8  ;;  %v17691_v45 = vmov 0  ;;  %vm1034_vm12 = vcmask 1043456  }
  0x9a   : > { %2196 = vmatpush1.bf16.msra.mxu1 %v12211_v7  ;;  %2084 = vmatprep.subr.bf16.mxu0 %v12212_v8  ;;  %v12220_v13 = vld [vmem:[#allocation6 + $0x684] ss:$16 sps:$4 sm:$0xff]   ;;  %v12223_v15 = vld [vmem:[#allocation6 + $0x680] ss:$16 sps:$4 sm:$0xff]   ;;  %vm14016_vm10 = vmor %vm14000_vm5, %vm13995_vm3  ;;  %vm1036_vm13 = vcmask 1047556   ;;  %vm3881_vm4 = vcmask 1046532  }
  0x9b   : > { %2197 = vmatprep.subr.bf16.mxu1 %v12214_v9  ;;  %v12224_v16 = vld [vmem:[#allocation6 + $0x464] ss:$16 sps:$4 sm:$0xff]   ;;  %v12228_v18 = vld [vmem:[#allocation6 + $0x460] ss:$16 sps:$4 sm:$0xff]   ;;  %v17692_v45 = vsel %vm14016_vm10, 4294967295, %v17691_v45  ;;  %vm14022_vm11 = vmor %vm438_vm9, %vm14006_vm7  ;;  %s17137_s8 = scalar_lea.vmem [#allocation15], %s11013_s1 }
  0x9c   : > { %v12226_v17 = vld [vmem:[#allocation6 + $0x664] ss:$16 sps:$4 sm:$0xff]   ;;  %v12229_v19 = vld [vmem:[#allocation6 + $0x660] ss:$16 sps:$4 sm:$0xff]   ;;  %17693 = vst [vmem:[#allocation21_spill] sm:$0xff] %v17692_v45  ;;  %v489_v58 = vld [vmem:[%s13975_s28 + $0x8] sm:$0xff] }
  0x9d   : > { %2085 = vmatpush1.bf16.msra.mxu0 %v12216_v10  ;;  %v12230_v20 = vld [vmem:[#allocation6 + $0x444] ss:$16 sps:$4 sm:$0xff]   ;;  %v12234_v22 = vld [vmem:[#allocation6 + $0x440] ss:$16 sps:$4 sm:$0xff]   ;;  %v493_v62 = vld [vmem:[%s13975_s28 + $0x28] sm:$0xff]  ;;  %s12086_s18 = sshll.u32 %s13816_s30, 13 }
  0x9e   : > { %2198 = vmatpush1.bf16.msra.mxu1 %v12217_v11  ;;  %2086 = vmatprep.subr.bf16.mxu0 %v12218_v12  ;;  %v12232_v21 = vld [vmem:[#allocation6 + $0x644] ss:$16 sps:$4 sm:$0xff]   ;;  %v12235_v23 = vld [vmem:[#allocation6 + $0x640] ss:$16 sps:$4 sm:$0xff]   ;;  %v14039_v0 = vpack.c.bf16 %v493_v62, %v489_v58  ;;  %vm712_vm14 = vsmask.f32 4368  ;;  %vm14044_vm15 = vmand %vm1034_vm12, %vm435_vm6  ;;  %s17562_s9 = scalar_lea.hbm %s17616_s7, %s12086_s18 }
  0x9f   : > { %2199 = vmatprep.subr.bf16.mxu1 %v12220_v13  ;;  %v12236_v24 = vld [vmem:[#allocation6 + $0x424] ss:$16 sps:$4 sm:$0xff]   ;;  %v12240_v26 = vld [vmem:[#allocation6 + $0x420] ss:$16 sps:$4 sm:$0xff]   ;;  %vm14050_vm0 = vmand %vm1036_vm13, %vm437_vm8  ;;  %s10869_s17 = sshll.u32 %s17137_s8, 4  ;;  %s10855_s15 = scalar_lea.sflag [#allocation5], %s13969_s21  ;;  %s17564_s17 = int_to_ptr.vmem [resolvable:$true] %s10869_s17 }
  0xa0   : > { %v12238_v25 = vld [vmem:[#allocation6 + $0x624] ss:$16 sps:$4 sm:$0xff]   ;;  %v12241_v27 = vld [vmem:[#allocation6 + $0x620] ss:$16 sps:$4 sm:$0xff]   ;;  %v491_v12 = vld [vmem:[%s13975_s28 + $0x18] sm:$0xff]  ;;  %2112 = vmatprep.mubr.bf16.mxu0 %v14039_v0  ;;  %s13663_s30 = scalar_lea.vmem %s17564_s17, 8192 }
  0xa1   : > { %2087 = vmatpush1.bf16.msra.mxu0 %v12222_v14  ;;  %v12242_v28 = vld [vmem:[#allocation6 + $0x404] ss:$16 sps:$4 sm:$0xff]   ;;  %v12246_v30 = vld [vmem:[#allocation6 + $0x400] ss:$16 sps:$4 sm:$0xff]   ;;  %vm14075_vm2 = vmor %vm14050_vm0, %vm14044_vm15  ;;  %p13664_p2 = scmp.ne.s32.totalorder %s17564_s17, %s13663_s30  ;;  %p18205_p5 = scmp.ne.s32.totalorder %s17674_s19, 0 }
  0xa2   : > { %2200 = vmatpush1.bf16.msra.mxu1 %v12223_v15  ;;  %2088 = vmatprep.subr.bf16.mxu0 %v12224_v16  ;;  %v12244_v29 = vld [vmem:[#allocation6 + $0x604] ss:$16 sps:$4 sm:$0xff]   ;;  %v12247_v32 = vld [vmem:[#allocation6 + $0x600] ss:$16 sps:$4 sm:$0xff]   ;;  %vm14081_vm3 = vmor %vm381_vm1, %vm712_vm14  ;;  %vm3880_vm1 = vcmask 1042432   ;;  %s13752_s13 = smov [#allocation15]  }
  0xa3   : > { %2201 = vmatprep.subr.bf16.mxu1 %v12226_v17  ;;  %v12248_v33 = vld [vmem:[#allocation6 + $0x5e4] ss:$16 sps:$4 sm:$0xff]   ;;  %v12252_v36 = vld [vmem:[#allocation6 + $0x5e0] ss:$16 sps:$4 sm:$0xff]   ;;  %v495_v17 = vld [vmem:[%s13975_s28 + $0x38] sm:$0xff]  ;;  %p13665_p9 = pnand %p13664_p2, %p18205_p5  ;;  %s13667_s22 = sshll.u32 %s13752_s13, 4  ;;  %s13668_s22 = int_to_ptr.vmem [resolvable:$false] %s13667_s22 }
  0xa4   : > { %v12250_v34 = vld [vmem:[#allocation6 + $0x7e4] ss:$16 sps:$4 sm:$0xff]   ;;  %v12253_v37 = vld [vmem:[#allocation6 + $0x7e0] ss:$16 sps:$4 sm:$0xff]   ;;  %v14105_v2 = vld [vmem:[%s13975_s28 + $0x58] sm:$0xff]  ;;  %s13669_s10 = scalar_lea.vmem %s13668_s22, 16384  ;;  %p13670_p4 = scmp.lt.s32.totalorder %s17564_s17, %s13668_s22 }
  0xa5   : > { %2089 = vmatpush1.bf16.msra.mxu0 %v12228_v18  ;;  %v12254_v39 = vld [vmem:[#allocation6 + $0x5c4] ss:$16 sps:$4 sm:$0xff]   ;;  %v12258_v41 = vld [vmem:[#allocation6 + $0x5c0] ss:$16 sps:$4 sm:$0xff]   ;;  %vm14641_vm5 = vmor %vm3880_vm1, %vm3881_vm4  ;;  %p13666_p8 = pneg %p13665_p9  ;;  %p13671_p0 = scmp.lt.s32.totalorder %s13669_s10, %s13663_s30 }
  0xa6   : > { %2202 = vmatpush1.bf16.msra.mxu1 %v12229_v19  ;;  %2090 = vmatprep.subr.bf16.mxu0 %v12230_v20  ;;  %v12256_v40 = vld [vmem:[#allocation6 + $0x7c4] ss:$16 sps:$4 sm:$0xff]   ;;  %v12259_v42 = vld [vmem:[#allocation6 + $0x7c0] ss:$16 sps:$4 sm:$0xff]  }
  0xa7   : > { %2203 = vmatprep.subr.bf16.mxu1 %v12232_v21  ;;  %v12260_v43 = vld [vmem:[#allocation6 + $0x5a4] ss:$16 sps:$4 sm:$0xff]   ;;  %v12264_v46 = vld [vmem:[#allocation6 + $0x5a0] ss:$16 sps:$4 sm:$0xff]   ;;  %v14068_v21 = vpack.c.bf16 %v495_v17, %v491_v12  ;;  %p13672_p1 = por %p13671_p0, %p13670_p4 }
  0xa8   : > { %v12262_v44 = vld [vmem:[#allocation6 + $0x7a4] ss:$16 sps:$4 sm:$0xff]   ;;  %v12265_v47 = vld [vmem:[#allocation6 + $0x7a0] ss:$16 sps:$4 sm:$0xff]  }
  0xa9   : > { %2091 = vmatpush1.bf16.msra.mxu0 %v12234_v22  ;;  %v12266_v49 = vld [vmem:[#allocation6 + $0x584] ss:$16 sps:$4 sm:$0xff]   ;;  %v12270_v51 = vld [vmem:[#allocation6 + $0x580] ss:$16 sps:$4 sm:$0xff]   ;;  %2225 = vmatprep.mubr.bf16.mxu1 %v14068_v21  ;;  %p13673_p3 = pnand %p13672_p1, %p13666_p8 }
  0xaa   : > { %2204 = vmatpush1.bf16.msra.mxu1 %v12235_v23  ;;  %2092 = vmatprep.subr.bf16.mxu0 %v12236_v24  ;;  %v12268_v50 = vld [vmem:[#allocation6 + $0x784] ss:$16 sps:$4 sm:$0xff]   ;;  %v12271_v52 = vld [vmem:[#allocation6 + $0x780] ss:$16 sps:$4 sm:$0xff]  }
  0xab   : > { %2205 = vmatprep.subr.bf16.mxu1 %v12238_v25  ;;  %v387_v53 = vld [vmem:[#allocation2 + $0xb0] sm:$0x11]  ;;  %v440_v56 = vld [vmem:[#allocation2 + $0x20] sm:$0x11]  ;;  %v17700_v25 = vmov 0 }
  0xac   : > { %v12272_v54 = vld [vmem:[#allocation6 + $0x564] ss:$16 sps:$4 sm:$0xff]   ;;  %v388_v55 = vsel %vm14016_vm10, 0, %v387_v53  ;;  %v441_v60 = vsel %vm14022_vm11, 0, %v440_v56  ;;  %v12276_v5 = vld [vmem:[#allocation6 + $0x560] ss:$16 sps:$4 sm:$0xff]  }
  0xad   : > { %2093 = vmatpush1.bf16.msra.mxu0 %v12240_v26  ;;  %v14029_v57 = vld [vmem:[%s13975_s28] sm:$0xff]  ;;  %389 = vst [vmem:[#allocation2 + $0xb0] sm:$0x11] %v388_v55  ;;  %442 = vst [vmem:[#allocation2 + $0x20] sm:$0x11] %v441_v60  ;;  %v14059_v11 = vld [vmem:[%s13975_s28 + $0x10] sm:$0xff] }
  0xae   : > { %2206 = vmatpush1.bf16.msra.mxu1 %v12241_v27  ;;  %2094 = vmatprep.subr.bf16.mxu0 %v12242_v28  ;;  %v12274_v59 = vld [vmem:[#allocation6 + $0x764] ss:$16 sps:$4 sm:$0xff]   ;;  %v12021_v63 = vpack.c.bf16 %v489_v58, %v14029_v57  ;;  %v12277_v13 = vld [vmem:[#allocation6 + $0x760] ss:$16 sps:$4 sm:$0xff]   ;;  %v12022_v18 = vpack.c.bf16 %v491_v12, %v14059_v11  ;;  %v17701_v25 = vsel %vm14075_vm2, 4294967295, %v17700_v25  ;;  %v14095_v60 = vld [vmem:[%s13975_s28 + $0x48] sm:$0xff] }
  0xaf   : > { %2207 = vmatprep.subr.bf16.mxu1 %v12244_v29  ;;  %v14035_v61 = vld [vmem:[%s13975_s28 + $0x20] sm:$0xff]  ;;  %v390_v3 = vld [vmem:[#allocation2 + $0x110] sm:$0x11]  ;;  %17702 = vst [vmem:[#allocation22_spill] sm:$0xff] %v17701_v25  ;;  %v17703_v29 = vmov 0 }
  0xb0   : > { %v12023_v1 = vpack.c.bf16 %v493_v62, %v14035_v61  ;;  %v443_v4 = vld [vmem:[#allocation2 + $0xa0] sm:$0x11]  ;;  %v715_v6 = vshrl.u32 %v12021_v63, 16  ;;  %v718_v7 = vshll.u32 %v12021_v63, 16  ;;  %v391_v9 = vsel %vm14016_vm10, 0, %v390_v3  ;;  %v14064_v16 = vld [vmem:[%s13975_s28 + $0x30] sm:$0xff] }
  0xb1   : > { %2095 = vmatpush1.bf16.msra.mxu0 %v12246_v30  ;;  %v444_v10 = vsel %vm14022_vm11, 0, %v443_v4  ;;  %392 = vst [vmem:[#allocation2 + $0x110] sm:$0x11] %v391_v9  ;;  %v12278_v19 = vld [vmem:[#allocation6 + $0x544] ss:$16 sps:$4 sm:$0xff]   ;;  %v12024_v22 = vpack.c.bf16 %v495_v17, %v14064_v16  ;;  %v722_v26 = vshrl.u32 %v12022_v18, 16 }
  0xb2   : > { %2208 = vmatpush1.bf16.msra.mxu1 %v12247_v32  ;;  %2096 = vmatprep.subr.bf16.mxu0 %v12248_v33  ;;  %v730_v14 = vshrl.u32 %v12023_v1, 16  ;;  %v733_v15 = vshll.u32 %v12023_v1, 16  ;;  %445 = vst [vmem:[#allocation2 + $0xa0] sm:$0x11] %v444_v10  ;;  %v717_v20 = vrot.slane %v715_v6, 7  ;;  %v725_v27 = vshll.u32 %v12022_v18, 16 }
  0xb3   : > { %2209 = vmatprep.subr.bf16.mxu1 %v12250_v34  ;;  %v12280_v23 = vld [vmem:[#allocation6 + $0x744] ss:$16 sps:$4 sm:$0xff]   ;;  %v12282_v28 = vld [vmem:[#allocation6 + $0x540] ss:$16 sps:$4 sm:$0xff]   ;;  %v17704_v29 = vsel %vm14081_vm3, 4294967295, %v17703_v29  ;;  %v739_v32 = vshrl.u32 %v12024_v22, 16 }
  0xb4   : > { %v732_v24 = vrot.slane %v730_v14, 7  ;;  %17705 = vst [vmem:[#allocation23_spill] sm:$0xff] %v17704_v29  ;;  %v720_v30 = vor.u32 %v718_v7, %v717_v20  ;;  %v728_v31 = vrot.slane %v717_v20, 4  ;;  %v742_v33 = vshll.u32 %v12024_v22, 16  ;;  %v12283_v34 = vld [vmem:[#allocation6 + $0x740] ss:$16 sps:$4 sm:$0xff]  }
  0xb5   : > { %2097 = vmatpush2.bf16.msra.mxu0 %v12252_v36  ;;  %v724_v38 = vrot.slane %v722_v26, 7  ;;  %v12290_v56 = vld [vmem:[#allocation6 + $0x504] ss:$16 sps:$4 sm:$0xff]   ;;  %v14102_v1 = vld [vmem:[%s13975_s28 + $0x68] sm:$0xff]  ;;  %v12294_v8 = vld [vmem:[#allocation6 + $0x500] ss:$16 sps:$4 sm:$0xff]  }
  0xb6   : > { %2210 = vmatpush2.bf16.msra.mxu1 %v12253_v37  ;;  %2098 = vmatprep.subr.bf16.mxu0 %v12254_v39  ;;  %v735_v35 = vor.u32 %v733_v15, %v732_v24  ;;  %v746_v36 = vrot.slane %v732_v24, 4  ;;  %v1039_v37 = vld [vmem:[#allocation2 + $0xb0] sm:$0xff]  ;;  %v14110_v6 = vld [vmem:[%s13975_s28 + $0x40] sm:$0xff]  ;;  %v396_v14 = vld [vmem:[#allocation2 + $0xc8] sm:$0x11] }
  0xb7   : > { %2211 = vmatprep.subr.bf16.mxu1 %v12256_v40  ;;  %v12284_v39 = vld [vmem:[#allocation6 + $0x524] ss:$16 sps:$4 sm:$0xff]   ;;  %v1040_v40 = vsel %vm14075_vm2, %v720_v30, %v1039_v37  ;;  %v12295_v9 = vld [vmem:[#allocation6 + $0x700] ss:$16 sps:$4 sm:$0xff]   ;;  %v12025_v12 = vpack.c.bf16 %v14095_v60, %v14110_v6  ;;  %v12298_v18 = vld [vmem:[#allocation6 + $0x4ec] ss:$16 sps:$4 sm:$0xff]  }
  0xb8   : > { %1041 = vst [vmem:[#allocation2 + $0xb0] sm:$0xff] %v1040_v40  ;;  %v12292_v58 = vld [vmem:[#allocation6 + $0x704] ss:$16 sps:$4 sm:$0xff]   ;;  %v12718_v25 = vld [vmem:[#allocation6 + $0x8cc] ss:$16 sps:$4 sm:$0xff]  }
  0xb9   : > { %2099 = vmatpush2.bf16.msra.mxu0 %v12258_v41  ;;  %v1047_v41 = vld [vmem:[#allocation2 + $0x20] sm:$0x11]  ;;  %v393_v3 = vld [vmem:[#allocation2 + $0x30] sm:$0x11]  ;;  %v749_v24 = vshrl.u32 %v12025_v12, 16  ;;  %v752_v26 = vshll.u32 %v12025_v12, 16 }
  0xba   : > { %2212 = vmatpush2.bf16.msra.mxu1 %v12259_v42  ;;  %2100 = vmatprep.subr.bf16.mxu0 %v12260_v43  ;;  %v741_v42 = vrot.slane %v739_v32, 7  ;;  %v12286_v43 = vld [vmem:[#allocation6 + $0x724] ss:$16 sps:$4 sm:$0xff]   ;;  %v394_v4 = vsel %vm14016_vm10, 0, %v393_v3  ;;  %v12310_v3 = vld [vmem:[#allocation6 + $0x4ac] ss:$16 sps:$4 sm:$0xff]  }
  0xbb   : > { %2213 = vmatprep.subr.bf16.mxu1 %v12262_v44  ;;  %v736_v44 = vsel %vm14081_vm3, %v728_v31, %v735_v35  ;;  %v1050_v55 = vld [vmem:[#allocation2 + $0xa0] sm:$0x11]  ;;  %395 = vst [vmem:[#allocation2 + $0x30] sm:$0x11] %v394_v4  ;;  %v449_v15 = vld [vmem:[#allocation2 + $0x70] sm:$0x11]  ;;  %v14137_v35 = vpack.c.bf16 %v14035_v61, %v14029_v57 }
  0xbc   : > { %1045 = vst [vmem:[#allocation2 + $0x120] sm:$0xff] %v736_v44  ;;  %v747_v53 = vrot.slane %v741_v42, 4  ;;  %v14113_v7 = vld [vmem:[%s13975_s28 + $0x60] sm:$0xff]  ;;  %v14122_v17 = vld [vmem:[%s13975_s28 + $0x50] sm:$0xff]  ;;  %v450_v20 = vsel %vm14022_vm11, 0, %v449_v15  ;;  %v751_v37 = vrot.slane %v749_v24, 7 }
  0xbd   : > { %2101 = vmatpush2.bf16.msra.mxu0 %v12264_v46  ;;  %v1048_v46 = vsel %vm14016_vm10, %v746_v36, %v1047_v41  ;;  %v12026_v22 = vpack.c.bf16 %v14105_v2, %v14122_v17  ;;  %451 = vst [vmem:[#allocation2 + $0x70] sm:$0x11] %v450_v20  ;;  %v14132_v30 = vld [vmem:[%s13975_s28 + $0x70] sm:$0xff]  ;;  %v12301_v31 = vld [vmem:[#allocation6 + $0x6ec] ss:$16 sps:$4 sm:$0xff]   ;;  %v14173_v20 = vld [vmem:[%s13975_s28 + $0xa0] sm:$0xff] }
  0xbe   : > { %2214 = vmatpush2.bf16.msra.mxu1 %v12265_v47  ;;  %2102 = vmatprep.subr.bf16.mxu0 %v12266_v49  ;;  %v727_v47 = vor.u32 %v725_v27, %v724_v38  ;;  %v737_v49 = vrot.slane %v724_v38, 4  ;;  %1049 = vst [vmem:[#allocation2 + $0x20] sm:$0x11] %v1048_v46  ;;  %v1051_v63 = vsel %vm14016_vm10, %v747_v53, %v1050_v55  ;;  %v12296_v36 = vld [vmem:[#allocation6 + $0x4e8] ss:$16 sps:$4 sm:$0xff]  }
  0xbf   : > { %2215 = vmatprep.subr.bf16.mxu1 %v12268_v50  ;;  %v12288_v50 = vld [vmem:[#allocation6 + $0x520] ss:$16 sps:$4 sm:$0xff]   ;;  %1052 = vst [vmem:[#allocation2 + $0xa0] sm:$0x11] %v1051_v63  ;;  %v12304_v44 = vld [vmem:[#allocation6 + $0x4cc] ss:$16 sps:$4 sm:$0xff]   ;;  %v754_v46 = vor.u32 %v752_v26, %v751_v37 }
  0xc0   : > { %v12307_v57 = vld [vmem:[#allocation6 + $0x6cc] ss:$16 sps:$4 sm:$0xff]   ;;  %v399_v12 = vld [vmem:[#allocation2 + $0x130] sm:$0x11]  ;;  %v12311_v24 = vld [vmem:[#allocation6 + $0x6a8] ss:$16 sps:$4 sm:$0xff]  }
  0xc1   : > { %2103 = vmatpush2.bf16.msra.mxu0 %v12270_v51  ;;  %v12289_v51 = vld [vmem:[#allocation6 + $0x720] ss:$16 sps:$4 sm:$0xff]   ;;  %v12313_v4 = vld [vmem:[#allocation6 + $0x6ac] ss:$16 sps:$4 sm:$0xff]   ;;  %v400_v15 = vsel %vm14016_vm10, 0, %v399_v12 }
  0xc2   : > { %2216 = vmatpush2.bf16.msra.mxu1 %v12271_v52  ;;  %2104 = vmatprep.subr.bf16.mxu0 %v12272_v54  ;;  %v744_v52 = vor.u32 %v742_v33, %v741_v42  ;;  %v1042_v54 = vld [vmem:[#allocation2 + $0x110] sm:$0xff]  ;;  %v756_v33 = vshrl.u32 %v12026_v22, 16  ;;  %401 = vst [vmem:[#allocation2 + $0x130] sm:$0x11] %v400_v15  ;;  %v12320_v12 = vld [vmem:[#allocation6 + $0x468] ss:$16 sps:$4 sm:$0xff]  }
  0xc3   : > { %2217 = vmatprep.subr.bf16.mxu1 %v12274_v59  ;;  %v1043_v59 = vsel %vm14075_vm2, %v727_v47, %v1042_v54  ;;  %v762_v47 = vrot.slane %v751_v37, 4  ;;  %v1053_v61 = vld [vmem:[#allocation2 + $0x30] sm:$0xff]  ;;  %v14145_v54 = vpack.c.bf16 %v14102_v1, %v14095_v60 }
  0xc4   : > { %v745_v62 = vsel %vm14081_vm3, %v737_v49, %v744_v52  ;;  %1044 = vst [vmem:[#allocation2 + $0x110] sm:$0xff] %v1043_v59  ;;  %v758_v40 = vrot.slane %v756_v33, 7  ;;  %v506_v33 = vld [vmem:[%s13975_s28 + $0x90] sm:$0xff] }
  0xc5   : > { %2105 = vmatpush2.bf16.msra.mxu0 %v12276_v5  ;;  %1046 = vst [vmem:[#allocation2 + $0xe8] sm:$0xff] %v745_v62  ;;  %v446_v5 = vld [vmem:[#allocation2 + $0xa8] sm:$0x11] }
  0xc6   : > { %2218 = vmatpush2.bf16.msra.mxu1 %v12277_v13  ;;  %2106 = vmatprep.subr.bf16.mxu0 %v12278_v19  ;;  %v447_v10 = vsel %vm14022_vm11, 0, %v446_v5  ;;  %v12027_v13 = vpack.c.bf16 %v14102_v1, %v14113_v7  ;;  %v397_v19 = vsel %vm14016_vm10, 0, %v396_v14  ;;  %v771_v52 = vrot.slane %v758_v40, 4  ;;  %v505_v5 = vld [vmem:[%s13975_s28 + $0x88] sm:$0xff] }
  0xc7   : > { %2219 = vmatprep.subr.bf16.mxu1 %v12280_v23  ;;  %448 = vst [vmem:[#allocation2 + $0xa8] sm:$0x11] %v447_v10  ;;  %v503_v23 = vld [vmem:[%s13975_s28 + $0x78] sm:$0xff]  ;;  %398 = vst [vmem:[#allocation2 + $0xc8] sm:$0x11] %v397_v19  ;;  %v14170_v19 = vld [vmem:[%s13975_s28 + $0x80] sm:$0xff] }
  0xc8   : > { %v764_v27 = vshrl.u32 %v12027_v13, 16  ;;  %v12028_v32 = vpack.c.bf16 %v503_v23, %v14132_v30  ;;  %v14148_v55 = vpack.c.bf16 %v503_v23, %v14105_v2  ;;  %v1064_v2 = vld [vmem:[#allocation2 + $0x70] sm:$0x11]  ;;  %v507_v10 = vld [vmem:[%s13975_s28 + $0x98] sm:$0xff] }
  0xc9   : > { %2107 = vmatpush2.bf16.msra.mxu0 %v12282_v28  ;;  %v767_v28 = vshll.u32 %v12027_v13, 16  ;;  %v12308_v23 = vld [vmem:[#allocation6 + $0x4a8] ss:$16 sps:$4 sm:$0xff]  }
  0xca   : > { %2220 = vmatpush2.bf16.msra.mxu1 %v12283_v34  ;;  %2108 = vmatprep.subr.bf16.mxu0 %v12284_v39  ;;  %v759_v34 = vshll.u32 %v12026_v22, 16  ;;  %v766_v38 = vrot.slane %v764_v27, 7  ;;  %v14141_v39 = vpack.c.bf16 %v14064_v16, %v14059_v11  ;;  %v773_v41 = vshrl.u32 %v12028_v32, 16  ;;  %v12302_v11 = vld [vmem:[#allocation6 + $0x4c8] ss:$16 sps:$4 sm:$0xff]  }
  0xcb   : > { %2221 = vmatprep.subr.bf16.mxu1 %v12286_v43  ;;  %v776_v42 = vshll.u32 %v12028_v32, 16  ;;  %v12299_v43 = vld [vmem:[#allocation6 + $0x6e8] ss:$16 sps:$4 sm:$0xff]   ;;  %v14179_v22 = vpack.c.bf16 %v14113_v7, %v14110_v6  ;;  %v12029_v27 = vpack.c.bf16 %v505_v5, %v14170_v19  ;;  %v14188_v6 = vpack.c.bf16 %v14132_v30, %v14122_v17  ;;  %v12316_v7 = vld [vmem:[#allocation6 + $0x48c] ss:$16 sps:$4 sm:$0xff]   ;;  %v510_v17 = vld [vmem:[%s13975_s28 + $0xb0] sm:$0xff] }
  0xcc   : > { %v769_v49 = vor.u32 %v767_v28, %v766_v38  ;;  %v775_v53 = vrot.slane %v773_v41, 7  ;;  %v12305_v16 = vld [vmem:[#allocation6 + $0x6c8] ss:$16 sps:$4 sm:$0xff]   ;;  %v12319_v30 = vld [vmem:[#allocation6 + $0x68c] ss:$16 sps:$4 sm:$0xff]  }
  0xcd   : > { %2109 = vmatpush2.bf16.msra.mxu0 %v12288_v50  ;;  %v780_v50 = vrot.slane %v766_v38, 4  ;;  %v455_v32 = vld [vmem:[#allocation2 + $0x88] sm:$0x11]  ;;  %v12030_v38 = vpack.c.bf16 %v507_v10, %v506_v33  ;;  %v786_v41 = vshll.u32 %v12029_v27, 16 }
  0xce   : > { %2222 = vmatpush2.bf16.msra.mxu1 %v12289_v51  ;;  %2110 = vmatprep.subr.bf16.mxu0 %v12290_v56  ;;  %v761_v51 = vor.u32 %v759_v34, %v758_v40  ;;  %v770_v56 = vsel %vm14081_vm3, %v762_v47, %v769_v49  ;;  %v1061_v59 = vld [vmem:[#allocation2 + $0xa8] sm:$0x11]  ;;  %v778_v62 = vor.u32 %v776_v42, %v775_v53  ;;  %v781_v63 = vrot.slane %v775_v53, 4  ;;  %v511_v34 = vld [vmem:[%s13975_s28 + $0xb8] sm:$0xff] }
  0xcf   : > { %2223 = vmatprep.subr.bf16.mxu1 %v12292_v58  ;;  %v1054_v58 = vsel %vm14075_vm2, %v754_v46, %v1053_v61  ;;  %1059 = vst [vmem:[#allocation2 + $0x68] sm:$0xff] %v770_v56  ;;  %v1062_v60 = vsel %vm14016_vm10, %v780_v50, %v1061_v59  ;;  %v1056_v1 = vld [vmem:[#allocation2 + $0xc8] sm:$0xff]  ;;  %v456_v37 = vsel %vm14022_vm11, 0, %v455_v32  ;;  %v783_v40 = vshrl.u32 %v12029_v27, 16  ;;  %v515_v32 = vld [vmem:[%s13975_s28 + $0xd8] sm:$0xff] }
  0xd0   : > { %1055 = vst [vmem:[#allocation2 + $0x30] sm:$0xff] %v1054_v58  ;;  %1063 = vst [vmem:[#allocation2 + $0xa8] sm:$0x11] %v1062_v60  ;;  %v779_v13 = vsel %vm14081_vm3, %v771_v52, %v778_v62  ;;  %v1065_v14 = vsel %vm14016_vm10, %v781_v63, %v1064_v2  ;;  %v790_v46 = vshrl.u32 %v12030_v38, 16  ;;  %v793_v47 = vshll.u32 %v12030_v38, 16  ;;  %v1067_v63 = vld [vmem:[#allocation2 + $0x130] sm:$0xff] }
  0xd1   : > { %2111 = vmatpush2.bf16.msra.mxu0 %v12294_v8  ;;  %v1057_v8 = vsel %vm14075_vm2, %v761_v51, %v1056_v1  ;;  %1060 = vst [vmem:[#allocation2 + $0x98] sm:$0xff] %v779_v13  ;;  %1066 = vst [vmem:[#allocation2 + $0x70] sm:$0x11] %v1065_v14  ;;  %v12314_v49 = vld [vmem:[#allocation6 + $0x488] ss:$16 sps:$4 sm:$0xff]   ;;  %v785_v61 = vrot.slane %v783_v40, 7 }
  0xd2   : > { %2224 = vmatpush2.bf16.msra.mxu1 %v12295_v9  ;;  %2306 = vmatprep.subr.bf16.mxu0 %v12298_v18  ;;  %v509_v9 = vld [vmem:[%s13975_s28 + $0xa8] sm:$0xff]  ;;  %1058 = vst [vmem:[#allocation2 + $0xc8] sm:$0xff] %v1057_v8  ;;  %v452_v18 = vld [vmem:[#allocation2 + $0x140] sm:$0x11]  ;;  %457 = vst [vmem:[#allocation2 + $0x88] sm:$0x11] %v456_v37 }
  0xd3   : > { %2419 = vmatprep.subr.bf16.mxu1 %v12301_v31  ;;  %v453_v26 = vsel %vm14022_vm11, 0, %v452_v18  ;;  %v12031_v28 = vpack.c.bf16 %v509_v9, %v14173_v20  ;;  %v402_v31 = vld [vmem:[#allocation2 + $0x78] sm:$0x11]  ;;  %v14196_v50 = vpack.c.bf16 %v509_v9, %v505_v5  ;;  %v792_v52 = vrot.slane %v790_v46, 7  ;;  %v513_v14 = vld [vmem:[%s13975_s28 + $0xc8] sm:$0xff] }
  0xd4   : > { %2113 = vmatmul.mubr.bf16.vlgmr.msra.gmra.mxu0 %v14137_v35  ;;  %454 = vst [vmem:[#allocation2 + $0x140] sm:$0x11] %v453_v26  ;;  %v788_v56 = vor.u32 %v786_v41, %v785_v61  ;;  %v796_v58 = vrot.slane %v785_v61, 4  ;;  %v12322_v62 = vld [vmem:[#allocation6 + $0x46c] ss:$16 sps:$4 sm:$0xff]   ;;  %v14206_v5 = vpack.c.bf16 %v14173_v20, %v14170_v19  ;;  %v14215_v18 = vpack.c.bf16 %v510_v17, %v506_v33  ;;  %v512_v41 = vld [vmem:[%s13975_s28 + $0xc0] sm:$0xff] }
  0xd5   : > { %2226 = vmatmul.mubr.bf16.vlgmr.msra.gmra.mxu1 %v14141_v39  ;;  %2307 = vmatpush1.bf16.msra.mxu0 %v12296_v36  ;;  %v403_v36 = vsel %vm14016_vm10, 0, %v402_v31  ;;  %v798_v42 = vshrl.u32 %v12031_v28, 16  ;;  %v795_v1 = vor.u32 %v793_v47, %v792_v52  ;;  %v805_v2 = vrot.slane %v792_v52, 4  ;;  %v12323_v13 = vld [vmem:[#allocation6 + $0x668] ss:$16 sps:$4 sm:$0xff]   ;;  %v514_v61 = vld [vmem:[%s13975_s28 + $0xd0] sm:$0xff] }
  0xd6   : > { %2420 = vmatpush1.bf16.msra.mxu1 %v12299_v43  ;;  %2308 = vmatprep.subr.bf16.mxu0 %v12304_v44  ;;  %v801_v43 = vshll.u32 %v12031_v28, 16  ;;  %404 = vst [vmem:[#allocation2 + $0x78] sm:$0x11] %v403_v36  ;;  %v12032_v44 = vpack.c.bf16 %v511_v34, %v510_v17  ;;  %v1068_v9 = vsel %vm14075_vm2, %v788_v56, %v1067_v63  ;;  %v12328_v26 = vld [vmem:[#allocation6 + $0x44c] ss:$16 sps:$4 sm:$0xff]  }
  0xd7   : > { %2421 = vmatprep.subr.bf16.mxu1 %v12307_v57  ;;  %2122 = vmatprep.mubr.bf16.mxu0 %v14145_v54  ;;  %v14198_v57 = vpack.c.bf16 %v511_v34, %v507_v10  ;;  %v800_v51 = vrot.slane %v798_v42, 7  ;;  %1069 = vst [vmem:[#allocation2 + $0x130] sm:$0xff] %v1068_v9  ;;  %v12331_v27 = vld [vmem:[#allocation6 + $0x64c] ss:$16 sps:$4 sm:$0xff]   ;;  %v405_v34 = vld [vmem:[#allocation2 + $0xc0] sm:$0x11] }
  0xd8   : > { %2235 = vmatprep.mubr.bf16.mxu1 %v14148_v55  ;;  %v807_v53 = vshrl.u32 %v12032_v44, 16  ;;  %v517_v28 = vld [vmem:[%s13975_s28 + $0xe8] sm:$0xff]  ;;  %v406_v38 = vsel %vm14016_vm10, 0, %v405_v34  ;;  %v458_v40 = vld [vmem:[#allocation2 + $0xb8] sm:$0x11]  ;;  %v516_v42 = vld [vmem:[%s13975_s28 + $0xe0] sm:$0xff] }
  0xd9   : > { %2309 = vmatpush1.bf16.msra.mxu0 %v12302_v11  ;;  %v810_v11 = vshll.u32 %v12032_v44, 16  ;;  %v803_v59 = vor.u32 %v801_v43, %v800_v51  ;;  %v814_v60 = vrot.slane %v800_v51, 4  ;;  %v14226_v37 = vpack.c.bf16 %v517_v28, %v513_v14  ;;  %v12326_v43 = vld [vmem:[#allocation6 + $0x448] ss:$16 sps:$4 sm:$0xff]   ;;  %407 = vst [vmem:[#allocation2 + $0xc0] sm:$0x11] %v406_v38 }
  0xda   : > { %2422 = vmatpush1.bf16.msra.mxu1 %v12305_v16  ;;  %2310 = vmatprep.subr.bf16.mxu0 %v12310_v3  ;;  %v12317_v16 = vld [vmem:[#allocation6 + $0x688] ss:$16 sps:$4 sm:$0xff]   ;;  %v809_v3 = vrot.slane %v807_v53, 7  ;;  %v12033_v44 = vpack.c.bf16 %v513_v14, %v512_v41  ;;  %v12035_v46 = vpack.c.bf16 %v517_v28, %v516_v42  ;;  %v12337_v9 = vld [vmem:[#allocation6 + $0x62c] ss:$16 sps:$4 sm:$0xff]  }
  0xdb   : > { %2423 = vmatprep.subr.bf16.mxu1 %v12313_v4  ;;  %v12325_v4 = vld [vmem:[#allocation6 + $0x66c] ss:$16 sps:$4 sm:$0xff]   ;;  %v804_v8 = vsel %vm14081_vm3, %v796_v58, %v803_v59  ;;  %v1075_v10 = vld [vmem:[#allocation2 + $0x140] sm:$0x11]  ;;  %v12329_v51 = vld [vmem:[#allocation6 + $0x648] ss:$16 sps:$4 sm:$0xff]  }
  0xdc   : > { %2123 = vmatmul.mubr.bf16.gmra.mxu0 %v14179_v22  ;;  %1073 = vst [vmem:[#allocation2 + $0xe0] sm:$0xff] %v804_v8  ;;  %v1076_v15 = vsel %vm14016_vm10, %v814_v60, %v1075_v10  ;;  %v812_v19 = vor.u32 %v810_v11, %v809_v3  ;;  %v815_v20 = vrot.slane %v809_v3, 4  ;;  %v408_v47 = vld [vmem:[#allocation2 + $0x168] sm:$0x11]  ;;  %v12034_v11 = vpack.c.bf16 %v515_v32, %v514_v61  ;;  %v518_v60 = vld [vmem:[%s13975_s28 + $0xf0] sm:$0xff] }
  0xdd   : > { %2236 = vmatmul.mubr.bf16.gmra.mxu1 %v14188_v6  ;;  %2311 = vmatpush1.bf16.msra.mxu0 %v12308_v23  ;;  %v1070_v23 = vld [vmem:[#allocation2 + $0x78] sm:$0xff]  ;;  %1077 = vst [vmem:[#allocation2 + $0x140] sm:$0x11] %v1076_v15  ;;  %v409_v52 = vsel %vm14016_vm10, 0, %v408_v47  ;;  %v820_v56 = vshll.u32 %v12033_v44, 16  ;;  %v832_v58 = vshrl.u32 %v12035_v46, 16  ;;  %v14246_v3 = vpack.c.bf16 %v516_v42, %v512_v41 }
  0xde   : > { %2424 = vmatpush1.bf16.msra.mxu1 %v12311_v24  ;;  %2312 = vmatprep.subr.bf16.mxu0 %v12316_v7  ;;  %v1078_v24 = vld [vmem:[#allocation2 + $0x88] sm:$0x11]  ;;  %v1071_v31 = vsel %vm14075_vm2, %v795_v1, %v1070_v23  ;;  %v519_v7 = vld [vmem:[%s13975_s28 + $0xf8] sm:$0xff]  ;;  %v813_v33 = vsel %vm14081_vm3, %v805_v2, %v812_v19  ;;  %v835_v59 = vshll.u32 %v12035_v46, 16  ;;  %410 = vst [vmem:[#allocation2 + $0x168] sm:$0x11] %v409_v52 }
  0xdf   : > { %2425 = vmatprep.subr.bf16.mxu1 %v12319_v30  ;;  %2132 = vmatprep.mubr.bf16.mxu0 %v14196_v50  ;;  %1072 = vst [vmem:[#allocation2 + $0x78] sm:$0xff] %v1071_v31  ;;  %v1079_v36 = vsel %vm14016_vm10, %v815_v20, %v1078_v24  ;;  %1074 = vst [vmem:[#allocation2 + $0x38] sm:$0xff] %v813_v33  ;;  %v14232_v17 = vpack.c.bf16 %v519_v7, %v515_v32  ;;  %v459_v30 = vsel %vm14022_vm11, 0, %v458_v40  ;;  %v12334_v2 = vld [vmem:[#allocation6 + $0x42c] ss:$16 sps:$4 sm:$0xff]  }
  0xe0   : > { %2245 = vmatprep.mubr.bf16.mxu1 %v14198_v57  ;;  %1080 = vst [vmem:[#allocation2 + $0x88] sm:$0x11] %v1079_v36  ;;  %460 = vst [vmem:[#allocation2 + $0xb8] sm:$0x11] %v459_v30  ;;  %v824_v63 = vshrl.u32 %v12034_v11, 16  ;;  %v827_v1 = vshll.u32 %v12034_v11, 16  ;;  %v14248_v10 = vpack.c.bf16 %v518_v60, %v514_v61 }
  0xe1   : > { %2313 = vmatpush1.bf16.msra.mxu0 %v12314_v49  ;;  %v461_v49 = vld [vmem:[#allocation2 + $0x138] sm:$0x11]  ;;  %v834_v8 = vrot.slane %v832_v58, 7  ;;  %v521_v42 = vld [vmem:[%s13975_s28 + $0x108] sm:$0xff] }
  0xe2   : > { %2426 = vmatpush1.bf16.msra.mxu1 %v12317_v16  ;;  %2314 = vmatprep.subr.bf16.mxu0 %v12322_v62  ;;  %v462_v53 = vsel %vm14022_vm11, 0, %v461_v49  ;;  %v817_v16 = vshrl.u32 %v12033_v44, 16  ;;  %v12036_v62 = vpack.c.bf16 %v519_v7, %v518_v60  ;;  %v12332_v24 = vld [vmem:[#allocation6 + $0x428] ss:$16 sps:$4 sm:$0xff]   ;;  %v12340_v7 = vld [vmem:[#allocation6 + $0x40c] ss:$16 sps:$4 sm:$0xff]  }
  0xe3   : > { %2427 = vmatprep.subr.bf16.mxu1 %v12325_v4  ;;  %463 = vst [vmem:[#allocation2 + $0x138] sm:$0x11] %v462_v53  ;;  %v837_v20 = vor.u32 %v835_v59, %v834_v8  ;;  %v848_v23 = vrot.slane %v834_v8, 4  ;;  %v12338_v38 = vld [vmem:[#allocation6 + $0x408] ss:$16 sps:$4 sm:$0xff]  }
  0xe4   : > { %2133 = vmatmul.mubr.bf16.gmra.mxu0 %v14206_v5  ;;  %v819_v4 = vrot.slane %v817_v16, 7  ;;  %v844_v14 = vshll.u32 %v12036_v62, 16  ;;  %v12341_v40 = vld [vmem:[#allocation6 + $0x608] ss:$16 sps:$4 sm:$0xff]   ;;  %v12343_v41 = vld [vmem:[#allocation6 + $0x60c] ss:$16 sps:$4 sm:$0xff]  }
  0xe5   : > { %2246 = vmatmul.mubr.bf16.gmra.mxu1 %v14215_v18  ;;  %2315 = vmatpush1.bf16.msra.mxu0 %v12320_v12  ;;  %v826_v12 = vrot.slane %v824_v63, 7  ;;  %v1084_v46 = vld [vmem:[#allocation2 + $0x168] sm:$0xff]  ;;  %v523_v52 = vld [vmem:[%s13975_s28 + $0x118] sm:$0xff]  ;;  %v524_v63 = vld [vmem:[%s13975_s28 + $0x120] sm:$0xff] }
  0xe6   : > { %2428 = vmatpush1.bf16.msra.mxu1 %v12323_v13  ;;  %2316 = vmatprep.subr.bf16.mxu0 %v12328_v26  ;;  %v841_v13 = vshrl.u32 %v12036_v62, 16  ;;  %v822_v15 = vor.u32 %v820_v56, %v819_v4  ;;  %v830_v19 = vrot.slane %v819_v4, 4  ;;  %v12335_v26 = vld [vmem:[#allocation6 + $0x628] ss:$16 sps:$4 sm:$0xff]   ;;  %v520_v62 = vld [vmem:[%s13975_s28 + $0x100] sm:$0xff] }
  0xe7   : > { %2429 = vmatprep.subr.bf16.mxu1 %v12331_v27  ;;  %2142 = vmatprep.mubr.bf16.mxu0 %v14226_v37  ;;  %v1081_v27 = vld [vmem:[#allocation2 + $0xc0] sm:$0xff]  ;;  %v829_v28 = vor.u32 %v827_v1, %v826_v12  ;;  %v839_v31 = vrot.slane %v826_v12, 4  ;;  %v1089_v36 = vld [vmem:[#allocation2 + $0xb8] sm:$0x11]  ;;  %v525_v49 = vld [vmem:[%s13975_s28 + $0x128] sm:$0xff] }
  0xe8   : > { %2255 = vmatprep.mubr.bf16.mxu1 %v14232_v17  ;;  %v843_v32 = vrot.slane %v841_v13, 7  ;;  %v838_v34 = vsel %vm14081_vm3, %v830_v19, %v837_v20  ;;  %v1082_v33 = vsel %vm14075_vm2, %v822_v15, %v1081_v27  ;;  %v527_v53 = vld [vmem:[%s13975_s28 + $0x138] sm:$0xff]  ;;  %v464_v60 = vld [vmem:[#allocation2 + $0x148] sm:$0x11]  ;;  %v12039_v4 = vpack.c.bf16 %v525_v49, %v524_v63  ;;  %v414_v8 = vld [vmem:[#allocation2 + $0x40] sm:$0x11] }
  0xe9   : > { %2317 = vmatpush1.bf16.msra.mxu0 %v12326_v43  ;;  %1083 = vst [vmem:[#allocation2 + $0xc0] sm:$0xff] %v1082_v33  ;;  %1087 = vst [vmem:[#allocation2 + $0x58] sm:$0xff] %v838_v34  ;;  %v1090_v43 = vsel %vm14016_vm10, %v848_v23, %v1089_v36  ;;  %v1085_v61 = vsel %vm14075_vm2, %v829_v28, %v1084_v46  ;;  %v411_v11 = vld [vmem:[#allocation2 + $0x18] sm:$0x11]  ;;  %v14270_v58 = vpack.c.bf16 %v527_v53, %v523_v52  ;;  %v522_v12 = vld [vmem:[%s13975_s28 + $0x110] sm:$0xff] }
  0xea   : > { %2430 = vmatpush1.bf16.msra.mxu1 %v12329_v51  ;;  %2318 = vmatprep.subr.bf16.mxu0 %v12334_v2  ;;  %v846_v30 = vor.u32 %v844_v14, %v843_v32  ;;  %v849_v44 = vrot.slane %v843_v32, 4  ;;  %v1092_v47 = vld [vmem:[#allocation2 + $0x138] sm:$0x11]  ;;  %1091 = vst [vmem:[#allocation2 + $0xb8] sm:$0x11] %v1090_v43  ;;  %v14262_v51 = vpack.c.bf16 %v525_v49, %v521_v42  ;;  %1086 = vst [vmem:[#allocation2 + $0x168] sm:$0xff] %v1085_v61 }
  0xeb   : > { %2431 = vmatprep.subr.bf16.mxu1 %v12337_v9  ;;  %v412_v59 = vsel %vm14016_vm10, 0, %v411_v11  ;;  %v465_v1 = vsel %vm14022_vm11, 0, %v464_v60  ;;  %v12037_v2 = vpack.c.bf16 %v521_v42, %v520_v62  ;;  %v467_v9 = vld [vmem:[#allocation2 + $0x178] sm:$0x11]  ;;  %v14281_v13 = vpack.c.bf16 %v524_v63, %v520_v62  ;;  %v526_v19 = vld [vmem:[%s13975_s28 + $0x130] sm:$0xff] }
  0xec   : > { %2143 = vmatmul.mubr.bf16.gmra.mxu0 %v14246_v3  ;;  %v847_v16 = vsel %vm14081_vm3, %v839_v31, %v846_v30  ;;  %v1093_v56 = vsel %vm14016_vm10, %v849_v44, %v1092_v47  ;;  %413 = vst [vmem:[#allocation2 + $0x18] sm:$0x11] %v412_v59  ;;  %466 = vst [vmem:[#allocation2 + $0x148] sm:$0x11] %v465_v1  ;;  %v415_v14 = vsel %vm14016_vm10, 0, %v414_v8  ;;  %v468_v15 = vsel %vm14022_vm11, 0, %v467_v9 }
  0xed   : > { %2256 = vmatmul.mubr.bf16.gmra.mxu1 %v14248_v10  ;;  %2319 = vmatpush1.bf16.msra.mxu0 %v12332_v24  ;;  %1088 = vst [vmem:[#allocation2 + $0x8] sm:$0xff] %v847_v16  ;;  %1094 = vst [vmem:[#allocation2 + $0x138] sm:$0x11] %v1093_v56  ;;  %v12038_v20 = vpack.c.bf16 %v523_v52, %v522_v12  ;;  %v851_v23 = vshrl.u32 %v12037_v2, 16  ;;  %v854_v24 = vshll.u32 %v12037_v2, 16  ;;  %v869_v27 = vshll.u32 %v12039_v4, 16 }
  0xee   : > { %2432 = vmatpush1.bf16.msra.mxu1 %v12335_v26  ;;  %2320 = vmatprep.subr.bf16.mxu0 %v12340_v7  ;;  %v866_v26 = vshrl.u32 %v12039_v4, 16  ;;  %416 = vst [vmem:[#allocation2 + $0x40] sm:$0x11] %v415_v14  ;;  %469 = vst [vmem:[#allocation2 + $0x178] sm:$0x11] %v468_v15  ;;  %v14288_v31 = vpack.c.bf16 %v526_v19, %v522_v12  ;;  %v12040_v32 = vpack.c.bf16 %v527_v53, %v526_v19  ;;  %v529_v2 = vld [vmem:[%s13975_s28 + $0x148] sm:$0xff] }
  0xef   : > { %2433 = vmatprep.subr.bf16.mxu1 %v12343_v41  ;;  %2152 = vmatprep.mubr.bf16.mxu0 %v14262_v51  ;;  %v12344_v28 = vld [vmem:[#allocation6 + $0x5e8] ss:$16 sps:$4 sm:$0xff]   ;;  %v858_v7 = vshrl.u32 %v12038_v20, 16  ;;  %v861_v34 = vshll.u32 %v12038_v20, 16  ;;  %v12346_v33 = vld [vmem:[#allocation6 + $0x5ec] ss:$16 sps:$4 sm:$0xff]  }
  0xf0   : > { %2265 = vmatprep.mubr.bf16.mxu1 %v14270_v58  ;;  %v853_v36 = vrot.slane %v851_v23, 7  ;;  %v868_v41 = vrot.slane %v866_v26, 7  ;;  %v12347_v42 = vld [vmem:[#allocation6 + $0x7e8] ss:$16 sps:$4 sm:$0xff]   ;;  %v12349_v43 = vld [vmem:[#allocation6 + $0x7ec] ss:$16 sps:$4 sm:$0xff]  }
  0xf1   : > { %2321 = vmatpush1.bf16.msra.mxu0 %v12338_v38  ;;  %v860_v38 = vrot.slane %v858_v7, 7  ;;  %v878_v30 = vshll.u32 %v12040_v32, 16  ;;  %v12350_v61 = vld [vmem:[#allocation6 + $0x5c8] ss:$16 sps:$4 sm:$0xff]   ;;  %v12352_v52 = vld [vmem:[#allocation6 + $0x5cc] ss:$16 sps:$4 sm:$0xff]  }
  0xf2   : > { %2434 = vmatpush1.bf16.msra.mxu1 %v12341_v40  ;;  %v875_v40 = vshrl.u32 %v12040_v32, 16  ;;  %v856_v44 = vor.u32 %v854_v24, %v853_v36  ;;  %v864_v46 = vrot.slane %v853_v36, 4  ;;  %v871_v47 = vor.u32 %v869_v27, %v868_v41  ;;  %2322 = vmatprep.subr.bf16.mxu0 %v12346_v33  ;;  %v12353_v59 = vld [vmem:[#allocation6 + $0x7c8] ss:$16 sps:$4 sm:$0xff]   ;;  %v12355_v1 = vld [vmem:[#allocation6 + $0x7cc] ss:$16 sps:$4 sm:$0xff]  }
  0xf3   : > { %v882_v49 = vrot.slane %v868_v41, 4  ;;  %2435 = vmatprep.subr.bf16.mxu1 %v12349_v43  ;;  %v1095_v53 = vld [vmem:[#allocation2 + $0x18] sm:$0xff]  ;;  %v863_v11 = vor.u32 %v861_v34, %v860_v38  ;;  %v873_v16 = vrot.slane %v860_v38, 4  ;;  %v1103_v63 = vld [vmem:[#allocation2 + $0x148] sm:$0x11]  ;;  %v528_v33 = vld [vmem:[%s13975_s28 + $0x140] sm:$0xff] }
  0xf4   : > { %2153 = vmatmul.mubr.bf16.gmra.mxu0 %v14281_v13  ;;  %v877_v56 = vrot.slane %v875_v40, 7  ;;  %v872_v60 = vsel %vm14081_vm3, %v864_v46, %v871_v47  ;;  %v1096_v62 = vsel %vm14075_vm2, %v856_v44, %v1095_v53  ;;  %v533_v15 = vld [vmem:[%s13975_s28 + $0x168] sm:$0xff]  ;;  %v531_v23 = vld [vmem:[%s13975_s28 + $0x158] sm:$0xff]  ;;  %v417_v26 = vld [vmem:[#allocation2 + $0x50] sm:$0x11]  ;;  %v12041_v43 = vpack.c.bf16 %v529_v2, %v528_v33 }
  0xf5   : > { %2266 = vmatmul.mubr.bf16.gmra.mxu1 %v14288_v31  ;;  %2323 = vmatpush2.bf16.msra.mxu0 %v12344_v28  ;;  %1097 = vst [vmem:[#allocation2 + $0x18] sm:$0xff] %v1096_v62  ;;  %1101 = vst [vmem:[#allocation2] sm:$0xff] %v872_v60  ;;  %v1104_v4 = vsel %vm14016_vm10, %v882_v49, %v1103_v63  ;;  %v1098_v12 = vld [vmem:[#allocation2 + $0x40] sm:$0xff]  ;;  %v1106_v14 = vld [vmem:[#allocation2 + $0x178] sm:$0x11]  ;;  %v14302_v20 = vpack.c.bf16 %v533_v15, %v529_v2  ;;  %v418_v7 = vsel %vm14016_vm10, 0, %v417_v26 }
  0xf6   : > { %2436 = vmatpush2.bf16.msra.mxu1 %v12347_v42  ;;  %2324 = vmatprep.subr.bf16.mxu0 %v12352_v52  ;;  %v880_v8 = vor.u32 %v878_v30, %v877_v56  ;;  %v883_v9 = vrot.slane %v877_v56, 4  ;;  %1105 = vst [vmem:[#allocation2 + $0x148] sm:$0x11] %v1104_v4  ;;  %v1099_v19 = vsel %vm14075_vm2, %v863_v11, %v1098_v12  ;;  %v535_v24 = vld [vmem:[%s13975_s28 + $0x178] sm:$0xff]  ;;  %v470_v34 = vld [vmem:[#allocation2 + $0x60] sm:$0x11] }
  0xf7   : > { %2437 = vmatprep.subr.bf16.mxu1 %v12355_v1  ;;  %1100 = vst [vmem:[#allocation2 + $0x40] sm:$0xff] %v1099_v19  ;;  %v14310_v32 = vpack.c.bf16 %v535_v24, %v531_v23  ;;  %v532_v36 = vld [vmem:[%s13975_s28 + $0x160] sm:$0xff]  ;;  %2162 = vmatprep.mubr.bf16.mxu0 %v14302_v20  ;;  %419 = vst [vmem:[#allocation2 + $0x50] sm:$0x11] %v418_v7  ;;  %v471_v41 = vsel %vm14022_vm11, 0, %v470_v34  ;;  %v530_v44 = vld [vmem:[%s13975_s28 + $0x150] sm:$0xff] }
  0xf8   : > { %v881_v27 = vsel %vm14081_vm3, %v873_v16, %v880_v8  ;;  %v1107_v28 = vsel %vm14016_vm10, %v883_v9, %v1106_v14  ;;  %v14319_v42 = vpack.c.bf16 %v532_v36, %v528_v33  ;;  %v12043_v38 = vpack.c.bf16 %v533_v15, %v532_v36  ;;  %v420_v40 = vld [vmem:[#allocation2 + $0x48] sm:$0x11]  ;;  %472 = vst [vmem:[#allocation2 + $0x60] sm:$0x11] %v471_v41  ;;  %v534_v49 = vld [vmem:[%s13975_s28 + $0x170] sm:$0xff] }
  0xf9   : > { %2325 = vmatpush2.bf16.msra.mxu0 %v12350_v61  ;;  %1102 = vst [vmem:[#allocation2 + $0x158] sm:$0xff] %v881_v27  ;;  %1108 = vst [vmem:[#allocation2 + $0x178] sm:$0x11] %v1107_v28  ;;  %v473_v30 = vld [vmem:[#allocation2 + $0x28] sm:$0x11]  ;;  %2275 = vmatprep.mubr.bf16.mxu1 %v14310_v32  ;;  %v421_v46 = vsel %vm14016_vm10, 0, %v420_v40  ;;  %v12042_v61 = vpack.c.bf16 %v531_v23, %v530_v44  ;;  %v12044_v60 = vpack.c.bf16 %v535_v24, %v534_v49 }
  0xfa   : > { %2438 = vmatpush2.bf16.msra.mxu1 %v12353_v59  ;;  %v474_v47 = vsel %vm14022_vm11, 0, %v473_v30  ;;  %v885_v52 = vshrl.u32 %v12041_v43, 16  ;;  %v888_v53 = vshll.u32 %v12041_v43, 16  ;;  %v900_v11 = vshrl.u32 %v12043_v38, 16  ;;  %422 = vst [vmem:[#allocation2 + $0x48] sm:$0x11] %v421_v46 }
  0xfb   : > { %v903_v16 = vshll.u32 %v12043_v38, 16  ;;  %475 = vst [vmem:[#allocation2 + $0x28] sm:$0x11] %v474_v47  ;;  %v12356_v56 = vld [vmem:[#allocation6 + $0x5a8] ss:$16 sps:$4 sm:$0xff]   ;;  %v14329_v59 = vpack.c.bf16 %v534_v49, %v530_v44  ;;  %v892_v62 = vshrl.u32 %v12042_v61, 16 }
  0xfc   : > { %2163 = vmatmul.mubr.bf16.gmra.mxu0 %v14319_v42  ;;  %v895_v63 = vshll.u32 %v12042_v61, 16  ;;  %v12358_v1 = vld [vmem:[#allocation6 + $0x5ac] ss:$16 sps:$4 sm:$0xff]   ;;  %v887_v2 = vrot.slane %v885_v52, 7  ;;  %v902_v4 = vrot.slane %v900_v11, 7  ;;  %v909_v14 = vshrl.u32 %v12044_v60, 16 }
  0xfd   : > { %v12359_v8 = vld [vmem:[#allocation6 + $0x7a8] ss:$16 sps:$4 sm:$0xff]   ;;  %v12361_v9 = vld [vmem:[#allocation6 + $0x7ac] ss:$16 sps:$4 sm:$0xff]   ;;  %v894_v12 = vrot.slane %v892_v62, 7  ;;  %v912_v15 = vshll.u32 %v12044_v60, 16  ;;  %2276 = vmatmul.mubr.bf16.gmra.mxu1 %v14329_v59  ;;  %2326 = vmatprep.subr.bf16.mxu0 %v12358_v1 }
  0xfe   : > { %v890_v19 = vor.u32 %v888_v53, %v887_v2  ;;  %v898_v23 = vrot.slane %v887_v2, 4  ;;  %v905_v26 = vor.u32 %v903_v16, %v902_v4  ;;  %v916_v27 = vrot.slane %v902_v4, 4  ;;  %2439 = vmatprep.subr.bf16.mxu1 %v12361_v9  ;;  %2327 = vmatpush2.bf16.msra.mxu0 %v12356_v56  ;;  %v12362_v24 = vld [vmem:[#allocation6 + $0x588] ss:$16 sps:$4 sm:$0xff]   ;;  %v12364_v28 = vld [vmem:[#allocation6 + $0x58c] ss:$16 sps:$4 sm:$0xff]  }
  0xff   : > { %v1109_v7 = vld [vmem:[#allocation2 + $0x50] sm:$0xff]  ;;  %v897_v34 = vor.u32 %v895_v63, %v894_v12  ;;  %v907_v33 = vrot.slane %v894_v12, 4  ;;  %v911_v36 = vrot.slane %v909_v14, 7  ;;  %2440 = vmatpush2.bf16.msra.mxu1 %v12359_v8  ;;  %v12365_v41 = vld [vmem:[#allocation6 + $0x788] ss:$16 sps:$4 sm:$0xff]   ;;  %2328 = vmatprep.subr.bf16.mxu0 %v12364_v28  ;;  %v536_v9 = vld [vmem:[%s13975_s28 + $0x180] sm:$0xff] }
 0x100   : > { %v906_v43 = vsel %vm14081_vm3, %v898_v23, %v905_v26  ;;  %v1110_v38 = vsel %vm14075_vm2, %v890_v19, %v1109_v7  ;;  %v1117_v40 = vld [vmem:[#allocation2 + $0x60] sm:$0x11]  ;;  %v12367_v30 = vld [vmem:[#allocation6 + $0x78c] ss:$16 sps:$4 sm:$0xff]   ;;  %v426_v26 = vld [vmem:[#allocation2 + $0x10] sm:$0x11] }
 0x101   : > { %v537_v44 = vld [vmem:[%s13975_s28 + $0x188] sm:$0xff]  ;;  %1111 = vst [vmem:[#allocation2 + $0x50] sm:$0xff] %v1110_v38  ;;  %1115 = vst [vmem:[#allocation2 + $0xf0] sm:$0xff] %v906_v43  ;;  %v1118_v46 = vsel %vm14016_vm10, %v916_v27, %v1117_v40  ;;  %v914_v47 = vor.u32 %v912_v15, %v911_v36  ;;  %v917_v49 = vrot.slane %v911_v36, 4  ;;  %2441 = vmatprep.subr.bf16.mxu1 %v12367_v30  ;;  %v539_v56 = vld [vmem:[%s13975_s28 + $0x198] sm:$0xff]  ;;  %v427_v28 = vsel %vm14016_vm10, 0, %v426_v26 }
 0x102   : > { %v1112_v61 = vld [vmem:[#allocation2 + $0x48] sm:$0xff]  ;;  %1119 = vst [vmem:[#allocation2 + $0x60] sm:$0x11] %v1118_v46  ;;  %2329 = vmatpush2.bf16.msra.mxu0 %v12362_v24  ;;  %v543_v60 = vld [vmem:[%s13975_s28 + $0x1b8] sm:$0xff]  ;;  %v476_v8 = vld [vmem:[#allocation2 + $0x80] sm:$0x11]  ;;  %v12045_v19 = vpack.c.bf16 %v537_v44, %v536_v9 }
 0x103   : > { %v1120_v52 = vld [vmem:[#allocation2 + $0x28] sm:$0x11]  ;;  %v1113_v11 = vsel %vm14075_vm2, %v897_v34, %v1112_v61  ;;  %v423_v62 = vld [vmem:[#allocation2 + $0xd8] sm:$0x11]  ;;  %v915_v63 = vsel %vm14081_vm3, %v907_v33, %v914_v47  ;;  %2442 = vmatpush2.bf16.msra.mxu1 %v12365_v41  ;;  %v14350_v2 = vpack.c.bf16 %v543_v60, %v539_v56  ;;  %v540_v12 = vld [vmem:[%s13975_s28 + $0x1a0] sm:$0xff]  ;;  %v477_v14 = vsel %vm14022_vm11, 0, %v476_v8 }
 0x104   : > { %v541_v53 = vld [vmem:[%s13975_s28 + $0x1a8] sm:$0xff]  ;;  %1114 = vst [vmem:[#allocation2 + $0x48] sm:$0xff] %v1113_v11  ;;  %v1121_v1 = vsel %vm14016_vm10, %v917_v49, %v1120_v52  ;;  %v424_v4 = vsel %vm14016_vm10, 0, %v423_v62  ;;  %1116 = vst [vmem:[#allocation2 + $0x128] sm:$0xff] %v915_v63  ;;  %v14359_v15 = vpack.c.bf16 %v540_v12, %v536_v9  ;;  %v479_v27 = vld [vmem:[#allocation2 + $0x160] sm:$0x11] }
 0x105   : > { %v14342_v16 = vpack.c.bf16 %v541_v53, %v537_v44  ;;  %1122 = vst [vmem:[#allocation2 + $0x28] sm:$0x11] %v1121_v1  ;;  %425 = vst [vmem:[#allocation2 + $0xd8] sm:$0x11] %v424_v4  ;;  %v12047_v23 = vpack.c.bf16 %v541_v53, %v540_v12  ;;  %v538_v24 = vld [vmem:[%s13975_s28 + $0x190] sm:$0xff]  ;;  %2285 = vmatprep.mubr.bf16.mxu1 %v14350_v2  ;;  %v480_v7 = vsel %vm14022_vm11, 0, %v479_v27 }
 0x106   : > { %478 = vst [vmem:[#allocation2 + $0x80] sm:$0x11] %v477_v14  ;;  %v542_v34 = vld [vmem:[%s13975_s28 + $0x1b0] sm:$0xff]  ;;  %v12046_v33 = vpack.c.bf16 %v539_v56, %v538_v24  ;;  %v919_v36 = vshrl.u32 %v12045_v19, 16  ;;  %v922_v41 = vshll.u32 %v12045_v19, 16 }
 0x107   : > { %2172 = vmatprep.mubr.bf16.mxu0 %v14342_v16  ;;  %v934_v43 = vshrl.u32 %v12047_v23, 16  ;;  %v937_v38 = vshll.u32 %v12047_v23, 16  ;;  %428 = vst [vmem:[#allocation2 + $0x10] sm:$0x11] %v427_v28  ;;  %481 = vst [vmem:[#allocation2 + $0x160] sm:$0x11] %v480_v7  ;;  %v14369_v30 = vpack.c.bf16 %v542_v34, %v538_v24  ;;  %v12048_v44 = vpack.c.bf16 %v543_v60, %v542_v34 }
 0x108   : > { %2173 = vmatmul.mubr.bf16.gmra.mxu0 %v14359_v15  ;;  %v12368_v40 = vld [vmem:[#allocation6 + $0x568] ss:$16 sps:$4 sm:$0xff]   ;;  %v926_v46 = vshrl.u32 %v12046_v33, 16  ;;  %v929_v47 = vshll.u32 %v12046_v33, 16  ;;  %v12370_v49 = vld [vmem:[#allocation6 + $0x56c] ss:$16 sps:$4 sm:$0xff]  }
 0x109   : > { %v921_v61 = vrot.slane %v919_v36, 7  ;;  %v936_v52 = vrot.slane %v934_v43, 7  ;;  %v12371_v53 = vld [vmem:[#allocation6 + $0x768] ss:$16 sps:$4 sm:$0xff]   ;;  %v12373_v11 = vld [vmem:[#allocation6 + $0x76c] ss:$16 sps:$4 sm:$0xff]   ;;  %2286 = vmatmul.mubr.bf16.gmra.mxu1 %v14369_v30  ;;  %2330 = vmatprep.subr.bf16.mxu0 %v12370_v49 }
 0x10a   : > { %v928_v56 = vrot.slane %v926_v46, 7  ;;  %v943_v62 = vshrl.u32 %v12048_v44, 16  ;;  %v946_v63 = vshll.u32 %v12048_v44, 16  ;;  %2443 = vmatprep.subr.bf16.mxu1 %v12373_v11  ;;  %2331 = vmatpush2.bf16.msra.mxu0 %v12368_v40  ;;  %v12374_v60 = vld [vmem:[#allocation6 + $0x548] ss:$16 sps:$4 sm:$0xff]  }
 0x10b   : > { %v924_v1 = vor.u32 %v922_v41, %v921_v61  ;;  %v932_v4 = vrot.slane %v921_v61, 4  ;;  %v939_v8 = vor.u32 %v937_v38, %v936_v52  ;;  %v950_v9 = vrot.slane %v936_v52, 4  ;;  %v12376_v12 = vld [vmem:[#allocation6 + $0x54c] ss:$16 sps:$4 sm:$0xff]   ;;  %2444 = vmatpush2.bf16.msra.mxu1 %v12371_v53  ;;  %v12377_v27 = vld [vmem:[#allocation6 + $0x748] ss:$16 sps:$4 sm:$0xff]  }
 0x10c   : > { %v1123_v14 = vld [vmem:[#allocation2 + $0xd8] sm:$0xff]  ;;  %v931_v19 = vor.u32 %v929_v47, %v928_v56  ;;  %v941_v23 = vrot.slane %v928_v56, 4  ;;  %v945_v26 = vrot.slane %v943_v62, 7  ;;  %2332 = vmatprep.subr.bf16.mxu0 %v12376_v12  ;;  %v545_v33 = vld [vmem:[%s13975_s28 + $0x1c8] sm:$0xff] }
 0x10d   : > { %v940_v24 = vsel %vm14081_vm3, %v932_v4, %v939_v8  ;;  %v1124_v28 = vsel %vm14075_vm2, %v924_v1, %v1123_v14  ;;  %v1131_v7 = vld [vmem:[#allocation2 + $0x80] sm:$0x11]  ;;  %v12379_v34 = vld [vmem:[#allocation6 + $0x74c] ss:$16 sps:$4 sm:$0xff]  }
 0x10e   : > { %1125 = vst [vmem:[#allocation2 + $0xd8] sm:$0xff] %v1124_v28  ;;  %1129 = vst [vmem:[#allocation2 + $0x150] sm:$0xff] %v940_v24  ;;  %v1132_v36 = vsel %vm14016_vm10, %v950_v9, %v1131_v7  ;;  %v948_v41 = vor.u32 %v946_v63, %v945_v26  ;;  %v951_v43 = vrot.slane %v945_v26, 4  ;;  %v1126_v38 = vld [vmem:[#allocation2 + $0x10] sm:$0xff]  ;;  %v1134_v40 = vld [vmem:[#allocation2 + $0x160] sm:$0x11]  ;;  %2445 = vmatprep.subr.bf16.mxu1 %v12379_v34  ;;  %2333 = vmatpush2.bf16.msra.mxu0 %v12374_v60 }
 0x10f   : > { %v549_v44 = vld [vmem:[%s13975_s28 + $0x1e8] sm:$0xff]  ;;  %1133 = vst [vmem:[#allocation2 + $0x80] sm:$0x11] %v1132_v36  ;;  %v1127_v46 = vsel %vm14075_vm2, %v931_v19, %v1126_v38  ;;  %v547_v49 = vld [vmem:[%s13975_s28 + $0x1d8] sm:$0xff]  ;;  %2446 = vmatpush2.bf16.msra.mxu1 %v12377_v27  ;;  %v482_v63 = vld [vmem:[#allocation2 + $0x170] sm:$0x11] }
 0x110   : > { %v14382_v47 = vpack.c.bf16 %v549_v44, %v545_v33  ;;  %v551_v61 = vld [vmem:[%s13975_s28 + $0x1f8] sm:$0xff]  ;;  %v949_v53 = vsel %vm14081_vm3, %v941_v23, %v948_v41  ;;  %1128 = vst [vmem:[#allocation2 + $0x10] sm:$0xff] %v1127_v46  ;;  %v1135_v11 = vsel %vm14016_vm10, %v951_v43, %v1134_v40  ;;  %v544_v1 = vld [vmem:[%s13975_s28 + $0x1c0] sm:$0xff]  ;;  %v483_v8 = vsel %vm14022_vm11, 0, %v482_v63  ;;  %v485_v19 = vld [vmem:[#allocation2 + $0xd0] sm:$0x11] }
 0x111   : > { %v429_v52 = vld [vmem:[#allocation2 + $0xf8] sm:$0x11]  ;;  %v14390_v56 = vpack.c.bf16 %v551_v61, %v547_v49  ;;  %v548_v4 = vld [vmem:[%s13975_s28 + $0x1e0] sm:$0xff]  ;;  %1130 = vst [vmem:[#allocation2 + $0x90] sm:$0xff] %v949_v53  ;;  %1136 = vst [vmem:[#allocation2 + $0x160] sm:$0x11] %v1135_v11  ;;  %v12049_v60 = vpack.c.bf16 %v545_v33, %v544_v1 }
 0x112   : > { %v430_v62 = vsel %vm14016_vm10, 0, %v429_v52  ;;  %2182 = vmatprep.mubr.bf16.mxu0 %v14382_v47  ;;  %v14399_v9 = vpack.c.bf16 %v548_v4, %v544_v1  ;;  %v12051_v12 = vpack.c.bf16 %v549_v44, %v548_v4  ;;  %v432_v14 = vld [vmem:[#allocation2 + $0x118] sm:$0x11]  ;;  %v546_v23 = vld [vmem:[%s13975_s28 + $0x1d0] sm:$0xff]  ;;  %484 = vst [vmem:[#allocation2 + $0x170] sm:$0x11] %v483_v8 }
 0x113   : > { %431 = vst [vmem:[#allocation2 + $0xf8] sm:$0x11] %v430_v62  ;;  %2295 = vmatprep.mubr.bf16.mxu1 %v14390_v56  ;;  %v433_v26 = vsel %vm14016_vm10, 0, %v432_v14  ;;  %v486_v27 = vsel %vm14022_vm11, 0, %v485_v19  ;;  %v550_v24 = vld [vmem:[%s13975_s28 + $0x1f0] sm:$0xff]  ;;  %v12050_v28 = vpack.c.bf16 %v547_v49, %v546_v23  ;;  %v953_v7 = vshrl.u32 %v12049_v60, 16 }
 0x114   : > { %v956_v34 = vshll.u32 %v12049_v60, 16  ;;  %v968_v36 = vshrl.u32 %v12051_v12, 16  ;;  %v971_v41 = vshll.u32 %v12051_v12, 16  ;;  %2183 = vmatmul.mubr.bf16.gmra.mxu0 %v14399_v9  ;;  %434 = vst [vmem:[#allocation2 + $0x118] sm:$0x11] %v433_v26  ;;  %v14409_v43 = vpack.c.bf16 %v550_v24, %v546_v23 }
 0x115   : > { %487 = vst [vmem:[#allocation2 + $0xd0] sm:$0x11] %v486_v27  ;;  %v12380_v33 = vld [vmem:[#allocation6 + $0x528] ss:$16 sps:$4 sm:$0xff]   ;;  %v12052_v38 = vpack.c.bf16 %v551_v61, %v550_v24  ;;  %v960_v40 = vshrl.u32 %v12050_v28, 16  ;;  %v963_v44 = vshll.u32 %v12050_v28, 16  ;;  %2338 = vmatprep.mubr.bf16.mxu0 %v14039_v0 }
 0x116   : > { %v12382_v46 = vld [vmem:[#allocation6 + $0x52c] ss:$16 sps:$4 sm:$0xff]   ;;  %v955_v48 = vrot.slane %v953_v7, 7  ;;  %v970_v52 = vrot.slane %v968_v36, 7  ;;  %v12383_v49 = vld [vmem:[#allocation6 + $0x728] ss:$16 sps:$4 sm:$0xff]   ;;  %2296 = vmatmul.mubr.bf16.gmra.mxu1 %v14409_v43 }
 0x117   : > { %v12385_v53 = vld [vmem:[#allocation6 + $0x72c] ss:$16 sps:$4 sm:$0xff]   ;;  %v962_v11 = vrot.slane %v960_v40, 7  ;;  %v977_v62 = vshrl.u32 %v12052_v38, 16  ;;  %v980_v63 = vshll.u32 %v12052_v38, 16  ;;  %2334 = vmatprep.subr.bf16.mxu0 %v12382_v46  ;;  %2451 = vmatprep.mubr.bf16.mxu1 %v14068_v21 }
 0x118   : > { %v958_v1 = vor.u32 %v956_v34, %v955_v48  ;;  %v966_v4 = vrot.slane %v955_v48, 4  ;;  %v973_v8 = vor.u32 %v971_v41, %v970_v52  ;;  %v984_v60 = vrot.slane %v970_v52, 4  ;;  %2447 = vmatprep.subr.bf16.mxu1 %v12385_v53  ;;  %2335 = vmatpush2.bf16.msra.mxu0 %v12380_v33  ;;  %v12386_v61 = vld [vmem:[#allocation6 + $0x508] ss:$16 sps:$4 sm:$0xff]   ;;  %v12388_v12 = vld [vmem:[#allocation6 + $0x50c] ss:$16 sps:$4 sm:$0xff]  }
 0x119   : > { %v965_v0 = vor.u32 %v963_v44, %v962_v11  ;;  %v975_v19 = vrot.slane %v962_v11, 4  ;;  %v979_v23 = vrot.slane %v977_v62, 7  ;;  %2448 = vmatpush2.bf16.msra.mxu1 %v12383_v49  ;;  %v12389_v26 = vld [vmem:[#allocation6 + $0x708] ss:$16 sps:$4 sm:$0xff]   ;;  %v1145_v28 = vld [vmem:[#allocation2 + $0x170] sm:$0x11]  ;;  %2336 = vmatprep.subr.bf16.mxu0 %v12388_v12 }
 0x11a   : > { %v1137_v14 = vld [vmem:[#allocation2 + $0xf8] sm:$0xff]  ;;  %v974_v27 = vsel %vm14081_vm3, %v966_v4, %v973_v8  ;;  %v1146_v34 = vsel %vm14016_vm10, %v984_v60, %v1145_v28  ;;  %v12392_v40 = vld [vmem:[#allocation6 + $0xe0] ss:$16 sps:$4 sm:$0xff]   ;;  %v12394_v44 = vld [vmem:[#allocation6 + $0xe4] ss:$16 sps:$4 sm:$0xff]  }
 0x11b   : > { %v1138_v24 = vsel %vm14075_vm2, %v958_v1, %v1137_v14  ;;  %v12391_v7 = vld [vmem:[#allocation6 + $0x70c] ss:$16 sps:$4 sm:$0xff]   ;;  %1143 = vst [vmem:[#allocation2 + $0x108] sm:$0xff] %v974_v27  ;;  %v982_v36 = vor.u32 %v980_v63, %v979_v23  ;;  %v985_v41 = vrot.slane %v979_v23, 4  ;;  %1147 = vst [vmem:[#allocation2 + $0x170] sm:$0x11] %v1146_v34 }
 0x11c   : > { %1139 = vst [vmem:[#allocation2 + $0xf8] sm:$0xff] %v1138_v24  ;;  %v1140_v33 = vld [vmem:[#allocation2 + $0x118] sm:$0xff]  ;;  %v1148_v38 = vld [vmem:[#allocation2 + $0xd0] sm:$0x11]  ;;  %2449 = vmatprep.subr.bf16.mxu1 %v12391_v7  ;;  %2337 = vmatpush2.bf16.msra.mxu0 %v12386_v61 }
 0x11d   : > { %v1141_v21 = vsel %vm14075_vm2, %v965_v0, %v1140_v33  ;;  %v983_v46 = vsel %vm14081_vm3, %v975_v19, %v982_v36  ;;  %v1149_v48 = vsel %vm14016_vm10, %v985_v41, %v1148_v38  ;;  %2450 = vmatpush2.bf16.msra.mxu1 %v12389_v26  ;;  %v12395_v52 = vld [vmem:[#allocation6 + $0x2e0] ss:$16 sps:$4 sm:$0xff]   ;;  %v12397_v49 = vld [vmem:[#allocation6 + $0x2e4] ss:$16 sps:$4 sm:$0xff]   ;;  %3332 = vmatprep.subr.bf16.mxu0 %v12394_v44 }
 0x11e   : > { %1142 = vst [vmem:[#allocation2 + $0x118] sm:$0xff] %v1141_v21  ;;  %1144 = vst [vmem:[#allocation2 + $0x100] sm:$0xff] %v983_v46  ;;  %v14426_v53 = vcombine.high %v1141_v21, %v983_v46  ;;  %v14428_v11 = vcombine.low %v1141_v21, %v983_v46  ;;  %3445 = vmatprep.subr.bf16.mxu1 %v12397_v49  ;;  %v12400_v62 = vld [vmem:[#allocation6 + $0xc4] ss:$16 sps:$4 sm:$0xff]   ;;  %v12398_v63 = vld [vmem:[#allocation6 + $0xc0] ss:$16 sps:$4 sm:$0xff]  }
 0x11f   : > { %1150 = vst [vmem:[#allocation2 + $0xd0] sm:$0x11] %v1149_v48  ;;  %2339 = vmatmul.mubr.bf16.vlgmr.msra.gmra.mxu0 %v14137_v35  ;;  %v12403_v1 = vld [vmem:[#allocation6 + $0x2c4] ss:$16 sps:$4 sm:$0xff]   ;;  %v12401_v4 = vld [vmem:[#allocation6 + $0x2c0] ss:$16 sps:$4 sm:$0xff]  }
 0x120   : > { %2452 = vmatmul.mubr.bf16.vlgmr.msra.gmra.mxu1 %v14141_v39  ;;  %3333 = vmatpush1.bf16.msra.mxu0 %v12392_v40  ;;  %v12406_v8 = vld [vmem:[#allocation6 + $0xa4] ss:$16 sps:$4 sm:$0xff]   ;;  %v12404_v61 = vld [vmem:[#allocation6 + $0xa0] ss:$16 sps:$4 sm:$0xff]  }
 0x121   : > { %3446 = vmatpush1.bf16.msra.mxu1 %v12395_v52  ;;  %3334 = vmatprep.subr.bf16.mxu0 %v12400_v62  ;;  %v12409_v60 = vld [vmem:[#allocation6 + $0x2a4] ss:$16 sps:$4 sm:$0xff]   ;;  %v12407_v35 = vld [vmem:[#allocation6 + $0x2a0] ss:$16 sps:$4 sm:$0xff]  }
 0x122   : > { %3447 = vmatprep.subr.bf16.mxu1 %v12403_v1  ;;  %2348 = vmatprep.mubr.bf16.mxu0 %v14145_v54  ;;  %v12412_v12 = vld [vmem:[#allocation6 + $0x84] ss:$16 sps:$4 sm:$0xff]   ;;  %v12410_v14 = vld [vmem:[#allocation6 + $0x80] ss:$16 sps:$4 sm:$0xff]  }
 0x123   : > { %2461 = vmatprep.mubr.bf16.mxu1 %v14148_v55  ;;  %v12415_v39 = vld [vmem:[#allocation6 + $0x284] ss:$16 sps:$4 sm:$0xff]   ;;  %v12413_v54 = vld [vmem:[#allocation6 + $0x280] ss:$16 sps:$4 sm:$0xff]  }
 0x124   : > { %3335 = vmatpush1.bf16.msra.mxu0 %v12398_v63  ;;  %v12418_v0 = vld [vmem:[#allocation6 + $0x64] ss:$16 sps:$4 sm:$0xff]   ;;  %v12416_v19 = vld [vmem:[#allocation6 + $0x60] ss:$16 sps:$4 sm:$0xff]  }
 0x125   : > { %3448 = vmatpush1.bf16.msra.mxu1 %v12401_v4  ;;  %3336 = vmatprep.subr.bf16.mxu0 %v12406_v8  ;;  %v12421_v55 = vld [vmem:[#allocation6 + $0x264] ss:$16 sps:$4 sm:$0xff]   ;;  %v12419_v23 = vld [vmem:[#allocation6 + $0x260] ss:$16 sps:$4 sm:$0xff]  }
 0x126   : > { %3449 = vmatprep.subr.bf16.mxu1 %v12409_v60  ;;  %v12422_v26 = vld [vmem:[#allocation6 + $0x40] ss:$16 sps:$4 sm:$0xff]   ;;  %v12430_v27 = vld [vmem:[#allocation6 + $0x24] ss:$16 sps:$4 sm:$0xff]  }
 0x127   : > { %2349 = vmatmul.mubr.bf16.gmra.mxu0 %v14179_v22  ;;  %v12424_v22 = vld [vmem:[#allocation6 + $0x44] ss:$16 sps:$4 sm:$0xff]   ;;  %v12428_v24 = vld [vmem:[#allocation6 + $0x20] ss:$16 sps:$4 sm:$0xff]  }
 0x128   : > { %2462 = vmatmul.mubr.bf16.gmra.mxu1 %v14188_v6  ;;  %3337 = vmatpush1.bf16.msra.mxu0 %v12404_v61  ;;  %v12427_v6 = vld [vmem:[#allocation6 + $0x244] ss:$16 sps:$4 sm:$0xff]   ;;  %v12431_v28 = vld [vmem:[#allocation6 + $0x220] ss:$16 sps:$4 sm:$0xff]  }
 0x129   : > { %3450 = vmatpush1.bf16.msra.mxu1 %v12407_v35  ;;  %3338 = vmatprep.subr.bf16.mxu0 %v12412_v12  ;;  %v12434_v7 = vld [vmem:[#allocation6] ss:$16 sps:$4 sm:$0xff]   ;;  %v12442_v34 = vld [vmem:[#allocation6 + $0x1e4] ss:$16 sps:$4 sm:$0xff]   ;;  %v12499_v35 = vld [vmem:[#allocation6 + $0x2ec] ss:$16 sps:$4 sm:$0xff]  }
 0x12a   : > { %3451 = vmatprep.subr.bf16.mxu1 %v12415_v39  ;;  %2358 = vmatprep.mubr.bf16.mxu0 %v14196_v50  ;;  %v12425_v50 = vld [vmem:[#allocation6 + $0x240] ss:$16 sps:$4 sm:$0xff]   ;;  %v12454_v38 = vld [vmem:[#allocation6 + $0x1a4] ss:$16 sps:$4 sm:$0xff]   ;;  %v12497_v39 = vld [vmem:[#allocation6 + $0x2e8] ss:$16 sps:$4 sm:$0xff]  }
 0x12b   : > { %2471 = vmatprep.mubr.bf16.mxu1 %v14198_v57  ;;  %v12433_v57 = vld [vmem:[#allocation6 + $0x224] ss:$16 sps:$4 sm:$0xff]   ;;  %v12440_v36 = vld [vmem:[#allocation6 + $0x1e0] ss:$16 sps:$4 sm:$0xff]  }
 0x12c   : > { %3339 = vmatpush1.bf16.msra.mxu0 %v12410_v14  ;;  %v12443_v41 = vld [vmem:[#allocation6 + $0x3e0] ss:$16 sps:$4 sm:$0xff]   ;;  %v12466_v46 = vld [vmem:[#allocation6 + $0x164] ss:$16 sps:$4 sm:$0xff]   ;;  %v12505_v14 = vld [vmem:[#allocation6 + $0x2cc] ss:$16 sps:$4 sm:$0xff]  }
 0x12d   : > { %3452 = vmatpush1.bf16.msra.mxu1 %v12413_v54  ;;  %3340 = vmatprep.subr.bf16.mxu0 %v12418_v0  ;;  %v12446_v33 = vld [vmem:[#allocation6 + $0x1c0] ss:$16 sps:$4 sm:$0xff]   ;;  %v12478_v62 = vld [vmem:[#allocation6 + $0x124] ss:$16 sps:$4 sm:$0xff]   ;;  %v14473_v0 = vld [vmem:[#allocation2 + $0xcc] ss:$-48 sps:$4 sm:$0xff]  }
 0x12e   : > { %3453 = vmatprep.subr.bf16.mxu1 %v12421_v55  ;;  %v12452_v21 = vld [vmem:[#allocation6 + $0x1a0] ss:$16 sps:$4 sm:$0xff]   ;;  %v12487_v4 = vld [vmem:[#allocation6 + $0x304] ss:$16 sps:$4 sm:$0xff]   ;;  %v12500_v55 = vld [vmem:[#allocation6 + $0xc8] ss:$16 sps:$4 sm:$0xff]  }
 0x12f   : > { %2359 = vmatmul.mubr.bf16.gmra.mxu0 %v14206_v5  ;;  %v12436_v5 = vld [vmem:[#allocation6 + $0x4] ss:$16 sps:$4 sm:$0xff]   ;;  %v12455_v40 = vld [vmem:[#allocation6 + $0x3a0] ss:$16 sps:$4 sm:$0xff]  }
 0x130   : > { %2472 = vmatmul.mubr.bf16.gmra.mxu1 %v14215_v18  ;;  %3341 = vmatpush1.bf16.msra.mxu0 %v12416_v19  ;;  %v12439_v18 = vld [vmem:[#allocation6 + $0x204] ss:$16 sps:$4 sm:$0xff]   ;;  %v12458_v44 = vld [vmem:[#allocation6 + $0x180] ss:$16 sps:$4 sm:$0xff]   ;;  %v12503_v19 = vld [vmem:[#allocation6 + $0x2c8] ss:$16 sps:$4 sm:$0xff]  }
 0x131   : > { %3454 = vmatpush1.bf16.msra.mxu1 %v12419_v23  ;;  %3342 = vmatprep.subr.bf16.mxu0 %v12424_v22  ;;  %v12464_v48 = vld [vmem:[#allocation6 + $0x160] ss:$16 sps:$4 sm:$0xff]   ;;  %v14461_v60 = vld [vmem:[#allocation2 + $0x114] ss:$-40 sps:$4 sm:$0xff]  }
 0x132   : > { %3455 = vmatprep.subr.bf16.mxu1 %v12427_v6  ;;  %2368 = vmatprep.mubr.bf16.mxu0 %v14226_v37  ;;  %v12437_v37 = vld [vmem:[#allocation6 + $0x200] ss:$16 sps:$4 sm:$0xff]   ;;  %v14470_v54 = vld [vmem:[#allocation2 + $0x34] ss:$56 sps:$4 sm:$0xff]   ;;  %v14479_v6 = vld [vmem:[#allocation2 + $0xc8] ss:$-48 sps:$4 sm:$0xff]  }
 0x133   : > { %2481 = vmatprep.mubr.bf16.mxu1 %v14232_v17  ;;  %v12445_v17 = vld [vmem:[#allocation6 + $0x3e4] ss:$16 sps:$4 sm:$0xff]   ;;  %v12467_v52 = vld [vmem:[#allocation6 + $0x360] ss:$16 sps:$4 sm:$0xff]   ;;  %v12514_v22 = vld [vmem:[#allocation6 + $0xac] ss:$16 sps:$4 sm:$0xff]  }
 0x134   : > { %3343 = vmatpush1.bf16.msra.mxu0 %v12422_v26  ;;  %v12470_v49 = vld [vmem:[#allocation6 + $0x140] ss:$16 sps:$4 sm:$0xff]   ;;  %v12512_v26 = vld [vmem:[#allocation6 + $0xa8] ss:$16 sps:$4 sm:$0xff]  }
 0x135   : > { %3456 = vmatpush1.bf16.msra.mxu1 %v12425_v50  ;;  %3344 = vmatprep.subr.bf16.mxu0 %v12430_v27  ;;  %v12476_v63 = vld [vmem:[#allocation6 + $0x120] ss:$16 sps:$4 sm:$0xff]   ;;  %v12517_v50 = vld [vmem:[#allocation6 + $0x2ac] ss:$16 sps:$4 sm:$0xff]   ;;  %v12515_v27 = vld [vmem:[#allocation6 + $0x2a8] ss:$16 sps:$4 sm:$0xff]  }
 0x136   : > { %3457 = vmatprep.subr.bf16.mxu1 %v12433_v57  ;;  %v12479_v1 = vld [vmem:[#allocation6 + $0x320] ss:$16 sps:$4 sm:$0xff]   ;;  %v1160_v57 = vld [vmem:[#allocation2 + $0x78] sm:$0xff] }
 0x137   : > { %2369 = vmatmul.mubr.bf16.gmra.mxu0 %v14246_v3  ;;  %v12448_v3 = vld [vmem:[#allocation6 + $0x1c4] ss:$16 sps:$4 sm:$0xff]   ;;  %v12482_v8 = vld [vmem:[#allocation6 + $0x100] ss:$16 sps:$4 sm:$0xff]  }
 0x138   : > { %2482 = vmatmul.mubr.bf16.gmra.mxu1 %v14248_v10  ;;  %3345 = vmatpush1.bf16.msra.mxu0 %v12428_v24  ;;  %v12451_v10 = vld [vmem:[#allocation6 + $0x3c4] ss:$16 sps:$4 sm:$0xff]   ;;  %v14464_v61 = vld [vmem:[#allocation2 + $0xb0] ss:$112 sps:$4 sm:$0xff]   ;;  %v1162_v24 = vld [vmem:[#allocation2 + $0x38] sm:$0xff] }
 0x139   : > { %3458 = vmatpush1.bf16.msra.mxu1 %v12431_v28  ;;  %3346 = vmatprep.subr.bf16.mxu0 %v12436_v5  ;;  %v14467_v12 = vld [vmem:[#allocation2 + $0x110] ss:$-40 sps:$4 sm:$0xff]   ;;  %v12520_v28 = vld [vmem:[#allocation6 + $0x8c] ss:$16 sps:$4 sm:$0xff]  }
 0x13a   : > { %3459 = vmatprep.subr.bf16.mxu1 %v12439_v18  ;;  %2378 = vmatprep.mubr.bf16.mxu0 %v14262_v51  ;;  %v12449_v51 = vld [vmem:[#allocation6 + $0x3c0] ss:$16 sps:$4 sm:$0xff]   ;;  %v12523_v5 = vld [vmem:[#allocation6 + $0x28c] ss:$16 sps:$4 sm:$0xff]   ;;  %v14482_v18 = vld [vmem:[#allocation2 + $0x134] ss:$-80 sps:$4 sm:$0xff]  }
 0x13b   : > { %2491 = vmatprep.mubr.bf16.mxu1 %v14270_v58  ;;  %v12457_v58 = vld [vmem:[#allocation6 + $0x3a4] ss:$16 sps:$4 sm:$0xff]   ;;  %v14476_v23 = vld [vmem:[#allocation2 + $0x30] ss:$56 sps:$4 sm:$0xff]  }
 0x13c   : > { %3347 = vmatpush1.bf16.msra.mxu0 %v12434_v7  ;;  %v14485_v7 = vcombine.high %v1160_v57, %v1162_v24 }
 0x13d   : > { %3460 = vmatpush1.bf16.msra.mxu1 %v12437_v37  ;;  %3348 = vmatprep.subr.bf16.mxu0 %v12442_v34  ;;  %v12518_v37 = vld [vmem:[#allocation6 + $0x88] ss:$16 sps:$4 sm:$0xff]  }
 0x13e   : > { %3461 = vmatprep.subr.bf16.mxu1 %v12445_v17  ;;  %v12521_v34 = vld [vmem:[#allocation6 + $0x288] ss:$16 sps:$4 sm:$0xff]   ;;  %v12529_v17 = vld [vmem:[#allocation6 + $0x6c] ss:$16 sps:$4 sm:$0xff]  }
 0x13f   : > { %2379 = vmatmul.mubr.bf16.gmra.mxu0 %v14281_v13  ;;  %v12460_v13 = vld [vmem:[#allocation6 + $0x184] ss:$16 sps:$4 sm:$0xff]  }
 0x140   : > { %2492 = vmatmul.mubr.bf16.gmra.mxu1 %v14288_v31  ;;  %3349 = vmatpush2.bf16.msra.mxu0 %v12440_v36  ;;  %v12463_v31 = vld [vmem:[#allocation6 + $0x384] ss:$16 sps:$4 sm:$0xff]   ;;  %v12532_v36 = vld [vmem:[#allocation6 + $0x26c] ss:$16 sps:$4 sm:$0xff]  }
 0x141   : > { %3462 = vmatpush2.bf16.msra.mxu1 %v12443_v41  ;;  %3350 = vmatprep.subr.bf16.mxu0 %v12448_v3  ;;  %v14490_v41 = vld [vmem:[#allocation2 + $0x130] ss:$-80 sps:$4 sm:$0xff]   ;;  %v14492_v3 = vcombine.low %v1160_v57, %v1162_v24  ;;  %v12572_v57 = vld [vmem:[#allocation6 + $0x1a8] ss:$16 sps:$4 sm:$0xff]   ;;  %v12577_v24 = vld [vmem:[#allocation6 + $0x3ac] ss:$16 sps:$4 sm:$0xff]  }
 0x142   : > { %3463 = vmatprep.subr.bf16.mxu1 %v12451_v10  ;;  %2388 = vmatprep.mubr.bf16.mxu0 %v14302_v20  ;;  %v12461_v20 = vld [vmem:[#allocation6 + $0x380] ss:$16 sps:$4 sm:$0xff]   ;;  %v12527_v10 = vld [vmem:[#allocation6 + $0x68] ss:$16 sps:$4 sm:$0xff]  }
 0x143   : > { %2501 = vmatprep.mubr.bf16.mxu1 %v14310_v32  ;;  %v12469_v32 = vld [vmem:[#allocation6 + $0x364] ss:$16 sps:$4 sm:$0xff]  }
 0x144   : > { %3351 = vmatpush2.bf16.msra.mxu0 %v12446_v33  ;;  %v1164_v33 = vld [vmem:[#allocation2 + $0x168] sm:$0xff] }
 0x145   : > { %3464 = vmatpush2.bf16.msra.mxu1 %v12449_v51  ;;  %3352 = vmatprep.subr.bf16.mxu0 %v12454_v38  ;;  %v1166_v51 = vld [vmem:[#allocation2 + $0x8] sm:$0xff] }
 0x146   : > { %3465 = vmatprep.subr.bf16.mxu1 %v12457_v58  ;;  %v12530_v38 = vld [vmem:[#allocation6 + $0x268] ss:$16 sps:$4 sm:$0xff]   ;;  %v12535_v58 = vld [vmem:[#allocation6 + $0x4c] ss:$16 sps:$4 sm:$0xff]  }
 0x147   : > { %2389 = vmatmul.mubr.bf16.gmra.mxu0 %v14319_v42  ;;  %v12472_v42 = vld [vmem:[#allocation6 + $0x144] ss:$16 sps:$4 sm:$0xff]  }
 0x148   : > { %2502 = vmatmul.mubr.bf16.gmra.mxu1 %v14329_v59  ;;  %3353 = vmatpush2.bf16.msra.mxu0 %v12452_v21  ;;  %v12475_v59 = vld [vmem:[#allocation6 + $0x344] ss:$16 sps:$4 sm:$0xff]   ;;  %v12538_v21 = vld [vmem:[#allocation6 + $0x24c] ss:$16 sps:$4 sm:$0xff]  }
 0x149   : > { %3466 = vmatpush2.bf16.msra.mxu1 %v12455_v40  ;;  %3354 = vmatprep.subr.bf16.mxu0 %v12460_v13  ;;  %v14494_v40 = vld [vmem:[#allocation2 + $0xc4] ss:$-104 sps:$4 sm:$0xff]   ;;  %v14497_v13 = vcombine.high %v1164_v33, %v1166_v51 }
 0x14a   : > { %3467 = vmatprep.subr.bf16.mxu1 %v12463_v31  ;;  %2398 = vmatprep.mubr.bf16.mxu0 %v14342_v16  ;;  %v12473_v16 = vld [vmem:[#allocation6 + $0x340] ss:$16 sps:$4 sm:$0xff]   ;;  %v12533_v31 = vld [vmem:[#allocation6 + $0x48] ss:$16 sps:$4 sm:$0xff]  }
 0x14b   : > { %2511 = vmatprep.mubr.bf16.mxu1 %v14350_v2  ;;  %v12481_v2 = vld [vmem:[#allocation6 + $0x324] ss:$16 sps:$4 sm:$0xff]  }
 0x14c   : > { %3355 = vmatpush2.bf16.msra.mxu0 %v12458_v44  ;;  %v12536_v44 = vld [vmem:[#allocation6 + $0x248] ss:$16 sps:$4 sm:$0xff]  }
 0x14d   : > { %3468 = vmatpush2.bf16.msra.mxu1 %v12461_v20  ;;  %3356 = vmatprep.subr.bf16.mxu0 %v12466_v46  ;;  %v12544_v20 = vld [vmem:[#allocation6 + $0x2c] ss:$16 sps:$4 sm:$0xff]  }
 0x14e   : > { %3469 = vmatprep.subr.bf16.mxu1 %v12469_v32  ;;  %v12547_v46 = vld [vmem:[#allocation6 + $0x22c] ss:$16 sps:$4 sm:$0xff]   ;;  %v14502_v32 = vld [vmem:[#allocation2 + $0xc0] ss:$-104 sps:$4 sm:$0xff]  }
 0x14f   : > { %2399 = vmatmul.mubr.bf16.gmra.mxu0 %v14359_v15  ;;  %v12484_v15 = vld [vmem:[#allocation6 + $0x104] ss:$16 sps:$4 sm:$0xff]  }
 0x150   : > { %2512 = vmatmul.mubr.bf16.gmra.mxu1 %v14369_v30  ;;  %3357 = vmatpush2.bf16.msra.mxu0 %v12464_v48  ;;  %v14458_v30 = vld [vmem:[#allocation2 + $0xb4] ss:$112 sps:$4 sm:$0xff]   ;;  %v14504_v48 = vcombine.low %v1164_v33, %v1166_v51  ;;  %v12578_v51 = vld [vmem:[#allocation6 + $0x188] ss:$16 sps:$4 sm:$0xff]  }
 0x151   : > { %3470 = vmatpush2.bf16.msra.mxu1 %v12467_v52  ;;  %3358 = vmatprep.subr.bf16.mxu0 %v12472_v42  ;;  %v12542_v52 = vld [vmem:[#allocation6 + $0x28] ss:$16 sps:$4 sm:$0xff]   ;;  %v14530_v33 = vld [vmem:[#allocation2 + $0xdc] ss:$120 sps:$4 sm:$0xff]  }
 0x152   : > { %3471 = vmatprep.subr.bf16.mxu1 %v12475_v59  ;;  %2408 = vmatprep.mubr.bf16.mxu0 %v14382_v47  ;;  %v12485_v47 = vld [vmem:[#allocation6 + $0x300] ss:$16 sps:$4 sm:$0xff]   ;;  %v12545_v42 = vld [vmem:[#allocation6 + $0x228] ss:$16 sps:$4 sm:$0xff]   ;;  %v12550_v59 = vld [vmem:[#allocation6 + $0xc] ss:$16 sps:$4 sm:$0xff]  }
 0x153   : > { %2521 = vmatprep.mubr.bf16.mxu1 %v14390_v56  ;;  %v12496_v56 = vld [vmem:[#allocation6 + $0xec] ss:$16 sps:$4 sm:$0xff]  }
 0x154   : > { %3359 = vmatpush2.bf16.msra.mxu0 %v12470_v49  ;;  %v12553_v49 = vld [vmem:[#allocation6 + $0x20c] ss:$16 sps:$4 sm:$0xff]  }
 0x155   : > { %3472 = vmatpush2.bf16.msra.mxu1 %v12473_v16  ;;  %3360 = vmatprep.subr.bf16.mxu0 %v12478_v62  ;;  %v14506_v16 = vld [vmem:[#allocation2 + $0x1c] ss:$-24 sps:$4 sm:$0xff]   ;;  %v12548_v62 = vld [vmem:[#allocation6 + $0x8] ss:$16 sps:$4 sm:$0xff]  }
 0x156   : > { %3473 = vmatprep.subr.bf16.mxu1 %v12481_v2  ;;  %v14509_v2 = vld [vmem:[#allocation2 + $0x44] ss:$280 sps:$4 sm:$0xff]  }
 0x157   : > { %2409 = vmatmul.mubr.bf16.gmra.mxu0 %v14399_v9  ;;  %v12494_v9 = vld [vmem:[#allocation6 + $0xe8] ss:$16 sps:$4 sm:$0xff]  }
 0x158   : > { %2522 = vmatmul.mubr.bf16.gmra.mxu1 %v14409_v43  ;;  %3361 = vmatpush2.bf16.msra.mxu0 %v12476_v63  ;;  %v12502_v43 = vld [vmem:[#allocation6 + $0xcc] ss:$16 sps:$4 sm:$0xff]   ;;  %v12551_v63 = vld [vmem:[#allocation6 + $0x208] ss:$16 sps:$4 sm:$0xff]  }
 0x159   : > { %3474 = vmatpush2.bf16.msra.mxu1 %v12479_v1  ;;  %3362 = vmatprep.subr.bf16.mxu0 %v12484_v15  ;;  %v14512_v1 = vld [vmem:[#allocation2 + $0x18] ss:$-24 sps:$4 sm:$0xff]   ;;  %v12562_v15 = vld [vmem:[#allocation6 + $0x1ec] ss:$16 sps:$4 sm:$0xff]  }
 0x15a   : > { %3475 = vmatprep.subr.bf16.mxu1 %v12487_v4  ;;  %3364 = vmatprep.mubr.bf16.mxu0 %v14458_v30  ;;  %v14515_v4 = vld [vmem:[#allocation2 + $0x40] ss:$280 sps:$4 sm:$0xff]  }
 0x15b   : > { %3477 = vmatprep.mubr.bf16.mxu1 %v14461_v60 }
 0x15c   : > { %3363 = vmatpush2.bf16.msra.mxu0 %v12482_v8  ;;  %v12560_v8 = vld [vmem:[#allocation6 + $0x1e8] ss:$16 sps:$4 sm:$0xff]  }
 0x15d   : > { %3476 = vmatpush2.bf16.msra.mxu1 %v12485_v47  ;;  %3558 = vmatprep.subr.bf16.mxu0 %v12496_v56  ;;  %v12565_v47 = vld [vmem:[#allocation6 + $0x3ec] ss:$16 sps:$4 sm:$0xff]   ;;  %v1171_v56 = vld [vmem:[#allocation2 + $0x50] sm:$0xff] }
 0x15e   : > { %3671 = vmatprep.subr.bf16.mxu1 %v12499_v35  ;;  %v12563_v35 = vld [vmem:[#allocation6 + $0x3e8] ss:$16 sps:$4 sm:$0xff]  }
 0x15f   : > { %3365 = vmatmul.mubr.bf16.vlgmr.msra.gmra.mxu0 %v14464_v61 }
 0x160   : > { %3478 = vmatmul.mubr.bf16.vlgmr.msra.gmra.mxu1 %v14467_v12  ;;  %3559 = vmatpush1.bf16.msra.mxu0 %v12494_v9  ;;  %v1173_v9 = vld [vmem:[#allocation2 + $0xf0] sm:$0xff] }
 0x161   : > { %3672 = vmatpush1.bf16.msra.mxu1 %v12497_v39  ;;  %3560 = vmatprep.subr.bf16.mxu0 %v12502_v43  ;;  %v1172_v39 = vld [vmem:[#allocation2 + $0x48] sm:$0xff] }
 0x162   : > { %3673 = vmatprep.subr.bf16.mxu1 %v12505_v14  ;;  %3374 = vmatprep.mubr.bf16.mxu0 %v14470_v54  ;;  %v1174_v43 = vld [vmem:[#allocation2 + $0x128] sm:$0xff] }
 0x163   : > { %3487 = vmatprep.mubr.bf16.mxu1 %v14473_v0  ;;  %v12568_v14 = vld [vmem:[#allocation6 + $0x1cc] ss:$16 sps:$4 sm:$0xff]  }
 0x164   : > { %3561 = vmatpush1.bf16.msra.mxu0 %v12500_v55  ;;  %v12571_v55 = vld [vmem:[#allocation6 + $0x3cc] ss:$16 sps:$4 sm:$0xff]  }
 0x165   : > { %3674 = vmatpush1.bf16.msra.mxu1 %v12503_v19  ;;  %3562 = vmatprep.subr.bf16.mxu0 %v12514_v22  ;;  %v14518_v19 = vcombine.high %v1171_v56, %v1173_v9  ;;  %v12566_v22 = vld [vmem:[#allocation6 + $0x1c8] ss:$16 sps:$4 sm:$0xff]  }
 0x166   : > { %3675 = vmatprep.subr.bf16.mxu1 %v12517_v50  ;;  %v12569_v50 = vld [vmem:[#allocation6 + $0x3c8] ss:$16 sps:$4 sm:$0xff]  }
 0x167   : > { %3375 = vmatmul.mubr.bf16.gmra.mxu0 %v14476_v23 }
 0x168   : > { %3488 = vmatmul.mubr.bf16.gmra.mxu1 %v14479_v6  ;;  %3563 = vmatpush1.bf16.msra.mxu0 %v12512_v26  ;;  %v14521_v26 = vcombine.high %v1172_v39, %v1174_v43 }
 0x169   : > { %3676 = vmatpush1.bf16.msra.mxu1 %v12515_v27  ;;  %3564 = vmatprep.subr.bf16.mxu0 %v12520_v28  ;;  %v12574_v27 = vld [vmem:[#allocation6 + $0x1ac] ss:$16 sps:$4 sm:$0xff]   ;;  %v14526_v28 = vcombine.low %v1171_v56, %v1173_v9  ;;  %v12602_v56 = vld [vmem:[#allocation6 + $0x128] ss:$16 sps:$4 sm:$0xff]  }
 0x16a   : > { %3677 = vmatprep.subr.bf16.mxu1 %v12523_v5  ;;  %3384 = vmatprep.mubr.bf16.mxu0 %v14482_v18  ;;  %v12575_v5 = vld [vmem:[#allocation6 + $0x3a8] ss:$16 sps:$4 sm:$0xff]  }
 0x16b   : > { %3497 = vmatprep.mubr.bf16.mxu1 %v14485_v7 }
 0x16c   : > { %3565 = vmatpush1.bf16.msra.mxu0 %v12518_v37  ;;  %v1176_v37 = vld [vmem:[#allocation2 + $0x10] sm:$0xff] }
 0x16d   : > { %3678 = vmatpush1.bf16.msra.mxu1 %v12521_v34  ;;  %3566 = vmatprep.subr.bf16.mxu0 %v12529_v17  ;;  %v14528_v34 = vcombine.low %v1172_v39, %v1174_v43  ;;  %v1178_v17 = vld [vmem:[#allocation2 + $0x90] sm:$0xff]  ;;  %v12605_v39 = vld [vmem:[#allocation6 + $0x328] ss:$16 sps:$4 sm:$0xff]  }
 0x16e   : > { %3679 = vmatprep.subr.bf16.mxu1 %v12532_v36  ;;  %v12580_v36 = vld [vmem:[#allocation6 + $0x18c] ss:$16 sps:$4 sm:$0xff]  }
 0x16f   : > { %3385 = vmatmul.mubr.bf16.gmra.mxu0 %v14490_v41 }
 0x170   : > { %3498 = vmatmul.mubr.bf16.gmra.mxu1 %v14492_v3  ;;  %3567 = vmatpush1.bf16.msra.mxu0 %v12527_v10  ;;  %v12583_v10 = vld [vmem:[#allocation6 + $0x38c] ss:$16 sps:$4 sm:$0xff]  }
 0x171   : > { %3680 = vmatpush1.bf16.msra.mxu1 %v12530_v38  ;;  %3568 = vmatprep.subr.bf16.mxu0 %v12535_v58  ;;  %v14533_v38 = vcombine.high %v1176_v37, %v1178_v17  ;;  %v12581_v58 = vld [vmem:[#allocation6 + $0x388] ss:$16 sps:$4 sm:$0xff]  }
 0x172   : > { %3681 = vmatprep.subr.bf16.mxu1 %v12538_v21  ;;  %3394 = vmatprep.mubr.bf16.mxu0 %v14494_v40  ;;  %v12589_v21 = vld [vmem:[#allocation6 + $0x16c] ss:$16 sps:$4 sm:$0xff]  }
 0x173   : > { %3507 = vmatprep.mubr.bf16.mxu1 %v14497_v13 }
 0x174   : > { %3569 = vmatpush1.bf16.msra.mxu0 %v12533_v31  ;;  %v12592_v31 = vld [vmem:[#allocation6 + $0x36c] ss:$16 sps:$4 sm:$0xff]  }
 0x175   : > { %3682 = vmatpush1.bf16.msra.mxu1 %v12536_v44  ;;  %3570 = vmatprep.subr.bf16.mxu0 %v12544_v20  ;;  %v14538_v44 = vld [vmem:[#allocation2 + $0xd8] ss:$120 sps:$4 sm:$0xff]  }
 0x176   : > { %3683 = vmatprep.subr.bf16.mxu1 %v12547_v46  ;;  %v12587_v20 = vld [vmem:[#allocation6 + $0x168] ss:$16 sps:$4 sm:$0xff]   ;;  %v14540_v46 = vcombine.low %v1176_v37, %v1178_v17 }
 0x177   : > { %3395 = vmatmul.mubr.bf16.gmra.mxu0 %v14502_v32  ;;  %v12611_v37 = vld [vmem:[#allocation6 + $0x308] ss:$16 sps:$4 sm:$0xff]  }
 0x178   : > { %3508 = vmatmul.mubr.bf16.gmra.mxu1 %v14504_v48  ;;  %3571 = vmatpush1.bf16.msra.mxu0 %v12542_v52  ;;  %v12590_v52 = vld [vmem:[#allocation6 + $0x368] ss:$16 sps:$4 sm:$0xff]  }
 0x179   : > { %3684 = vmatpush1.bf16.msra.mxu1 %v12545_v42  ;;  %3572 = vmatprep.subr.bf16.mxu0 %v12550_v59  ;;  %v12595_v42 = vld [vmem:[#allocation6 + $0x14c] ss:$16 sps:$4 sm:$0xff]  }
 0x17a   : > { %3685 = vmatprep.subr.bf16.mxu1 %v12553_v49  ;;  %3404 = vmatprep.mubr.bf16.mxu0 %v14506_v16  ;;  %v12598_v59 = vld [vmem:[#allocation6 + $0x34c] ss:$16 sps:$4 sm:$0xff]  }
 0x17b   : > { %3517 = vmatprep.mubr.bf16.mxu1 %v14509_v2  ;;  %v14542_v49 = vld [vmem:[#allocation2 + $0xfc] ss:$16 sps:$4 sm:$0xff]  }
 0x17c   : > { %3573 = vmatpush1.bf16.msra.mxu0 %v12548_v62  ;;  %v12593_v62 = vld [vmem:[#allocation6 + $0x148] ss:$16 sps:$4 sm:$0xff]  }
 0x17d   : > { %3686 = vmatpush1.bf16.msra.mxu1 %v12551_v63  ;;  %3574 = vmatprep.subr.bf16.mxu0 %v12562_v15  ;;  %v12596_v63 = vld [vmem:[#allocation6 + $0x348] ss:$16 sps:$4 sm:$0xff]   ;;  %v12604_v15 = vld [vmem:[#allocation6 + $0x12c] ss:$16 sps:$4 sm:$0xff]  }
 0x17e   : > { %3687 = vmatprep.subr.bf16.mxu1 %v12565_v47  ;;  %v14548_v47 = vld [vmem:[#allocation2 + $0xf8] ss:$16 sps:$4 sm:$0xff]  }
 0x17f   : > { %3405 = vmatmul.mubr.bf16.gmra.mxu0 %v14512_v1 }
 0x180   : > { %3518 = vmatmul.mubr.bf16.gmra.mxu1 %v14515_v4  ;;  %3575 = vmatpush2.bf16.msra.mxu0 %v12560_v8  ;;  %v12607_v8 = vld [vmem:[#allocation6 + $0x32c] ss:$16 sps:$4 sm:$0xff]  }
 0x181   : > { %3688 = vmatpush2.bf16.msra.mxu1 %v12563_v35  ;;  %3576 = vmatprep.subr.bf16.mxu0 %v12568_v14  ;;  %v12610_v14 = vld [vmem:[#allocation6 + $0x10c] ss:$16 sps:$4 sm:$0xff]  }
 0x182   : > { %3689 = vmatprep.subr.bf16.mxu1 %v12571_v55  ;;  %3414 = vmatprep.mubr.bf16.mxu0 %v14518_v19 }
 0x183   : > { %3527 = vmatprep.mubr.bf16.mxu1 %v14521_v26 }
 0x184   : > { %3577 = vmatpush2.bf16.msra.mxu0 %v12566_v22 }
 0x185   : > { %3690 = vmatpush2.bf16.msra.mxu1 %v12569_v50  ;;  %3578 = vmatprep.subr.bf16.mxu0 %v12574_v27  ;;  %v12613_v50 = vld [vmem:[#allocation6 + $0x30c] ss:$16 sps:$4 sm:$0xff]  }
 0x186   : > { %3691 = vmatprep.subr.bf16.mxu1 %v12577_v24 }
 0x187   : > { %3415 = vmatmul.mubr.bf16.gmra.mxu0 %v14526_v28 }
 0x188   : > { %3528 = vmatmul.mubr.bf16.gmra.mxu1 %v14528_v34  ;;  %3579 = vmatpush2.bf16.msra.mxu0 %v12572_v57  ;;  %v12608_v57 = vld [vmem:[#allocation6 + $0x108] ss:$16 sps:$4 sm:$0xff]  }
 0x189   : > { %3692 = vmatpush2.bf16.msra.mxu1 %v12575_v5  ;;  %3580 = vmatprep.subr.bf16.mxu0 %v12580_v36  ;;  %v12616_v36 = vld [vmem:[#allocation6 + $0x8e4] ss:$16 sps:$4 sm:$0xff]  }
 0x18a   : > { %3693 = vmatprep.subr.bf16.mxu1 %v12583_v10  ;;  %3424 = vmatprep.mubr.bf16.mxu0 %v14530_v33 }
 0x18b   : > { %3537 = vmatprep.mubr.bf16.mxu1 %v14533_v38 }
 0x18c   : > { %3581 = vmatpush2.bf16.msra.mxu0 %v12578_v51 }
 0x18d   : > { %3694 = vmatpush2.bf16.msra.mxu1 %v12581_v58  ;;  %3582 = vmatprep.subr.bf16.mxu0 %v12589_v21  ;;  %v12619_v58 = vld [vmem:[#allocation6 + $0xae4] ss:$16 sps:$4 sm:$0xff]  }
 0x18e   : > { %3695 = vmatprep.subr.bf16.mxu1 %v12592_v31  ;;  %v12614_v31 = vld [vmem:[#allocation6 + $0x8e0] ss:$16 sps:$4 sm:$0xff]  }
 0x18f   : > { %3425 = vmatmul.mubr.bf16.gmra.mxu0 %v14538_v44 }
 0x190   : > { %3538 = vmatmul.mubr.bf16.gmra.mxu1 %v14540_v46  ;;  %3583 = vmatpush2.bf16.msra.mxu0 %v12587_v20 }
 0x191   : > { %3696 = vmatpush2.bf16.msra.mxu1 %v12590_v52  ;;  %3584 = vmatprep.subr.bf16.mxu0 %v12595_v42  ;;  %v12617_v42 = vld [vmem:[#allocation6 + $0xae0] ss:$16 sps:$4 sm:$0xff]  }
 0x192   : > { %3697 = vmatprep.subr.bf16.mxu1 %v12598_v59  ;;  %3434 = vmatprep.mubr.bf16.mxu0 %v14542_v49 }
 0x193   : > { %3547 = vmatprep.mubr.bf16.mxu1 %v14426_v53 }
 0x194   : > { %v2114_v35 = vpop.f32.mrf.mxu0  ;;  %3585 = vmatpush2.bf16.msra.mxu0 %v12593_v62  ;;  %v12622_v62 = vld [vmem:[#allocation6 + $0x8c4] ss:$16 sps:$4 sm:$0xff]  }
 0x195   : > { %v2227_v9 = vpop.f32.mrf.mxu1  ;;  %3698 = vmatpush2.bf16.msra.mxu1 %v12596_v63  ;;  %3586 = vmatprep.subr.bf16.mxu0 %v12604_v15 }
 0x196   : > { %v14550_v43 = vadd.f32 %v2227_v9, %v2114_v35  ;;  %v2116_v55 = vpop.f32.mrf.mxu0  ;;  %3699 = vmatprep.subr.bf16.mxu1 %v12607_v8  ;;  %v12625_v8 = vld [vmem:[#allocation6 + $0xac4] ss:$16 sps:$4 sm:$0xff]   ;;  %v12623_v9 = vld [vmem:[#allocation6 + $0xac0] ss:$16 sps:$4 sm:$0xff]  }
 0x197   : > { %v2229_v22 = vpop.f32.mrf.mxu1  ;;  %3435 = vmatmul.mubr.bf16.gmra.mxu0 %v14548_v47 }
 0x198   : > { %v14552_v27 = vadd.f32 %v2229_v22, %v2116_v55  ;;  %v2118_v24 = vpop.f32.mrf.mxu0  ;;  %3548 = vmatmul.mubr.bf16.gmra.mxu1 %v14428_v11  ;;  %3587 = vmatpush2.bf16.msra.mxu0 %v12602_v56  ;;  %v12620_v56 = vld [vmem:[#allocation6 + $0x8c0] ss:$16 sps:$4 sm:$0xff]  }
 0x199   : > { %v2231_v5 = vpop.f32.mrf.mxu1  ;;  %3700 = vmatpush2.bf16.msra.mxu1 %v12605_v39  ;;  %3588 = vmatprep.subr.bf16.mxu0 %v12610_v14  ;;  %v12628_v14 = vld [vmem:[#allocation6 + $0x8a4] ss:$16 sps:$4 sm:$0xff]  }
 0x19a   : > { %v14556_v17 = vadd.f32 %v2231_v5, %v2118_v24  ;;  %v2120_v10 = vpop.f32.mrf.mxu0  ;;  %3701 = vmatprep.subr.bf16.mxu1 %v12613_v50  ;;  %3590 = vmatprep.mubr.bf16.mxu0 %v14458_v30  ;;  %v12631_v50 = vld [vmem:[#allocation6 + $0xaa4] ss:$16 sps:$4 sm:$0xff]   ;;  %v12629_v5 = vld [vmem:[#allocation6 + $0xaa0] ss:$16 sps:$4 sm:$0xff]  }
 0x19b   : > { %v2233_v51 = vpop.f32.mrf.mxu1  ;;  %3703 = vmatprep.mubr.bf16.mxu1 %v14461_v60 }
 0x19c   : > { %v14559_v21 = vadd.f32 %v2233_v51, %v2120_v10  ;;  %v2124_v20 = vpop.f32.mrf.mxu0  ;;  %3589 = vmatpush2.bf16.msra.mxu0 %v12608_v57 }
 0x19d   : > { %v2237_v52 = vpop.f32.mrf.mxu1  ;;  %3702 = vmatpush2.bf16.msra.mxu1 %v12611_v37  ;;  %4892 = vmatprep.subr.bf16.mxu0 %v12616_v36  ;;  %v12634_v36 = vld [vmem:[#allocation6 + $0x884] ss:$16 sps:$4 sm:$0xff]  }
 0x19e   : > { %v14562_v59 = vadd.f32 %v2237_v52, %v2124_v20  ;;  %v2126_v63 = vpop.f32.mrf.mxu0  ;;  %5005 = vmatprep.subr.bf16.mxu1 %v12619_v58  ;;  %v12637_v58 = vld [vmem:[#allocation6 + $0xa84] ss:$16 sps:$4 sm:$0xff]   ;;  %v12635_v52 = vld [vmem:[#allocation6 + $0xa80] ss:$16 sps:$4 sm:$0xff]  }
 0x19f   : > { %v2239_v15 = vpop.f32.mrf.mxu1  ;;  %3591 = vmatmul.mubr.bf16.vlgmr.msra.gmra.mxu0 %v14464_v61  ;;  %v12626_v61 = vld [vmem:[#allocation6 + $0x8a0] ss:$16 sps:$4 sm:$0xff]  }
 0x1a0   : > { %v14564_v30 = vadd.f32 %v2239_v15, %v2126_v63  ;;  %v2128_v60 = vpop.f32.mrf.mxu0  ;;  %3704 = vmatmul.mubr.bf16.vlgmr.msra.gmra.mxu1 %v14467_v12  ;;  %4893 = vmatpush1.bf16.msra.mxu0 %v12614_v31  ;;  %v12632_v31 = vld [vmem:[#allocation6 + $0x880] ss:$16 sps:$4 sm:$0xff]  }
 0x1a1   : > { %v2241_v35 = vpop.f32.mrf.mxu1  ;;  %5006 = vmatpush1.bf16.msra.mxu1 %v12617_v42  ;;  %4894 = vmatprep.subr.bf16.mxu0 %v12622_v62  ;;  %v12640_v62 = vld [vmem:[#allocation6 + $0x864] ss:$16 sps:$4 sm:$0xff]  }
 0x1a2   : > { %v14568_v39 = vadd.f32 %v2241_v35, %v2128_v60  ;;  %v2130_v55 = vpop.f32.mrf.mxu0  ;;  %5007 = vmatprep.subr.bf16.mxu1 %v12625_v8  ;;  %3600 = vmatprep.mubr.bf16.mxu0 %v14470_v54  ;;  %v12643_v8 = vld [vmem:[#allocation6 + $0xa64] ss:$16 sps:$4 sm:$0xff]  }
 0x1a3   : > { %v2243_v22 = vpop.f32.mrf.mxu1  ;;  %3713 = vmatprep.mubr.bf16.mxu1 %v14473_v0 }
 0x1a4   : > { %v14571_v57 = vadd.f32 %v2243_v22, %v2130_v55  ;;  %v2134_v24 = vpop.f32.mrf.mxu0  ;;  %4895 = vmatpush1.bf16.msra.mxu0 %v12620_v56 }
 0x1a5   : > { %v2247_v12 = vpop.f32.mrf.mxu1  ;;  %5008 = vmatpush1.bf16.msra.mxu1 %v12623_v9  ;;  %4896 = vmatprep.subr.bf16.mxu0 %v12628_v14  ;;  %v12641_v9 = vld [vmem:[#allocation6 + $0xa60] ss:$16 sps:$4 sm:$0xff]   ;;  %v12646_v14 = vld [vmem:[#allocation6 + $0x844] ss:$16 sps:$4 sm:$0xff]  }
 0x1a6   : > { %v14574_v37 = vadd.f32 %v2247_v12, %v2134_v24  ;;  %v2136_v10 = vpop.f32.mrf.mxu0  ;;  %5009 = vmatprep.subr.bf16.mxu1 %v12631_v50  ;;  %v12649_v50 = vld [vmem:[#allocation6 + $0xa44] ss:$16 sps:$4 sm:$0xff]   ;;  %v12647_v12 = vld [vmem:[#allocation6 + $0xa40] ss:$16 sps:$4 sm:$0xff]  }
 0x1a7   : > { %v2249_v51 = vpop.f32.mrf.mxu1  ;;  %3601 = vmatmul.mubr.bf16.gmra.mxu0 %v14476_v23 }
 0x1a8   : > { %v14576_v54 = vadd.f32 %v2249_v51, %v2136_v10  ;;  %v2138_v0 = vpop.f32.mrf.mxu0  ;;  %3714 = vmatmul.mubr.bf16.gmra.mxu1 %v14479_v6  ;;  %4897 = vmatpush1.bf16.msra.mxu0 %v12626_v61  ;;  %v12638_v6 = vld [vmem:[#allocation6 + $0x860] ss:$16 sps:$4 sm:$0xff]  }
 0x1a9   : > { %v2251_v20 = vpop.f32.mrf.mxu1  ;;  %5010 = vmatpush1.bf16.msra.mxu1 %v12629_v5  ;;  %4898 = vmatprep.subr.bf16.mxu0 %v12634_v36  ;;  %v12644_v61 = vld [vmem:[#allocation6 + $0x840] ss:$16 sps:$4 sm:$0xff]   ;;  %v12652_v36 = vld [vmem:[#allocation6 + $0x824] ss:$16 sps:$4 sm:$0xff]  }
 0x1aa   : > { %v14580_v42 = vadd.f32 %v2251_v20, %v2138_v0  ;;  %v2140_v63 = vpop.f32.mrf.mxu0  ;;  %5011 = vmatprep.subr.bf16.mxu1 %v12637_v58  ;;  %3610 = vmatprep.mubr.bf16.mxu0 %v14482_v18  ;;  %v12655_v58 = vld [vmem:[#allocation6 + $0xa24] ss:$16 sps:$4 sm:$0xff]  }
 0x1ab   : > { %v2253_v15 = vpop.f32.mrf.mxu1  ;;  %3723 = vmatprep.mubr.bf16.mxu1 %v14485_v7 }
 0x1ac   : > { %v14583_v56 = vadd.f32 %v2253_v15, %v2140_v63  ;;  %v2144_v23 = vpop.f32.mrf.mxu0  ;;  %4899 = vmatpush1.bf16.msra.mxu0 %v12632_v31 }
 0x1ad   : > { %v2257_v60 = vpop.f32.mrf.mxu1  ;;  %5012 = vmatpush1.bf16.msra.mxu1 %v12635_v52  ;;  %4900 = vmatprep.subr.bf16.mxu0 %v12640_v62  ;;  %v12653_v52 = vld [vmem:[#allocation6 + $0xa20] ss:$16 sps:$4 sm:$0xff]   ;;  %v12658_v62 = vld [vmem:[#allocation6 + $0x804] ss:$16 sps:$4 sm:$0xff]  }
 0x1ae   : > { %v14586_v35 = vadd.f32 %v2257_v60, %v2144_v23  ;;  %v2146_v55 = vpop.f32.mrf.mxu0  ;;  %5013 = vmatprep.subr.bf16.mxu1 %v12643_v8  ;;  %v12661_v8 = vld [vmem:[#allocation6 + $0xa04] ss:$16 sps:$4 sm:$0xff]   ;;  %v12656_v23 = vld [vmem:[#allocation6 + $0x800] ss:$16 sps:$4 sm:$0xff]  }
 0x1af   : > { %v2259_v22 = vpop.f32.mrf.mxu1  ;;  %3611 = vmatmul.mubr.bf16.gmra.mxu0 %v14490_v41 }
 0x1b0   : > { %v14588_v18 = vadd.f32 %v2259_v22, %v2146_v55  ;;  %v2148_v7 = vpop.f32.mrf.mxu0  ;;  %3724 = vmatmul.mubr.bf16.gmra.mxu1 %v14492_v3  ;;  %4901 = vmatpush1.bf16.msra.mxu0 %v12638_v6  ;;  %v12650_v3 = vld [vmem:[#allocation6 + $0x820] ss:$16 sps:$4 sm:$0xff]  }
 0x1b1   : > { %v2261_v24 = vpop.f32.mrf.mxu1  ;;  %5014 = vmatpush1.bf16.msra.mxu1 %v12641_v9  ;;  %4902 = vmatprep.subr.bf16.mxu0 %v12646_v14  ;;  %v12659_v6 = vld [vmem:[#allocation6 + $0xa00] ss:$16 sps:$4 sm:$0xff]   ;;  %v12664_v14 = vld [vmem:[#allocation6 + $0x9e4] ss:$16 sps:$4 sm:$0xff]  }
 0x1b2   : > { %17706 = vst [vmem:[#allocation24_spill] sm:$0xff] %v14588_v18  ;;  %v14592_v5 = vadd.f32 %v2261_v24, %v2148_v7  ;;  %v2150_v10 = vpop.f32.mrf.mxu0  ;;  %5015 = vmatprep.subr.bf16.mxu1 %v12649_v50  ;;  %3620 = vmatprep.mubr.bf16.mxu0 %v14494_v40  ;;  %v12667_v50 = vld [vmem:[#allocation6 + $0xbe4] ss:$16 sps:$4 sm:$0xff]   ;;  %v12665_v7 = vld [vmem:[#allocation6 + $0xbe0] ss:$16 sps:$4 sm:$0xff]  }
 0x1b3   : > { %v2263_v51 = vpop.f32.mrf.mxu1  ;;  %3733 = vmatprep.mubr.bf16.mxu1 %v14497_v13  ;;  %v12670_v24 = vld [vmem:[#allocation6 + $0x9c4] ss:$16 sps:$4 sm:$0xff]  }
 0x1b4   : > { %17707 = vst [vmem:[#allocation25_spill] sm:$0xff] %v14592_v5  ;;  %v14595_v31 = vadd.f32 %v2263_v51, %v2150_v10  ;;  %v2154_v41 = vpop.f32.mrf.mxu0  ;;  %4903 = vmatpush1.bf16.msra.mxu0 %v12644_v61  ;;  %v12668_v10 = vld [vmem:[#allocation6 + $0x9c0] ss:$16 sps:$4 sm:$0xff]  }
 0x1b5   : > { %v2267_v0 = vpop.f32.mrf.mxu1  ;;  %5016 = vmatpush1.bf16.msra.mxu1 %v12647_v12  ;;  %4904 = vmatprep.subr.bf16.mxu0 %v12652_v36  ;;  %v12673_v12 = vld [vmem:[#allocation6 + $0xbc4] ss:$16 sps:$4 sm:$0xff]  }
 0x1b6   : > { %17708 = vst [vmem:[#allocation26_spill] sm:$0xff] %v14595_v31  ;;  %v14598_v20 = vadd.f32 %v2267_v0, %v2154_v41  ;;  %v2156_v63 = vpop.f32.mrf.mxu0  ;;  %5017 = vmatprep.subr.bf16.mxu1 %v12655_v58  ;;  %v12676_v41 = vld [vmem:[#allocation6 + $0x9a4] ss:$16 sps:$4 sm:$0xff]  }
 0x1b7   : > { %v2269_v15 = vpop.f32.mrf.mxu1  ;;  %3621 = vmatmul.mubr.bf16.gmra.mxu0 %v14502_v32  ;;  %v12662_v32 = vld [vmem:[#allocation6 + $0x9e0] ss:$16 sps:$4 sm:$0xff]  }
 0x1b8   : > { %17709 = vst [vmem:[#allocation27_spill] sm:$0xff] %v14598_v20  ;;  %v14600_v40 = vadd.f32 %v2269_v15, %v2156_v63  ;;  %v2158_v13 = vpop.f32.mrf.mxu0  ;;  %3734 = vmatmul.mubr.bf16.gmra.mxu1 %v14504_v48  ;;  %4905 = vmatpush1.bf16.msra.mxu0 %v12650_v3  ;;  %v12679_v3 = vld [vmem:[#allocation6 + $0xba4] ss:$16 sps:$4 sm:$0xff]   ;;  %v12677_v15 = vld [vmem:[#allocation6 + $0xba0] ss:$16 sps:$4 sm:$0xff]  }
 0x1b9   : > { %v2271_v60 = vpop.f32.mrf.mxu1  ;;  %5018 = vmatpush1.bf16.msra.mxu1 %v12653_v52  ;;  %4906 = vmatprep.subr.bf16.mxu0 %v12658_v62  ;;  %v3815_v20 = vld [vmem:[#allocation2 + $0x48] sm:$0xee] }
 0x1ba   : > { %17710 = vst [vmem:[#allocation28_spill] sm:$0xff] %v14600_v40  ;;  %v14604_v9 = vadd.f32 %v2271_v60, %v2158_v13  ;;  %v2160_v55 = vpop.f32.mrf.mxu0  ;;  %5019 = vmatprep.subr.bf16.mxu1 %v12661_v8  ;;  %3630 = vmatprep.mubr.bf16.mxu0 %v14506_v16  ;;  %v12671_v16 = vld [vmem:[#allocation6 + $0xbc0] ss:$16 sps:$4 sm:$0xff]   ;;  %v12682_v8 = vld [vmem:[#allocation6 + $0x984] ss:$16 sps:$4 sm:$0xff]  }
 0x1bb   : > { %v2273_v22 = vpop.f32.mrf.mxu1  ;;  %3743 = vmatprep.mubr.bf16.mxu1 %v14509_v2  ;;  %v12685_v13 = vld [vmem:[#allocation6 + $0xb84] ss:$16 sps:$4 sm:$0xff]  }
 0x1bc   : > { %17711 = vst [vmem:[#allocation29_spill] sm:$0xff] %v14604_v9  ;;  %v14607_v61 = vadd.f32 %v2273_v22, %v2160_v55  ;;  %4907 = vmatpush1.bf16.msra.mxu0 %v12656_v23  ;;  %v2164_v48 = vpop.f32.mrf.mxu0  ;;  %v3786_v55 = vld [vmem:[#allocation2 + $0x120] sm:$0xff]  ;;  %v14624_v22 = vld [vmem:[#allocation2 + $0xe8] sm:$0xff] }
 0x1bd   : > { %5020 = vmatpush1.bf16.msra.mxu1 %v12659_v6  ;;  %4908 = vmatprep.subr.bf16.mxu0 %v12664_v14  ;;  %v2277_v51 = vpop.f32.mrf.mxu1  ;;  %v12683_v6 = vld [vmem:[#allocation6 + $0xb80] ss:$16 sps:$4 sm:$0xff]  }
 0x1be   : > { %17712 = vst [vmem:[#allocation30_spill] sm:$0xff] %v14607_v61  ;;  %5021 = vmatprep.subr.bf16.mxu1 %v12667_v50  ;;  %v2166_v36 = vpop.f32.mrf.mxu0  ;;  %v14612_v58 = vadd.f32 %v2277_v51, %v2164_v48  ;;  %v12691_v50 = vld [vmem:[#allocation6 + $0xb64] ss:$16 sps:$4 sm:$0xff]   ;;  %v12686_v48 = vld [vmem:[#allocation6 + $0x960] ss:$16 sps:$4 sm:$0xff]   ;;  %v3889_v51 = vrot.slane %v14624_v22, 5 }
 0x1bf   : > { %3631 = vmatmul.mubr.bf16.gmra.mxu0 %v14512_v1  ;;  %v2279_v0 = vpop.f32.mrf.mxu1  ;;  %v14700_v61 = vld [vmem:[#allocation2 + $0x58] sm:$0xff]  ;;  %v14794_v40 = vld [vmem:[#allocation2 + $0x60] sm:$0x11] }
 0x1c0   : > { %3744 = vmatmul.mubr.bf16.gmra.mxu1 %v14515_v4  ;;  %4909 = vmatpush2.bf16.msra.mxu0 %v12662_v32  ;;  %17713 = vst [vmem:[#allocation31_spill] sm:$0xff] %v14612_v58  ;;  %v2168_v2 = vpop.f32.mrf.mxu0  ;;  %v14615_v52 = vadd.f32 %v2279_v0, %v2166_v36  ;;  %v12674_v4 = vld [vmem:[#allocation6 + $0x9a0] ss:$16 sps:$4 sm:$0xff]  }
 0x1c1   : > { %5022 = vmatpush2.bf16.msra.mxu1 %v12665_v7  ;;  %4910 = vmatprep.subr.bf16.mxu0 %v12670_v24  ;;  %v2281_v1 = vpop.f32.mrf.mxu1  ;;  %v12689_v7 = vld [vmem:[#allocation6 + $0xb60] ss:$16 sps:$4 sm:$0xff]   ;;  %v3885_v24 = vrot.slane %v3786_v55, 5 }
 0x1c2   : > { %5023 = vmatprep.subr.bf16.mxu1 %v12673_v12  ;;  %3640 = vmatprep.mubr.bf16.mxu0 %v14518_v19  ;;  %17714 = vst [vmem:[#allocation32_spill] sm:$0xff] %v14615_v52  ;;  %v2170_v62 = vpop.f32.mrf.mxu0  ;;  %v14618_v63 = vadd.f32 %v2281_v1, %v2168_v2  ;;  %v12680_v19 = vld [vmem:[#allocation6 + $0x980] ss:$16 sps:$4 sm:$0xff]  }
 0x1c3   : > { %3753 = vmatprep.mubr.bf16.mxu1 %v14521_v26  ;;  %v2283_v23 = vpop.f32.mrf.mxu1  ;;  %v12688_v26 = vld [vmem:[#allocation6 + $0x964] ss:$16 sps:$4 sm:$0xff]   ;;  %v12692_v0 = vld [vmem:[#allocation6 + $0x940] ss:$16 sps:$4 sm:$0xff]  }
 0x1c4   : > { %4911 = vmatpush2.bf16.msra.mxu0 %v12668_v10  ;;  %17715 = vst [vmem:[#allocation33_spill] sm:$0xff] %v14618_v63  ;;  %v14620_v60 = vadd.f32 %v2283_v23, %v2170_v62  ;;  %v3784_v36 = vld [vmem:[#allocation2 + $0xb0] sm:$0xee]  ;;  %v3788_v10 = vld [vmem:[#allocation2 + $0x20] sm:$0x11]  ;;  %v3891_v23 = vrot.slane %v3885_v24, 4 }
 0x1c5   : > { %5024 = vmatpush2.bf16.msra.mxu1 %v12671_v16  ;;  %4912 = vmatprep.subr.bf16.mxu0 %v12676_v41  ;;  %v12694_v16 = vld [vmem:[#allocation6 + $0x944] ss:$16 sps:$4 sm:$0xff]   ;;  %v12695_v62 = vld [vmem:[#allocation6 + $0xb40] ss:$16 sps:$4 sm:$0xff]   ;;  %v12751_v63 = vld [vmem:[#allocation6 + $0xa2c] ss:$16 sps:$4 sm:$0xff]  }
 0x1c6   : > { %5025 = vmatprep.subr.bf16.mxu1 %v12679_v3  ;;  %17716 = vst [vmem:[#allocation34_spill] sm:$0xff] %v14620_v60  ;;  %v3785_v2 = vld [vmem:[#allocation2 + $0x110] sm:$0xee]  ;;  %v3789_v41 = vld [vmem:[#allocation2 + $0xa0] sm:$0x11] }
 0x1c7   : > { %3641 = vmatmul.mubr.bf16.gmra.mxu0 %v14526_v28  ;;  %v12697_v3 = vld [vmem:[#allocation6 + $0xb44] ss:$16 sps:$4 sm:$0xff]   ;;  %v3895_v55 = vrot.slane %v3789_v41, 5 }
 0x1c8   : > { %3754 = vmatmul.mubr.bf16.gmra.mxu1 %v14528_v34  ;;  %4913 = vmatpush2.bf16.msra.mxu0 %v12674_v4  ;;  %v2174_v14 = vpop.f32.mrf.mxu0 }
 0x1c9   : > { %5026 = vmatpush2.bf16.msra.mxu1 %v12677_v15  ;;  %4914 = vmatprep.subr.bf16.mxu0 %v12682_v8  ;;  %v2287_v28 = vpop.f32.mrf.mxu1  ;;  %v12700_v15 = vld [vmem:[#allocation6 + $0x924] ss:$16 sps:$4 sm:$0xff]   ;;  %v11341_v8 = vrot.slane %v3784_v36, 9 }
 0x1ca   : > { %5027 = vmatprep.subr.bf16.mxu1 %v12685_v13  ;;  %3650 = vmatprep.mubr.bf16.mxu0 %v14530_v33  ;;  %v2176_v32 = vpop.f32.mrf.mxu0  ;;  %v14628_v34 = vadd.f32 %v2287_v28, %v2174_v14  ;;  %v3892_v13 = vrot.slane %v3788_v10, 5  ;;  %v3894_v14 = vrot.slane %v3889_v51, 4  ;;  %v12703_v28 = vld [vmem:[#allocation6 + $0xb24] ss:$16 sps:$4 sm:$0xff]   ;;  %v3794_v10 = vld [vmem:[#allocation2 + $0xa8] sm:$0x11] }
 0x1cb   : > { %3763 = vmatprep.mubr.bf16.mxu1 %v14533_v38  ;;  %v2289_v33 = vpop.f32.mrf.mxu1  ;;  %v3790_v36 = vld [vmem:[#allocation2 + $0x30] sm:$0xee] }
 0x1cc   : > { %4915 = vmatpush2.bf16.msra.mxu0 %v12680_v19  ;;  %17717 = vst [vmem:[#allocation35_spill] sm:$0xff] %v14628_v34  ;;  %v2178_v12 = vpop.f32.mrf.mxu0  ;;  %v14631_v38 = vadd.f32 %v2289_v33, %v2176_v32  ;;  %v14634_v19 = vld [vmem:[#allocation2 + $0x68] sm:$0xff]  ;;  %v3896_v41 = vsel %vm14641_vm5, %v3894_v14, %v3895_v55  ;;  %v14666_v55 = vld [vmem:[#allocation2 + $0xe0] sm:$0xff] }
 0x1cd   : > { %5028 = vmatpush2.bf16.msra.mxu1 %v12683_v6  ;;  %4916 = vmatprep.subr.bf16.mxu0 %v12688_v26  ;;  %v2291_v1 = vpop.f32.mrf.mxu1  ;;  %v17720_v26 = vmov 0 }
 0x1ce   : > { %5029 = vmatprep.subr.bf16.mxu1 %v12691_v50  ;;  %17718 = vst [vmem:[#allocation36_spill] sm:$0xff] %v14631_v38  ;;  %v2180_v4 = vpop.f32.mrf.mxu0  ;;  %v14637_v6 = vadd.f32 %v2291_v1, %v2178_v12  ;;  %v17721_v26 = vsel %vm14641_vm5, 4294967295, %v17720_v26  ;;  %v14645_v50 = vld [vmem:[#allocation2 + $0x98] sm:$0xff]  ;;  %v3886_v12 = vsel %vm14641_vm5, %v11341_v8, %v3885_v24  ;;  %v12709_v24 = vld [vmem:[#allocation6 + $0xb04] ss:$16 sps:$4 sm:$0xff]  }
 0x1cf   : > { %3651 = vmatmul.mubr.bf16.gmra.mxu0 %v14538_v44  ;;  %17722 = vst [vmem:[#allocation38_spill] sm:$0xff] %v17721_v26  ;;  %v11342_v44 = vrot.slane %v3785_v2, 9  ;;  %v2293_v22 = vpop.f32.mrf.mxu1  ;;  %v12706_v2 = vld [vmem:[#allocation6 + $0x904] ss:$16 sps:$4 sm:$0xff]  }
 0x1d0   : > { %3764 = vmatmul.mubr.bf16.gmra.mxu1 %v14540_v46  ;;  %4917 = vmatpush2.bf16.msra.mxu0 %v12686_v48  ;;  %17719 = vst [vmem:[#allocation37_spill] sm:$0xff] %v14637_v6  ;;  %v14647_v32 = vadd.f32 %v2293_v22, %v2180_v4  ;;  %v12698_v46 = vld [vmem:[#allocation6 + $0x920] ss:$16 sps:$4 sm:$0xff]   ;;  %v3899_v48 = vrot.slane %v14634_v19, 5  ;;  %v12808_v26 = vld [vmem:[#allocation8 + $0x4e4] ss:$16 sps:$4 sm:$0xff]  }
 0x1d1   : > { %5030 = vmatpush2.bf16.msra.mxu1 %v12689_v7  ;;  %4918 = vmatprep.subr.bf16.mxu0 %v12694_v16  ;;  %v3893_v7 = vsel %vm14641_vm5, %v3891_v23, %v3892_v13  ;;  %v12701_v16 = vld [vmem:[#allocation6 + $0xb20] ss:$16 sps:$4 sm:$0xff]   ;;  %v3906_v13 = vrot.slane %v3794_v10, 5 }
 0x1d2   : > { %5031 = vmatprep.subr.bf16.mxu1 %v12697_v3  ;;  %17723 = vst [vmem:[#allocation39_spill] sm:$0xff] %v14647_v32  ;;  %3660 = vmatprep.mubr.bf16.mxu0 %v14542_v49  ;;  %v3890_v49 = vsel %vm14641_vm5, %v11342_v44, %v3889_v51  ;;  %v3791_v3 = vld [vmem:[#allocation2 + $0xc8] sm:$0xee]  ;;  %v3795_v1 = vld [vmem:[#allocation2 + $0x70] sm:$0x11]  ;;  %v14661_v8 = vcombine.high %v3886_v12, %v3893_v7  ;;  %v3905_v23 = vrot.slane %v3899_v48, 4 }
 0x1d3   : > { %3773 = vmatprep.mubr.bf16.mxu1 %v14426_v53  ;;  %v3903_v53 = vrot.slane %v14645_v50, 5  ;;  %v12704_v51 = vld [vmem:[#allocation6 + $0x900] ss:$16 sps:$4 sm:$0xff]   ;;  %v14664_v14 = vcombine.high %v3890_v49, %v3896_v41  ;;  %v11344_v22 = vrot.slane %v3791_v3, 9  ;;  %v14681_v29 = vcombine.low %v3886_v12, %v3893_v7  ;;  %v3801_v7 = vld [vmem:[#allocation2 + $0x88] sm:$0x11] }
 0x1d4   : > { %4919 = vmatpush2.bf16.msra.mxu0 %v12692_v0  ;;  %v2184_v33 = vpop.f32.mrf.mxu0  ;;  %v11343_v0 = vrot.slane %v3790_v36, 9  ;;  %v12707_v44 = vld [vmem:[#allocation6 + $0xb00] ss:$16 sps:$4 sm:$0xff]   ;;  %v14671_v36 = vld [vmem:[#allocation2 + $0x38] sm:$0xff] }
 0x1d5   : > { %5032 = vmatpush2.bf16.msra.mxu1 %v12695_v62  ;;  %4920 = vmatprep.subr.bf16.mxu0 %v12700_v15  ;;  %v3908_v50 = vrot.slane %v3903_v53, 4  ;;  %v3796_v3 = vld [vmem:[#allocation2 + $0x130] sm:$0xee]  ;;  %v12721_v32 = vld [vmem:[#allocation6 + $0xacc] ss:$16 sps:$4 sm:$0xff]   ;;  %v14741_v38 = vld [vmem:[#allocation2] sm:$0xff] }
 0x1d6   : > { %5033 = vmatprep.subr.bf16.mxu1 %v12703_v28  ;;  %v2186_v4 = vpop.f32.mrf.mxu0  ;;  %v2297_v19 = vpop.f32.mrf.mxu1  ;;  %v3909_v28 = vrot.slane %v3795_v1, 5  ;;  %v3913_v1 = vrot.slane %v14666_v55, 5 }
 0x1d7   : > { %3661 = vmatmul.mubr.bf16.gmra.mxu0 %v14548_v47  ;;  %v14668_v62 = vadd.f32 %v2297_v19, %v2184_v33  ;;  %v12712_v47 = vld [vmem:[#allocation6 + $0x8ec] ss:$16 sps:$4 sm:$0xff]  }
 0x1d8   : > { %3774 = vmatmul.mubr.bf16.gmra.mxu1 %v14428_v11  ;;  %4921 = vmatpush2.bf16.msra.mxu0 %v12698_v46  ;;  %v2188_v15 = vpop.f32.mrf.mxu0  ;;  %v2299_v10 = vpop.f32.mrf.mxu1  ;;  %v12715_v33 = vld [vmem:[#allocation6 + $0xaec] ss:$16 sps:$4 sm:$0xff]   ;;  %v3900_v11 = vsel %vm14641_vm5, %v11343_v0, %v3899_v48  ;;  %v3907_v46 = vsel %vm14641_vm5, %v3905_v23, %v3906_v13  ;;  %v14687_v48 = vcombine.low %v3890_v49, %v3896_v41  ;;  %v12710_v0 = vld [vmem:[#allocation6 + $0x8e8] ss:$16 sps:$4 sm:$0xff]   ;;  %v3919_v41 = vrot.slane %v3913_v1, 4 }
 0x1d9   : > { %17724 = vst [vmem:[#allocation40_spill] sm:$0xff] %v14668_v62  ;;  %5034 = vmatpush2.bf16.msra.mxu1 %v12701_v16  ;;  %4922 = vmatprep.subr.bf16.mxu0 %v12706_v2  ;;  %v14673_v45 = vadd.f32 %v2299_v10, %v2186_v4  ;;  %v3800_v2 = vld [vmem:[#allocation2 + $0x140] sm:$0x11]  ;;  %v3917_v4 = vrot.slane %v14671_v36, 5  ;;  %v12713_v23 = vld [vmem:[#allocation6 + $0xae8] ss:$16 sps:$4 sm:$0xff]   ;;  %v3904_v13 = vsel %vm14641_vm5, %v11344_v22, %v3903_v53 }
 0x1da   : > { %5035 = vmatprep.subr.bf16.mxu1 %v12709_v24  ;;  %4924 = vmatprep.mubr.bf16.mxu0 %v14661_v8  ;;  %v2301_v19 = vpop.f32.mrf.mxu1  ;;  %v2190_v16 = vpop.f32.mrf.mxu0  ;;  %v3797_v24 = vld [vmem:[#allocation2 + $0x78] sm:$0xee]  ;;  %v3910_v12 = vsel %vm14641_vm5, %v3908_v50, %v3909_v28  ;;  %v14693_v36 = vcombine.high %v3900_v11, %v3907_v46 }
 0x1db   : > { %17725 = vst [vmem:[#allocation41_spill] sm:$0xff] %v14673_v45  ;;  %5037 = vmatprep.mubr.bf16.mxu1 %v14664_v14  ;;  %v14685_v10 = vadd.f32 %v2301_v19, %v2188_v15  ;;  %v11345_v15 = vrot.slane %v3796_v3, 9  ;;  %v12716_v49 = vld [vmem:[#allocation6 + $0x8c8] ss:$16 sps:$4 sm:$0xff]   ;;  %v3920_v19 = vrot.slane %v3800_v2, 5  ;;  %v11346_v60 = vrot.slane %v3797_v24, 9 }
 0x1dc   : > { %4923 = vmatpush2.bf16.msra.mxu0 %v12704_v51  ;;  %v2303_v55 = vpop.f32.mrf.mxu1  ;;  %v12719_v22 = vld [vmem:[#allocation6 + $0xac8] ss:$16 sps:$4 sm:$0xff]   ;;  %v14698_v50 = vcombine.high %v3904_v13, %v3910_v12  ;;  %v3922_v28 = vrot.slane %v3917_v4, 4  ;;  %v14707_v2 = vcombine.low %v3900_v11, %v3907_v46  ;;  %v12727_v24 = vld [vmem:[#allocation6 + $0xaac] ss:$16 sps:$4 sm:$0xff]   ;;  %v3927_v46 = vrot.slane %v14700_v61, 5 }
 0x1dd   : > { %17726 = vst [vmem:[#allocation42_spill] sm:$0xff] %v14685_v10  ;;  %5036 = vmatpush2.bf16.msra.mxu1 %v12707_v44  ;;  %5118 = vmatprep.subr.bf16.mxu0 %v12712_v47  ;;  %v14695_v51 = vadd.f32 %v2303_v55, %v2190_v16  ;;  %v12724_v44 = vld [vmem:[#allocation6 + $0x8ac] ss:$16 sps:$4 sm:$0xff]   ;;  %v3923_v47 = vrot.slane %v3801_v7, 5  ;;  %v3914_v7 = vsel %vm14641_vm5, %v11345_v15, %v3913_v1 }
 0x1de   : > { %5231 = vmatprep.subr.bf16.mxu1 %v12715_v33  ;;  %v14703_v33 = vld [vmem:[#allocation2 + $0x8] sm:$0xff] }
 0x1df   : > { %17727 = vst [vmem:[#allocation43_spill] sm:$0xff] %v14695_v51  ;;  %v2340_v53 = vpop.f32.mrf.mxu0  ;;  %4925 = vmatmul.mubr.bf16.vlgmr.msra.gmra.mxu0 %v14681_v29  ;;  %v3803_v1 = vld [vmem:[#allocation2 + $0x168] sm:$0xee]  ;;  %v3931_v15 = vrot.slane %v14703_v33, 5 }
 0x1e0   : > { %v2453_v10 = vpop.f32.mrf.mxu1  ;;  %5038 = vmatmul.mubr.bf16.vlgmr.msra.gmra.mxu1 %v14687_v48  ;;  %5119 = vmatpush1.bf16.msra.mxu0 %v12710_v0  ;;  %v3921_v0 = vsel %vm14641_vm5, %v3919_v41, %v3920_v19  ;;  %v3807_v19 = vld [vmem:[#allocation2 + $0x138] sm:$0x11]  ;;  %v11348_v33 = vrot.slane %v3803_v1, 9 }
 0x1e1   : > { %v14705_v3 = vadd.f32 %v2453_v10, %v2340_v53  ;;  %5232 = vmatpush1.bf16.msra.mxu1 %v12713_v23  ;;  %v2342_v16 = vpop.f32.mrf.mxu0  ;;  %5120 = vmatprep.subr.bf16.mxu0 %v12718_v25  ;;  %v14716_v10 = vsel %vm14641_vm5, %v11346_v60, %v3917_v4  ;;  %v3802_v23 = vld [vmem:[#allocation2 + $0xc0] sm:$0xee]  ;;  %v3806_v53 = vld [vmem:[#allocation2 + $0xb8] sm:$0x11]  ;;  %v14727_v60 = vcombine.low %v3904_v13, %v3910_v12  ;;  %v3936_v45 = vrot.slane %v3931_v15, 4 }
 0x1e2   : > { %v2455_v55 = vpop.f32.mrf.mxu1  ;;  %5233 = vmatprep.subr.bf16.mxu1 %v12721_v32  ;;  %4934 = vmatprep.mubr.bf16.mxu0 %v14693_v36  ;;  %v14723_v32 = vsel %vm14641_vm5, %v3922_v28, %v3923_v47  ;;  %v12722_v4 = vld [vmem:[#allocation6 + $0x8a8] ss:$16 sps:$4 sm:$0xff]   ;;  %v12733_v28 = vld [vmem:[#allocation6 + $0xa8c] ss:$16 sps:$4 sm:$0xff]   ;;  %v14731_v47 = vcombine.high %v3914_v7, %v3921_v0  ;;  %v11347_v13 = vrot.slane %v3802_v23, 9  ;;  %v3934_v12 = vrot.slane %v3806_v53, 5 }
 0x1e3   : > { %17728 = vst [vmem:[#allocation44_spill] sm:$0xff] %v14705_v3  ;;  %v14718_v25 = vadd.f32 %v2455_v55, %v2342_v16  ;;  %v2344_v11 = vpop.f32.mrf.mxu0  ;;  %5047 = vmatprep.mubr.bf16.mxu1 %v14698_v50  ;;  %v12725_v51 = vld [vmem:[#allocation6 + $0xaa8] ss:$16 sps:$4 sm:$0xff]   ;;  %v3937_v62 = vrot.slane %v3807_v19, 5 }
 0x1e4   : > { %v2457_v41 = vpop.f32.mrf.mxu1  ;;  %5121 = vmatpush1.bf16.msra.mxu0 %v12716_v49  ;;  %v12728_v3 = vld [vmem:[#allocation6 + $0x888] ss:$16 sps:$4 sm:$0xff]   ;;  %v14735_v49 = vcombine.high %v14716_v10, %v14723_v32 }
 0x1e5   : > { %17729 = vst [vmem:[#allocation45_spill] sm:$0xff] %v14718_v25  ;;  %v14729_v16 = vadd.f32 %v2457_v41, %v2344_v11  ;;  %5234 = vmatpush1.bf16.msra.mxu1 %v12719_v22  ;;  %v2346_v55 = vpop.f32.mrf.mxu0  ;;  %5122 = vmatprep.subr.bf16.mxu0 %v12724_v44  ;;  %v12730_v25 = vld [vmem:[#allocation6 + $0x88c] ss:$16 sps:$4 sm:$0xff]   ;;  %v12731_v44 = vld [vmem:[#allocation6 + $0xa88] ss:$16 sps:$4 sm:$0xff]  }
 0x1e6   : > { %v2459_v61 = vpop.f32.mrf.mxu1  ;;  %5235 = vmatprep.subr.bf16.mxu1 %v12727_v24  ;;  %v12736_v41 = vld [vmem:[#allocation6 + $0x86c] ss:$16 sps:$4 sm:$0xff]   ;;  %v12734_v19 = vld [vmem:[#allocation6 + $0x868] ss:$16 sps:$4 sm:$0xff]  }
 0x1e7   : > { %17730 = vst [vmem:[#allocation46_spill] sm:$0xff] %v14729_v16  ;;  %v14737_v11 = vadd.f32 %v2459_v61, %v2346_v55  ;;  %v2350_v22 = vpop.f32.mrf.mxu0  ;;  %4935 = vmatmul.mubr.bf16.gmra.mxu0 %v14707_v2  ;;  %v3933_v16 = vrot.slane %v3927_v46, 4  ;;  %v12739_v24 = vld [vmem:[#allocation6 + $0xa6c] ss:$16 sps:$4 sm:$0xff]   ;;  %v14747_v61 = vcombine.low %v3914_v7, %v3921_v0  ;;  %v12737_v7 = vld [vmem:[#allocation6 + $0xa68] ss:$16 sps:$4 sm:$0xff]  }
 0x1e8   : > { %v2463_v6 = vpop.f32.mrf.mxu1  ;;  %5048 = vmatmul.mubr.bf16.gmra.mxu1 %v14727_v60  ;;  %5123 = vmatpush1.bf16.msra.mxu0 %v12722_v4  ;;  %v14745_v1 = vld [vmem:[#allocation2 + $0x158] sm:$0xff]  ;;  %v3928_v4 = vsel %vm14641_vm5, %v11347_v13, %v3927_v46  ;;  %v3938_v46 = vsel %vm14641_vm5, %v3936_v45, %v3937_v62  ;;  %v3809_v13 = vld [vmem:[#allocation2 + $0x40] sm:$0xee] }
 0x1e9   : > { %17731 = vst [vmem:[#allocation47_spill] sm:$0xff] %v14737_v11  ;;  %v14743_v23 = vadd.f32 %v2463_v6, %v2350_v22  ;;  %5236 = vmatpush1.bf16.msra.mxu1 %v12725_v51  ;;  %v2352_v53 = vpop.f32.mrf.mxu0  ;;  %5124 = vmatprep.subr.bf16.mxu0 %v12730_v25  ;;  %v14754_v11 = vsel %vm14641_vm5, %v11348_v33, %v3931_v15  ;;  %v14756_v6 = vld [vmem:[#allocation2 + $0x18] sm:$0xee]  ;;  %v14758_v51 = vld [vmem:[#allocation2 + $0x148] sm:$0x11]  ;;  %v3941_v15 = vrot.slane %v14741_v38, 5 }
 0x1ea   : > { %v2465_v55 = vpop.f32.mrf.mxu1  ;;  %5237 = vmatprep.subr.bf16.mxu1 %v12733_v28  ;;  %4944 = vmatprep.mubr.bf16.mxu0 %v14731_v47  ;;  %v12742_v0 = vld [vmem:[#allocation6 + $0x84c] ss:$16 sps:$4 sm:$0xff]   ;;  %v3935_v28 = vsel %vm14641_vm5, %v3933_v16, %v3934_v12  ;;  %v14775_v12 = vld [vmem:[#allocation2 + $0xf0] sm:$0xff]  ;;  %v12740_v38 = vld [vmem:[#allocation6 + $0x848] ss:$16 sps:$4 sm:$0xff]   ;;  %v11350_v52 = vrot.slane %v3809_v13, 9 }
 0x1eb   : > { %17732 = vst [vmem:[#allocation48_spill] sm:$0xff] %v14743_v23  ;;  %v14760_v25 = vadd.f32 %v2465_v55, %v2352_v53  ;;  %v2354_v22 = vpop.f32.mrf.mxu0  ;;  %5057 = vmatprep.mubr.bf16.mxu1 %v14735_v49  ;;  %v3813_v33 = vld [vmem:[#allocation2 + $0x178] sm:$0x11]  ;;  %v14770_v53 = vcombine.low %v14716_v10, %v14723_v32  ;;  %v14777_v62 = vcombine.high %v3928_v4, %v3935_v28  ;;  %v14782_v10 = vld [vmem:[#allocation2 + $0x128] sm:$0xff]  ;;  %v3955_v13 = vrot.slane %v14775_v12, 5 }
 0x1ec   : > { %v2467_v23 = vpop.f32.mrf.mxu1  ;;  %5125 = vmatpush1.bf16.msra.mxu0 %v12728_v3  ;;  %v12745_v55 = vld [vmem:[#allocation6 + $0xa4c] ss:$16 sps:$4 sm:$0xff]   ;;  %v14780_v3 = vcombine.high %v14754_v11, %v3938_v46  ;;  %v3951_v9 = vrot.slane %v3813_v33, 5  ;;  %v14809_v12 = vcombine.low %v14754_v11, %v3938_v46  ;;  %v3962_v46 = vrot.slane %v14794_v40, 5 }
 0x1ed   : > { %17733 = vst [vmem:[#allocation49_spill] sm:$0xff] %v14760_v25  ;;  %v3945_v25 = vrot.slane %v14745_v1, 5  ;;  %v14773_v34 = vadd.f32 %v2467_v23, %v2354_v22  ;;  %5238 = vmatpush1.bf16.msra.mxu1 %v12731_v44  ;;  %v2356_v16 = vpop.f32.mrf.mxu0  ;;  %5126 = vmatprep.subr.bf16.mxu0 %v12736_v41  ;;  %v12743_v44 = vld [vmem:[#allocation6 + $0xa48] ss:$16 sps:$4 sm:$0xff]   ;;  %v12748_v23 = vld [vmem:[#allocation6 + $0x82c] ss:$16 sps:$4 sm:$0xff]  }
 0x1ee   : > { %v2469_v45 = vpop.f32.mrf.mxu1  ;;  %5239 = vmatprep.subr.bf16.mxu1 %v12739_v24  ;;  %v11349_v41 = vrot.slane %v14756_v6, 9  ;;  %v3947_v22 = vrot.slane %v3941_v15, 4  ;;  %v3948_v24 = vrot.slane %v14758_v51, 5  ;;  %v14796_v51 = vcombine.low %v3928_v4, %v3935_v28  ;;  %v3819_v28 = vld [vmem:[#allocation2 + $0x28] sm:$0x11] }
 0x1ef   : > { %17734 = vst [vmem:[#allocation50_spill] sm:$0xff] %v14773_v34  ;;  %v14784_v32 = vadd.f32 %v2469_v45, %v2356_v16  ;;  %v2360_v1 = vpop.f32.mrf.mxu0  ;;  %4945 = vmatmul.mubr.bf16.gmra.mxu0 %v14747_v61  ;;  %v3950_v58 = vrot.slane %v3945_v25, 4  ;;  %v14790_v16 = vld [vmem:[#allocation2 + $0x50] sm:$0xee]  ;;  %v3961_v11 = vrot.slane %v3955_v13, 4 }
 0x1f0   : > { %v2473_v34 = vpop.f32.mrf.mxu1  ;;  %5058 = vmatmul.mubr.bf16.gmra.mxu1 %v14770_v53  ;;  %5127 = vmatpush1.bf16.msra.mxu0 %v12734_v19  ;;  %v12746_v19 = vld [vmem:[#allocation6 + $0x828] ss:$16 sps:$4 sm:$0xff]   ;;  %v3949_v4 = vsel %vm14641_vm5, %v3947_v22, %v3948_v24  ;;  %v11352_v24 = vrot.slane %v3815_v20, 9  ;;  %v12763_v20 = vld [vmem:[#allocation6 + $0xbec] ss:$16 sps:$4 sm:$0xff]  }
 0x1f1   : > { %17735 = vst [vmem:[#allocation51_spill] sm:$0xff] %v14784_v32  ;;  %v14792_v45 = vadd.f32 %v2473_v34, %v2360_v1  ;;  %5240 = vmatpush1.bf16.msra.mxu1 %v12737_v7  ;;  %v2362_v32 = vpop.f32.mrf.mxu0  ;;  %5128 = vmatprep.subr.bf16.mxu0 %v12742_v0  ;;  %v12749_v34 = vld [vmem:[#allocation6 + $0xa28] ss:$16 sps:$4 sm:$0xff]   ;;  %v12754_v7 = vld [vmem:[#allocation6 + $0x80c] ss:$16 sps:$4 sm:$0xff]   ;;  %v3942_v0 = vsel %vm14641_vm5, %v11349_v41, %v3941_v15  ;;  %v11351_v41 = vrot.slane %v14790_v16, 9 }
 0x1f2   : > { %v2475_v6 = vpop.f32.mrf.mxu1  ;;  %5241 = vmatprep.subr.bf16.mxu1 %v12745_v55  ;;  %4954 = vmatprep.mubr.bf16.mxu0 %v14777_v62  ;;  %v3959_v55 = vrot.slane %v14782_v10, 5  ;;  %v14818_v22 = vcombine.high %v3942_v0, %v3949_v4  ;;  %v14828_v16 = vld [vmem:[#allocation2 + $0x90] sm:$0xff] }
 0x1f3   : > { %17736 = vst [vmem:[#allocation52_spill] sm:$0xff] %v14792_v45  ;;  %v14800_v33 = vadd.f32 %v2475_v6, %v2362_v32  ;;  %v2364_v31 = vpop.f32.mrf.mxu0  ;;  %5067 = vmatprep.mubr.bf16.mxu1 %v14780_v3  ;;  %v12757_v32 = vld [vmem:[#allocation6 + $0xa0c] ss:$16 sps:$4 sm:$0xff]   ;;  %v3946_v6 = vsel %vm14641_vm5, %v11350_v52, %v3945_v25  ;;  %v14821_v52 = vld [vmem:[#allocation2 + $0x150] sm:$0xff]  ;;  %v3956_v18 = vsel %vm14641_vm5, %v11351_v41, %v3955_v13  ;;  %v3825_v41 = vld [vmem:[#allocation2 + $0x160] sm:$0x11] }
 0x1f4   : > { %v2477_v1 = vpop.f32.mrf.mxu1  ;;  %5129 = vmatpush1.bf16.msra.mxu0 %v12740_v38  ;;  %v12752_v38 = vld [vmem:[#allocation6 + $0x808] ss:$16 sps:$4 sm:$0xff]   ;;  %17739 = vst [vmem:[#allocation55_spill] sm:$0xff] %v14818_v22  ;;  %v3969_v13 = vrot.slane %v14821_v52, 5 }
 0x1f5   : > { %17737 = vst [vmem:[#allocation53_spill] sm:$0xff] %v14800_v33  ;;  %v3952_v33 = vsel %vm14641_vm5, %v3950_v58, %v3951_v9  ;;  %v14815_v45 = vadd.f32 %v2477_v1, %v2364_v31  ;;  %5242 = vmatpush1.bf16.msra.mxu1 %v12743_v44  ;;  %v2366_v15 = vpop.f32.mrf.mxu0  ;;  %5130 = vmatprep.subr.bf16.mxu0 %v12748_v23  ;;  %v12755_v9 = vld [vmem:[#allocation6 + $0xa08] ss:$16 sps:$4 sm:$0xff]   ;;  %v12760_v44 = vld [vmem:[#allocation6 + $0x9ec] ss:$16 sps:$4 sm:$0xff]   ;;  %v3964_v23 = vrot.slane %v3959_v55, 4 }
 0x1f6   : > { %v2479_v10 = vpop.f32.mrf.mxu1  ;;  %5243 = vmatprep.subr.bf16.mxu1 %v12751_v63  ;;  %v14826_v58 = vcombine.high %v3946_v6, %v3952_v33  ;;  %v3965_v63 = vrot.slane %v3819_v28, 5  ;;  %v12758_v28 = vld [vmem:[#allocation6 + $0x9e8] ss:$16 sps:$4 sm:$0xff]  }
 0x1f7   : > { %17738 = vst [vmem:[#allocation54_spill] sm:$0xff] %v14815_v45  ;;  %v14823_v25 = vadd.f32 %v2479_v10, %v2366_v15  ;;  %v2370_v31 = vpop.f32.mrf.mxu0  ;;  %4955 = vmatmul.mubr.bf16.gmra.mxu0 %v14796_v51  ;;  %v14833_v10 = vcombine.low %v3942_v0, %v3949_v4  ;;  %v14835_v45 = vld [vmem:[#allocation2 + $0x80] sm:$0x11] }
 0x1f8   : > { %17741 = vst [vmem:[#allocation57_spill] sm:$0xff] %v14826_v58  ;;  %v2483_v1 = vpop.f32.mrf.mxu1  ;;  %5068 = vmatmul.mubr.bf16.gmra.mxu1 %v14809_v12  ;;  %5131 = vmatpush1.bf16.msra.mxu0 %v12746_v19  ;;  %v3963_v19 = vsel %vm14641_vm5, %v3961_v11, %v3962_v46  ;;  %v3973_v11 = vrot.slane %v14828_v16, 5  ;;  %v3976_v16 = vrot.slane %v14835_v45, 5  ;;  %v12775_v45 = vld [vmem:[#allocation6 + $0xbac] ss:$16 sps:$4 sm:$0xff]  }
 0x1f9   : > { %17740 = vst [vmem:[#allocation56_spill] sm:$0xff] %v14823_v25  ;;  %v14831_v40 = vadd.f32 %v2483_v1, %v2370_v31  ;;  %5244 = vmatpush1.bf16.msra.mxu1 %v12749_v34  ;;  %v2372_v15 = vpop.f32.mrf.mxu0  ;;  %5132 = vmatprep.subr.bf16.mxu0 %v12754_v7  ;;  %17743 = vst [vmem:[#allocation59_spill] sm:$0xff] %v14833_v10  ;;  %v3820_v25 = vld [vmem:[#allocation2 + $0xd8] sm:$0xee]  ;;  %v14844_v34 = vsel %vm14641_vm5, %v11352_v24, %v3959_v55  ;;  %v3821_v7 = vld [vmem:[#allocation2 + $0x10] sm:$0xee] }
 0x1fa   : > { %v2485_v5 = vpop.f32.mrf.mxu1  ;;  %5245 = vmatprep.subr.bf16.mxu1 %v12757_v32  ;;  %4964 = vmatprep.mubr.bf16.mxu0 %v14818_v22  ;;  %v12761_v32 = vld [vmem:[#allocation6 + $0xbe8] ss:$16 sps:$4 sm:$0xff]   ;;  %v12766_v31 = vld [vmem:[#allocation6 + $0x9cc] ss:$16 sps:$4 sm:$0xff]   ;;  %v3966_v1 = vsel %vm14641_vm5, %v3964_v23, %v3965_v63  ;;  %v14853_v55 = vcombine.low %v3946_v6, %v3952_v33  ;;  %v11353_v63 = vrot.slane %v3820_v25, 9 }
 0x1fb   : > { %17742 = vst [vmem:[#allocation58_spill] sm:$0xff] %v14831_v40  ;;  %v14846_v0 = vadd.f32 %v2485_v5, %v2372_v15  ;;  %v2374_v4 = vpop.f32.mrf.mxu0  ;;  %5077 = vmatprep.mubr.bf16.mxu1 %v14826_v58  ;;  %v12769_v24 = vld [vmem:[#allocation6 + $0xbcc] ss:$16 sps:$4 sm:$0xff]   ;;  %v12764_v23 = vld [vmem:[#allocation6 + $0x9c8] ss:$16 sps:$4 sm:$0xff]   ;;  %v14860_v52 = vcombine.high %v14844_v34, %v3966_v1  ;;  %v14868_v58 = vld [vmem:[#allocation2 + $0x100] sm:$0xff] }
 0x1fc   : > { %v2487_v46 = vpop.f32.mrf.mxu1  ;;  %5133 = vmatpush1.bf16.msra.mxu0 %v12752_v38  ;;  %17745 = vst [vmem:[#allocation61_spill] sm:$0xff] %v14853_v55  ;;  %v11354_v38 = vrot.slane %v3821_v7, 9  ;;  %v14863_v33 = vld [vmem:[#allocation2 + $0x108] sm:$0xff] }
 0x1fd   : > { %17744 = vst [vmem:[#allocation60_spill] sm:$0xff] %v14846_v0  ;;  %v14855_v5 = vadd.f32 %v2487_v46, %v2374_v4  ;;  %5246 = vmatpush1.bf16.msra.mxu1 %v12755_v9  ;;  %v2376_v15 = vpop.f32.mrf.mxu0  ;;  %5134 = vmatprep.subr.bf16.mxu0 %v12760_v44  ;;  %v14857_v0 = vcombine.high %v3956_v18, %v3963_v19  ;;  %17748 = vst [vmem:[#allocation64_spill] sm:$0xff] %v14860_v52  ;;  %v12767_v9 = vld [vmem:[#allocation6 + $0xbc8] ss:$16 sps:$4 sm:$0xff]   ;;  %v12772_v44 = vld [vmem:[#allocation6 + $0x9ac] ss:$16 sps:$4 sm:$0xff]  }
 0x1fe   : > { %v2489_v40 = vpop.f32.mrf.mxu1  ;;  %5247 = vmatprep.subr.bf16.mxu1 %v12763_v20  ;;  %v3975_v46 = vrot.slane %v3969_v13, 4  ;;  %v3979_v20 = vrot.slane %v3825_v41, 5  ;;  %v3970_v41 = vsel %vm14641_vm5, %v11353_v63, %v3969_v13  ;;  %v3983_v13 = vrot.slane %v14863_v33, 5  ;;  %v3827_v63 = vld [vmem:[#allocation2 + $0x118] sm:$0xee] }
 0x1ff   : > { %17746 = vst [vmem:[#allocation62_spill] sm:$0xff] %v14855_v5  ;;  %17747 = vst [vmem:[#allocation63_spill] sm:$0xff] %v14857_v0  ;;  %v14865_v6 = vadd.f32 %v2489_v40, %v2376_v15  ;;  %v2380_v4 = vpop.f32.mrf.mxu0  ;;  %4965 = vmatmul.mubr.bf16.gmra.mxu0 %v14833_v10  ;;  %v3978_v5 = vrot.slane %v3973_v11, 4  ;;  %v14873_v15 = vcombine.low %v3956_v18, %v3963_v19  ;;  %v3830_v10 = vld [vmem:[#allocation2 + $0x170] sm:$0x11] }
 0x200   : > { %v2493_v22 = vpop.f32.mrf.mxu1  ;;  %5078 = vmatmul.mubr.bf16.gmra.mxu1 %v14853_v55  ;;  %5135 = vmatpush2.bf16.msra.mxu0 %v12758_v28  ;;  %v3974_v55 = vsel %vm14641_vm5, %v11354_v38, %v3973_v11  ;;  %v3826_v28 = vld [vmem:[#allocation2 + $0xf8] sm:$0xee]  ;;  %v3977_v18 = vsel %vm14641_vm5, %v3975_v46, %v3976_v16  ;;  %v14889_v38 = vcombine.low %v14844_v34, %v3966_v1 }
 0x201   : > { %17749 = vst [vmem:[#allocation65_spill] sm:$0xff] %v14865_v6  ;;  %v14871_v25 = vadd.f32 %v2493_v22, %v2380_v4  ;;  %5248 = vmatpush2.bf16.msra.mxu1 %v12761_v32  ;;  %v2382_v40 = vpop.f32.mrf.mxu0  ;;  %5136 = vmatprep.subr.bf16.mxu0 %v12766_v31  ;;  %17751 = vst [vmem:[#allocation67_spill] sm:$0xff] %v14873_v15  ;;  %v12770_v6 = vld [vmem:[#allocation6 + $0x9a8] ss:$16 sps:$4 sm:$0xff]   ;;  %v3980_v19 = vsel %vm14641_vm5, %v3978_v5, %v3979_v20  ;;  %v3831_v4 = vld [vmem:[#allocation2 + $0xd0] sm:$0x11] }
 0x202   : > { %v2495_v7 = vpop.f32.mrf.mxu1  ;;  %5249 = vmatprep.subr.bf16.mxu1 %v12769_v24  ;;  %4974 = vmatprep.mubr.bf16.mxu0 %v14857_v0  ;;  %v12773_v31 = vld [vmem:[#allocation6 + $0xba8] ss:$16 sps:$4 sm:$0xff]   ;;  %v12778_v24 = vld [vmem:[#allocation6 + $0x98c] ss:$16 sps:$4 sm:$0xff]   ;;  %v14894_v20 = vcombine.high %v3970_v41, %v3977_v18  ;;  %v14896_v33 = vcombine.high %v3974_v55, %v3980_v19  ;;  %v11355_v1 = vrot.slane %v3826_v28, 9  ;;  %v14907_v0 = vcombine.low %v3970_v41, %v3977_v18 }
 0x203   : > { %17750 = vst [vmem:[#allocation66_spill] sm:$0xff] %v14871_v25  ;;  %v14880_v22 = vadd.f32 %v2495_v7, %v2382_v40  ;;  %v2384_v32 = vpop.f32.mrf.mxu0  ;;  %5087 = vmatprep.mubr.bf16.mxu1 %v14860_v52  ;;  %v3987_v40 = vrot.slane %v14868_v58, 5  ;;  %v12776_v46 = vld [vmem:[#allocation6 + $0x988] ss:$16 sps:$4 sm:$0xff]   ;;  %v12781_v5 = vld [vmem:[#allocation6 + $0xb8c] ss:$16 sps:$4 sm:$0xff]  }
 0x204   : > { %v2497_v11 = vpop.f32.mrf.mxu1  ;;  %5137 = vmatpush2.bf16.msra.mxu0 %v12764_v23  ;;  %v12779_v34 = vld [vmem:[#allocation6 + $0xb88] ss:$16 sps:$4 sm:$0xff]   ;;  %v12784_v58 = vld [vmem:[#allocation6 + $0x96c] ss:$16 sps:$4 sm:$0xff]  }
 0x205   : > { %17752 = vst [vmem:[#allocation68_spill] sm:$0xff] %v14880_v22  ;;  %v14892_v7 = vadd.f32 %v2497_v11, %v2384_v32  ;;  %5250 = vmatpush2.bf16.msra.mxu1 %v12767_v9  ;;  %v2386_v22 = vpop.f32.mrf.mxu0  ;;  %5138 = vmatprep.subr.bf16.mxu0 %v12772_v44  ;;  %v3989_v32 = vrot.slane %v3983_v13, 4  ;;  %v3990_v9 = vrot.slane %v3830_v10, 5  ;;  %v11356_v44 = vrot.slane %v3827_v63, 9  ;;  %v12787_v28 = vld [vmem:[#allocation6 + $0xb6c] ss:$16 sps:$4 sm:$0xff]  }
 0x206   : > { %v2499_v16 = vpop.f32.mrf.mxu1  ;;  %5251 = vmatprep.subr.bf16.mxu1 %v12775_v45  ;;  %v3992_v45 = vrot.slane %v3987_v40, 4  ;;  %v12790_v63 = vld [vmem:[#allocation6 + $0x94c] ss:$16 sps:$4 sm:$0xff]  }
 0x207   : > { %17753 = vst [vmem:[#allocation69_spill] sm:$0xff] %v14892_v7  ;;  %v14898_v25 = vadd.f32 %v2499_v16, %v2386_v22  ;;  %v2390_v23 = vpop.f32.mrf.mxu0  ;;  %4975 = vmatmul.mubr.bf16.gmra.mxu0 %v14873_v15  ;;  %v3993_v7 = vrot.slane %v3831_v4, 5 }
 0x208   : > { %v2503_v11 = vpop.f32.mrf.mxu1  ;;  %5088 = vmatmul.mubr.bf16.gmra.mxu1 %v14889_v38  ;;  %5139 = vmatpush2.bf16.msra.mxu0 %v12770_v6  ;;  %v12785_v6 = vld [vmem:[#allocation6 + $0xb68] ss:$16 sps:$4 sm:$0xff]  }
 0x209   : > { %17754 = vst [vmem:[#allocation70_spill] sm:$0xff] %v14898_v25  ;;  %v14902_v52 = vadd.f32 %v2503_v11, %v2390_v23  ;;  %5252 = vmatpush2.bf16.msra.mxu1 %v12773_v31  ;;  %v2392_v22 = vpop.f32.mrf.mxu0  ;;  %5140 = vmatprep.subr.bf16.mxu0 %v12778_v24  ;;  %v12782_v25 = vld [vmem:[#allocation6 + $0x968] ss:$16 sps:$4 sm:$0xff]   ;;  %v3984_v31 = vsel %vm14641_vm5, %v11355_v1, %v3983_v13  ;;  %v12793_v1 = vld [vmem:[#allocation6 + $0xb4c] ss:$16 sps:$4 sm:$0xff]  }
 0x20a   : > { %v2505_v16 = vpop.f32.mrf.mxu1  ;;  %5253 = vmatprep.subr.bf16.mxu1 %v12781_v5  ;;  %4984 = vmatprep.mubr.bf16.mxu0 %v14894_v20  ;;  %v3991_v24 = vsel %vm14641_vm5, %v3989_v32, %v3990_v9  ;;  %v14914_v5 = vcombine.low %v3974_v55, %v3980_v19  ;;  %v3988_v23 = vsel %vm14641_vm5, %v11356_v44, %v3987_v40  ;;  %v12788_v13 = vld [vmem:[#allocation6 + $0x948] ss:$16 sps:$4 sm:$0xff]  }
 0x20b   : > { %v14905_v15 = vadd.f32 %v2505_v16, %v2392_v22  ;;  %v2394_v10 = vpop.f32.mrf.mxu0  ;;  %5097 = vmatprep.mubr.bf16.mxu1 %v14896_v33  ;;  %v3994_v41 = vsel %vm14641_vm5, %v3992_v45, %v3993_v7  ;;  %v14922_v32 = vcombine.high %v3984_v31, %v3991_v24  ;;  %v12791_v19 = vld [vmem:[#allocation6 + $0xb48] ss:$16 sps:$4 sm:$0xff]   ;;  %v12796_v7 = vld [vmem:[#allocation6 + $0x92c] ss:$16 sps:$4 sm:$0xff]  }
 0x20c   : > { %v2507_v4 = vpop.f32.mrf.mxu1  ;;  %5141 = vmatpush2.bf16.msra.mxu0 %v12776_v46  ;;  %v14927_v40 = vcombine.high %v3988_v23, %v3994_v41  ;;  %v12794_v45 = vld [vmem:[#allocation6 + $0x928] ss:$16 sps:$4 sm:$0xff]   ;;  %v12799_v16 = vld [vmem:[#allocation6 + $0xb2c] ss:$16 sps:$4 sm:$0xff]  }
 0x20d   : > { %v14920_v18 = vadd.f32 %v2507_v4, %v2394_v10  ;;  %5254 = vmatpush2.bf16.msra.mxu1 %v12779_v34  ;;  %v2396_v11 = vpop.f32.mrf.mxu0  ;;  %5142 = vmatprep.subr.bf16.mxu0 %v12784_v58  ;;  %v14935_v4 = vcombine.low %v3984_v31, %v3991_v24  ;;  %v12803_v24 = vld [vmem:[#allocation6 + $0xb08] ss:$16 sps:$4 sm:$0xff]  }
 0x20e   : > { %v2509_v22 = vpop.f32.mrf.mxu1  ;;  %5255 = vmatprep.subr.bf16.mxu1 %v12787_v28 }
 0x20f   : > { %v14924_v46 = vadd.f32 %v2509_v22, %v2396_v11  ;;  %v2400_v55 = vpop.f32.mrf.mxu0  ;;  %4985 = vmatmul.mubr.bf16.gmra.mxu0 %v14907_v0  ;;  %v12797_v11 = vld [vmem:[#allocation6 + $0xb28] ss:$16 sps:$4 sm:$0xff]  }
 0x210   : > { %v2513_v9 = vpop.f32.mrf.mxu1  ;;  %5098 = vmatmul.mubr.bf16.gmra.mxu1 %v14914_v5  ;;  %5143 = vmatpush2.bf16.msra.mxu0 %v12782_v25  ;;  %v12802_v25 = vld [vmem:[#allocation6 + $0x90c] ss:$16 sps:$4 sm:$0xff]  }
 0x211   : > { %17755 = vst [vmem:[#allocation71_spill] sm:$0xff] %v14924_v46  ;;  %v14930_v34 = vadd.f32 %v2513_v9, %v2400_v55  ;;  %5256 = vmatpush2.bf16.msra.mxu1 %v12785_v6  ;;  %v2402_v58 = vpop.f32.mrf.mxu0  ;;  %5144 = vmatprep.subr.bf16.mxu0 %v12790_v63  ;;  %v14938_v6 = vcombine.low %v3988_v23, %v3994_v41  ;;  %v12800_v9 = vld [vmem:[#allocation6 + $0x908] ss:$16 sps:$4 sm:$0xff]  }
 0x212   : > { %v2515_v44 = vpop.f32.mrf.mxu1  ;;  %5257 = vmatprep.subr.bf16.mxu1 %v12793_v1  ;;  %4994 = vmatprep.mubr.bf16.mxu0 %v14922_v32 }
 0x213   : > { %v14933_v28 = vadd.f32 %v2515_v44, %v2402_v58  ;;  %v2404_v10 = vpop.f32.mrf.mxu0  ;;  %5107 = vmatprep.mubr.bf16.mxu1 %v14927_v40  ;;  %v12805_v58 = vld [vmem:[#allocation6 + $0xb0c] ss:$16 sps:$4 sm:$0xff]  }
 0x214   : > { %v2517_v22 = vpop.f32.mrf.mxu1  ;;  %5145 = vmatpush2.bf16.msra.mxu0 %v12788_v13 }
 0x215   : > { %v14940_v63 = vadd.f32 %v2517_v22, %v2404_v10  ;;  %5258 = vmatpush2.bf16.msra.mxu1 %v12791_v19  ;;  %v2406_v1 = vpop.f32.mrf.mxu0  ;;  %5146 = vmatprep.subr.bf16.mxu0 %v12796_v7 }
 0x216   : > { %v2519_v55 = vpop.f32.mrf.mxu1  ;;  %5259 = vmatprep.subr.bf16.mxu1 %v12799_v16  ;;  %v12806_v16 = vld [vmem:[#allocation8 + $0x4e0] ss:$16 sps:$4 sm:$0xff]  }
 0x217   : > { %v14942_v44 = vadd.f32 %v2519_v55, %v2406_v1  ;;  %v2410_v31 = vpop.f32.mrf.mxu0  ;;  %4995 = vmatmul.mubr.bf16.gmra.mxu0 %v14935_v4 }
 0x218   : > { %v2523_v46 = vpop.f32.mrf.mxu1  ;;  %5108 = vmatmul.mubr.bf16.gmra.mxu1 %v14938_v6  ;;  %5147 = vmatpush2.bf16.msra.mxu0 %v12794_v45 }
 0x219   : > { %v14946_v23 = vadd.f32 %v2523_v46, %v2410_v31  ;;  %5260 = vmatpush2.bf16.msra.mxu1 %v12797_v11  ;;  %v2412_v41 = vpop.f32.mrf.mxu0  ;;  %5148 = vmatprep.subr.bf16.mxu0 %v12802_v25  ;;  %v12811_v11 = vld [vmem:[#allocation8 + $0x4c4] ss:$16 sps:$4 sm:$0xff]  }
 0x21a   : > { %v2525_v13 = vpop.f32.mrf.mxu1  ;;  %5261 = vmatprep.subr.bf16.mxu1 %v12805_v58  ;;  %5150 = vmatprep.mubr.bf16.mxu0 %v14661_v8  ;;  %v12809_v8 = vld [vmem:[#allocation8 + $0x4c0] ss:$16 sps:$4 sm:$0xff]  }
 0x21b   : > { %v14949_v19 = vadd.f32 %v2525_v13, %v2412_v41  ;;  %v2414_v7 = vpop.f32.mrf.mxu0  ;;  %5263 = vmatprep.mubr.bf16.mxu1 %v14664_v14 }
 0x21c   : > { %v2527_v10 = vpop.f32.mrf.mxu1  ;;  %5149 = vmatpush2.bf16.msra.mxu0 %v12800_v9 }
 0x21d   : > { %v14952_v22 = vadd.f32 %v2527_v10, %v2414_v7  ;;  %5262 = vmatpush2.bf16.msra.mxu1 %v12803_v24  ;;  %v2416_v46 = vpop.f32.mrf.mxu0  ;;  %7165 = vmatprep.subr.bf16.mxu0 %v12808_v26  ;;  %v12814_v24 = vld [vmem:[#allocation8 + $0x4a4] ss:$16 sps:$4 sm:$0xff]  }
 0x21e   : > { %v2529_v45 = vpop.f32.mrf.mxu1  ;;  %v12817_v10 = vld [vmem:[#allocation8 + $0x484] ss:$16 sps:$4 sm:$0xff]  }
 0x21f   : > { %v14954_v25 = vadd.f32 %v2529_v45, %v2416_v46  ;;  %v3366_v1 = vpop.f32.mrf.mxu0  ;;  %5151 = vmatmul.mubr.bf16.vlgmr.msra.gmra.mxu0 %v14681_v29  ;;  %v12815_v46 = vld [vmem:[#allocation8 + $0x480] ss:$16 sps:$4 sm:$0xff]  }
 0x220   : > { %v3367_v55 = vadd.f32 %v3366_v1, %v14550_v43  ;;  %v3479_v58 = vpop.f32.mrf.mxu1  ;;  %5264 = vmatmul.mubr.bf16.vlgmr.msra.gmra.mxu1 %v14687_v48  ;;  %5160 = vmatprep.mubr.bf16.mxu0 %v14693_v36  ;;  %v12812_v48 = vld [vmem:[#allocation8 + $0x4a0] ss:$16 sps:$4 sm:$0xff]  }
 0x221   : > { %v3368_v14 = vpop.f32.mrf.mxu0  ;;  %5273 = vmatprep.mubr.bf16.mxu1 %v14698_v50  ;;  %7166 = vmatpush1.bf16.msra.mxu0 %v12806_v16 }
 0x222   : > { %v14961_v26 = vadd.f32 %v3479_v58, %v3367_v55  ;;  %v3369_v9 = vadd.f32 %v3368_v14, %v14552_v27  ;;  %v3481_v31 = vpop.f32.mrf.mxu1  ;;  %7167 = vmatprep.subr.bf16.mxu0 %v12811_v11  ;;  %v12818_v14 = vld [vmem:[#allocation8 + $0x460] ss:$16 sps:$4 sm:$0xff]  }
 0x223   : > { %v3370_v29 = vpop.f32.mrf.mxu0 }
 0x224   : > { %v14964_v41 = vadd.f32 %v3481_v31, %v3369_v9  ;;  %v3371_v43 = vadd.f32 %v3370_v29, %v14556_v17  ;;  %v3483_v13 = vpop.f32.mrf.mxu1  ;;  %v12823_v31 = vld [vmem:[#allocation8 + $0x444] ss:$16 sps:$4 sm:$0xff]  }
 0x225   : > { %v3372_v7 = vpop.f32.mrf.mxu0  ;;  %7168 = vmatpush1.bf16.msra.mxu0 %v12809_v8 }
 0x226   : > { %v14967_v36 = vadd.f32 %v3483_v13, %v3371_v43  ;;  %v3373_v50 = vadd.f32 %v3372_v7, %v14559_v21  ;;  %v3485_v16 = vpop.f32.mrf.mxu1  ;;  %7169 = vmatprep.subr.bf16.mxu0 %v12814_v24  ;;  %v12821_v43 = vld [vmem:[#allocation8 + $0x440] ss:$16 sps:$4 sm:$0xff]  }
 0x227   : > { %v3376_v27 = vpop.f32.mrf.mxu0  ;;  %5161 = vmatmul.mubr.bf16.gmra.mxu0 %v14707_v2  ;;  %v12820_v2 = vld [vmem:[#allocation8 + $0x464] ss:$16 sps:$4 sm:$0xff]  }
 0x228   : > { %v14971_v45 = vadd.f32 %v3485_v16, %v3373_v50  ;;  %v3377_v11 = vadd.f32 %v3376_v27, %v14562_v59  ;;  %v3489_v17 = vpop.f32.mrf.mxu1  ;;  %5274 = vmatmul.mubr.bf16.gmra.mxu1 %v14727_v60  ;;  %5170 = vmatprep.mubr.bf16.mxu0 %v14731_v47 }
 0x229   : > { %v3378_v1 = vpop.f32.mrf.mxu0  ;;  %5283 = vmatprep.mubr.bf16.mxu1 %v14735_v49  ;;  %7170 = vmatpush1.bf16.msra.mxu0 %v12812_v48 }
 0x22a   : > { %v14977_v21 = vadd.f32 %v3489_v17, %v3377_v11  ;;  %v3379_v8 = vadd.f32 %v3378_v1, %v14564_v30  ;;  %v3491_v55 = vpop.f32.mrf.mxu1  ;;  %7171 = vmatprep.subr.bf16.mxu0 %v12817_v10  ;;  %v12854_v17 = vld [vmem:[#allocation8 + $0x6e0] ss:$16 sps:$4 sm:$0xff]  }
 0x22b   : > { %v3380_v58 = vpop.f32.mrf.mxu0 }
 0x22c   : > { %v14980_v9 = vadd.f32 %v3491_v55, %v3379_v8  ;;  %v3381_v59 = vadd.f32 %v3380_v58, %v14568_v39  ;;  %v3493_v60 = vpop.f32.mrf.mxu1  ;;  %v12826_v39 = vld [vmem:[#allocation8 + $0x424] ss:$16 sps:$4 sm:$0xff]  }
 0x22d   : > { %v3382_v47 = vpop.f32.mrf.mxu0  ;;  %7172 = vmatpush1.bf16.msra.mxu0 %v12815_v46 }
 0x22e   : > { %v14983_v24 = vadd.f32 %v3493_v60, %v3381_v59  ;;  %v3383_v49 = vadd.f32 %v3382_v47, %v14571_v57  ;;  %v3495_v29 = vpop.f32.mrf.mxu1  ;;  %7173 = vmatprep.subr.bf16.mxu0 %v12820_v2  ;;  %v12862_v59 = vld [vmem:[#allocation8 + $0x6c4] ss:$16 sps:$4 sm:$0xff]   ;;  %v12860_v47 = vld [vmem:[#allocation8 + $0x6c0] ss:$16 sps:$4 sm:$0xff]  }
 0x22f   : > { %v3386_v30 = vpop.f32.mrf.mxu0  ;;  %5171 = vmatmul.mubr.bf16.gmra.mxu0 %v14747_v61 }
 0x230   : > { %v14987_v13 = vadd.f32 %v3495_v29, %v3383_v49  ;;  %v3387_v48 = vadd.f32 %v3386_v30, %v14574_v37  ;;  %v3499_v7 = vpop.f32.mrf.mxu1  ;;  %5284 = vmatmul.mubr.bf16.gmra.mxu1 %v14770_v53  ;;  %5180 = vmatprep.mubr.bf16.mxu0 %v14777_v62  ;;  %v12856_v53 = vld [vmem:[#allocation8 + $0x6e4] ss:$16 sps:$4 sm:$0xff]   ;;  %v12824_v62 = vld [vmem:[#allocation8 + $0x420] ss:$16 sps:$4 sm:$0xff]  }
 0x231   : > { %v3388_v50 = vpop.f32.mrf.mxu0  ;;  %5293 = vmatprep.mubr.bf16.mxu1 %v14780_v3  ;;  %7174 = vmatpush1.bf16.msra.mxu0 %v12818_v14  ;;  %v17756_v14 = vld [vmem:[#allocation55_spill] sm:$0xff] }
 0x232   : > { %v14993_v57 = vadd.f32 %v3499_v7, %v3387_v48  ;;  %v3389_v16 = vadd.f32 %v3388_v50, %v14576_v54  ;;  %v3501_v61 = vpop.f32.mrf.mxu1  ;;  %7175 = vmatprep.subr.bf16.mxu0 %v12823_v31  ;;  %v12829_v54 = vld [vmem:[#allocation8 + $0x404] ss:$16 sps:$4 sm:$0xff]   ;;  %7278 = vmatprep.subr.bf16.mxu1 %v12856_v53  ;;  %v12827_v31 = vld [vmem:[#allocation8 + $0x400] ss:$16 sps:$4 sm:$0xff]  }
 0x233   : > { %v3390_v10 = vpop.f32.mrf.mxu0  ;;  %7279 = vmatpush1.bf16.msra.mxu1 %v12854_v17  ;;  %v12830_v48 = vld [vmem:[#allocation8 + $0x5e0] ss:$16 sps:$4 sm:$0xff]   ;;  %v12868_v17 = vld [vmem:[#allocation8 + $0x6a4] ss:$16 sps:$4 sm:$0xff]  }
 0x234   : > { %v14996_v27 = vadd.f32 %v3501_v61, %v3389_v16  ;;  %v3391_v37 = vadd.f32 %v3390_v10, %v14580_v42  ;;  %v3503_v46 = vpop.f32.mrf.mxu1  ;;  %7280 = vmatprep.subr.bf16.mxu1 %v12862_v59  ;;  %v17759_v7 = vld [vmem:[#allocation25_spill] sm:$0xff] }
 0x235   : > { %v3392_v11 = vpop.f32.mrf.mxu0  ;;  %7176 = vmatpush1.bf16.msra.mxu0 %v12821_v43  ;;  %v12832_v43 = vld [vmem:[#allocation8 + $0x5e4] ss:$16 sps:$4 sm:$0xff]   ;;  %v12866_v59 = vld [vmem:[#allocation8 + $0x6a0] ss:$16 sps:$4 sm:$0xff]  }
 0x236   : > { %v14999_v1 = vadd.f32 %v3503_v46, %v3391_v37  ;;  %v3393_v3 = vadd.f32 %v3392_v11, %v14583_v56  ;;  %v3505_v8 = vpop.f32.mrf.mxu1  ;;  %7177 = vmatprep.subr.bf16.mxu0 %v12826_v39  ;;  %v17757_v56 = vld [vmem:[#allocation57_spill] sm:$0xff]  ;;  %v17760_v37 = vld [vmem:[#allocation26_spill] sm:$0xff] }
 0x237   : > { %v3396_v55 = vpop.f32.mrf.mxu0  ;;  %5181 = vmatmul.mubr.bf16.gmra.mxu0 %v14796_v51  ;;  %v17758_v51 = vld [vmem:[#allocation24_spill] sm:$0xff]  ;;  %7281 = vmatpush1.bf16.msra.mxu1 %v12860_v47  ;;  %v12835_v16 = vld [vmem:[#allocation8 + $0x5c4] ss:$16 sps:$4 sm:$0xff]  }
 0x238   : > { %v15003_v2 = vadd.f32 %v3505_v8, %v3393_v3  ;;  %v3397_v42 = vadd.f32 %v3396_v55, %v14586_v35  ;;  %v3509_v58 = vpop.f32.mrf.mxu1  ;;  %5294 = vmatmul.mubr.bf16.gmra.mxu1 %v14809_v12  ;;  %5190 = vmatprep.mubr.bf16.mxu0 %v17756_v14  ;;  %v17762_v8 = vld [vmem:[#allocation27_spill] sm:$0xff] }
 0x239   : > { %v3398_v60 = vpop.f32.mrf.mxu0  ;;  %5303 = vmatprep.mubr.bf16.mxu1 %v17757_v56  ;;  %7178 = vmatpush1.bf16.msra.mxu0 %v12824_v62  ;;  %v17761_v62 = vld [vmem:[#allocation59_spill] sm:$0xff]  ;;  %v17765_v56 = vld [vmem:[#allocation64_spill] sm:$0xff] }
 0x23a   : > { %v15009_v49 = vadd.f32 %v3509_v58, %v3397_v42  ;;  %v3399_v29 = vadd.f32 %v3398_v60, %v17758_v51  ;;  %v3511_v30 = vpop.f32.mrf.mxu1  ;;  %7179 = vmatprep.subr.bf16.mxu0 %v12829_v54  ;;  %v17763_v42 = vld [vmem:[#allocation61_spill] sm:$0xff]  ;;  %v17764_v58 = vld [vmem:[#allocation63_spill] sm:$0xff]  ;;  %v17766_v51 = vld [vmem:[#allocation28_spill] sm:$0xff]  ;;  %7282 = vmatprep.subr.bf16.mxu1 %v12868_v17 }
 0x23b   : > { %v3400_v35 = vpop.f32.mrf.mxu0  ;;  %v12833_v14 = vld [vmem:[#allocation8 + $0x5c0] ss:$16 sps:$4 sm:$0xff]   ;;  %7283 = vmatpush1.bf16.msra.mxu1 %v12866_v59 }
 0x23c   : > { %v15012_v12 = vadd.f32 %v3511_v30, %v3399_v29  ;;  %v3401_v39 = vadd.f32 %v3400_v35, %v17759_v7  ;;  %v3513_v50 = vpop.f32.mrf.mxu1  ;;  %v12874_v35 = vld [vmem:[#allocation8 + $0x684] ss:$16 sps:$4 sm:$0xff]  }
 0x23d   : > { %v3402_v61 = vpop.f32.mrf.mxu0  ;;  %7180 = vmatpush1.bf16.msra.mxu0 %v12827_v31  ;;  %v12838_v31 = vld [vmem:[#allocation8 + $0x5a4] ss:$16 sps:$4 sm:$0xff]   ;;  %7284 = vmatprep.subr.bf16.mxu1 %v12874_v35 }
 0x23e   : > { %v15015_v10 = vadd.f32 %v3513_v50, %v3401_v39  ;;  %v3403_v46 = vadd.f32 %v3402_v61, %v17760_v37  ;;  %v3515_v53 = vpop.f32.mrf.mxu1  ;;  %7181 = vmatprep.subr.bf16.mxu0 %v12832_v43  ;;  %v17768_v39 = vld [vmem:[#allocation29_spill] sm:$0xff]  ;;  %v17770_v17 = vld [vmem:[#allocation67_spill] sm:$0xff] }
 0x23f   : > { %v3406_v11 = vpop.f32.mrf.mxu0  ;;  %5191 = vmatmul.mubr.bf16.gmra.mxu0 %v17761_v62  ;;  %v12836_v37 = vld [vmem:[#allocation8 + $0x5a0] ss:$16 sps:$4 sm:$0xff]  }
 0x240   : > { %v15019_v3 = vadd.f32 %v3515_v53, %v3403_v46  ;;  %v3407_v54 = vadd.f32 %v3406_v11, %v17762_v8  ;;  %v3519_v55 = vpop.f32.mrf.mxu1  ;;  %5304 = vmatmul.mubr.bf16.gmra.mxu1 %v17763_v42  ;;  %5200 = vmatprep.mubr.bf16.mxu0 %v17764_v58  ;;  %v12841_v46 = vld [vmem:[#allocation8 + $0x584] ss:$16 sps:$4 sm:$0xff]   ;;  %v12872_v53 = vld [vmem:[#allocation8 + $0x680] ss:$16 sps:$4 sm:$0xff]  }
 0x241   : > { %v3408_v60 = vpop.f32.mrf.mxu0  ;;  %5313 = vmatprep.mubr.bf16.mxu1 %v17765_v56  ;;  %7182 = vmatpush2.bf16.msra.mxu0 %v12830_v48  ;;  %v17771_v8 = vld [vmem:[#allocation31_spill] sm:$0xff] }
 0x242   : > { %v15025_v47 = vadd.f32 %v3519_v55, %v3407_v54  ;;  %v3409_v29 = vadd.f32 %v3408_v60, %v17766_v51  ;;  %v3521_v30 = vpop.f32.mrf.mxu1  ;;  %7183 = vmatprep.subr.bf16.mxu0 %v12835_v16  ;;  %7285 = vmatpush1.bf16.msra.mxu1 %v12872_v53  ;;  %v12839_v58 = vld [vmem:[#allocation8 + $0x580] ss:$16 sps:$4 sm:$0xff]   ;;  %v17773_v60 = vld [vmem:[#allocation32_spill] sm:$0xff]  ;;  %v12844_v51 = vld [vmem:[#allocation8 + $0x564] ss:$16 sps:$4 sm:$0xff]  }
 0x243   : > { %v3410_v43 = vpop.f32.mrf.mxu0  ;;  %v12884_v53 = vld [vmem:[#allocation8 + $0x640] ss:$16 sps:$4 sm:$0xff]  }
 0x244   : > { %v15028_v7 = vadd.f32 %v3521_v30, %v3409_v29  ;;  %v3411_v50 = vadd.f32 %v3410_v43, %v17768_v39  ;;  %v3523_v61 = vpop.f32.mrf.mxu1  ;;  %v12878_v29 = vld [vmem:[#allocation8 + $0x660] ss:$16 sps:$4 sm:$0xff]  }
 0x245   : > { %v15031_v48 = vpop.f32.mrf.mxu0  ;;  %7184 = vmatpush2.bf16.msra.mxu0 %v12833_v14  ;;  %v12880_v14 = vld [vmem:[#allocation8 + $0x664] ss:$16 sps:$4 sm:$0xff]   ;;  %v12842_v39 = vld [vmem:[#allocation8 + $0x560] ss:$16 sps:$4 sm:$0xff]  }
 0x246   : > { %17767 = vst [vmem:[#allocation55_spill] sm:$0xff] %v15028_v7  ;;  %v15033_v11 = vadd.f32 %v3523_v61, %v3411_v50  ;;  %v15035_v62 = vpop.f32.mrf.mxu1  ;;  %7185 = vmatprep.subr.bf16.mxu0 %v12838_v31  ;;  %7286 = vmatprep.subr.bf16.mxu1 %v12880_v14  ;;  %v12886_v50 = vld [vmem:[#allocation8 + $0x644] ss:$16 sps:$4 sm:$0xff]  }
 0x247   : > { %v3416_v16 = vpop.f32.mrf.mxu0  ;;  %5201 = vmatmul.mubr.bf16.gmra.mxu0 %v17770_v17  ;;  %7287 = vmatpush1.bf16.msra.mxu1 %v12878_v29  ;;  %v12845_v17 = vld [vmem:[#allocation8 + $0x540] ss:$16 sps:$4 sm:$0xff]  }
 0x248   : > { %17769 = vst [vmem:[#allocation57_spill] sm:$0xff] %v15033_v11  ;;  %v3417_v54 = vadd.f32 %v3416_v16, %v17771_v8  ;;  %v3529_v55 = vpop.f32.mrf.mxu1  ;;  %5314 = vmatmul.mubr.bf16.gmra.mxu1 %v14889_v38  ;;  %5210 = vmatprep.mubr.bf16.mxu0 %v14894_v20  ;;  %v17775_v38 = vld [vmem:[#allocation33_spill] sm:$0xff]  ;;  %v17777_v8 = vld [vmem:[#allocation35_spill] sm:$0xff] }
 0x249   : > { %v3418_v42 = vpop.f32.mrf.mxu0  ;;  %5323 = vmatprep.mubr.bf16.mxu1 %v14896_v33  ;;  %7186 = vmatpush2.bf16.msra.mxu0 %v12836_v37  ;;  %v17781_v29 = vld [vmem:[#allocation37_spill] sm:$0xff]  ;;  %v17834_v11 = vld [vmem:[#allocation47_spill] sm:$0xff] }
 0x24a   : > { %v15042_v59 = vadd.f32 %v3529_v55, %v3417_v54  ;;  %v3419_v56 = vadd.f32 %v3418_v42, %v17773_v60  ;;  %v3531_v31 = vpop.f32.mrf.mxu1  ;;  %7187 = vmatprep.subr.bf16.mxu0 %v12841_v46  ;;  %v12847_v46 = vld [vmem:[#allocation8 + $0x544] ss:$16 sps:$4 sm:$0xff]   ;;  %7288 = vmatprep.subr.bf16.mxu1 %v12886_v50  ;;  %v17779_v60 = vld [vmem:[#allocation36_spill] sm:$0xff] }
 0x24b   : > { %v3420_v30 = vpop.f32.mrf.mxu0  ;;  %v12850_v42 = vld [vmem:[#allocation8 + $0x524] ss:$16 sps:$4 sm:$0xff]   ;;  %7289 = vmatpush1.bf16.msra.mxu1 %v12884_v53  ;;  %v17783_v53 = vld [vmem:[#allocation40_spill] sm:$0xff] }
 0x24c   : > { %17772 = vst [vmem:[#allocation24_spill] sm:$0xff] %v15042_v59  ;;  %v15045_v43 = vadd.f32 %v3531_v31, %v3419_v56  ;;  %v3421_v20 = vadd.f32 %v3420_v30, %v17775_v38  ;;  %v3533_v35 = vpop.f32.mrf.mxu1  ;;  %v12892_v38 = vld [vmem:[#allocation8 + $0x624] ss:$16 sps:$4 sm:$0xff]  }
 0x24d   : > { %v15048_v33 = vpop.f32.mrf.mxu0  ;;  %7188 = vmatpush2.bf16.msra.mxu0 %v12839_v58  ;;  %v12853_v50 = vld [vmem:[#allocation8 + $0x504] ss:$16 sps:$4 sm:$0xff]   ;;  %7290 = vmatprep.subr.bf16.mxu1 %v12892_v38 }
 0x24e   : > { %17774 = vst [vmem:[#allocation25_spill] sm:$0xff] %v15045_v43  ;;  %v15050_v61 = vadd.f32 %v3533_v35, %v3421_v20  ;;  %v15052_v37 = vpop.f32.mrf.mxu1  ;;  %7189 = vmatprep.subr.bf16.mxu0 %v12844_v51  ;;  %v12848_v20 = vld [vmem:[#allocation8 + $0x520] ss:$16 sps:$4 sm:$0xff]   ;;  %v12904_v38 = vld [vmem:[#allocation8 + $0x7e4] ss:$16 sps:$4 sm:$0xff]  }
 0x24f   : > { %v3426_v16 = vpop.f32.mrf.mxu0  ;;  %5211 = vmatmul.mubr.bf16.gmra.mxu0 %v14907_v0 }
 0x250   : > { %17776 = vst [vmem:[#allocation26_spill] sm:$0xff] %v15050_v61  ;;  %v3427_v54 = vadd.f32 %v3426_v16, %v17777_v8  ;;  %v3539_v55 = vpop.f32.mrf.mxu1  ;;  %5324 = vmatmul.mubr.bf16.gmra.mxu1 %v14914_v5  ;;  %5220 = vmatprep.mubr.bf16.mxu0 %v14922_v32 }
 0x251   : > { %v3428_v58 = vpop.f32.mrf.mxu0  ;;  %5333 = vmatprep.mubr.bf16.mxu1 %v14927_v40  ;;  %7190 = vmatpush2.bf16.msra.mxu0 %v12842_v39  ;;  %v12890_v40 = vld [vmem:[#allocation8 + $0x620] ss:$16 sps:$4 sm:$0xff]  }
 0x252   : > { %v15059_v14 = vadd.f32 %v3539_v55, %v3427_v54  ;;  %v3429_v56 = vadd.f32 %v3428_v58, %v17779_v60  ;;  %v3541_v31 = vpop.f32.mrf.mxu1  ;;  %7191 = vmatprep.subr.bf16.mxu0 %v12847_v46  ;;  %7291 = vmatpush1.bf16.msra.mxu1 %v12890_v40  ;;  %v12898_v54 = vld [vmem:[#allocation8 + $0x604] ss:$16 sps:$4 sm:$0xff]   ;;  %v12851_v55 = vld [vmem:[#allocation8 + $0x500] ss:$16 sps:$4 sm:$0xff]   ;;  %v12859_v58 = vld [vmem:[#allocation8 + $0x4ec] ss:$16 sps:$4 sm:$0xff]  }
 0x253   : > { %v3430_v0 = vpop.f32.mrf.mxu0  ;;  %v12896_v60 = vld [vmem:[#allocation8 + $0x600] ss:$16 sps:$4 sm:$0xff]   ;;  %7292 = vmatprep.subr.bf16.mxu1 %v12898_v54 }
 0x254   : > { %17778 = vst [vmem:[#allocation59_spill] sm:$0xff] %v15059_v14  ;;  %v15062_v51 = vadd.f32 %v3541_v31, %v3429_v56  ;;  %v3431_v30 = vadd.f32 %v3430_v0, %v17781_v29  ;;  %v3543_v5 = vpop.f32.mrf.mxu1 }
 0x255   : > { %v15065_v32 = vpop.f32.mrf.mxu0  ;;  %7192 = vmatpush2.bf16.msra.mxu0 %v12845_v17 }
 0x256   : > { %17780 = vst [vmem:[#allocation27_spill] sm:$0xff] %v15062_v51  ;;  %v15067_v35 = vadd.f32 %v3543_v5, %v3431_v30  ;;  %v15069_v39 = vpop.f32.mrf.mxu1  ;;  %7193 = vmatprep.subr.bf16.mxu0 %v12850_v42  ;;  %v17785_v42 = vld [vmem:[#allocation41_spill] sm:$0xff]  ;;  %7293 = vmatpush1.bf16.msra.mxu1 %v12896_v60  ;;  %v17787_v30 = vld [vmem:[#allocation42_spill] sm:$0xff] }
 0x257   : > { %v3436_v46 = vpop.f32.mrf.mxu0  ;;  %5221 = vmatmul.mubr.bf16.gmra.mxu0 %v14935_v4  ;;  %7294 = vmatprep.subr.bf16.mxu1 %v12904_v38  ;;  %v12932_v51 = vld [vmem:[#allocation8 + $0x740] ss:$16 sps:$4 sm:$0xff]  }
 0x258   : > { %17782 = vst [vmem:[#allocation61_spill] sm:$0xff] %v15067_v35  ;;  %v3437_v16 = vadd.f32 %v3436_v46, %v17783_v53  ;;  %v3549_v8 = vpop.f32.mrf.mxu1  ;;  %5334 = vmatmul.mubr.bf16.gmra.mxu1 %v14938_v6 }
 0x259   : > { %v3438_v17 = vpop.f32.mrf.mxu0  ;;  %7194 = vmatpush2.bf16.msra.mxu0 %v12848_v20  ;;  %v12902_v20 = vld [vmem:[#allocation8 + $0x7e0] ss:$16 sps:$4 sm:$0xff]  }
 0x25a   : > { %v15074_v56 = vadd.f32 %v3549_v8, %v3437_v16  ;;  %v3439_v31 = vadd.f32 %v3438_v17, %v17785_v42  ;;  %v3551_v0 = vpop.f32.mrf.mxu1  ;;  %7195 = vmatprep.subr.bf16.mxu0 %v12853_v50  ;;  %7295 = vmatpush2.bf16.msra.mxu1 %v12902_v20  ;;  %v17789_v16 = vld [vmem:[#allocation44_spill] sm:$0xff]  ;;  %v12910_v17 = vld [vmem:[#allocation8 + $0x7c4] ss:$16 sps:$4 sm:$0xff]   ;;  %v12908_v42 = vld [vmem:[#allocation8 + $0x7c0] ss:$16 sps:$4 sm:$0xff]  }
 0x25b   : > { %v3440_v4 = vpop.f32.mrf.mxu0  ;;  %7296 = vmatprep.subr.bf16.mxu1 %v12910_v17 }
 0x25c   : > { %17784 = vst [vmem:[#allocation63_spill] sm:$0xff] %v15074_v56  ;;  %v15077_v29 = vadd.f32 %v3551_v0, %v3439_v31  ;;  %v3441_v5 = vadd.f32 %v3440_v4, %v17787_v30  ;;  %v3553_v6 = vpop.f32.mrf.mxu1  ;;  %v17791_v0 = vld [vmem:[#allocation45_spill] sm:$0xff] }
 0x25d   : > { %v15080_v40 = vpop.f32.mrf.mxu0  ;;  %7196 = vmatpush2.bf16.msra.mxu0 %v12851_v55 }
 0x25e   : > { %17786 = vst [vmem:[#allocation64_spill] sm:$0xff] %v15077_v29  ;;  %v15082_v46 = vadd.f32 %v3553_v6, %v3441_v5  ;;  %v15084_v53 = vpop.f32.mrf.mxu1  ;;  %7391 = vmatprep.subr.bf16.mxu0 %v12859_v58  ;;  %7297 = vmatpush2.bf16.msra.mxu1 %v12908_v42  ;;  %v17793_v58 = vld [vmem:[#allocation46_spill] sm:$0xff] }
 0x25f   : > { %v3592_v50 = vpop.f32.mrf.mxu0 }
 0x260   : > { %17788 = vst [vmem:[#allocation28_spill] sm:$0xff] %v15082_v46  ;;  %v3593_v8 = vadd.f32 %v3592_v50, %v17789_v16  ;;  %v3705_v54 = vpop.f32.mrf.mxu1  ;;  %v12916_v46 = vld [vmem:[#allocation8 + $0x7a4] ss:$16 sps:$4 sm:$0xff]  }
 0x261   : > { %v3594_v60 = vpop.f32.mrf.mxu0  ;;  %7298 = vmatprep.subr.bf16.mxu1 %v12916_v46 }
 0x262   : > { %v15087_v31 = vadd.f32 %v3705_v54, %v3593_v8  ;;  %v3595_v4 = vadd.f32 %v3594_v60, %v17791_v0  ;;  %v3707_v55 = vpop.f32.mrf.mxu1  ;;  %v12914_v54 = vld [vmem:[#allocation8 + $0x7a0] ss:$16 sps:$4 sm:$0xff]  }
 0x263   : > { %v3596_v30 = vpop.f32.mrf.mxu0  ;;  %7299 = vmatpush2.bf16.msra.mxu1 %v12914_v54  ;;  %v12928_v54 = vld [vmem:[#allocation8 + $0x764] ss:$16 sps:$4 sm:$0xff]  }
 0x264   : > { %17790 = vst [vmem:[#allocation29_spill] sm:$0xff] %v15087_v31  ;;  %v15090_v5 = vadd.f32 %v3707_v55, %v3595_v4  ;;  %v3597_v6 = vadd.f32 %v3596_v30, %v17793_v58  ;;  %v3709_v38 = vpop.f32.mrf.mxu1  ;;  %v17795_v31 = vld [vmem:[#allocation48_spill] sm:$0xff]  ;;  %v17797_v4 = vld [vmem:[#allocation49_spill] sm:$0xff] }
 0x265   : > { %v15093_v20 = vpop.f32.mrf.mxu0  ;;  %v12922_v58 = vld [vmem:[#allocation8 + $0x784] ss:$16 sps:$4 sm:$0xff]  }
 0x266   : > { %17792 = vst [vmem:[#allocation67_spill] sm:$0xff] %v15090_v5  ;;  %v15095_v50 = vadd.f32 %v3709_v38, %v3597_v6  ;;  %v15097_v16 = vpop.f32.mrf.mxu1  ;;  %v12920_v6 = vld [vmem:[#allocation8 + $0x780] ss:$16 sps:$4 sm:$0xff]   ;;  %7300 = vmatprep.subr.bf16.mxu1 %v12922_v58 }
 0x267   : > { %v3602_v8 = vpop.f32.mrf.mxu0  ;;  %7301 = vmatpush2.bf16.msra.mxu1 %v12920_v6  ;;  %v12934_v6 = vld [vmem:[#allocation8 + $0x744] ss:$16 sps:$4 sm:$0xff]  }
 0x268   : > { %17794 = vst [vmem:[#allocation31_spill] sm:$0xff] %v15095_v50  ;;  %v3603_v60 = vadd.f32 %v3602_v8, %v17795_v31  ;;  %v3715_v0 = vpop.f32.mrf.mxu1  ;;  %v17799_v50 = vld [vmem:[#allocation50_spill] sm:$0xff]  ;;  %7302 = vmatprep.subr.bf16.mxu1 %v12928_v54 }
 0x269   : > { %v3604_v17 = vpop.f32.mrf.mxu0 }
 0x26a   : > { %v15100_v42 = vadd.f32 %v3715_v0, %v3603_v60  ;;  %v3605_v55 = vadd.f32 %v3604_v17, %v17797_v4  ;;  %v3717_v30 = vpop.f32.mrf.mxu1  ;;  %v17801_v60 = vld [vmem:[#allocation52_spill] sm:$0xff]  ;;  %v12926_v4 = vld [vmem:[#allocation8 + $0x760] ss:$16 sps:$4 sm:$0xff]  }
 0x26b   : > { %v3606_v5 = vpop.f32.mrf.mxu0  ;;  %7303 = vmatpush2.bf16.msra.mxu1 %v12926_v4 }
 0x26c   : > { %17796 = vst [vmem:[#allocation32_spill] sm:$0xff] %v15100_v42  ;;  %v15103_v38 = vadd.f32 %v3717_v30, %v3605_v55  ;;  %v3607_v29 = vadd.f32 %v3606_v5, %v17799_v50  ;;  %v3719_v56 = vpop.f32.mrf.mxu1  ;;  %v17803_v5 = vld [vmem:[#allocation53_spill] sm:$0xff]  ;;  %7304 = vmatprep.subr.bf16.mxu1 %v12934_v6 }
 0x26d   : > { %v15106_v35 = vpop.f32.mrf.mxu0 }
 0x26e   : > { %17798 = vst [vmem:[#allocation33_spill] sm:$0xff] %v15103_v38  ;;  %v15108_v46 = vadd.f32 %v3719_v56, %v3607_v29  ;;  %v15110_v31 = vpop.f32.mrf.mxu1  ;;  %v17805_v29 = vld [vmem:[#allocation54_spill] sm:$0xff] }
 0x26f   : > { %v3612_v8 = vpop.f32.mrf.mxu0  ;;  %7305 = vmatpush2.bf16.msra.mxu1 %v12932_v51 }
 0x270   : > { %17800 = vst [vmem:[#allocation35_spill] sm:$0xff] %v15108_v46  ;;  %v3613_v0 = vadd.f32 %v3612_v8, %v17801_v60  ;;  %v3725_v17 = vpop.f32.mrf.mxu1 }
 0x271   : > { %v3614_v42 = vpop.f32.mrf.mxu0 }
 0x272   : > { %v15113_v55 = vadd.f32 %v3725_v17, %v3613_v0  ;;  %v3615_v50 = vadd.f32 %v3614_v42, %v17803_v5  ;;  %v3727_v30 = vpop.f32.mrf.mxu1  ;;  %v17807_v42 = vld [vmem:[#allocation58_spill] sm:$0xff]  ;;  %v12940_v5 = vld [vmem:[#allocation8 + $0x724] ss:$16 sps:$4 sm:$0xff]  }
 0x273   : > { %v3616_v58 = vpop.f32.mrf.mxu0  ;;  %7306 = vmatprep.subr.bf16.mxu1 %v12940_v5 }
 0x274   : > { %17802 = vst [vmem:[#allocation36_spill] sm:$0xff] %v15113_v55  ;;  %v15116_v56 = vadd.f32 %v3727_v30, %v3615_v50  ;;  %v3617_v46 = vadd.f32 %v3616_v58, %v17805_v29  ;;  %v3729_v38 = vpop.f32.mrf.mxu1  ;;  %v17809_v30 = vld [vmem:[#allocation60_spill] sm:$0xff] }
 0x275   : > { %v15119_v14 = vpop.f32.mrf.mxu0 }
 0x276   : > { %17804 = vst [vmem:[#allocation37_spill] sm:$0xff] %v15116_v56  ;;  %v15121_v8 = vadd.f32 %v3729_v38, %v3617_v46  ;;  %v15123_v54 = vpop.f32.mrf.mxu1  ;;  %v12938_v56 = vld [vmem:[#allocation8 + $0x720] ss:$16 sps:$4 sm:$0xff]   ;;  %v17811_v38 = vld [vmem:[#allocation62_spill] sm:$0xff] }
 0x277   : > { %v3622_v60 = vpop.f32.mrf.mxu0  ;;  %7307 = vmatpush2.bf16.msra.mxu1 %v12938_v56 }
 0x278   : > { %17806 = vst [vmem:[#allocation40_spill] sm:$0xff] %v15121_v8  ;;  %v3623_v0 = vadd.f32 %v3622_v60, %v17807_v42  ;;  %v3735_v17 = vpop.f32.mrf.mxu1  ;;  %v12946_v60 = vld [vmem:[#allocation8 + $0x704] ss:$16 sps:$4 sm:$0xff]  }
 0x279   : > { %v3624_v4 = vpop.f32.mrf.mxu0  ;;  %7308 = vmatprep.subr.bf16.mxu1 %v12946_v60 }
 0x27a   : > { %v15126_v50 = vadd.f32 %v3735_v17, %v3623_v0  ;;  %v3625_v58 = vadd.f32 %v3624_v4, %v17809_v30  ;;  %v3737_v29 = vpop.f32.mrf.mxu1  ;;  %v12944_v0 = vld [vmem:[#allocation8 + $0x700] ss:$16 sps:$4 sm:$0xff]   ;;  %v17813_v4 = vld [vmem:[#allocation66_spill] sm:$0xff] }
 0x27b   : > { %v3626_v55 = vpop.f32.mrf.mxu0  ;;  %7309 = vmatpush2.bf16.msra.mxu1 %v12944_v0 }
 0x27c   : > { %17808 = vst [vmem:[#allocation41_spill] sm:$0xff] %v15126_v50  ;;  %v15129_v6 = vadd.f32 %v3737_v29, %v3625_v58  ;;  %v3627_v46 = vadd.f32 %v3626_v55, %v17811_v38  ;;  %v3739_v8 = vpop.f32.mrf.mxu1  ;;  %v17815_v55 = vld [vmem:[#allocation68_spill] sm:$0xff] }
 0x27d   : > { %v15132_v51 = vpop.f32.mrf.mxu0  ;;  %v12952_v38 = vld [vmem:[#allocation8 + $0x6ec] ss:$16 sps:$4 sm:$0xff]  }
 0x27e   : > { %17810 = vst [vmem:[#allocation42_spill] sm:$0xff] %v15129_v6  ;;  %v15134_v42 = vadd.f32 %v3739_v8, %v3627_v46  ;;  %v15136_v61 = vpop.f32.mrf.mxu1  ;;  %v17817_v8 = vld [vmem:[#allocation69_spill] sm:$0xff]  ;;  %7504 = vmatprep.subr.bf16.mxu1 %v12952_v38 }
 0x27f   : > { %v3632_v17 = vpop.f32.mrf.mxu0 }
 0x280   : > { %17812 = vst [vmem:[#allocation44_spill] sm:$0xff] %v15134_v42  ;;  %v3633_v30 = vadd.f32 %v3632_v17, %v17813_v4  ;;  %v3745_v50 = vpop.f32.mrf.mxu1 }
 0x281   : > { %v3634_v5 = vpop.f32.mrf.mxu0 }
 0x282   : > { %v15139_v58 = vadd.f32 %v3745_v50, %v3633_v30  ;;  %v3635_v29 = vadd.f32 %v3634_v5, %v17815_v55  ;;  %v3747_v56 = vpop.f32.mrf.mxu1 }
 0x283   : > { %v3636_v6 = vpop.f32.mrf.mxu0 }
 0x284   : > { %17814 = vst [vmem:[#allocation45_spill] sm:$0xff] %v15139_v58  ;;  %v15142_v43 = vadd.f32 %v3747_v56, %v3635_v29  ;;  %v3637_v46 = vadd.f32 %v3636_v6, %v17817_v8  ;;  %v3749_v42 = vpop.f32.mrf.mxu1 }
 0x285   : > { %v15145_v59 = vpop.f32.mrf.mxu0 }
 0x286   : > { %17816 = vst [vmem:[#allocation46_spill] sm:$0xff] %v15142_v43  ;;  %v15147_v60 = vadd.f32 %v3749_v42, %v3637_v46  ;;  %v15149_v17 = vpop.f32.mrf.mxu1 }
 0x287   : > { %v3642_v0 = vpop.f32.mrf.mxu0 }
 0x288   : > { %17818 = vst [vmem:[#allocation48_spill] sm:$0xff] %v15147_v60  ;;  %v3643_v50 = vadd.f32 %v3642_v0, %v14902_v52  ;;  %v3755_v4 = vpop.f32.mrf.mxu1 }
 0x289   : > { %v3644_v30 = vpop.f32.mrf.mxu0 }
 0x28a   : > { %v15152_v5 = vadd.f32 %v3755_v4, %v3643_v50  ;;  %v3645_v55 = vadd.f32 %v3644_v30, %v14905_v15  ;;  %v3757_v29 = vpop.f32.mrf.mxu1 }
 0x28b   : > { %v3646_v56 = vpop.f32.mrf.mxu0 }
 0x28c   : > { %17819 = vst [vmem:[#allocation49_spill] sm:$0xff] %v15152_v5  ;;  %v15155_v6 = vadd.f32 %v3757_v29, %v3645_v55  ;;  %v3647_v38 = vadd.f32 %v3646_v56, %v14920_v18  ;;  %v3759_v8 = vpop.f32.mrf.mxu1 }
 0x28d   : > { %v15158_v42 = vpop.f32.mrf.mxu0 }
 0x28e   : > { %17820 = vst [vmem:[#allocation50_spill] sm:$0xff] %v15155_v6  ;;  %v15160_v46 = vadd.f32 %v3759_v8, %v3647_v38  ;;  %v15162_v60 = vpop.f32.mrf.mxu1  ;;  %v5410_v8 = vlaneseq }
 0x28f   : > { %v3652_v52 = vpop.f32.mrf.mxu0 }
 0x290   : > { %17821 = vst [vmem:[#allocation52_spill] sm:$0xff] %v15160_v46  ;;  %v3653_v0 = vadd.f32 %v3652_v52, %v14930_v34  ;;  %v3765_v50 = vpop.f32.mrf.mxu1 }
 0x291   : > { %v3654_v4 = vpop.f32.mrf.mxu0 }
 0x292   : > { %v15165_v5 = vadd.f32 %v3765_v50, %v3653_v0  ;;  %v3655_v15 = vadd.f32 %v3654_v4, %v14933_v28  ;;  %v3767_v30 = vpop.f32.mrf.mxu1  ;;  %v5411_v28 = vshrl.u32 %v5410_v8, 7  ;;  %v5494_v8 = vld [vmem:[#allocation11] sm:$0xf] }
 0x293   : > { %v3656_v55 = vpop.f32.mrf.mxu0 }
 0x294   : > { %17822 = vst [vmem:[#allocation53_spill] sm:$0xff] %v15165_v5  ;;  %v15168_v29 = vadd.f32 %v3767_v30, %v3655_v15  ;;  %v3657_v18 = vadd.f32 %v3656_v55, %v14940_v63  ;;  %v3769_v56 = vpop.f32.mrf.mxu1 }
 0x295   : > { %v15171_v38 = vpop.f32.mrf.mxu0 }
 0x296   : > { %17823 = vst [vmem:[#allocation54_spill] sm:$0xff] %v15168_v29  ;;  %v15173_v46 = vadd.f32 %v3769_v56, %v3657_v18  ;;  %v15175_v6 = vpop.f32.mrf.mxu1 }
 0x297   : > { %v3662_v34 = vpop.f32.mrf.mxu0 }
 0x298   : > { %17824 = vst [vmem:[#allocation58_spill] sm:$0xff] %v15173_v46  ;;  %v3663_v52 = vadd.f32 %v3662_v34, %v14946_v23  ;;  %v3775_v0 = vpop.f32.mrf.mxu1  ;;  %v15184_v46 = vsub.s32 0, %v5411_v28  ;;  %v5408_v34 = vld [vmem:[#allocation9] sm:$0xf] }
 0x299   : > { %v3664_v50 = vpop.f32.mrf.mxu0 }
 0x29a   : > { %v15178_v4 = vadd.f32 %v3775_v0, %v3663_v52  ;;  %v3665_v15 = vadd.f32 %v3664_v50, %v14949_v19  ;;  %v3777_v30 = vpop.f32.mrf.mxu1  ;;  %17827 = vst [vmem:[#allocation66_spill] sm:$0xff] %v15184_v46  ;;  %v15190_v52 = vsub.s32 1, %v5411_v28  ;;  %v17830_v19 = vld [vmem:[#allocation30_spill] sm:$0xff]  ;;  %v15204_v43 = vrot.slane %v5494_v8, %v15184_v46 }
 0x29b   : > { %v3666_v63 = vpop.f32.mrf.mxu0  ;;  %v3413_v50 = vadd.f32 %v15031_v48, %v17830_v19  ;;  %v3599_v48 = vadd.f32 %v15093_v20, %v17834_v11 }
 0x29c   : > { %17825 = vst [vmem:[#allocation60_spill] sm:$0xff] %v15178_v4  ;;  %v15181_v55 = vadd.f32 %v3777_v30, %v3665_v15  ;;  %v3667_v29 = vadd.f32 %v3666_v63, %v14952_v22  ;;  %v3779_v18 = vpop.f32.mrf.mxu1  ;;  %17829 = vst [vmem:[#allocation69_spill] sm:$0xff] %v15190_v52  ;;  %v17831_v15 = vld [vmem:[#allocation34_spill] sm:$0xff]  ;;  %v17832_v22 = vld [vmem:[#allocation39_spill] sm:$0xff]  ;;  %v15201_v4 = vrot.slane %v5408_v34, %v15184_v46 }
 0x29d   : > { %v3668_v56 = vpop.f32.mrf.mxu0  ;;  %v3423_v30 = vadd.f32 %v15048_v33, %v17831_v15  ;;  %v3433_v63 = vadd.f32 %v15065_v32, %v17832_v22  ;;  %v15209_v33 = vrot.slane %v5408_v34, %v15190_v52  ;;  %v15211_v32 = vsub.s32 2, %v5411_v28 }
 0x29e   : > { %17826 = vst [vmem:[#allocation62_spill] sm:$0xff] %v15181_v55  ;;  %v15186_v5 = vadd.f32 %v3779_v18, %v3667_v29  ;;  %v15188_v23 = vpop.f32.mrf.mxu1  ;;  %v17833_v55 = vld [vmem:[#allocation43_spill] sm:$0xff]  ;;  %v15213_v15 = vsub.s32 3, %v5411_v28  ;;  %v15219_v46 = vrot.slane %v5494_v8, %v15190_v52  ;;  %v15222_v11 = vadd.f32 %v15035_v62, %v3413_v50 }
 0x29f   : > { %v4926_v0 = vpop.f32.mrf.mxu0  ;;  %v3443_v29 = vadd.f32 %v15080_v40, %v17833_v55  ;;  %17835 = vst [vmem:[#allocation30_spill] sm:$0xff] %v15211_v32  ;;  %v17837_v40 = vld [vmem:[#allocation51_spill] sm:$0xff]  ;;  %v15225_v20 = vadd.f32 %v15052_v37, %v3423_v30  ;;  %v15228_v7 = vadd.f32 %v15069_v39, %v3433_v63  ;;  %v15238_v50 = vadd.f32 %v15097_v16, %v3599_v48  ;;  %v17839_v48 = vld [vmem:[#allocation65_spill] sm:$0xff] }
 0x2a0   : > { %17828 = vst [vmem:[#allocation68_spill] sm:$0xff] %v15186_v5  ;;  %v5039_v18 = vpop.f32.mrf.mxu1  ;;  %17836 = vst [vmem:[#allocation34_spill] sm:$0xff] %v15213_v15  ;;  %v3609_v55 = vadd.f32 %v15106_v35, %v17837_v40  ;;  %v17838_v40 = vld [vmem:[#allocation56_spill] sm:$0xff]  ;;  %v15241_v39 = vrot.slane %v5408_v34, %v15211_v32  ;;  %v15247_v30 = vrot.slane %v5408_v34, %v15213_v15 }
 0x2a1   : > { %v5040_v5 = vadd.f32 %v5039_v18, %v4926_v0  ;;  %v4928_v58 = vpop.f32.mrf.mxu0  ;;  %v15231_v28 = vadd.f32 %v15084_v53, %v3443_v29  ;;  %v15244_v53 = vrot.slane %v5494_v8, %v15211_v32  ;;  %v15260_v34 = vrot.slane %v5494_v8, %v15213_v15 }
 0x2a2   : > { %v5041_v19 = vpop.f32.mrf.mxu1 }
 0x2a3   : > { %v5344_v0 = vadd.f32 %v5040_v5, %v14961_v26  ;;  %v5042_v22 = vadd.f32 %v5041_v19, %v4928_v58  ;;  %v4930_v18 = vpop.f32.mrf.mxu0  ;;  %v3619_v26 = vadd.f32 %v15119_v14, %v17838_v40  ;;  %v15250_v14 = vadd.f32 %v15110_v31, %v3609_v55 }
 0x2a4   : > { %v5043_v35 = vpop.f32.mrf.mxu1 }
 0x2a5   : > { %v5430_v58 = vmul.f32 %v15201_v4, %v5344_v0  ;;  %v5345_v5 = vadd.f32 %v5042_v22, %v14964_v41  ;;  %v5044_v19 = vadd.f32 %v5043_v35, %v4930_v18  ;;  %v4932_v62 = vpop.f32.mrf.mxu0  ;;  %v3629_v0 = vadd.f32 %v15132_v51, %v17839_v48  ;;  %v17840_v22 = vld [vmem:[#allocation70_spill] sm:$0xff] }
 0x2a6   : > { %v5045_v37 = vpop.f32.mrf.mxu1  ;;  %v3639_v18 = vadd.f32 %v15145_v59, %v17840_v22  ;;  %v15263_v31 = vadd.f32 %v15123_v54, %v3619_v26  ;;  %v3659_v59 = vadd.f32 %v15171_v38, %v14942_v44 }
 0x2a7   : > { %v5431_v41 = vmul.f32 %v15209_v33, %v5345_v5  ;;  %v5348_v63 = vadd.f32 %v5044_v19, %v14967_v36  ;;  %v5046_v29 = vadd.f32 %v5045_v37, %v4932_v62  ;;  %v4936_v16 = vpop.f32.mrf.mxu0  ;;  %v5516_v35 = vadd.f32 %v15204_v43, %v5430_v58  ;;  %v17841_v62 = vld [vmem:[#allocation71_spill] sm:$0xff] }
 0x2a8   : > { %v5049_v40 = vpop.f32.mrf.mxu1  ;;  %v3649_v51 = vadd.f32 %v15158_v42, %v17841_v62  ;;  %v3669_v58 = vadd.f32 %v3668_v56, %v14954_v25  ;;  %v15280_v42 = vadd.f32 %v15149_v17, %v3639_v18 }
 0x2a9   : > { %v5434_v55 = vmul.f32 %v15201_v4, %v5348_v63  ;;  %v5349_v36 = vadd.f32 %v5046_v29, %v14971_v45  ;;  %v5050_v5 = vadd.f32 %v5049_v40, %v4936_v16  ;;  %v4938_v19 = vpop.f32.mrf.mxu0  ;;  %v5517_v8 = vadd.f32 %v15219_v46, %v5431_v41 }
 0x2aa   : > { %v5051_v37 = vpop.f32.mrf.mxu1  ;;  %v15277_v16 = vadd.f32 %v15136_v61, %v3629_v0  ;;  %v5580_v44 = vmax.f32 %v5516_v35, 0.0  ;;  %v15292_v18 = vadd.f32 %v15188_v23, %v3669_v58 }
 0x2ab   : > { %v5520_v54 = vadd.f32 %v15204_v43, %v5434_v55  ;;  %v5435_v26 = vmul.f32 %v15209_v33, %v5349_v36  ;;  %v5352_v63 = vadd.f32 %v5050_v5, %v14977_v21  ;;  %v5052_v45 = vadd.f32 %v5051_v37, %v4938_v19  ;;  %v4940_v29 = vpop.f32.mrf.mxu0 }
 0x2ac   : > { %v5053_v38 = vpop.f32.mrf.mxu1  ;;  %v5581_v25 = vmax.f32 %v5517_v8, 0.0  ;;  %v15285_v21 = vadd.f32 %v15162_v60, %v3649_v51  ;;  %v15288_v55 = vadd.f32 %v15175_v6, %v3659_v59  ;;  %17842 = vst [vmem:[#allocation39_spill] sm:$0xff] %v15292_v18 }
 0x2ad   : > { %v5584_v56 = vmax.f32 %v5520_v54, 0.0  ;;  %v5438_v41 = vmul.f32 %v15201_v4, %v5352_v63  ;;  %v5353_v48 = vadd.f32 %v5052_v45, %v14980_v9  ;;  %v5054_v22 = vadd.f32 %v5053_v38, %v4940_v29  ;;  %v4942_v40 = vpop.f32.mrf.mxu0  ;;  %v12857_v29 = vld [vmem:[#allocation8 + $0x4e8] ss:$16 sps:$4 sm:$0xff]  }
 0x2ae   : > { %v5055_v61 = vpop.f32.mrf.mxu1  ;;  %v5521_v17 = vadd.f32 %v15219_v46, %v5435_v26  ;;  %v12053_v0 = vpack.c.bf16 %v5581_v25, %v5580_v44 }
 0x2af   : > { %v15294_v35 = vpack.c.bf16 %v5584_v56, %v5580_v44  ;;  %v5439_v36 = vmul.f32 %v15209_v33, %v5353_v48  ;;  %v5356_v9 = vadd.f32 %v5054_v22, %v14983_v24  ;;  %v4946_v5 = vpop.f32.mrf.mxu0  ;;  %v15299_v60 = vadd.f32 %v15204_v43, %v5438_v41  ;;  %v6124_v48 = vld [vmem:[#allocation2 + $0xb0] sm:$0xff] }
 0x2b0   : > { %v5056_v19 = vadd.f32 %v5055_v61, %v4942_v40  ;;  %v5059_v6 = vpop.f32.mrf.mxu1  ;;  %v5585_v62 = vmax.f32 %v5521_v17, 0.0  ;;  %v5805_v51 = vshrl.u32 %v12053_v0, 16  ;;  %v5808_v23 = vshll.u32 %v12053_v0, 16  ;;  %v12865_v40 = vld [vmem:[#allocation8 + $0x4cc] ss:$16 sps:$4 sm:$0xff]  }
 0x2b1   : > { %v5442_v59 = vmul.f32 %v15201_v4, %v5356_v9  ;;  %v5060_v37 = vadd.f32 %v5059_v6, %v4946_v5  ;;  %v4948_v8 = vpop.f32.mrf.mxu0  ;;  %v5525_v58 = vadd.f32 %v15219_v46, %v5439_v36  ;;  %v5588_v17 = vmax.f32 %v15299_v60, 0.0 }
 0x2b2   : > { %v5357_v54 = vadd.f32 %v5056_v19, %v14987_v13  ;;  %v5061_v26 = vpop.f32.mrf.mxu1  ;;  %v15304_v63 = vpack.c.bf16 %v5585_v62, %v5581_v25  ;;  %v12055_v24 = vpack.c.bf16 %v5585_v62, %v5584_v56  ;;  %v5807_v45 = vrot.slane %v5805_v51, 7  ;;  %v13061_v62 = vld [vmem:[#allocation8 + $0xc8] ss:$16 sps:$4 sm:$0xff]  }
 0x2b3   : > { %v15307_v44 = vadd.f32 %v15204_v43, %v5442_v59  ;;  %v5360_v38 = vadd.f32 %v5060_v37, %v14993_v57  ;;  %v5062_v41 = vadd.f32 %v5061_v26, %v4948_v8  ;;  %v4950_v22 = vpop.f32.mrf.mxu0  ;;  %v5589_v61 = vmax.f32 %v5525_v58, 0.0  ;;  %v12863_v37 = vld [vmem:[#allocation8 + $0x4c8] ss:$16 sps:$4 sm:$0xff]  }
 0x2b4   : > { %v5443_v13 = vmul.f32 %v15209_v33, %v5357_v54  ;;  %v5810_v0 = vor.u32 %v5808_v23, %v5807_v45  ;;  %v5820_v25 = vshrl.u32 %v12055_v24, 16  ;;  %7197 = vmatprep.mubr.bf16.mxu0 %v15304_v63  ;;  %v5063_v56 = vpop.f32.mrf.mxu1  ;;  %v5818_v5 = vrot.slane %v5807_v45, 4  ;;  %v12871_v45 = vld [vmem:[#allocation8 + $0x4ac] ss:$16 sps:$4 sm:$0xff]  }
 0x2b5   : > { %v5446_v36 = vmul.f32 %v15201_v4, %v5360_v38  ;;  %v5361_v9 = vadd.f32 %v5062_v41, %v14996_v27  ;;  %v5823_v57 = vshll.u32 %v12055_v24, 16  ;;  %7198 = vmatmul.mubr.bf16.vlgmr.msra.gmra.mxu0 %v15294_v35  ;;  %v4952_v19 = vpop.f32.mrf.mxu0  ;;  %v5064_v51 = vadd.f32 %v5063_v56, %v4950_v22  ;;  %v6132_v27 = vld [vmem:[#allocation2 + $0x20] sm:$0x11] }
 0x2b6   : > { %v5822_v6 = vrot.slane %v5820_v25, 7  ;;  %v6125_v60 = vsel %vm14075_vm2, %v5810_v0, %v6124_v48  ;;  %7392 = vmatpush1.bf16.msra.mxu0 %v12857_v29  ;;  %v5065_v59 = vpop.f32.mrf.mxu1  ;;  %v5529_v8 = vadd.f32 %v15219_v46, %v5443_v13  ;;  %v5592_v23 = vmax.f32 %v15307_v44, 0.0 }
 0x2b7   : > { %v15321_v58 = vadd.f32 %v15204_v43, %v5446_v36  ;;  %6126 = vst [vmem:[#allocation2 + $0xb0] sm:$0xff] %v6125_v60  ;;  %v5066_v54 = vadd.f32 %v5065_v59, %v4952_v19  ;;  %v4956_v26 = vpop.f32.mrf.mxu0  ;;  %7393 = vmatprep.subr.bf16.mxu0 %v12865_v40  ;;  %v12057_v24 = vpack.c.bf16 %v5589_v61, %v5588_v17  ;;  %v13078_v36 = vld [vmem:[#allocation8 + $0x8c] ss:$16 sps:$4 sm:$0xff]   ;;  %v13058_v60 = vld [vmem:[#allocation8 + $0x2c0] ss:$16 sps:$4 sm:$0xff]  }
 0x2b8   : > { %v5825_v38 = vor.u32 %v5823_v57, %v5822_v6  ;;  %v5836_v41 = vrot.slane %v5822_v6, 4  ;;  %v5364_v29 = vadd.f32 %v5064_v51, %v14999_v1  ;;  %v5069_v48 = vpop.f32.mrf.mxu1  ;;  %v5593_v22 = vmax.f32 %v5529_v8, 0.0 }
 0x2b9   : > { %v5447_v13 = vmul.f32 %v15209_v33, %v5361_v9  ;;  %v5365_v44 = vadd.f32 %v5066_v54, %v15003_v2  ;;  %v5070_v0 = vadd.f32 %v5069_v48, %v4956_v26  ;;  %v4958_v25 = vpop.f32.mrf.mxu0  ;;  %v5839_v56 = vshrl.u32 %v12057_v24, 16  ;;  %v12869_v54 = vld [vmem:[#allocation8 + $0x4a8] ss:$16 sps:$4 sm:$0xff]  }
 0x2ba   : > { %v5826_v19 = vsel %vm14081_vm3, %v5818_v5, %v5825_v38  ;;  %v6133_v40 = vsel %vm14016_vm10, %v5836_v41, %v6132_v27  ;;  %v5450_v57 = vmul.f32 %v15201_v4, %v5364_v29  ;;  %7394 = vmatpush1.bf16.msra.mxu0 %v12863_v37  ;;  %v5071_v6 = vpop.f32.mrf.mxu1  ;;  %v15331_v1 = vpack.c.bf16 %v5593_v22, %v5589_v61  ;;  %v12877_v38 = vld [vmem:[#allocation8 + $0x48c] ss:$16 sps:$4 sm:$0xff]  }
 0x2bb   : > { %6130 = vst [vmem:[#allocation2 + $0x120] sm:$0xff] %v5826_v19  ;;  %6134 = vst [vmem:[#allocation2 + $0x20] sm:$0x11] %v6133_v40  ;;  %v5451_v9 = vmul.f32 %v15209_v33, %v5365_v44  ;;  %v5368_v2 = vadd.f32 %v5070_v0, %v15009_v49  ;;  %v5072_v51 = vadd.f32 %v5071_v6, %v4958_v25  ;;  %v4960_v8 = vpop.f32.mrf.mxu0  ;;  %7395 = vmatprep.subr.bf16.mxu0 %v12871_v45  ;;  %v6146_v6 = vld [vmem:[#allocation2 + $0xa8] sm:$0x11] }
 0x2bc   : > { %v12059_v59 = vpack.c.bf16 %v5593_v22, %v5592_v23  ;;  %v15336_v5 = vadd.f32 %v15204_v43, %v5450_v57  ;;  %v5841_v27 = vrot.slane %v5839_v56, 7  ;;  %v5842_v26 = vshll.u32 %v12057_v24, 16  ;;  %7207 = vmatprep.mubr.bf16.mxu0 %v15331_v1  ;;  %v5073_v61 = vpop.f32.mrf.mxu1  ;;  %v6138_v22 = vld [vmem:[#allocation2 + $0x30] sm:$0xff] }
 0x2bd   : > { %v15339_v37 = vpack.c.bf16 %v5592_v23, %v5588_v17  ;;  %v5596_v41 = vmax.f32 %v15321_v58, 0.0  ;;  %v5454_v49 = vmul.f32 %v15201_v4, %v5368_v2  ;;  %v5369_v29 = vadd.f32 %v5072_v51, %v15012_v12  ;;  %v4962_v45 = vpop.f32.mrf.mxu0  ;;  %v12875_v12 = vld [vmem:[#allocation8 + $0x488] ss:$16 sps:$4 sm:$0xff]  }
 0x2be   : > { %v5854_v48 = vshrl.u32 %v12059_v59, 16  ;;  %v5600_v44 = vmax.f32 %v15336_v5, 0.0  ;;  %v5844_v0 = vor.u32 %v5842_v26, %v5841_v27  ;;  %v5857_v25 = vshll.u32 %v12059_v59, 16  ;;  %v5075_v56 = vpop.f32.mrf.mxu1  ;;  %7396 = vmatpush1.bf16.msra.mxu0 %v12869_v54  ;;  %v12883_v5 = vld [vmem:[#allocation8 + $0x46c] ss:$16 sps:$4 sm:$0xff]  }
 0x2bf   : > { %v5074_v24 = vadd.f32 %v5073_v61, %v4960_v8  ;;  %7208 = vmatmul.mubr.bf16.gmra.mxu0 %v15339_v37  ;;  %v15347_v17 = vadd.f32 %v15204_v43, %v5454_v49  ;;  %v5852_v23 = vrot.slane %v5841_v27, 4  ;;  %v5076_v19 = vadd.f32 %v5075_v56, %v4962_v45  ;;  %v4966_v40 = vpop.f32.mrf.mxu0  ;;  %7397 = vmatprep.subr.bf16.mxu0 %v12877_v38 }
 0x2c0   : > { %v5856_v58 = vrot.slane %v5854_v48, 7  ;;  %v6139_v57 = vsel %vm14075_vm2, %v5844_v0, %v6138_v22  ;;  %v5079_v51 = vpop.f32.mrf.mxu1  ;;  %v5533_v59 = vadd.f32 %v15219_v46, %v5447_v13  ;;  %v5537_v8 = vadd.f32 %v15219_v46, %v5451_v9 }
 0x2c1   : > { %v5372_v2 = vadd.f32 %v5074_v24, %v15015_v10  ;;  %v5455_v27 = vmul.f32 %v15209_v33, %v5369_v29  ;;  %6140 = vst [vmem:[#allocation2 + $0x30] sm:$0xff] %v6139_v57  ;;  %v5373_v61 = vadd.f32 %v5076_v19, %v15019_v3  ;;  %v4968_v49 = vpop.f32.mrf.mxu0  ;;  %v5080_v22 = vadd.f32 %v5079_v51, %v4966_v40  ;;  %v12881_v40 = vld [vmem:[#allocation8 + $0x468] ss:$16 sps:$4 sm:$0xff]  }
 0x2c2   : > { %v5859_v26 = vor.u32 %v5857_v25, %v5856_v58  ;;  %v5870_v54 = vrot.slane %v5856_v58, 4  ;;  %v5081_v45 = vpop.f32.mrf.mxu1  ;;  %v5597_v10 = vmax.f32 %v5533_v59, 0.0  ;;  %v5601_v0 = vmax.f32 %v5537_v8, 0.0  ;;  %7398 = vmatpush1.bf16.msra.mxu0 %v12875_v12  ;;  %v12889_v59 = vld [vmem:[#allocation8 + $0x44c] ss:$16 sps:$4 sm:$0xff]  }
 0x2c3   : > { %v5458_v48 = vmul.f32 %v15201_v4, %v5372_v2  ;;  %v5082_v29 = vadd.f32 %v5081_v45, %v4968_v49  ;;  %v4970_v25 = vpop.f32.mrf.mxu0  ;;  %v5376_v24 = vadd.f32 %v5080_v22, %v15025_v47  ;;  %7399 = vmatprep.subr.bf16.mxu0 %v12883_v5  ;;  %v15369_v12 = vpack.c.bf16 %v5600_v44, %v5596_v41  ;;  %v17847_v45 = vld [vmem:[#allocation57_spill] sm:$0xff] }
 0x2c4   : > { %v5860_v13 = vsel %vm14081_vm3, %v5852_v23, %v5859_v26  ;;  %v6147_v9 = vsel %vm14016_vm10, %v5870_v54, %v6146_v6  ;;  %v15366_v56 = vpack.c.bf16 %v5601_v0, %v5597_v10  ;;  %v12061_v58 = vpack.c.bf16 %v5597_v10, %v5596_v41  ;;  %v5083_v19 = vpop.f32.mrf.mxu1  ;;  %v17846_v23 = vld [vmem:[#allocation55_spill] sm:$0xff] }
 0x2c5   : > { %6144 = vst [vmem:[#allocation2 + $0x68] sm:$0xff] %v5860_v13  ;;  %6148 = vst [vmem:[#allocation2 + $0xa8] sm:$0x11] %v6147_v9  ;;  %v15363_v3 = vadd.f32 %v15204_v43, %v5458_v48  ;;  %v5377_v57 = vadd.f32 %v5082_v29, %v17846_v23  ;;  %v12063_v2 = vpack.c.bf16 %v5601_v0, %v5600_v44  ;;  %v4972_v51 = vpop.f32.mrf.mxu0  ;;  %v12887_v9 = vld [vmem:[#allocation8 + $0x448] ss:$16 sps:$4 sm:$0xff]  }
 0x2c6   : > { %v5084_v6 = vadd.f32 %v5083_v19, %v4970_v25  ;;  %v5459_v26 = vmul.f32 %v15209_v33, %v5373_v61  ;;  %v5462_v47 = vmul.f32 %v15201_v4, %v5376_v24  ;;  %v5873_v54 = vshrl.u32 %v12061_v58, 16  ;;  %7217 = vmatprep.mubr.bf16.mxu0 %v15366_v56  ;;  %v5085_v49 = vpop.f32.mrf.mxu1  ;;  %7400 = vmatpush1.bf16.msra.mxu0 %v12881_v40  ;;  %v6152_v19 = vld [vmem:[#allocation2 + $0x130] sm:$0xff] }
 0x2c7   : > { %v15376_v5 = vmul.f32 %v15209_v33, %v5377_v57  ;;  %v5876_v48 = vshll.u32 %v12061_v58, 16  ;;  %v5888_v22 = vshrl.u32 %v12063_v2, 16  ;;  %7218 = vmatmul.mubr.bf16.gmra.mxu0 %v15369_v12  ;;  %v4976_v44 = vpop.f32.mrf.mxu0  ;;  %v5086_v0 = vadd.f32 %v5085_v49, %v4972_v51  ;;  %7401 = vmatprep.subr.bf16.mxu0 %v12889_v59  ;;  %v17855_v59 = vld [vmem:[#allocation59_spill] sm:$0xff] }
 0x2c8   : > { %v5380_v41 = vadd.f32 %v5084_v6, %v17847_v45  ;;  %v15381_v10 = vadd.f32 %v15204_v43, %v5462_v47  ;;  %v5875_v61 = vrot.slane %v5873_v54, 7  ;;  %v5089_v13 = vpop.f32.mrf.mxu1  ;;  %v5541_v29 = vadd.f32 %v15219_v46, %v5455_v27  ;;  %v12895_v6 = vld [vmem:[#allocation8 + $0x42c] ss:$16 sps:$4 sm:$0xff]   ;;  %v6160_v47 = vld [vmem:[#allocation2 + $0x140] sm:$0x11] }
 0x2c9   : > { %v5890_v25 = vrot.slane %v5888_v22, 7  ;;  %v5891_v24 = vshll.u32 %v12063_v2, 16  ;;  %v5090_v23 = vadd.f32 %v5089_v13, %v4976_v44  ;;  %v4978_v57 = vpop.f32.mrf.mxu0  ;;  %v5381_v54 = vadd.f32 %v5086_v0, %v15222_v11  ;;  %v17848_v2 = vld [vmem:[#allocation24_spill] sm:$0xff] }
 0x2ca   : > { %v5466_v58 = vmul.f32 %v15201_v4, %v5380_v41  ;;  %v5878_v45 = vor.u32 %v5876_v48, %v5875_v61  ;;  %v5886_v8 = vrot.slane %v5875_v61, 4  ;;  %v5091_v40 = vpop.f32.mrf.mxu1  ;;  %v5545_v51 = vadd.f32 %v15219_v46, %v5459_v26  ;;  %7402 = vmatpush1.bf16.msra.mxu0 %v12887_v9  ;;  %v12893_v0 = vld [vmem:[#allocation8 + $0x428] ss:$16 sps:$4 sm:$0xff]   ;;  %v17849_v9 = vld [vmem:[#allocation25_spill] sm:$0xff] }
 0x2cb   : > { %v5893_v49 = vor.u32 %v5891_v24, %v5890_v25  ;;  %v5904_v38 = vrot.slane %v5890_v25, 4  ;;  %v5384_v22 = vadd.f32 %v5090_v23, %v17848_v2  ;;  %v4980_v41 = vpop.f32.mrf.mxu0  ;;  %v5092_v44 = vadd.f32 %v5091_v40, %v4978_v57  ;;  %7403 = vmatprep.subr.bf16.mxu0 %v12895_v6  ;;  %v12901_v23 = vld [vmem:[#allocation8 + $0x40c] ss:$16 sps:$4 sm:$0xff]  }
 0x2cc   : > { %v15388_v27 = vadd.f32 %v15204_v43, %v5466_v58  ;;  %v6153_v48 = vsel %vm14075_vm2, %v5878_v45, %v6152_v19  ;;  %v5605_v61 = vmax.f32 %v5541_v29, 0.0  ;;  %v5093_v11 = vpop.f32.mrf.mxu1  ;;  %v5467_v25 = vmul.f32 %v15209_v33, %v5381_v54 }
 0x2cd   : > { %v5894_v26 = vsel %vm14081_vm3, %v5886_v8, %v5893_v49  ;;  %6154 = vst [vmem:[#allocation2 + $0x130] sm:$0xff] %v6153_v48  ;;  %v6161_v13 = vsel %vm14016_vm10, %v5904_v38, %v6160_v47  ;;  %v5470_v24 = vmul.f32 %v15201_v4, %v5384_v22  ;;  %v4982_v58 = vpop.f32.mrf.mxu0  ;;  %v5385_v29 = vadd.f32 %v5092_v44, %v17849_v9 }
 0x2ce   : > { %6158 = vst [vmem:[#allocation2 + $0xe0] sm:$0xff] %v5894_v26  ;;  %6162 = vst [vmem:[#allocation2 + $0x140] sm:$0x11] %v6161_v13  ;;  %v5609_v19 = vmax.f32 %v5545_v51, 0.0  ;;  %v17850_v57 = vmax.f32 %v15347_v17, 0.0  ;;  %v5094_v8 = vadd.f32 %v5093_v11, %v4980_v41  ;;  %v5095_v40 = vpop.f32.mrf.mxu1  ;;  %v17852_v6 = vmax.f32 %v15363_v3, 0.0  ;;  %7404 = vmatpush1.bf16.msra.mxu0 %v12893_v0 }
 0x2cf   : > { %v15405_v38 = vadd.f32 %v15204_v43, %v5470_v24  ;;  %v5096_v2 = vadd.f32 %v5095_v40, %v4982_v58  ;;  %v4986_v22 = vpop.f32.mrf.mxu0  ;;  %v12899_v26 = vld [vmem:[#allocation8 + $0x408] ss:$16 sps:$4 sm:$0xff]   ;;  %v5549_v13 = vadd.f32 %v15219_v46, %v15376_v5  ;;  %v15421_v24 = vmul.f32 %v15209_v33, %v5385_v29  ;;  %7405 = vmatprep.subr.bf16.mxu0 %v12901_v23  ;;  %v12907_v40 = vld [vmem:[#allocation8 + $0x5ec] ss:$16 sps:$4 sm:$0xff]  }
 0x2d0   : > { %v12065_v45 = vpack.c.bf16 %v5605_v61, %v17850_v57  ;;  %v17851_v47 = vmov %v17850_v57  ;;  %v15413_v48 = vpack.c.bf16 %v5609_v19, %v5605_v61  ;;  %v17853_v51 = vmov %v17852_v6  ;;  %v5099_v11 = vpop.f32.mrf.mxu1  ;;  %v17854_v58 = vld [vmem:[#allocation26_spill] sm:$0xff] }
 0x2d1   : > { %v15411_v54 = vpack.c.bf16 %v17852_v6, %v17851_v47  ;;  %v12067_v44 = vpack.c.bf16 %v5609_v19, %v17853_v51  ;;  %v5388_v57 = vadd.f32 %v5094_v8, %v17854_v58  ;;  %v4988_v61 = vpop.f32.mrf.mxu0  ;;  %v5389_v0 = vadd.f32 %v5096_v2, %v15225_v20  ;;  %v6166_v51 = vld [vmem:[#allocation2 + $0xc0] sm:$0xff]  ;;  %v6174_v17 = vld [vmem:[#allocation2 + $0xb8] sm:$0x11] }
 0x2d2   : > { %v5907_v41 = vshrl.u32 %v12065_v45, 16  ;;  %v5910_v9 = vshll.u32 %v12065_v45, 16  ;;  %7227 = vmatprep.mubr.bf16.mxu0 %v15413_v48  ;;  %v5100_v47 = vadd.f32 %v5099_v11, %v4986_v22  ;;  %v5101_v6 = vpop.f32.mrf.mxu1  ;;  %v5553_v23 = vadd.f32 %v15219_v46, %v5467_v25  ;;  %7406 = vmatpush1.bf16.msra.mxu0 %v12899_v26  ;;  %v12905_v2 = vld [vmem:[#allocation8 + $0x5e8] ss:$16 sps:$4 sm:$0xff]  }
 0x2d3   : > { %v5922_v19 = vshrl.u32 %v12067_v44, 16  ;;  %v5925_v5 = vshll.u32 %v12067_v44, 16  ;;  %v5474_v29 = vmul.f32 %v15201_v4, %v5388_v57  ;;  %7228 = vmatmul.mubr.bf16.gmra.mxu0 %v15411_v54  ;;  %v5102_v45 = vadd.f32 %v5101_v6, %v4988_v61  ;;  %v4990_v8 = vpop.f32.mrf.mxu0  ;;  %v17856_v44 = vld [vmem:[#allocation27_spill] sm:$0xff]  ;;  %7407 = vmatprep.subr.bf16.mxu0 %v12907_v40  ;;  %v12913_v6 = vld [vmem:[#allocation8 + $0x5cc] ss:$16 sps:$4 sm:$0xff]  }
 0x2d4   : > { %v5909_v3 = vrot.slane %v5907_v41, 7  ;;  %v5392_v15 = vadd.f32 %v5100_v47, %v17855_v59  ;;  %v5103_v20 = vpop.f32.mrf.mxu1  ;;  %v5613_v57 = vmax.f32 %v5549_v13, 0.0  ;;  %v5617_v32 = vmax.f32 %v5553_v23, 0.0  ;;  %v12911_v23 = vld [vmem:[#allocation8 + $0x5c8] ss:$16 sps:$4 sm:$0xff]  }
 0x2d5   : > { %v5924_v49 = vrot.slane %v5922_v19, 7  ;;  %v15431_v22 = vadd.f32 %v15204_v43, %v5474_v29  ;;  %v5393_v11 = vadd.f32 %v5102_v45, %v17856_v44  ;;  %v4992_v61 = vpop.f32.mrf.mxu0  ;;  %v5475_v19 = vmul.f32 %v15209_v33, %v5389_v0 }
 0x2d6   : > { %v5912_v58 = vor.u32 %v5910_v9, %v5909_v3  ;;  %v5920_v41 = vrot.slane %v5909_v3, 4  ;;  %v5478_v59 = vmul.f32 %v15201_v4, %v5392_v15  ;;  %v5105_v26 = vpop.f32.mrf.mxu1  ;;  %v15439_v47 = vpack.c.bf16 %v5617_v32, %v5613_v57  ;;  %7408 = vmatpush2.bf16.msra.mxu0 %v12905_v2  ;;  %v12919_v2 = vld [vmem:[#allocation8 + $0x5ac] ss:$16 sps:$4 sm:$0xff]  }
 0x2d7   : > { %v5927_v25 = vor.u32 %v5925_v5, %v5924_v49  ;;  %v5938_v52 = vrot.slane %v5924_v49, 4  ;;  %v17857_v13 = vmax.f32 %v15381_v10, 0.0  ;;  %v4996_v29 = vpop.f32.mrf.mxu0  ;;  %7409 = vmatprep.subr.bf16.mxu0 %v12913_v6  ;;  %v5557_v6 = vadd.f32 %v15219_v46, %v15421_v24  ;;  %v17863_v3 = vld [vmem:[#allocation64_spill] sm:$0xff] }
 0x2d8   : > { %v6167_v9 = vsel %vm14075_vm2, %v5912_v58, %v6166_v51  ;;  %v15448_v15 = vadd.f32 %v15204_v43, %v5478_v59  ;;  %v17858_v51 = vmax.f32 %v15388_v27, 0.0  ;;  %v5109_v0 = vpop.f32.mrf.mxu1  ;;  %v15453_v58 = vmul.f32 %v15209_v33, %v5393_v11  ;;  %7237 = vmatprep.mubr.bf16.mxu0 %v15439_v47 }
 0x2d9   : > { %6168 = vst [vmem:[#allocation2 + $0xc0] sm:$0xff] %v6167_v9  ;;  %v12069_v40 = vpack.c.bf16 %v5613_v57, %v17857_v13  ;;  %v5928_v49 = vsel %vm14081_vm3, %v5920_v41, %v5927_v25  ;;  %v6175_v5 = vsel %vm14016_vm10, %v5938_v52, %v6174_v17  ;;  %v5104_v41 = vadd.f32 %v5103_v20, %v4990_v8 }
 0x2da   : > { %v12071_v45 = vpack.c.bf16 %v5617_v32, %v17858_v51  ;;  %6172 = vst [vmem:[#allocation2 + $0x58] sm:$0xff] %v5928_v49  ;;  %6176 = vst [vmem:[#allocation2 + $0xb8] sm:$0x11] %v6175_v5  ;;  %v17859_v52 = vmov %v17857_v13  ;;  %v17860_v17 = vmov %v17858_v51  ;;  %v4998_v32 = vpop.f32.mrf.mxu0  ;;  %v5106_v13 = vadd.f32 %v5105_v26, %v4992_v61  ;;  %v5111_v11 = vpop.f32.mrf.mxu1  ;;  %v17861_v5 = vld [vmem:[#allocation61_spill] sm:$0xff]  ;;  %7410 = vmatpush2.bf16.msra.mxu0 %v12911_v23  ;;  %v12917_v61 = vld [vmem:[#allocation8 + $0x5a8] ss:$16 sps:$4 sm:$0xff]  }
 0x2db   : > { %v5941_v44 = vshrl.u32 %v12069_v40, 16  ;;  %v15460_v57 = vpack.c.bf16 %v17860_v17, %v17859_v52  ;;  %v5944_v9 = vshll.u32 %v12069_v40, 16  ;;  %v5396_v51 = vadd.f32 %v5104_v41, %v17861_v5  ;;  %v6180_v17 = vld [vmem:[#allocation2 + $0x18] sm:$0xff]  ;;  %7411 = vmatprep.subr.bf16.mxu0 %v12919_v2 }
 0x2dc   : > { %v5956_v59 = vshrl.u32 %v12071_v45, 16  ;;  %v5110_v8 = vadd.f32 %v5109_v0, %v4996_v29  ;;  %v5112_v10 = vadd.f32 %v5111_v11, %v4998_v32  ;;  %v5000_v20 = vpop.f32.mrf.mxu0  ;;  %v5959_v52 = vshll.u32 %v12071_v45, 16  ;;  %v5113_v25 = vpop.f32.mrf.mxu1  ;;  %v17862_v29 = vld [vmem:[#allocation63_spill] sm:$0xff]  ;;  %v12925_v45 = vld [vmem:[#allocation8 + $0x58c] ss:$16 sps:$4 sm:$0xff]  }
 0x2dd   : > { %v5943_v49 = vrot.slane %v5941_v44, 7  ;;  %7238 = vmatmul.mubr.bf16.gmra.mxu0 %v15460_v57  ;;  %v5561_v40 = vadd.f32 %v15219_v46, %v5475_v19  ;;  %v6188_v44 = vld [vmem:[#allocation2 + $0x148] sm:$0x11]  ;;  %v5482_v41 = vmul.f32 %v15201_v4, %v5396_v51  ;;  %v5397_v5 = vadd.f32 %v5106_v13, %v15228_v7 }
 0x2de   : > { %v5958_v27 = vrot.slane %v5956_v59, 7  ;;  %v5400_v0 = vadd.f32 %v5110_v8, %v17862_v29  ;;  %v5002_v32 = vpop.f32.mrf.mxu0  ;;  %v5401_v24 = vadd.f32 %v5112_v10, %v17863_v3  ;;  %v5115_v18 = vpop.f32.mrf.mxu1  ;;  %v5621_v7 = vmax.f32 %v5557_v6, 0.0  ;;  %7412 = vmatpush2.bf16.msra.mxu0 %v12917_v61  ;;  %v12931_v29 = vld [vmem:[#allocation8 + $0x56c] ss:$16 sps:$4 sm:$0xff]  }
 0x2df   : > { %v5946_v26 = vor.u32 %v5944_v9, %v5943_v49  ;;  %v5954_v59 = vrot.slane %v5943_v49, 4  ;;  %v15475_v9 = vadd.f32 %v15204_v43, %v5482_v41  ;;  %v5625_v8 = vmax.f32 %v5561_v40, 0.0  ;;  %7413 = vmatprep.subr.bf16.mxu0 %v12925_v45 }
 0x2e0   : > { %v5961_v23 = vor.u32 %v5959_v52, %v5958_v27  ;;  %v5972_v11 = vrot.slane %v5958_v27, 4  ;;  %v5486_v51 = vmul.f32 %v15201_v4, %v5400_v0  ;;  %v5152_v13 = vpop.f32.mrf.mxu0  ;;  %v15483_v3 = vmul.f32 %v15209_v33, %v5401_v24  ;;  %v5265_v10 = vpop.f32.mrf.mxu1  ;;  %v12923_v27 = vld [vmem:[#allocation8 + $0x588] ss:$16 sps:$4 sm:$0xff]  }
 0x2e1   : > { %v6181_v19 = vsel %vm14075_vm2, %v5946_v26, %v6180_v17  ;;  %v5483_v52 = vmul.f32 %v15209_v33, %v5397_v5  ;;  %v17864_v6 = vmax.f32 %v15405_v38, 0.0  ;;  %v5114_v41 = vadd.f32 %v5113_v25, %v5000_v20  ;;  %v17869_v20 = vld [vmem:[#allocation28_spill] sm:$0xff] }
 0x2e2   : > { %v5962_v2 = vsel %vm14081_vm3, %v5954_v59, %v5961_v23  ;;  %6182 = vst [vmem:[#allocation2 + $0x18] sm:$0xff] %v6181_v19  ;;  %v6189_v49 = vsel %vm14016_vm10, %v5972_v11, %v6188_v44  ;;  %v15487_v17 = vadd.f32 %v15204_v43, %v5486_v51  ;;  %v5154_v44 = vpop.f32.mrf.mxu0  ;;  %v15491_v0 = vpack.c.bf16 %v5625_v8, %v5621_v7  ;;  %v5267_v24 = vpop.f32.mrf.mxu1 }
 0x2e3   : > { %6186 = vst [vmem:[#allocation2] sm:$0xff] %v5962_v2  ;;  %6190 = vst [vmem:[#allocation2 + $0x148] sm:$0x11] %v6189_v49  ;;  %v12073_v26 = vpack.c.bf16 %v5621_v7, %v17864_v6  ;;  %v17865_v40 = vmax.f32 %v15431_v22, 0.0  ;;  %v17866_v59 = vmov %v17864_v6  ;;  %v5116_v11 = vadd.f32 %v5115_v18, %v5002_v32  ;;  %7414 = vmatpush2.bf16.msra.mxu0 %v12923_v27  ;;  %v12929_v6 = vld [vmem:[#allocation8 + $0x568] ss:$16 sps:$4 sm:$0xff]  }
 0x2e4   : > { %v5632_v19 = vmax.f32 %v15475_v9, 0.0  ;;  %v5404_v45 = vadd.f32 %v5114_v41, %v17869_v20  ;;  %v5156_v2 = vpop.f32.mrf.mxu0  ;;  %7247 = vmatprep.mubr.bf16.mxu0 %v15491_v0  ;;  %v5266_v38 = vadd.f32 %v5265_v10, %v5152_v13  ;;  %v5269_v22 = vpop.f32.mrf.mxu1  ;;  %v5268_v32 = vadd.f32 %v5267_v24, %v5154_v44  ;;  %7415 = vmatprep.subr.bf16.mxu0 %v12931_v29  ;;  %v12937_v41 = vld [vmem:[#allocation8 + $0x54c] ss:$16 sps:$4 sm:$0xff]   ;;  %v17870_v13 = vld [vmem:[#allocation29_spill] sm:$0xff]  ;;  %v17871_v24 = vld [vmem:[#allocation67_spill] sm:$0xff] }
 0x2e5   : > { %v12075_v61 = vpack.c.bf16 %v5625_v8, %v17865_v40  ;;  %v17867_v23 = vmov %v17865_v40  ;;  %v5975_v51 = vshrl.u32 %v12073_v26, 16  ;;  %v5978_v25 = vshll.u32 %v12073_v26, 16 }
 0x2e6   : > { %v15499_v5 = vpack.c.bf16 %v17867_v23, %v17866_v59  ;;  %v5405_v8 = vadd.f32 %v5116_v11, %v15231_v28  ;;  %v5490_v18 = vmul.f32 %v15201_v4, %v5404_v45  ;;  %v5565_v9 = vadd.f32 %v15219_v46, %v15453_v58  ;;  %v5158_v26 = vpop.f32.mrf.mxu0  ;;  %v6194_v59 = vld [vmem:[#allocation2 + $0x50] sm:$0xff]  ;;  %v5271_v23 = vpop.f32.mrf.mxu1 }
 0x2e7   : > { %v5990_v7 = vshrl.u32 %v12075_v61, 16  ;;  %v5993_v49 = vshll.u32 %v12075_v61, 16  ;;  %v5977_v40 = vrot.slane %v5975_v51, 7  ;;  %v5346_v10 = vadd.f32 %v5266_v38, %v17870_v13  ;;  %v6202_v51 = vld [vmem:[#allocation2 + $0x60] sm:$0x11]  ;;  %7416 = vmatpush2.bf16.msra.mxu0 %v12929_v6 }
 0x2e8   : > { %17868 = vst [vmem:[#allocation43_spill] sm:$0xff] %v15499_v5  ;;  %7248 = vmatmul.mubr.bf16.gmra.mxu0 %v15499_v5  ;;  %v5491_v28 = vmul.f32 %v15209_v33, %v5405_v8  ;;  %v5569_v27 = vadd.f32 %v15219_v46, %v5483_v52  ;;  %v15513_v44 = vadd.f32 %v15204_v43, %v5490_v18  ;;  %v5162_v29 = vpop.f32.mrf.mxu0  ;;  %v5629_v5 = vmax.f32 %v5565_v9, 0.0  ;;  %v5275_v33 = vpop.f32.mrf.mxu1  ;;  %v12935_v8 = vld [vmem:[#allocation8 + $0x548] ss:$16 sps:$4 sm:$0xff]   ;;  %v12943_v18 = vld [vmem:[#allocation8 + $0x52c] ss:$16 sps:$4 sm:$0xff]  }
 0x2e9   : > { %v5992_v61 = vrot.slane %v5990_v7, 7  ;;  %v5980_v11 = vor.u32 %v5978_v25, %v5977_v40  ;;  %v5988_v4 = vrot.slane %v5977_v40, 4  ;;  %v5347_v58 = vadd.f32 %v5268_v32, %v17871_v24  ;;  %7417 = vmatprep.subr.bf16.mxu0 %v12937_v41  ;;  %v6216_v38 = vld [vmem:[#allocation2 + $0x80] sm:$0x11] }
 0x2ea   : > { %v5432_v7 = vmul.f32 %v15241_v39, %v5346_v10  ;;  %v5633_v43 = vmax.f32 %v5569_v27, 0.0  ;;  %v5164_v40 = vpop.f32.mrf.mxu0  ;;  %v17872_v9 = vmax.f32 %v15448_v15, 0.0  ;;  %v5270_v10 = vadd.f32 %v5269_v22, %v5156_v2 }
 0x2eb   : > { %v5995_v20 = vor.u32 %v5993_v49, %v5992_v61  ;;  %v6006_v45 = vrot.slane %v5992_v61, 4  ;;  %v6195_v25 = vsel %vm14075_vm2, %v5980_v11, %v6194_v59  ;;  %v15526_v32 = vmul.f32 %v15247_v30, %v5347_v58  ;;  %v5277_v59 = vpop.f32.mrf.mxu1  ;;  %7418 = vmatpush2.bf16.msra.mxu0 %v12935_v8 }
 0x2ec   : > { %6196 = vst [vmem:[#allocation2 + $0x50] sm:$0xff] %v6195_v25  ;;  %v12077_v61 = vpack.c.bf16 %v5629_v5, %v17872_v9  ;;  %v15530_v13 = vpack.c.bf16 %v5633_v43, %v5629_v5  ;;  %v12079_v41 = vpack.c.bf16 %v5633_v43, %v5632_v19  ;;  %v17873_v27 = vmov %v17872_v9  ;;  %v12941_v25 = vld [vmem:[#allocation8 + $0x528] ss:$16 sps:$4 sm:$0xff]   ;;  %v17874_v5 = vld [vmem:[#allocation31_spill] sm:$0xff] }
 0x2ed   : > { %v5996_v49 = vsel %vm14081_vm3, %v5988_v4, %v5995_v20  ;;  %v6203_v6 = vsel %vm14016_vm10, %v6006_v45, %v6202_v51  ;;  %v15534_v11 = vpack.c.bf16 %v5632_v19, %v17873_v27  ;;  %v5166_v4 = vpop.f32.mrf.mxu0  ;;  %v15537_v51 = vadd.f32 %v15244_v53, %v5432_v7  ;;  %v5279_v45 = vpop.f32.mrf.mxu1  ;;  %7419 = vmatprep.subr.bf16.mxu0 %v12943_v18  ;;  %v12949_v19 = vld [vmem:[#allocation8 + $0x50c] ss:$16 sps:$4 sm:$0xff]  }
 0x2ee   : > { %6200 = vst [vmem:[#allocation2 + $0xf0] sm:$0xff] %v5996_v49  ;;  %6204 = vst [vmem:[#allocation2 + $0x60] sm:$0x11] %v6203_v6  ;;  %v6009_v24 = vshrl.u32 %v12077_v61, 16  ;;  %v6012_v58 = vshll.u32 %v12077_v61, 16  ;;  %v5272_v20 = vadd.f32 %v5271_v23, %v5158_v26  ;;  %v6024_v49 = vshrl.u32 %v12079_v41, 16  ;;  %7257 = vmatprep.mubr.bf16.mxu0 %v15530_v13 }
 0x2ef   : > { %v6027_v6 = vshll.u32 %v12079_v41, 16  ;;  %v5350_v2 = vadd.f32 %v5270_v10, %v17874_v5  ;;  %v5276_v22 = vadd.f32 %v5275_v33, %v5162_v29  ;;  %v5168_v15 = vpop.f32.mrf.mxu0  ;;  %v5278_v9 = vadd.f32 %v5277_v59, %v5164_v40  ;;  %v5281_v23 = vpop.f32.mrf.mxu1  ;;  %v6208_v61 = vld [vmem:[#allocation2 + $0xd8] sm:$0xff]  ;;  %v17875_v27 = vld [vmem:[#allocation32_spill] sm:$0xff]  ;;  %7420 = vmatpush2.bf16.msra.mxu0 %v12941_v25 }
 0x2f0   : > { %v6011_v43 = vrot.slane %v6009_v24, 7  ;;  %7258 = vmatmul.mubr.bf16.gmra.mxu0 %v15534_v11  ;;  %v5351_v7 = vadd.f32 %v5272_v20, %v15238_v50  ;;  %v5573_v26 = vadd.f32 %v15219_v46, %v15483_v3  ;;  %v6026_v8 = vrot.slane %v6024_v49, 7  ;;  %v17876_v50 = vld [vmem:[#allocation33_spill] sm:$0xff]  ;;  %v12947_v3 = vld [vmem:[#allocation8 + $0x508] ss:$16 sps:$4 sm:$0xff]   ;;  %7421 = vmatprep.subr.bf16.mxu0 %v12949_v19 }
 0x2f1   : > { %v5436_v41 = vmul.f32 %v15241_v39, %v5350_v2  ;;  %v5354_v10 = vadd.f32 %v5276_v22, %v17875_v27  ;;  %v5577_v29 = vadd.f32 %v15219_v46, %v5491_v28  ;;  %v5172_v33 = vpop.f32.mrf.mxu0  ;;  %v17646_v18 = vmax.f32 %v15537_v51, 0.0  ;;  %v5285_v59 = vpop.f32.mrf.mxu1  ;;  %v12955_v28 = vld [vmem:[#allocation8 + $0xe4] ss:$16 sps:$4 sm:$0xff]  }
 0x2f2   : > { %v6014_v24 = vor.u32 %v6012_v58, %v6011_v43  ;;  %v6022_v5 = vrot.slane %v6011_v43, 4  ;;  %v5355_v40 = vadd.f32 %v5278_v9, %v17876_v50  ;;  %v6029_v20 = vor.u32 %v6027_v6, %v6026_v8 }
 0x2f3   : > { %v6040_v49 = vrot.slane %v6026_v8, 4  ;;  %v15551_v52 = vadd.f32 %v15244_v53, %v5436_v41  ;;  %v5440_v2 = vmul.f32 %v15241_v39, %v5354_v10  ;;  %v5174_v46 = vpop.f32.mrf.mxu0  ;;  %v5437_v22 = vmul.f32 %v15247_v30, %v5351_v7  ;;  %v5287_v25 = vpop.f32.mrf.mxu1  ;;  %7422 = vmatpush2.bf16.msra.mxu0 %v12947_v3 }
 0x2f4   : > { %v6209_v58 = vsel %vm14075_vm2, %v6014_v24, %v6208_v61  ;;  %v5637_v43 = vmax.f32 %v5573_v26, 0.0  ;;  %v5641_v9 = vmax.f32 %v5577_v29, 0.0  ;;  %v6030_v6 = vsel %vm14081_vm3, %v6022_v5, %v6029_v20  ;;  %8417 = vmatprep.subr.bf16.mxu0 %v12955_v28 }
 0x2f5   : > { %6210 = vst [vmem:[#allocation2 + $0xd8] sm:$0xff] %v6209_v58  ;;  %v6217_v8 = vsel %vm14016_vm10, %v6040_v49, %v6216_v38  ;;  %v17645_v41 = vmax.f32 %v15551_v52, 0.0  ;;  %v15563_v19 = vmul.f32 %v15247_v30, %v5355_v40  ;;  %v5176_v27 = vpop.f32.mrf.mxu0  ;;  %6214 = vst [vmem:[#allocation2 + $0x150] sm:$0xff] %v6030_v6  ;;  %v17877_v7 = vmax.f32 %v15487_v17, 0.0  ;;  %v5289_v5 = vpop.f32.mrf.mxu1 }
 0x2f6   : > { %6218 = vst [vmem:[#allocation2 + $0x80] sm:$0x11] %v6217_v8  ;;  %v15565_v61 = vpack.c.bf16 %v5641_v9, %v5637_v43  ;;  %v17878_v10 = vmax.f32 %v15513_v44, 0.0  ;;  %v5280_v24 = vadd.f32 %v5279_v45, %v5166_v4  ;;  %v15578_v50 = vadd.f32 %v15244_v53, %v5440_v2  ;;  %v17882_v8 = vld [vmem:[#allocation35_spill] sm:$0xff] }
 0x2f7   : > { %v12081_v26 = vpack.c.bf16 %v5637_v43, %v17877_v7  ;;  %v15575_v38 = vpack.c.bf16 %v17645_v41, %v17646_v18  ;;  %v17879_v40 = vmov %v17877_v7  ;;  %v5282_v58 = vadd.f32 %v5281_v23, %v5168_v15  ;;  %v5178_v4 = vpop.f32.mrf.mxu0  ;;  %v5291_v6 = vpop.f32.mrf.mxu1 }
 0x2f8   : > { %v12083_v29 = vpack.c.bf16 %v5641_v9, %v17878_v10  ;;  %v17880_v20 = vmov %v17878_v10  ;;  %7267 = vmatprep.mubr.bf16.mxu0 %v15565_v61  ;;  %v5358_v7 = vadd.f32 %v5280_v24, %v17882_v8  ;;  %v5286_v2 = vadd.f32 %v5285_v59, %v5172_v33  ;;  %v6222_v24 = vld [vmem:[#allocation2 + $0xf8] sm:$0xff]  ;;  %v17884_v59 = vld [vmem:[#allocation37_spill] sm:$0xff] }
 0x2f9   : > { %v15584_v49 = vpack.c.bf16 %v17880_v20, %v17879_v40  ;;  %v6043_v45 = vshrl.u32 %v12081_v26, 16  ;;  %v6046_v3 = vshll.u32 %v12081_v26, 16  ;;  %v5359_v17 = vadd.f32 %v5282_v58, %v15250_v14  ;;  %v5182_v10 = vpop.f32.mrf.mxu0  ;;  %v5295_v26 = vpop.f32.mrf.mxu1  ;;  %v6230_v20 = vld [vmem:[#allocation2 + $0x170] sm:$0x11]  ;;  %v17883_v14 = vld [vmem:[#allocation36_spill] sm:$0xff] }
 0x2fa   : > { %v6058_v43 = vshrl.u32 %v12083_v29, 16  ;;  %v6061_v9 = vshll.u32 %v12083_v29, 16  ;;  %v5288_v44 = vadd.f32 %v5287_v25, %v5174_v46  ;;  %v5519_v23 = vadd.f32 %v15260_v34, %v15526_v32 }
 0x2fb   : > { %17881 = vst [vmem:[#allocation47_spill] sm:$0xff] %v15584_v49  ;;  %7268 = vmatmul.mubr.bf16.gmra.mxu0 %v15584_v49  ;;  %v6045_v40 = vrot.slane %v6043_v45, 7  ;;  %v5523_v28 = vadd.f32 %v15260_v34, %v5437_v22  ;;  %v5444_v8 = vmul.f32 %v15241_v39, %v5358_v7  ;;  %v5362_v33 = vadd.f32 %v5286_v2, %v17883_v14  ;;  %v5184_v25 = vpop.f32.mrf.mxu0  ;;  %v5297_v41 = vpop.f32.mrf.mxu1 }
 0x2fc   : > { %v6060_v15 = vrot.slane %v6058_v43, 7  ;;  %7423 = vmatprep.mubr.bf16.mxu0 %v15304_v63  ;;  %v5363_v46 = vadd.f32 %v5288_v44, %v17884_v59  ;;  %v5445_v22 = vmul.f32 %v15247_v30, %v5359_v17  ;;  %v5583_v18 = vmax.f32 %v5519_v23, 0.0  ;;  %v12950_v59 = vld [vmem:[#allocation8 + $0x6e8] ss:$16 sps:$4 sm:$0xff]  }
 0x2fd   : > { %v6048_v58 = vor.u32 %v6046_v3, %v6045_v40  ;;  %v6056_v45 = vrot.slane %v6045_v40, 4  ;;  %v15599_v32 = vadd.f32 %v15244_v53, %v5444_v8  ;;  %v5448_v29 = vmul.f32 %v15241_v39, %v5362_v33  ;;  %v15603_v49 = vpop.f32.mrf.mxu0  ;;  %v15611_v44 = vpop.f32.mrf.mxu1 }
 0x2fe   : > { %v6063_v63 = vor.u32 %v6061_v9, %v6060_v15  ;;  %v6074_v43 = vrot.slane %v6060_v15, 4  ;;  %v5587_v2 = vmax.f32 %v5523_v28, 0.0  ;;  %v15617_v40 = vmul.f32 %v15247_v30, %v5363_v46 }
 0x2ff   : > { %v6223_v3 = vsel %vm14075_vm2, %v6048_v58, %v6222_v24  ;;  %v15614_v17 = vadd.f32 %v15244_v53, %v5448_v29  ;;  %v17885_v15 = vmax.f32 %v15537_v51, 0.0  ;;  %v5290_v8 = vadd.f32 %v5289_v5, %v5176_v27  ;;  %v12953_v24 = vld [vmem:[#allocation8 + $0xe0] ss:$16 sps:$4 sm:$0xff]   ;;  %v15621_v14 = vpop.f32.mrf.mxu0  ;;  %v12961_v29 = vld [vmem:[#allocation8 + $0xc4] ss:$16 sps:$4 sm:$0xff]   ;;  %v17887_v27 = vld [vmem:[#allocation40_spill] sm:$0xff] }
 0x300   : > { %v6064_v7 = vsel %vm14081_vm3, %v6056_v45, %v6063_v63  ;;  %v6231_v9 = vsel %vm14016_vm10, %v6074_v43, %v6230_v20  ;;  %6224 = vst [vmem:[#allocation2 + $0xf8] sm:$0xff] %v6223_v3  ;;  %v15623_v20 = vpack.c.bf16 %v5587_v2, %v5583_v18  ;;  %v17886_v28 = vmax.f32 %v15551_v52, 0.0  ;;  %v15627_v63 = vpop.f32.mrf.mxu1  ;;  %v6135_v51 = vld [vmem:[#allocation2 + $0xa0] sm:$0x11] }
 0x301   : > { %6228 = vst [vmem:[#allocation2 + $0x108] sm:$0xff] %v6064_v7  ;;  %6232 = vst [vmem:[#allocation2 + $0x170] sm:$0x11] %v6231_v9  ;;  %v12054_v23 = vpack.c.bf16 %v5583_v18, %v17885_v15  ;;  %v5292_v58 = vadd.f32 %v5291_v6, %v5178_v4  ;;  %v5296_v45 = vadd.f32 %v5295_v26, %v5182_v10  ;;  %v12958_v18 = vld [vmem:[#allocation8 + $0x6cc] ss:$16 sps:$4 sm:$0xff]   ;;  %v15633_v7 = vpop.f32.mrf.mxu0  ;;  %v17888_v6 = vld [vmem:[#allocation41_spill] sm:$0xff] }
 0x302   : > { %v12056_v33 = vpack.c.bf16 %v5587_v2, %v17886_v28  ;;  %v5366_v5 = vadd.f32 %v5290_v8, %v17887_v27  ;;  %7310 = vmatprep.mubr.bf16.mxu1 %v15623_v20  ;;  %v5305_v26 = vpop.f32.mrf.mxu1  ;;  %v6127_v2 = vld [vmem:[#allocation2 + $0x110] sm:$0xff]  ;;  %v5298_v8 = vadd.f32 %v5297_v41, %v5184_v25 }
 0x303   : > { %v5812_v43 = vshrl.u32 %v12054_v23, 16  ;;  %7424 = vmatmul.mubr.bf16.vlgmr.msra.gmra.mxu0 %v15294_v35  ;;  %v5815_v52 = vshll.u32 %v12054_v23, 16  ;;  %v5367_v4 = vadd.f32 %v5292_v58, %v15263_v31  ;;  %v5370_v10 = vadd.f32 %v5296_v45, %v17888_v6  ;;  %7311 = vmatmul.mubr.bf16.vlgmr.msra.gmra.mxu1 %v15575_v38  ;;  %v12959_v35 = vld [vmem:[#allocation8 + $0xc0] ss:$16 sps:$4 sm:$0xff]   ;;  %v5194_v28 = vpop.f32.mrf.mxu0  ;;  %v12956_v58 = vld [vmem:[#allocation8 + $0x6c8] ss:$16 sps:$4 sm:$0xff]  }
 0x304   : > { %v5829_v3 = vshrl.u32 %v12056_v33, 16  ;;  %7433 = vmatprep.mubr.bf16.mxu0 %v15331_v1  ;;  %v5452_v15 = vmul.f32 %v15241_v39, %v5366_v5  ;;  %8418 = vmatpush1.bf16.msra.mxu0 %v12953_v24  ;;  %v5527_v23 = vadd.f32 %v15260_v34, %v15563_v19  ;;  %v5832_v1 = vshll.u32 %v12056_v33, 16  ;;  %v5307_v5 = vpop.f32.mrf.mxu1  ;;  %v17889_v19 = vld [vmem:[#allocation42_spill] sm:$0xff] }
 0x305   : > { %v5814_v9 = vrot.slane %v5812_v43, 7  ;;  %7505 = vmatpush1.bf16.msra.mxu1 %v12950_v59  ;;  %v5456_v31 = vmul.f32 %v15241_v39, %v5370_v10  ;;  %8419 = vmatprep.subr.bf16.mxu0 %v12961_v29  ;;  %v5531_v45 = vadd.f32 %v15260_v34, %v5445_v22  ;;  %v12967_v43 = vld [vmem:[#allocation8 + $0xa4] ss:$16 sps:$4 sm:$0xff]   ;;  %v15649_v41 = vmul.f32 %v15247_v30, %v5367_v4  ;;  %v12964_v33 = vld [vmem:[#allocation8 + $0x6ac] ss:$16 sps:$4 sm:$0xff]   ;;  %v15652_v59 = vpop.f32.mrf.mxu0 }
 0x306   : > { %v5831_v27 = vrot.slane %v5829_v3, 7  ;;  %v15646_v24 = vadd.f32 %v15244_v53, %v5452_v15  ;;  %7506 = vmatprep.subr.bf16.mxu1 %v12958_v18  ;;  %v5371_v25 = vadd.f32 %v5298_v8, %v17889_v19  ;;  %v5591_v22 = vmax.f32 %v5527_v23, 0.0  ;;  %v15654_v46 = vpop.f32.mrf.mxu1  ;;  %v12965_v8 = vld [vmem:[#allocation8 + $0xa0] ss:$16 sps:$4 sm:$0xff]  }
 0x307   : > { %v5817_v6 = vor.u32 %v5815_v52, %v5814_v9  ;;  %v5827_v3 = vrot.slane %v5814_v9, 4  ;;  %v15659_v15 = vadd.f32 %v15244_v53, %v5456_v31  ;;  %v5595_v4 = vmax.f32 %v5531_v45, 0.0  ;;  %v15664_v19 = vpop.f32.mrf.mxu0 }
 0x308   : > { %v5834_v29 = vor.u32 %v5832_v1, %v5831_v27  ;;  %v5837_v10 = vrot.slane %v5831_v27, 4  ;;  %8420 = vmatpush1.bf16.msra.mxu0 %v12959_v35  ;;  %v15662_v18 = vmul.f32 %v15247_v30, %v5371_v25  ;;  %v17890_v27 = vmax.f32 %v15578_v50, 0.0  ;;  %v12973_v1 = vld [vmem:[#allocation8 + $0x84] ss:$16 sps:$4 sm:$0xff]   ;;  %v15673_v31 = vpop.f32.mrf.mxu1  ;;  %v12970_v50 = vld [vmem:[#allocation8 + $0x68c] ss:$16 sps:$4 sm:$0xff]  }
 0x309   : > { %v6128_v52 = vsel %vm14075_vm2, %v5817_v6, %v6127_v2  ;;  %v5602_v2 = vmax.f32 %v15646_v24, 0.0  ;;  %7507 = vmatpush1.bf16.msra.mxu1 %v12956_v58  ;;  %8421 = vmatprep.subr.bf16.mxu0 %v12967_v43  ;;  %v15675_v45 = vpack.c.bf16 %v5595_v4, %v5591_v22  ;;  %v17891_v6 = vmax.f32 %v15599_v32, 0.0  ;;  %v12962_v43 = vld [vmem:[#allocation8 + $0x6a8] ss:$16 sps:$4 sm:$0xff]  }
 0x30a   : > { %v5835_v9 = vsel %vm14081_vm3, %v5827_v3, %v5834_v29  ;;  %6129 = vst [vmem:[#allocation2 + $0x110] sm:$0xff] %v6128_v52  ;;  %v6136_v23 = vsel %vm14016_vm10, %v5837_v10, %v6135_v51  ;;  %v12058_v35 = vpack.c.bf16 %v5591_v22, %v17890_v27  ;;  %v5300_v51 = vadd.f32 %v15611_v44, %v15603_v49  ;;  %v15688_v10 = vpop.f32.mrf.mxu0  ;;  %v15694_v44 = vpop.f32.mrf.mxu1 }
 0x30b   : > { %6131 = vst [vmem:[#allocation2 + $0xe8] sm:$0xff] %v5835_v9  ;;  %6137 = vst [vmem:[#allocation2 + $0xa0] sm:$0x11] %v6136_v23  ;;  %v12060_v25 = vpack.c.bf16 %v5595_v4, %v17891_v6  ;;  %v17892_v3 = vmov %v17890_v27  ;;  %v17893_v58 = vmov %v17891_v6  ;;  %7434 = vmatmul.mubr.bf16.gmra.mxu0 %v15339_v37  ;;  %7508 = vmatprep.subr.bf16.mxu1 %v12964_v33  ;;  %v17894_v37 = vld [vmem:[#allocation44_spill] sm:$0xff]  ;;  %v12971_v27 = vld [vmem:[#allocation8 + $0x80] ss:$16 sps:$4 sm:$0xff]  }
 0x30c   : > { %v15685_v29 = vpack.c.bf16 %v17893_v58, %v17892_v3  ;;  %v5846_v52 = vshrl.u32 %v12058_v35, 16  ;;  %v5849_v22 = vshll.u32 %v12058_v35, 16  ;;  %7443 = vmatprep.mubr.bf16.mxu0 %v15366_v56  ;;  %v5302_v4 = vadd.f32 %v15627_v63, %v15621_v14  ;;  %7320 = vmatprep.mubr.bf16.mxu1 %v15675_v45  ;;  %v15698_v33 = vpop.f32.mrf.mxu0  ;;  %v17895_v63 = vld [vmem:[#allocation45_spill] sm:$0xff]  ;;  %v17896_v3 = vld [vmem:[#allocation46_spill] sm:$0xff] }
 0x30d   : > { %v5306_v49 = vadd.f32 %v5305_v26, %v15633_v7  ;;  %v5863_v32 = vshrl.u32 %v12060_v25, 16  ;;  %v5866_v9 = vshll.u32 %v12060_v25, 16  ;;  %v5374_v23 = vadd.f32 %v5300_v51, %v17894_v37  ;;  %8422 = vmatpush1.bf16.msra.mxu0 %v12965_v8  ;;  %v12979_v6 = vld [vmem:[#allocation8 + $0x64] ss:$16 sps:$4 sm:$0xff]   ;;  %v15705_v25 = vpop.f32.mrf.mxu1  ;;  %v6141_v8 = vld [vmem:[#allocation2 + $0xc8] sm:$0xff]  ;;  %7509 = vmatpush1.bf16.msra.mxu1 %v12962_v43 }
 0x30e   : > { %v5308_v35 = vadd.f32 %v5307_v5, %v5194_v28  ;;  %v5848_v56 = vrot.slane %v5846_v52, 7  ;;  %7321 = vmatmul.mubr.bf16.gmra.mxu1 %v15685_v29  ;;  %v5375_v14 = vadd.f32 %v5302_v4, %v15277_v16  ;;  %8423 = vmatprep.subr.bf16.mxu0 %v12973_v1  ;;  %v5535_v26 = vadd.f32 %v15260_v34, %v15617_v40  ;;  %v12968_v5 = vld [vmem:[#allocation8 + $0x688] ss:$16 sps:$4 sm:$0xff]   ;;  %v15711_v52 = vpop.f32.mrf.mxu0  ;;  %v12976_v37 = vld [vmem:[#allocation8 + $0x66c] ss:$16 sps:$4 sm:$0xff]  }
 0x30f   : > { %v5378_v7 = vadd.f32 %v5306_v49, %v17895_v63  ;;  %v5865_v51 = vrot.slane %v5863_v32, 7  ;;  %v5460_v28 = vmul.f32 %v15241_v39, %v5374_v23  ;;  %v5539_v16 = vadd.f32 %v15260_v34, %v15649_v41  ;;  %v6149_v49 = vld [vmem:[#allocation2 + $0x70] sm:$0x11]  ;;  %7510 = vmatprep.subr.bf16.mxu1 %v12970_v50  ;;  %v15717_v23 = vpop.f32.mrf.mxu1 }
 0x310   : > { %v5379_v58 = vadd.f32 %v5308_v35, %v17896_v3  ;;  %v5851_v1 = vor.u32 %v5849_v22, %v5848_v56  ;;  %v5861_v4 = vrot.slane %v5848_v56, 4  ;;  %v15714_v40 = vmul.f32 %v15247_v30, %v5375_v14  ;;  %v12977_v22 = vld [vmem:[#allocation8 + $0x60] ss:$16 sps:$4 sm:$0xff]   ;;  %v15725_v56 = vpop.f32.mrf.mxu0 }
 0x311   : > { %v5464_v32 = vmul.f32 %v15241_v39, %v5378_v7  ;;  %v5868_v43 = vor.u32 %v5866_v9, %v5865_v51  ;;  %v5871_v63 = vrot.slane %v5865_v51, 4  ;;  %v15720_v35 = vadd.f32 %v15244_v53, %v5460_v28  ;;  %8424 = vmatpush1.bf16.msra.mxu0 %v12971_v27  ;;  %v12985_v9 = vld [vmem:[#allocation8 + $0x44] ss:$16 sps:$4 sm:$0xff]   ;;  %v15732_v51 = vpop.f32.mrf.mxu1  ;;  %7511 = vmatpush1.bf16.msra.mxu1 %v12968_v5  ;;  %v12974_v5 = vld [vmem:[#allocation8 + $0x668] ss:$16 sps:$4 sm:$0xff]  }
 0x312   : > { %v15723_v41 = vmul.f32 %v15247_v30, %v5379_v58  ;;  %v6142_v14 = vsel %vm14075_vm2, %v5851_v1, %v6141_v8  ;;  %v5599_v7 = vmax.f32 %v5535_v26, 0.0  ;;  %v5603_v3 = vmax.f32 %v5539_v16, 0.0  ;;  %8425 = vmatprep.subr.bf16.mxu0 %v12979_v6  ;;  %v15741_v58 = vpop.f32.mrf.mxu0  ;;  %7512 = vmatprep.subr.bf16.mxu1 %v12976_v37  ;;  %v12982_v37 = vld [vmem:[#allocation8 + $0x64c] ss:$16 sps:$4 sm:$0xff]  }
 0x313   : > { %v15730_v50 = vadd.f32 %v15244_v53, %v5464_v32  ;;  %v5869_v27 = vsel %vm14081_vm3, %v5861_v4, %v5868_v43  ;;  %6143 = vst [vmem:[#allocation2 + $0xc8] sm:$0xff] %v6142_v14  ;;  %v6150_v28 = vsel %vm14016_vm10, %v5871_v63, %v6149_v49  ;;  %v5310_v8 = vadd.f32 %v15654_v46, %v15652_v59  ;;  %v15751_v46 = vpop.f32.mrf.mxu1  ;;  %v12983_v14 = vld [vmem:[#allocation8 + $0x40] ss:$16 sps:$4 sm:$0xff]  }
 0x314   : > { %7444 = vmatmul.mubr.bf16.gmra.mxu0 %v15369_v12  ;;  %v5606_v26 = vmax.f32 %v15659_v15, 0.0  ;;  %6145 = vst [vmem:[#allocation2 + $0x98] sm:$0xff] %v5869_v27  ;;  %6151 = vst [vmem:[#allocation2 + $0x70] sm:$0x11] %v6150_v28  ;;  %v15744_v6 = vpack.c.bf16 %v5603_v3, %v5599_v7  ;;  %v17897_v16 = vmax.f32 %v15614_v17, 0.0  ;;  %v12064_v4 = vpack.c.bf16 %v5603_v3, %v5602_v2  ;;  %v17898_v12 = vld [vmem:[#allocation48_spill] sm:$0xff]  ;;  %v15765_v24 = vpop.f32.mrf.mxu0 }
 0x315   : > { %7453 = vmatprep.mubr.bf16.mxu0 %v15413_v48  ;;  %v5382_v59 = vadd.f32 %v5310_v8, %v17898_v12  ;;  %8426 = vmatpush1.bf16.msra.mxu0 %v12977_v22  ;;  %v5312_v43 = vadd.f32 %v15673_v31, %v15664_v19  ;;  %v5316_v63 = vadd.f32 %v15694_v44, %v15688_v10  ;;  %v12991_v17 = vld [vmem:[#allocation8 + $0x24] ss:$16 sps:$4 sm:$0xff]   ;;  %v6155_v22 = vld [vmem:[#allocation2 + $0x78] sm:$0xff] }
 0x316   : > { %v12062_v1 = vpack.c.bf16 %v5599_v7, %v17897_v16  ;;  %v17899_v49 = vmov %v17897_v16  ;;  %v5897_v3 = vshrl.u32 %v12064_v4, 16  ;;  %v5900_v27 = vshll.u32 %v12064_v4, 16  ;;  %7330 = vmatprep.mubr.bf16.mxu1 %v15744_v6  ;;  %8427 = vmatprep.subr.bf16.mxu0 %v12985_v9  ;;  %v17900_v10 = vld [vmem:[#allocation49_spill] sm:$0xff]  ;;  %v6163_v9 = vld [vmem:[#allocation2 + $0x88] sm:$0x11] }
 0x317   : > { %v15758_v32 = vpack.c.bf16 %v5602_v2, %v17899_v49  ;;  %v15767_v2 = vpop.f32.mrf.mxu1  ;;  %v5468_v19 = vmul.f32 %v15241_v39, %v5382_v59  ;;  %v5383_v31 = vadd.f32 %v5312_v43, %v15280_v42  ;;  %v5386_v44 = vadd.f32 %v5316_v63, %v17900_v10  ;;  %7513 = vmatpush1.bf16.msra.mxu1 %v12974_v5  ;;  %v12989_v5 = vld [vmem:[#allocation8 + $0x20] ss:$16 sps:$4 sm:$0xff]  }
 0x318   : > { %v5880_v48 = vshrl.u32 %v12062_v1, 16  ;;  %v5883_v7 = vshll.u32 %v12062_v1, 16  ;;  %v5318_v28 = vadd.f32 %v15705_v25, %v15698_v33  ;;  %v5899_v16 = vrot.slane %v5897_v3, 7  ;;  %v12980_v1 = vld [vmem:[#allocation8 + $0x648] ss:$16 sps:$4 sm:$0xff]   ;;  %7514 = vmatprep.subr.bf16.mxu1 %v12982_v37 }
 0x319   : > { %7331 = vmatmul.mubr.bf16.gmra.mxu1 %v15758_v32  ;;  %v5543_v4 = vadd.f32 %v15260_v34, %v15662_v18  ;;  %v5547_v12 = vadd.f32 %v15260_v34, %v15714_v40  ;;  %v5610_v59 = vmax.f32 %v15720_v35, 0.0  ;;  %v5614_v42 = vmax.f32 %v15730_v50, 0.0  ;;  %8428 = vmatpush1.bf16.msra.mxu0 %v12983_v14  ;;  %v12988_v25 = vld [vmem:[#allocation8 + $0x62c] ss:$16 sps:$4 sm:$0xff]   ;;  %v12997_v3 = vld [vmem:[#allocation8 + $0x4] ss:$16 sps:$4 sm:$0xff]   ;;  %v15785_v40 = vpop.f32.mrf.mxu0  ;;  %v15787_v35 = vpop.f32.mrf.mxu1 }
 0x31a   : > { %v5882_v8 = vrot.slane %v5880_v48, 7  ;;  %v15782_v49 = vadd.f32 %v15244_v53, %v5468_v19  ;;  %v5472_v33 = vmul.f32 %v15241_v39, %v5386_v44  ;;  %v5902_v48 = vor.u32 %v5900_v27, %v5899_v16  ;;  %8429 = vmatprep.subr.bf16.mxu0 %v12991_v17  ;;  %v17901_v44 = vld [vmem:[#allocation50_spill] sm:$0xff] }
 0x31b   : > { %v5905_v18 = vrot.slane %v5899_v16, 4  ;;  %v5469_v10 = vmul.f32 %v15247_v30, %v5383_v31  ;;  %v5387_v37 = vadd.f32 %v5318_v28, %v17901_v44  ;;  %v5607_v14 = vmax.f32 %v5543_v4, 0.0  ;;  %7515 = vmatpush1.bf16.msra.mxu1 %v12980_v1  ;;  %v12986_v31 = vld [vmem:[#allocation8 + $0x628] ss:$16 sps:$4 sm:$0xff]  }
 0x31c   : > { %v5885_v43 = vor.u32 %v5883_v7, %v5882_v8  ;;  %v5895_v63 = vrot.slane %v5882_v8, 4  ;;  %v15791_v19 = vadd.f32 %v15244_v53, %v5472_v33  ;;  %7454 = vmatmul.mubr.bf16.gmra.mxu0 %v15411_v54  ;;  %v5611_v8 = vmax.f32 %v5547_v12, 0.0  ;;  %7516 = vmatprep.subr.bf16.mxu1 %v12988_v25  ;;  %v12995_v33 = vld [vmem:[#allocation8] ss:$16 sps:$4 sm:$0xff]   ;;  %v17902_v25 = vld [vmem:[#allocation52_spill] sm:$0xff] }
 0x31d   : > { %v6164_v17 = vsel %vm14016_vm10, %v5905_v18, %v6163_v9  ;;  %7463 = vmatprep.mubr.bf16.mxu0 %v15439_v47  ;;  %v5618_v28 = vmax.f32 %v15782_v49, 0.0  ;;  %v15804_v54 = vmul.f32 %v15247_v30, %v5387_v37  ;;  %v12066_v16 = vpack.c.bf16 %v5607_v14, %v5606_v26  ;;  %8430 = vmatpush1.bf16.msra.mxu0 %v12989_v5  ;;  %v12994_v9 = vld [vmem:[#allocation8 + $0x60c] ss:$16 sps:$4 sm:$0xff]   ;;  %v13003_v18 = vld [vmem:[#allocation8 + $0x1e4] ss:$16 sps:$4 sm:$0xff]  }
 0x31e   : > { %v5903_v7 = vsel %vm14081_vm3, %v5895_v63, %v5902_v48  ;;  %v6156_v27 = vsel %vm14075_vm2, %v5885_v43, %v6155_v22  ;;  %6165 = vst [vmem:[#allocation2 + $0x88] sm:$0x11] %v6164_v17  ;;  %v5320_v22 = vadd.f32 %v15717_v23, %v15711_v52  ;;  %v15810_v1 = vpack.c.bf16 %v5611_v8, %v5607_v14  ;;  %v15818_v43 = vpop.f32.mrf.mxu0  ;;  %v15820_v63 = vpop.f32.mrf.mxu1  ;;  %v17903_v37 = vld [vmem:[#allocation53_spill] sm:$0xff]  ;;  %v17904_v17 = vld [vmem:[#allocation54_spill] sm:$0xff] }
 0x31f   : > { %6157 = vst [vmem:[#allocation2 + $0x78] sm:$0xff] %v6156_v27  ;;  %6159 = vst [vmem:[#allocation2 + $0x38] sm:$0xff] %v5903_v7  ;;  %v12068_v47 = vpack.c.bf16 %v5611_v8, %v5610_v59  ;;  %v15814_v4 = vpack.c.bf16 %v5610_v59, %v5606_v26  ;;  %v5322_v12 = vadd.f32 %v15732_v51, %v15725_v56  ;;  %8431 = vmatprep.subr.bf16.mxu0 %v12997_v3  ;;  %v12992_v51 = vld [vmem:[#allocation8 + $0x608] ss:$16 sps:$4 sm:$0xff]   ;;  %v13001_v8 = vld [vmem:[#allocation8 + $0x1e0] ss:$16 sps:$4 sm:$0xff]  }
 0x320   : > { %v5914_v52 = vshrl.u32 %v12066_v16, 16  ;;  %v5917_v23 = vshll.u32 %v12066_v16, 16  ;;  %v5390_v5 = vadd.f32 %v5320_v22, %v17902_v25  ;;  %v5326_v48 = vadd.f32 %v15751_v46, %v15741_v58  ;;  %7340 = vmatprep.mubr.bf16.mxu1 %v15810_v1  ;;  %7517 = vmatpush1.bf16.msra.mxu1 %v12986_v31  ;;  %v13000_v46 = vld [vmem:[#allocation8 + $0x7ec] ss:$16 sps:$4 sm:$0xff]   ;;  %v5222_v31 = vpop.f32.mrf.mxu0  ;;  %v5335_v16 = vpop.f32.mrf.mxu1 }
 0x321   : > { %v5931_v15 = vshrl.u32 %v12068_v47, 16  ;;  %v5934_v26 = vshll.u32 %v12068_v47, 16  ;;  %v5391_v56 = vadd.f32 %v5322_v12, %v15285_v21  ;;  %v5328_v59 = vadd.f32 %v15767_v2, %v15765_v24  ;;  %7341 = vmatmul.mubr.bf16.gmra.mxu1 %v15814_v4  ;;  %7518 = vmatprep.subr.bf16.mxu1 %v12994_v9  ;;  %v6169_v27 = vld [vmem:[#allocation2 + $0x168] sm:$0xff]  ;;  %v6177_v47 = vld [vmem:[#allocation2 + $0x138] sm:$0x11] }
 0x322   : > { %v5916_v3 = vrot.slane %v5914_v52, 7  ;;  %v5476_v44 = vmul.f32 %v15241_v39, %v5390_v5  ;;  %v5394_v14 = vadd.f32 %v5326_v48, %v17903_v37  ;;  %v5551_v58 = vadd.f32 %v15260_v34, %v15723_v41  ;;  %8432 = vmatpush1.bf16.msra.mxu0 %v12995_v33  ;;  %v13009_v33 = vld [vmem:[#allocation8 + $0x1c4] ss:$16 sps:$4 sm:$0xff]   ;;  %v12998_v48 = vld [vmem:[#allocation8 + $0x7e8] ss:$16 sps:$4 sm:$0xff]   ;;  %v5337_v37 = vpop.f32.mrf.mxu1 }
 0x323   : > { %v5933_v7 = vrot.slane %v5931_v15, 7  ;;  %v15835_v21 = vmul.f32 %v15247_v30, %v5391_v56  ;;  %v5395_v24 = vadd.f32 %v5328_v59, %v17904_v17  ;;  %v5555_v2 = vadd.f32 %v15260_v34, %v5469_v10  ;;  %8433 = vmatprep.subr.bf16.mxu0 %v13003_v18  ;;  %v17905_v17 = vld [vmem:[#allocation58_spill] sm:$0xff] }
 0x324   : > { %v5622_v22 = vmax.f32 %v15791_v19, 0.0  ;;  %v5919_v9 = vor.u32 %v5917_v23, %v5916_v3  ;;  %v15841_v41 = vadd.f32 %v15244_v53, %v5476_v44  ;;  %v5480_v12 = vmul.f32 %v15241_v39, %v5394_v14  ;;  %7464 = vmatmul.mubr.bf16.gmra.mxu0 %v15460_v57  ;;  %7519 = vmatpush1.bf16.msra.mxu1 %v12992_v51  ;;  %v13006_v57 = vld [vmem:[#allocation8 + $0x7cc] ss:$16 sps:$4 sm:$0xff]   ;;  %v5224_v44 = vpop.f32.mrf.mxu0 }
 0x325   : > { %v5929_v52 = vrot.slane %v5916_v3, 4  ;;  %v5936_v25 = vor.u32 %v5934_v26, %v5933_v7  ;;  %v5939_v5 = vrot.slane %v5933_v7, 4  ;;  %v5615_v10 = vmax.f32 %v5551_v58, 0.0  ;;  %7473 = vmatprep.mubr.bf16.mxu0 %v15491_v0  ;;  %7520 = vmatprep.subr.bf16.mxu1 %v13000_v46  ;;  %v13007_v3 = vld [vmem:[#allocation8 + $0x1c0] ss:$16 sps:$4 sm:$0xff]  }
 0x326   : > { %v6170_v23 = vsel %vm14075_vm2, %v5919_v9, %v6169_v27  ;;  %v5626_v15 = vmax.f32 %v15841_v41, 0.0  ;;  %v15850_v56 = vmul.f32 %v15247_v30, %v5395_v24  ;;  %v5619_v59 = vmax.f32 %v5555_v2, 0.0  ;;  %8434 = vmatpush2.bf16.msra.mxu0 %v13001_v8  ;;  %v13004_v8 = vld [vmem:[#allocation8 + $0x7c8] ss:$16 sps:$4 sm:$0xff]  }
 0x327   : > { %v5937_v18 = vsel %vm14081_vm3, %v5929_v52, %v5936_v25  ;;  %6171 = vst [vmem:[#allocation2 + $0x168] sm:$0xff] %v6170_v23  ;;  %v6178_v26 = vsel %vm14016_vm10, %v5939_v5, %v6177_v47  ;;  %v12070_v0 = vpack.c.bf16 %v5615_v10, %v5614_v42  ;;  %v5330_v51 = vadd.f32 %v15787_v35, %v15785_v40  ;;  %v13015_v40 = vld [vmem:[#allocation8 + $0x1a4] ss:$16 sps:$4 sm:$0xff]   ;;  %v5339_v52 = vpop.f32.mrf.mxu1  ;;  %v13013_v25 = vld [vmem:[#allocation8 + $0x1a0] ss:$16 sps:$4 sm:$0xff]  }
 0x328   : > { %6173 = vst [vmem:[#allocation2 + $0x8] sm:$0xff] %v5937_v18  ;;  %6179 = vst [vmem:[#allocation2 + $0x138] sm:$0x11] %v6178_v26  ;;  %v15861_v14 = vadd.f32 %v15244_v53, %v5480_v12  ;;  %v15863_v58 = vpack.c.bf16 %v5619_v59, %v5615_v10  ;;  %v12072_v46 = vpack.c.bf16 %v5619_v59, %v5618_v28  ;;  %8435 = vmatprep.subr.bf16.mxu0 %v13009_v33  ;;  %v6183_v10 = vld [vmem:[#allocation2 + $0x40] sm:$0xff] }
 0x329   : > { %v15871_v7 = vpack.c.bf16 %v5618_v28, %v5614_v42  ;;  %v5948_v35 = vshrl.u32 %v12070_v0, 16  ;;  %v5951_v27 = vshll.u32 %v12070_v0, 16  ;;  %v5398_v24 = vadd.f32 %v5330_v51, %v17905_v17  ;;  %7521 = vmatpush2.bf16.msra.mxu1 %v12998_v48  ;;  %v13012_v42 = vld [vmem:[#allocation8 + $0x7ac] ss:$16 sps:$4 sm:$0xff]  }
 0x32a   : > { %v5332_v2 = vadd.f32 %v15820_v63, %v15818_v43  ;;  %v5965_v9 = vshrl.u32 %v12072_v46, 16  ;;  %v5968_v47 = vshll.u32 %v12072_v46, 16  ;;  %7350 = vmatprep.mubr.bf16.mxu1 %v15863_v58  ;;  %v5336_v50 = vadd.f32 %v5335_v16, %v5222_v31  ;;  %7522 = vmatprep.subr.bf16.mxu1 %v13006_v57  ;;  %v5226_v63 = vpop.f32.mrf.mxu0  ;;  %v17906_v31 = vld [vmem:[#allocation60_spill] sm:$0xff]  ;;  %v17907_v48 = vld [vmem:[#allocation62_spill] sm:$0xff]  ;;  %v17908_v57 = vld [vmem:[#allocation43_spill] sm:$0xff] }
 0x32b   : > { %v5338_v49 = vadd.f32 %v5337_v37, %v5224_v44  ;;  %v5950_v28 = vrot.slane %v5948_v35, 7  ;;  %v5484_v12 = vmul.f32 %v15241_v39, %v5398_v24  ;;  %7351 = vmatmul.mubr.bf16.gmra.mxu1 %v15871_v7  ;;  %8436 = vmatpush2.bf16.msra.mxu0 %v13007_v3  ;;  %v5559_v43 = vadd.f32 %v15260_v34, %v15804_v54  ;;  %v6191_v0 = vld [vmem:[#allocation2 + $0x178] sm:$0x11] }
 0x32c   : > { %v5399_v33 = vadd.f32 %v5332_v2, %v15288_v55  ;;  %v5967_v5 = vrot.slane %v5965_v9, 7  ;;  %v5402_v16 = vadd.f32 %v5336_v50, %v17906_v31  ;;  %v5563_v59 = vadd.f32 %v15260_v34, %v15835_v21  ;;  %7474 = vmatmul.mubr.bf16.gmra.mxu0 %v17908_v57  ;;  %8437 = vmatprep.subr.bf16.mxu0 %v13015_v40  ;;  %v13021_v55 = vld [vmem:[#allocation8 + $0x184] ss:$16 sps:$4 sm:$0xff]   ;;  %v13010_v3 = vld [vmem:[#allocation8 + $0x7a8] ss:$16 sps:$4 sm:$0xff]   ;;  %v5228_v2 = vpop.f32.mrf.mxu0 }
 0x32d   : > { %v5403_v23 = vadd.f32 %v5338_v49, %v17907_v48  ;;  %v5630_v18 = vmax.f32 %v15861_v14, 0.0  ;;  %v5953_v26 = vor.u32 %v5951_v27, %v5950_v28  ;;  %v5963_v54 = vrot.slane %v5950_v28, 4  ;;  %7523 = vmatpush2.bf16.msra.mxu1 %v13004_v8  ;;  %7483 = vmatprep.mubr.bf16.mxu0 %v15530_v13  ;;  %v13018_v40 = vld [vmem:[#allocation8 + $0x78c] ss:$16 sps:$4 sm:$0xff]   ;;  %v5341_v8 = vpop.f32.mrf.mxu1  ;;  %v13019_v9 = vld [vmem:[#allocation8 + $0x180] ss:$16 sps:$4 sm:$0xff]  }
 0x32e   : > { %v15889_v51 = vadd.f32 %v15244_v53, %v5484_v12  ;;  %v5970_v44 = vor.u32 %v5968_v47, %v5967_v5  ;;  %v5973_v37 = vrot.slane %v5967_v5, 4  ;;  %v5485_v21 = vmul.f32 %v15247_v30, %v5399_v33  ;;  %7524 = vmatprep.subr.bf16.mxu1 %v13012_v42 }
 0x32f   : > { %v5488_v46 = vmul.f32 %v15241_v39, %v5402_v16  ;;  %v6184_v35 = vsel %vm14075_vm2, %v5953_v26, %v6183_v10  ;;  %v5489_v27 = vmul.f32 %v15247_v30, %v5403_v23  ;;  %v5623_v17 = vmax.f32 %v5559_v43, 0.0  ;;  %8438 = vmatpush2.bf16.msra.mxu0 %v13013_v25  ;;  %v13016_v43 = vld [vmem:[#allocation8 + $0x788] ss:$16 sps:$4 sm:$0xff]   ;;  %v13024_v16 = vld [vmem:[#allocation8 + $0x76c] ss:$16 sps:$4 sm:$0xff]  }
 0x330   : > { %v5627_v24 = vmax.f32 %v5563_v59, 0.0  ;;  %v5971_v13 = vsel %vm14081_vm3, %v5963_v54, %v5970_v44  ;;  %6185 = vst [vmem:[#allocation2 + $0x40] sm:$0xff] %v6184_v35  ;;  %v6192_v47 = vsel %vm14016_vm10, %v5973_v37, %v6191_v0  ;;  %v5634_v50 = vmax.f32 %v15889_v51, 0.0  ;;  %8439 = vmatprep.subr.bf16.mxu0 %v13021_v55  ;;  %v17909_v25 = vld [vmem:[#allocation68_spill] sm:$0xff]  ;;  %v17910_v59 = vld [vmem:[#allocation39_spill] sm:$0xff] }
 0x331   : > { %v5340_v49 = vadd.f32 %v5339_v52, %v5226_v63  ;;  %6187 = vst [vmem:[#allocation2 + $0x158] sm:$0xff] %v5971_v13  ;;  %6193 = vst [vmem:[#allocation2 + $0x178] sm:$0x11] %v6192_v47  ;;  %v12074_v28 = vpack.c.bf16 %v5623_v17, %v5622_v22  ;;  %v15912_v33 = vpack.c.bf16 %v5626_v15, %v5622_v22  ;;  %7525 = vmatpush2.bf16.msra.mxu1 %v13010_v3  ;;  %v13027_v63 = vld [vmem:[#allocation8 + $0x164] ss:$16 sps:$4 sm:$0xff]   ;;  %v6197_v44 = vld [vmem:[#allocation2 + $0x48] sm:$0xff] }
 0x332   : > { %v15902_v42 = vpack.c.bf16 %v5627_v24, %v5623_v17  ;;  %v12076_v12 = vpack.c.bf16 %v5627_v24, %v5626_v15  ;;  %v15915_v52 = vadd.f32 %v15244_v53, %v5488_v46  ;;  %v5342_v10 = vadd.f32 %v5341_v8, %v5228_v2  ;;  %7526 = vmatprep.subr.bf16.mxu1 %v13018_v40  ;;  %v13025_v22 = vld [vmem:[#allocation8 + $0x160] ss:$16 sps:$4 sm:$0xff]   ;;  %v13022_v3 = vld [vmem:[#allocation8 + $0x768] ss:$16 sps:$4 sm:$0xff]   ;;  %v13030_v35 = vld [vmem:[#allocation8 + $0x74c] ss:$16 sps:$4 sm:$0xff]  }
 0x333   : > { %v5406_v5 = vadd.f32 %v5340_v49, %v17909_v25  ;;  %v5567_v31 = vadd.f32 %v15260_v34, %v15850_v56  ;;  %v5982_v48 = vshrl.u32 %v12074_v28, 16  ;;  %v5985_v19 = vshll.u32 %v12074_v28, 16  ;;  %8440 = vmatpush2.bf16.msra.mxu0 %v13019_v9  ;;  %v13033_v56 = vld [vmem:[#allocation8 + $0x144] ss:$16 sps:$4 sm:$0xff]   ;;  %v6205_v37 = vld [vmem:[#allocation2 + $0x28] sm:$0x11] }
 0x334   : > { %v5999_v23 = vshrl.u32 %v12076_v12, 16  ;;  %v6002_v41 = vshll.u32 %v12076_v12, 16  ;;  %7360 = vmatprep.mubr.bf16.mxu1 %v15902_v42  ;;  %v5407_v57 = vadd.f32 %v5342_v10, %v17910_v59  ;;  %v5571_v55 = vadd.f32 %v15260_v34, %v5485_v21  ;;  %7484 = vmatmul.mubr.bf16.gmra.mxu0 %v15534_v11  ;;  %v13028_v49 = vld [vmem:[#allocation8 + $0x748] ss:$16 sps:$4 sm:$0xff]   ;;  %v13039_v28 = vld [vmem:[#allocation8 + $0x124] ss:$16 sps:$4 sm:$0xff]  }
 0x335   : > { %v5492_v15 = vmul.f32 %v15241_v39, %v5406_v5  ;;  %7361 = vmatmul.mubr.bf16.gmra.mxu1 %v15912_v33  ;;  %v5631_v26 = vmax.f32 %v5567_v31, 0.0  ;;  %v5984_v54 = vrot.slane %v5982_v48, 7  ;;  %v15928_v51 = vpack.c.bf16 %v5634_v50, %v5630_v18  ;;  %8441 = vmatprep.subr.bf16.mxu0 %v13027_v63  ;;  %v6211_v25 = vld [vmem:[#allocation2 + $0x10] sm:$0xff] }
 0x336   : > { %v6001_v0 = vrot.slane %v5999_v23, 7  ;;  %7527 = vmatpush2.bf16.msra.mxu1 %v13016_v43  ;;  %v5575_v39 = vadd.f32 %v15260_v34, %v5489_v27  ;;  %v5493_v21 = vmul.f32 %v15247_v30, %v5407_v57  ;;  %v5635_v11 = vmax.f32 %v5571_v55, 0.0  ;;  %7493 = vmatprep.mubr.bf16.mxu0 %v15565_v61  ;;  %v13031_v27 = vld [vmem:[#allocation8 + $0x140] ss:$16 sps:$4 sm:$0xff]   ;;  %v13034_v55 = vld [vmem:[#allocation8 + $0x728] ss:$16 sps:$4 sm:$0xff]  }
 0x337   : > { %v15932_v46 = vadd.f32 %v15244_v53, %v5492_v15  ;;  %v12078_v40 = vpack.c.bf16 %v5631_v26, %v5630_v18  ;;  %7528 = vmatprep.subr.bf16.mxu1 %v13024_v16  ;;  %v5987_v17 = vor.u32 %v5985_v19, %v5984_v54  ;;  %v5997_v24 = vrot.slane %v5984_v54, 4  ;;  %8442 = vmatpush2.bf16.msra.mxu0 %v13025_v22  ;;  %v13037_v31 = vld [vmem:[#allocation8 + $0x120] ss:$16 sps:$4 sm:$0xff]   ;;  %v15952_v16 = vld [vmem:[#allocation2 + $0xb4] ss:$112 sps:$4 sm:$0xff]  }
 0x338   : > { %v6004_v2 = vor.u32 %v6002_v41, %v6001_v0  ;;  %v6007_v8 = vrot.slane %v6001_v0, 4  ;;  %v15939_v53 = vpack.c.bf16 %v5635_v11, %v5631_v26  ;;  %v12080_v13 = vpack.c.bf16 %v5635_v11, %v5634_v50  ;;  %8443 = vmatprep.subr.bf16.mxu0 %v13033_v56  ;;  %v17911_v22 = vld [vmem:[#allocation47_spill] sm:$0xff]  ;;  %v13054_v11 = vld [vmem:[#allocation8 + $0xec] ss:$16 sps:$4 sm:$0xff]  }
 0x339   : > { %v5642_v9 = vmax.f32 %v15932_v46, 0.0  ;;  %v6016_v30 = vshrl.u32 %v12078_v40, 16  ;;  %v5638_v14 = vmax.f32 %v15915_v52, 0.0  ;;  %v6198_v61 = vsel %vm14075_vm2, %v5987_v17, %v6197_v44  ;;  %v13036_v52 = vld [vmem:[#allocation8 + $0x72c] ss:$16 sps:$4 sm:$0xff]  }
 0x33a   : > { %v6005_v18 = vsel %vm14081_vm3, %v5997_v24, %v6004_v2  ;;  %v6206_v47 = vsel %vm14016_vm10, %v6007_v8, %v6205_v37  ;;  %7529 = vmatpush2.bf16.msra.mxu1 %v13022_v3  ;;  %6199 = vst [vmem:[#allocation2 + $0x48] sm:$0xff] %v6198_v61  ;;  %v6019_v12 = vshll.u32 %v12078_v40, 16  ;;  %v6033_v43 = vshrl.u32 %v12080_v13, 16  ;;  %7370 = vmatprep.mubr.bf16.mxu1 %v15939_v53  ;;  %v13048_v15 = vld [vmem:[#allocation8 + $0x104] ss:$16 sps:$4 sm:$0xff]   ;;  %v6225_v2 = vld [vmem:[#allocation2 + $0x118] sm:$0xff] }
 0x33b   : > { %6201 = vst [vmem:[#allocation2 + $0x128] sm:$0xff] %v6005_v18  ;;  %6207 = vst [vmem:[#allocation2 + $0x28] sm:$0x11] %v6206_v47  ;;  %v6018_v50 = vrot.slane %v6016_v30, 7  ;;  %7530 = vmatprep.subr.bf16.mxu1 %v13030_v35  ;;  %v5579_v63 = vadd.f32 %v15260_v34, %v5493_v21  ;;  %8444 = vmatpush2.bf16.msra.mxu0 %v13031_v27  ;;  %v5639_v5 = vmax.f32 %v5575_v39, 0.0  ;;  %v6036_v23 = vshll.u32 %v12080_v13, 16 }
 0x33c   : > { %v15950_v10 = vpack.c.bf16 %v5642_v9, %v5638_v14  ;;  %v6035_v19 = vrot.slane %v6033_v43, 7  ;;  %7494 = vmatmul.mubr.bf16.gmra.mxu0 %v17911_v22  ;;  %v6219_v34 = vld [vmem:[#allocation2 + $0x160] sm:$0x11]  ;;  %8445 = vmatprep.subr.bf16.mxu0 %v13039_v28  ;;  %v13045_v3 = vld [vmem:[#allocation8 + $0x70c] ss:$16 sps:$4 sm:$0xff]  }
 0x33d   : > { %v6021_v48 = vor.u32 %v6019_v12, %v6018_v50  ;;  %7371 = vmatmul.mubr.bf16.gmra.mxu1 %v15928_v51  ;;  %v5643_v41 = vmax.f32 %v5579_v63, 0.0  ;;  %v6031_v59 = vrot.slane %v6018_v50, 4  ;;  %v12082_v57 = vpack.c.bf16 %v5639_v5, %v5638_v14  ;;  %8449 = vmatprep.mubr.bf16.mxu0 %v15952_v16  ;;  %v13046_v37 = vld [vmem:[#allocation8 + $0x100] ss:$16 sps:$4 sm:$0xff]   ;;  %v13043_v24 = vld [vmem:[#allocation8 + $0x708] ss:$16 sps:$4 sm:$0xff]  }
 0x33e   : > { %7531 = vmatpush2.bf16.msra.mxu1 %v13028_v49  ;;  %v6038_v26 = vor.u32 %v6036_v23, %v6035_v19  ;;  %v6041_v56 = vrot.slane %v6035_v19, 4  ;;  %v13051_v8 = vld [vmem:[#allocation8 + $0x2e4] ss:$16 sps:$4 sm:$0xff]   ;;  %v13052_v30 = vld [vmem:[#allocation8 + $0xe8] ss:$16 sps:$4 sm:$0xff]  }
 0x33f   : > { %v6212_v54 = vsel %vm14075_vm2, %v6021_v48, %v6211_v25  ;;  %v15958_v0 = vpack.c.bf16 %v5643_v41, %v5639_v5  ;;  %7532 = vmatprep.subr.bf16.mxu1 %v13036_v52  ;;  %v12084_v39 = vpack.c.bf16 %v5643_v41, %v5642_v9  ;;  %v6050_v44 = vshrl.u32 %v12082_v57, 16  ;;  %8446 = vmatpush2.bf16.msra.mxu0 %v13037_v31  ;;  %v6233_v14 = vld [vmem:[#allocation2 + $0xd0] sm:$0x11]  ;;  %v13063_v61 = vld [vmem:[#allocation8 + $0xcc] ss:$16 sps:$4 sm:$0xff]  }
 0x340   : > { %6213 = vst [vmem:[#allocation2 + $0x10] sm:$0xff] %v6212_v54  ;;  %v6039_v46 = vsel %vm14081_vm3, %v6031_v59, %v6038_v26  ;;  %v6220_v21 = vsel %vm14016_vm10, %v6041_v56, %v6219_v34  ;;  %8447 = vmatprep.subr.bf16.mxu0 %v13048_v15  ;;  %v6053_v35 = vshll.u32 %v12082_v57, 16  ;;  %v15967_v18 = vld [vmem:[#allocation2 + $0xb0] ss:$112 sps:$4 sm:$0xff]   ;;  %v15972_v12 = vld [vmem:[#allocation2 + $0x34] ss:$56 sps:$4 sm:$0xff]  }
 0x341   : > { %7380 = vmatprep.mubr.bf16.mxu1 %v15958_v0  ;;  %6215 = vst [vmem:[#allocation2 + $0x90] sm:$0xff] %v6039_v46  ;;  %6221 = vst [vmem:[#allocation2 + $0x160] sm:$0x11] %v6220_v21  ;;  %v6052_v40 = vrot.slane %v6050_v44, 7  ;;  %v6067_v17 = vshrl.u32 %v12084_v39, 16  ;;  %v6070_v13 = vshll.u32 %v12084_v39, 16 }
 0x342   : > { %7533 = vmatpush2.bf16.msra.mxu1 %v13034_v55  ;;  %v13049_v52 = vld [vmem:[#allocation8 + $0x2e0] ss:$16 sps:$4 sm:$0xff]   ;;  %v13060_v25 = vld [vmem:[#allocation8 + $0x2c4] ss:$16 sps:$4 sm:$0xff]   ;;  %v13067_v5 = vld [vmem:[#allocation8 + $0xa8] ss:$16 sps:$4 sm:$0xff]  }
 0x343   : > { %7534 = vmatprep.subr.bf16.mxu1 %v13045_v3  ;;  %v6055_v27 = vor.u32 %v6053_v35, %v6052_v40  ;;  %v6069_v9 = vrot.slane %v6067_v17, 7  ;;  %8448 = vmatpush2.bf16.msra.mxu0 %v13046_v37  ;;  %v6065_v47 = vrot.slane %v6052_v40, 4  ;;  %v15981_v31 = vld [vmem:[#allocation2 + $0x30] ss:$56 sps:$4 sm:$0xff]   ;;  %v15984_v48 = vld [vmem:[#allocation2 + $0x134] ss:$-80 sps:$4 sm:$0xff]  }
 0x344   : > { %8643 = vmatprep.subr.bf16.mxu0 %v13054_v11  ;;  %v13066_v19 = vld [vmem:[#allocation8 + $0x2a4] ss:$16 sps:$4 sm:$0xff]   ;;  %v13076_v23 = vld [vmem:[#allocation8 + $0x88] ss:$16 sps:$4 sm:$0xff]   ;;  %v13064_v41 = vld [vmem:[#allocation8 + $0x2a0] ss:$16 sps:$4 sm:$0xff]  }
 0x345   : > { %7381 = vmatmul.mubr.bf16.gmra.mxu1 %v15950_v10  ;;  %v6072_v49 = vor.u32 %v6070_v13, %v6069_v9  ;;  %v6075_v28 = vrot.slane %v6069_v9, 4  ;;  %v6226_v50 = vsel %vm14075_vm2, %v6055_v27, %v6225_v2  ;;  %v13075_v22 = vld [vmem:[#allocation8 + $0x284] ss:$16 sps:$4 sm:$0xff]   ;;  %v15989_v15 = vld [vmem:[#allocation2 + $0x130] ss:$-80 sps:$4 sm:$0xff]  }
 0x346   : > { %7536 = vmatprep.mubr.bf16.mxu1 %v15623_v20  ;;  %7535 = vmatpush2.bf16.msra.mxu1 %v13043_v24  ;;  %6227 = vst [vmem:[#allocation2 + $0x118] sm:$0xff] %v6226_v50  ;;  %v13069_v20 = vld [vmem:[#allocation8 + $0xac] ss:$16 sps:$4 sm:$0xff]   ;;  %v13073_v34 = vld [vmem:[#allocation8 + $0x280] ss:$16 sps:$4 sm:$0xff]  }
 0x347   : > { %8450 = vmatmul.mubr.bf16.vlgmr.msra.gmra.mxu0 %v15967_v18  ;;  %8530 = vmatprep.subr.bf16.mxu1 %v13051_v8  ;;  %v6073_v43 = vsel %vm14081_vm3, %v6065_v47, %v6072_v49  ;;  %v6234_v63 = vsel %vm14016_vm10, %v6075_v28, %v6233_v14  ;;  %v13093_v59 = vld [vmem:[#allocation8 + $0x4c] ss:$16 sps:$4 sm:$0xff]   ;;  %v13081_v55 = vld [vmem:[#allocation8 + $0x264] ss:$16 sps:$4 sm:$0xff]   ;;  %v13091_v26 = vld [vmem:[#allocation8 + $0x48] ss:$16 sps:$4 sm:$0xff]  }
 0x348   : > { %8459 = vmatprep.mubr.bf16.mxu0 %v15972_v12  ;;  %8644 = vmatpush1.bf16.msra.mxu0 %v13052_v30  ;;  %6229 = vst [vmem:[#allocation2 + $0x100] sm:$0xff] %v6073_v43  ;;  %6235 = vst [vmem:[#allocation2 + $0xd0] sm:$0x11] %v6234_v63  ;;  %v15992_v57 = vld [vmem:[#allocation2 + $0xc4] ss:$-104 sps:$4 sm:$0xff]   ;;  %v6258_v35 = vld [vmem:[#allocation2 + $0xf0] sm:$0xff] }
 0x349   : > { %8645 = vmatprep.subr.bf16.mxu0 %v13063_v61  ;;  %v13079_v56 = vld [vmem:[#allocation8 + $0x260] ss:$16 sps:$4 sm:$0xff]   ;;  %v13090_v54 = vld [vmem:[#allocation8 + $0x244] ss:$16 sps:$4 sm:$0xff]   ;;  %v13108_v39 = vld [vmem:[#allocation8 + $0xc] ss:$16 sps:$4 sm:$0xff]  }
 0x34a   : > { %v15997_v3 = vld [vmem:[#allocation2 + $0xc0] ss:$-104 sps:$4 sm:$0xff]   ;;  %v16000_v37 = vld [vmem:[#allocation2 + $0x1c] ss:$-24 sps:$4 sm:$0xff]   ;;  %v6256_v24 = vld [vmem:[#allocation2 + $0x50] sm:$0xff] }
 0x34b   : > { %v13088_v44 = vld [vmem:[#allocation8 + $0x240] ss:$16 sps:$4 sm:$0xff]   ;;  %v13096_v46 = vld [vmem:[#allocation8 + $0x224] ss:$16 sps:$4 sm:$0xff]   ;;  %v13106_v21 = vld [vmem:[#allocation8 + $0x8] ss:$16 sps:$4 sm:$0xff]   ;;  %v16008_v27 = vcombine.high %v6256_v24, %v6258_v35  ;;  %v16013_v61 = vcombine.low %v6256_v24, %v6258_v35 }
 0x34c   : > { %8646 = vmatpush1.bf16.msra.mxu0 %v13061_v62  ;;  %v13094_v11 = vld [vmem:[#allocation8 + $0x220] ss:$16 sps:$4 sm:$0xff]   ;;  %v13105_v40 = vld [vmem:[#allocation8 + $0x204] ss:$16 sps:$4 sm:$0xff]   ;;  %v13120_v2 = vld [vmem:[#allocation8 + $0x1cc] ss:$16 sps:$4 sm:$0xff]  }
 0x34d   : > { %7537 = vmatmul.mubr.bf16.vlgmr.msra.gmra.mxu1 %v15575_v38  ;;  %8647 = vmatprep.subr.bf16.mxu0 %v13069_v20  ;;  %v13084_v38 = vld [vmem:[#allocation8 + $0x6c] ss:$16 sps:$4 sm:$0xff]   ;;  %v16005_v17 = vld [vmem:[#allocation2 + $0x18] ss:$-24 sps:$4 sm:$0xff]   ;;  %v13111_v9 = vld [vmem:[#allocation8 + $0x3e4] ss:$16 sps:$4 sm:$0xff]  }
 0x34e   : > { %7546 = vmatprep.mubr.bf16.mxu1 %v15675_v45  ;;  %8531 = vmatpush1.bf16.msra.mxu1 %v13049_v52  ;;  %v13082_v45 = vld [vmem:[#allocation8 + $0x68] ss:$16 sps:$4 sm:$0xff]   ;;  %v13103_v8 = vld [vmem:[#allocation8 + $0x200] ss:$16 sps:$4 sm:$0xff]   ;;  %v13117_v14 = vld [vmem:[#allocation8 + $0x3c4] ss:$16 sps:$4 sm:$0xff]  }
 0x34f   : > { %8532 = vmatprep.subr.bf16.mxu1 %v13060_v25  ;;  %8460 = vmatmul.mubr.bf16.gmra.mxu0 %v15981_v31  ;;  %v13118_v13 = vld [vmem:[#allocation8 + $0x1c8] ss:$16 sps:$4 sm:$0xff]   ;;  %v13109_v30 = vld [vmem:[#allocation8 + $0x3e0] ss:$16 sps:$4 sm:$0xff]   ;;  %v13135_v47 = vld [vmem:[#allocation8 + $0x18c] ss:$16 sps:$4 sm:$0xff]  }
 0x350   : > { %8469 = vmatprep.mubr.bf16.mxu0 %v15984_v48  ;;  %8648 = vmatpush1.bf16.msra.mxu0 %v13067_v5  ;;  %v13115_v49 = vld [vmem:[#allocation8 + $0x3c0] ss:$16 sps:$4 sm:$0xff]   ;;  %v16016_v28 = vld [vmem:[#allocation2 + $0xdc] ss:$120 sps:$4 sm:$0xff]   ;;  %v13133_v43 = vld [vmem:[#allocation8 + $0x188] ss:$16 sps:$4 sm:$0xff]  }
 0x351   : > { %8649 = vmatprep.subr.bf16.mxu0 %v13078_v36  ;;  %v13123_v50 = vld [vmem:[#allocation8 + $0x3a4] ss:$16 sps:$4 sm:$0xff]   ;;  %v13121_v63 = vld [vmem:[#allocation8 + $0x3a0] ss:$16 sps:$4 sm:$0xff]   ;;  %v13150_v52 = vld [vmem:[#allocation8 + $0x14c] ss:$16 sps:$4 sm:$0xff]  }
 0x352   : > { %8533 = vmatpush1.bf16.msra.mxu1 %v13058_v60  ;;  %v13132_v62 = vld [vmem:[#allocation8 + $0x384] ss:$16 sps:$4 sm:$0xff]   ;;  %v16021_v20 = vld [vmem:[#allocation2 + $0xd8] ss:$120 sps:$4 sm:$0xff]   ;;  %v16024_v5 = vld [vmem:[#allocation2 + $0xfc] ss:$16 sps:$4 sm:$0xff]  }
 0x353   : > { %8534 = vmatprep.subr.bf16.mxu1 %v13066_v19  ;;  %v13130_v25 = vld [vmem:[#allocation8 + $0x380] ss:$16 sps:$4 sm:$0xff]   ;;  %v13138_v36 = vld [vmem:[#allocation8 + $0x364] ss:$16 sps:$4 sm:$0xff]   ;;  %v13148_v60 = vld [vmem:[#allocation8 + $0x148] ss:$16 sps:$4 sm:$0xff]  }
 0x354   : > { %8650 = vmatpush1.bf16.msra.mxu0 %v13076_v23  ;;  %v13136_v19 = vld [vmem:[#allocation8 + $0x360] ss:$16 sps:$4 sm:$0xff]   ;;  %v13147_v23 = vld [vmem:[#allocation8 + $0x344] ss:$16 sps:$4 sm:$0xff]   ;;  %v13177_v24 = vld [vmem:[#allocation8 + $0x2cc] ss:$16 sps:$4 sm:$0xff]  }
 0x355   : > { %7547 = vmatmul.mubr.bf16.gmra.mxu1 %v15685_v29  ;;  %8651 = vmatprep.subr.bf16.mxu0 %v13084_v38  ;;  %v13099_v29 = vld [vmem:[#allocation8 + $0x2c] ss:$16 sps:$4 sm:$0xff]  }
 0x356   : > { %7556 = vmatprep.mubr.bf16.mxu1 %v15744_v6  ;;  %8535 = vmatpush1.bf16.msra.mxu1 %v13064_v41  ;;  %v13097_v6 = vld [vmem:[#allocation8 + $0x28] ss:$16 sps:$4 sm:$0xff]  }
 0x357   : > { %8536 = vmatprep.subr.bf16.mxu1 %v13075_v22  ;;  %8470 = vmatmul.mubr.bf16.gmra.mxu0 %v15989_v15  ;;  %v16031_v41 = vld [vmem:[#allocation2 + $0xf8] ss:$16 sps:$4 sm:$0xff]   ;;  %v13165_v22 = vld [vmem:[#allocation8 + $0x10c] ss:$16 sps:$4 sm:$0xff]  }
 0x358   : > { %8479 = vmatprep.mubr.bf16.mxu0 %v15992_v57  ;;  %8652 = vmatpush1.bf16.msra.mxu0 %v13082_v45 }
 0x359   : > { %8653 = vmatprep.subr.bf16.mxu0 %v13093_v59  ;;  %v13145_v59 = vld [vmem:[#allocation8 + $0x340] ss:$16 sps:$4 sm:$0xff]  }
 0x35a   : > { %8537 = vmatpush1.bf16.msra.mxu1 %v13073_v34  ;;  %v13153_v34 = vld [vmem:[#allocation8 + $0x324] ss:$16 sps:$4 sm:$0xff]  }
 0x35b   : > { %8538 = vmatprep.subr.bf16.mxu1 %v13081_v55 }
 0x35c   : > { %8654 = vmatpush1.bf16.msra.mxu0 %v13091_v26  ;;  %v13171_v26 = vld [vmem:[#allocation8 + $0x8e4] ss:$16 sps:$4 sm:$0xff]  }
 0x35d   : > { %7557 = vmatmul.mubr.bf16.gmra.mxu1 %v15758_v32  ;;  %8655 = vmatprep.subr.bf16.mxu0 %v13099_v29  ;;  %v13114_v32 = vld [vmem:[#allocation8 + $0x1ec] ss:$16 sps:$4 sm:$0xff]  }
 0x35e   : > { %7566 = vmatprep.mubr.bf16.mxu1 %v15810_v1  ;;  %8539 = vmatpush1.bf16.msra.mxu1 %v13079_v56  ;;  %v13112_v1 = vld [vmem:[#allocation8 + $0x1e8] ss:$16 sps:$4 sm:$0xff]   ;;  %v13151_v56 = vld [vmem:[#allocation8 + $0x320] ss:$16 sps:$4 sm:$0xff]  }
 0x35f   : > { %8540 = vmatprep.subr.bf16.mxu1 %v13090_v54  ;;  %8480 = vmatmul.mubr.bf16.gmra.mxu0 %v15997_v3  ;;  %v16042_v54 = vld [vmem:[#allocation2 + $0x114] ss:$-40 sps:$4 sm:$0xff]  }
 0x360   : > { %8489 = vmatprep.mubr.bf16.mxu0 %v16000_v37  ;;  %8656 = vmatpush1.bf16.msra.mxu0 %v13097_v6  ;;  %v13169_v6 = vld [vmem:[#allocation8 + $0x8e0] ss:$16 sps:$4 sm:$0xff]  }
 0x361   : > { %8657 = vmatprep.subr.bf16.mxu0 %v13108_v39 }
 0x362   : > { %8541 = vmatpush1.bf16.msra.mxu1 %v13088_v44  ;;  %v13180_v44 = vld [vmem:[#allocation8 + $0x8c4] ss:$16 sps:$4 sm:$0xff]  }
 0x363   : > { %8542 = vmatprep.subr.bf16.mxu1 %v13096_v46 }
 0x364   : > { %8658 = vmatpush1.bf16.msra.mxu0 %v13106_v21  ;;  %v13168_v21 = vld [vmem:[#allocation8 + $0x2ec] ss:$16 sps:$4 sm:$0xff]  }
 0x365   : > { %7567 = vmatmul.mubr.bf16.gmra.mxu1 %v15814_v4  ;;  %8659 = vmatprep.subr.bf16.mxu0 %v13114_v32  ;;  %v13126_v4 = vld [vmem:[#allocation8 + $0x1ac] ss:$16 sps:$4 sm:$0xff]   ;;  %v13178_v32 = vld [vmem:[#allocation8 + $0x8c0] ss:$16 sps:$4 sm:$0xff]  }
 0x366   : > { %7576 = vmatprep.mubr.bf16.mxu1 %v15863_v58  ;;  %8543 = vmatpush1.bf16.msra.mxu1 %v13094_v11  ;;  %v13124_v58 = vld [vmem:[#allocation8 + $0x1a8] ss:$16 sps:$4 sm:$0xff]  }
 0x367   : > { %8544 = vmatprep.subr.bf16.mxu1 %v13105_v40  ;;  %8490 = vmatmul.mubr.bf16.gmra.mxu0 %v16005_v17  ;;  %v13166_v40 = vld [vmem:[#allocation8 + $0x2e8] ss:$16 sps:$4 sm:$0xff]  }
 0x368   : > { %8499 = vmatprep.mubr.bf16.mxu0 %v16008_v27  ;;  %8660 = vmatpush2.bf16.msra.mxu0 %v13112_v1  ;;  %v16056_v1 = vld [vmem:[#allocation2 + $0x110] ss:$-40 sps:$4 sm:$0xff]  }
 0x369   : > { %8661 = vmatprep.subr.bf16.mxu0 %v13120_v2  ;;  %v16058_v2 = vld [vmem:[#allocation2 + $0xcc] ss:$-48 sps:$4 sm:$0xff]  }
 0x36a   : > { %8545 = vmatpush1.bf16.msra.mxu1 %v13103_v8 }
 0x36b   : > { %8546 = vmatprep.subr.bf16.mxu1 %v13111_v9  ;;  %v13175_v9 = vld [vmem:[#allocation8 + $0x2c8] ss:$16 sps:$4 sm:$0xff]  }
 0x36c   : > { %8662 = vmatpush2.bf16.msra.mxu0 %v13118_v13  ;;  %v13183_v13 = vld [vmem:[#allocation8 + $0x2ac] ss:$16 sps:$4 sm:$0xff]  }
 0x36d   : > { %7577 = vmatmul.mubr.bf16.gmra.mxu1 %v15871_v7  ;;  %8663 = vmatprep.subr.bf16.mxu0 %v13126_v4  ;;  %v13141_v7 = vld [vmem:[#allocation8 + $0x16c] ss:$16 sps:$4 sm:$0xff]  }
 0x36e   : > { %7586 = vmatprep.mubr.bf16.mxu1 %v15902_v42  ;;  %8547 = vmatpush2.bf16.msra.mxu1 %v13109_v30  ;;  %v13139_v42 = vld [vmem:[#allocation8 + $0x168] ss:$16 sps:$4 sm:$0xff]   ;;  %v13190_v30 = vld [vmem:[#allocation8 + $0x880] ss:$16 sps:$4 sm:$0xff]  }
 0x36f   : > { %8548 = vmatprep.subr.bf16.mxu1 %v13117_v14  ;;  %8500 = vmatmul.mubr.bf16.gmra.mxu0 %v16013_v61  ;;  %v6247_v14 = vld [vmem:[#allocation2 + $0x38] sm:$0xff] }
 0x370   : > { %8509 = vmatprep.mubr.bf16.mxu0 %v16016_v28  ;;  %8664 = vmatpush2.bf16.msra.mxu0 %v13124_v58  ;;  %v13198_v58 = vld [vmem:[#allocation8 + $0x864] ss:$16 sps:$4 sm:$0xff]  }
 0x371   : > { %8665 = vmatprep.subr.bf16.mxu0 %v13135_v47 }
 0x372   : > { %8549 = vmatpush2.bf16.msra.mxu1 %v13115_v49  ;;  %v13181_v49 = vld [vmem:[#allocation8 + $0x2a8] ss:$16 sps:$4 sm:$0xff]  }
 0x373   : > { %8550 = vmatprep.subr.bf16.mxu1 %v13123_v50  ;;  %v16070_v50 = vld [vmem:[#allocation2 + $0xc8] ss:$-48 sps:$4 sm:$0xff]  }
 0x374   : > { %8666 = vmatpush2.bf16.msra.mxu0 %v13133_v43  ;;  %v6245_v43 = vld [vmem:[#allocation2 + $0x78] sm:$0xff] }
 0x375   : > { %7587 = vmatmul.mubr.bf16.gmra.mxu1 %v15912_v33  ;;  %8667 = vmatprep.subr.bf16.mxu0 %v13141_v7  ;;  %v13156_v33 = vld [vmem:[#allocation8 + $0x12c] ss:$16 sps:$4 sm:$0xff]   ;;  %v16028_v38 = vpop.f32.mrf.mxu0 }
 0x376   : > { %7596 = vmatprep.mubr.bf16.mxu1 %v15939_v53  ;;  %8551 = vmatpush2.bf16.msra.mxu1 %v13121_v63  ;;  %v13154_v53 = vld [vmem:[#allocation8 + $0x128] ss:$16 sps:$4 sm:$0xff]   ;;  %v13189_v7 = vld [vmem:[#allocation8 + $0x28c] ss:$16 sps:$4 sm:$0xff]   ;;  %v13196_v63 = vld [vmem:[#allocation8 + $0x860] ss:$16 sps:$4 sm:$0xff]  }
 0x377   : > { %8552 = vmatprep.subr.bf16.mxu1 %v13132_v62  ;;  %8510 = vmatmul.mubr.bf16.gmra.mxu0 %v16021_v20  ;;  %v16033_v45 = vpop.f32.mrf.mxu0 }
 0x378   : > { %8519 = vmatprep.mubr.bf16.mxu0 %v16024_v5  ;;  %8668 = vmatpush2.bf16.msra.mxu0 %v13139_v42  ;;  %v13187_v42 = vld [vmem:[#allocation8 + $0x288] ss:$16 sps:$4 sm:$0xff]  }
 0x379   : > { %8669 = vmatprep.subr.bf16.mxu0 %v13150_v52  ;;  %v16037_v55 = vpop.f32.mrf.mxu0  ;;  %v13195_v52 = vld [vmem:[#allocation8 + $0x26c] ss:$16 sps:$4 sm:$0xff]  }
 0x37a   : > { %8553 = vmatpush2.bf16.msra.mxu1 %v13130_v25  ;;  %v13202_v25 = vld [vmem:[#allocation8 + $0x840] ss:$16 sps:$4 sm:$0xff]  }
 0x37b   : > { %8554 = vmatprep.subr.bf16.mxu1 %v13138_v36  ;;  %v16040_v29 = vpop.f32.mrf.mxu0  ;;  %v6251_v36 = vld [vmem:[#allocation2 + $0x8] sm:$0xff] }
 0x37c   : > { %8670 = vmatpush2.bf16.msra.mxu0 %v13148_v60 }
 0x37d   : > { %7597 = vmatmul.mubr.bf16.gmra.mxu1 %v15928_v51  ;;  %8671 = vmatprep.subr.bf16.mxu0 %v13156_v33  ;;  %v13163_v51 = vld [vmem:[#allocation8 + $0x108] ss:$16 sps:$4 sm:$0xff]   ;;  %v13210_v33 = vld [vmem:[#allocation8 + $0x824] ss:$16 sps:$4 sm:$0xff]  }
 0x37e   : > { %7606 = vmatprep.mubr.bf16.mxu1 %v15958_v0  ;;  %8555 = vmatpush2.bf16.msra.mxu1 %v13136_v19  ;;  %v13162_v0 = vld [vmem:[#allocation8 + $0x304] ss:$16 sps:$4 sm:$0xff]   ;;  %v13193_v19 = vld [vmem:[#allocation8 + $0x268] ss:$16 sps:$4 sm:$0xff]  }
 0x37f   : > { %8556 = vmatprep.subr.bf16.mxu1 %v13147_v23  ;;  %8520 = vmatmul.mubr.bf16.gmra.mxu0 %v16031_v41  ;;  %v16044_v39 = vpop.f32.mrf.mxu0  ;;  %v16082_v23 = vcombine.low %v6245_v43, %v6247_v14 }
 0x380   : > { %8672 = vmatpush2.bf16.msra.mxu0 %v13154_v53  ;;  %8675 = vmatprep.mubr.bf16.mxu0 %v15952_v16  ;;  %v13160_v16 = vld [vmem:[#allocation8 + $0x300] ss:$16 sps:$4 sm:$0xff]   ;;  %v6249_v53 = vld [vmem:[#allocation2 + $0x168] sm:$0xff] }
 0x381   : > { %8673 = vmatprep.subr.bf16.mxu0 %v13165_v22  ;;  %v16048_v46 = vpop.f32.mrf.mxu0  ;;  %v13201_v22 = vld [vmem:[#allocation8 + $0x24c] ss:$16 sps:$4 sm:$0xff]  }
 0x382   : > { %8557 = vmatpush2.bf16.msra.mxu1 %v13145_v59 }
 0x383   : > { %8558 = vmatprep.subr.bf16.mxu1 %v13153_v34  ;;  %v16052_v11 = vpop.f32.mrf.mxu0 }
 0x384   : > { %8674 = vmatpush2.bf16.msra.mxu0 %v13163_v51  ;;  %v13219_v51 = vld [vmem:[#allocation8 + $0x804] ss:$16 sps:$4 sm:$0xff]  }
 0x385   : > { %7607 = vmatmul.mubr.bf16.gmra.mxu1 %v15950_v10  ;;  %9974 = vmatprep.subr.bf16.mxu0 %v13171_v26  ;;  %v13186_v10 = vld [vmem:[#allocation8 + $0x8a4] ss:$16 sps:$4 sm:$0xff]   ;;  %v16054_v35 = vpop.f32.mrf.mxu0  ;;  %v13199_v26 = vld [vmem:[#allocation8 + $0x248] ss:$16 sps:$4 sm:$0xff]  }
 0x386   : > { %8559 = vmatpush2.bf16.msra.mxu1 %v13151_v56  ;;  %8562 = vmatprep.mubr.bf16.mxu1 %v16042_v54  ;;  %v13207_v56 = vld [vmem:[#allocation8 + $0x22c] ss:$16 sps:$4 sm:$0xff]  }
 0x387   : > { %8560 = vmatprep.subr.bf16.mxu1 %v13162_v0  ;;  %8676 = vmatmul.mubr.bf16.vlgmr.msra.gmra.mxu0 %v15967_v18  ;;  %v13184_v18 = vld [vmem:[#allocation8 + $0x8a0] ss:$16 sps:$4 sm:$0xff]   ;;  %v16061_v8 = vpop.f32.mrf.mxu0 }
 0x388   : > { %8685 = vmatprep.mubr.bf16.mxu0 %v15972_v12  ;;  %9975 = vmatpush1.bf16.msra.mxu0 %v13169_v6  ;;  %v13192_v12 = vld [vmem:[#allocation8 + $0x884] ss:$16 sps:$4 sm:$0xff]   ;;  %v13217_v6 = vld [vmem:[#allocation8 + $0x800] ss:$16 sps:$4 sm:$0xff]  }
 0x389   : > { %9976 = vmatprep.subr.bf16.mxu0 %v13180_v44  ;;  %v16065_v4 = vpop.f32.mrf.mxu0 }
 0x38a   : > { %8561 = vmatpush2.bf16.msra.mxu1 %v13160_v16  ;;  %v13225_v16 = vld [vmem:[#allocation8 + $0x9e4] ss:$16 sps:$4 sm:$0xff]  }
 0x38b   : > { %8756 = vmatprep.subr.bf16.mxu1 %v13168_v21  ;;  %v16068_v47 = vpop.f32.mrf.mxu0  ;;  %v13205_v21 = vld [vmem:[#allocation8 + $0x228] ss:$16 sps:$4 sm:$0xff]  }
 0x38c   : > { %9977 = vmatpush1.bf16.msra.mxu0 %v13178_v32  ;;  %v16098_v32 = vcombine.low %v6249_v53, %v6251_v36 }
 0x38d   : > { %8563 = vmatmul.mubr.bf16.vlgmr.msra.gmra.mxu1 %v16056_v1  ;;  %9978 = vmatprep.subr.bf16.mxu0 %v13186_v10  ;;  %v16075_v62 = vpop.f32.mrf.mxu0  ;;  %v13216_v10 = vld [vmem:[#allocation8 + $0x20c] ss:$16 sps:$4 sm:$0xff]  }
 0x38e   : > { %8572 = vmatprep.mubr.bf16.mxu1 %v16058_v2  ;;  %8757 = vmatpush1.bf16.msra.mxu1 %v13166_v40 }
 0x38f   : > { %8758 = vmatprep.subr.bf16.mxu1 %v13177_v24  ;;  %8686 = vmatmul.mubr.bf16.gmra.mxu0 %v15981_v31  ;;  %v16072_v31 = vcombine.high %v6245_v43, %v6247_v14  ;;  %v13223_v24 = vld [vmem:[#allocation8 + $0x9e0] ss:$16 sps:$4 sm:$0xff]   ;;  %v6259_v14 = vld [vmem:[#allocation2 + $0x128] sm:$0xff] }
 0x390   : > { %8695 = vmatprep.mubr.bf16.mxu0 %v15984_v48  ;;  %9979 = vmatpush1.bf16.msra.mxu0 %v13184_v18  ;;  %v13204_v48 = vld [vmem:[#allocation8 + $0x844] ss:$16 sps:$4 sm:$0xff]   ;;  %v16112_v43 = vld [vmem:[#allocation2 + $0x40] ss:$280 sps:$4 sm:$0xff]  }
 0x391   : > { %9980 = vmatprep.subr.bf16.mxu0 %v13192_v12  ;;  %v13231_v18 = vld [vmem:[#allocation8 + $0x9c4] ss:$16 sps:$4 sm:$0xff]   ;;  %v13214_v12 = vld [vmem:[#allocation8 + $0x208] ss:$16 sps:$4 sm:$0xff]  }
 0x392   : > { %8759 = vmatpush1.bf16.msra.mxu1 %v13175_v9  ;;  %v13222_v9 = vld [vmem:[#allocation8 + $0x3ec] ss:$16 sps:$4 sm:$0xff]  }
 0x393   : > { %8760 = vmatprep.subr.bf16.mxu1 %v13183_v13  ;;  %v16080_v60 = vpop.f32.mrf.mxu0 }
 0x394   : > { %9981 = vmatpush1.bf16.msra.mxu0 %v13190_v30  ;;  %v13229_v30 = vld [vmem:[#allocation8 + $0x9c0] ss:$16 sps:$4 sm:$0xff]  }
 0x395   : > { %8573 = vmatmul.mubr.bf16.gmra.mxu1 %v16070_v50  ;;  %9982 = vmatprep.subr.bf16.mxu0 %v13198_v58  ;;  %v16084_v59 = vpop.f32.mrf.mxu0  ;;  %v13237_v58 = vld [vmem:[#allocation8 + $0x9a4] ss:$16 sps:$4 sm:$0xff]  }
 0x396   : > { %8582 = vmatprep.mubr.bf16.mxu1 %v16072_v31  ;;  %8761 = vmatpush1.bf16.msra.mxu1 %v13181_v49  ;;  %17912 = vst [vmem:[#allocation51_spill] sm:$0xff] %v16084_v59  ;;  %v13220_v49 = vld [vmem:[#allocation8 + $0x3e8] ss:$16 sps:$4 sm:$0xff]  }
 0x397   : > { %8762 = vmatprep.subr.bf16.mxu1 %v13189_v7  ;;  %8696 = vmatmul.mubr.bf16.gmra.mxu0 %v15989_v15  ;;  %v16086_v15 = vcombine.high %v6249_v53, %v6251_v36  ;;  %v16089_v34 = vpop.f32.mrf.mxu0  ;;  %v6257_v7 = vld [vmem:[#allocation2 + $0x48] sm:$0xff]  ;;  %v8871_v53 = vld [vmem:[#allocation2 + $0x120] sm:$0xff] }
 0x398   : > { %8705 = vmatprep.mubr.bf16.mxu0 %v15992_v57  ;;  %9983 = vmatpush1.bf16.msra.mxu0 %v13196_v63  ;;  %v13208_v57 = vld [vmem:[#allocation8 + $0x820] ss:$16 sps:$4 sm:$0xff]   ;;  %17913 = vst [vmem:[#allocation56_spill] sm:$0xff] %v16089_v34  ;;  %v13228_v63 = vld [vmem:[#allocation8 + $0x3cc] ss:$16 sps:$4 sm:$0xff]  }
 0x399   : > { %9984 = vmatprep.subr.bf16.mxu0 %v13204_v48  ;;  %v16093_v0 = vpop.f32.mrf.mxu0  ;;  %v13234_v36 = vld [vmem:[#allocation8 + $0x3ac] ss:$16 sps:$4 sm:$0xff]   ;;  %v13310_v34 = vld [vmem:[#allocation8 + $0x828] ss:$16 sps:$4 sm:$0xff]  }
 0x39a   : > { %8763 = vmatpush1.bf16.msra.mxu1 %v13187_v42  ;;  %17914 = vst [vmem:[#allocation65_spill] sm:$0xff] %v16093_v0  ;;  %v13235_v42 = vld [vmem:[#allocation8 + $0x9a0] ss:$16 sps:$4 sm:$0xff]  }
 0x39b   : > { %8764 = vmatprep.subr.bf16.mxu1 %v13195_v52  ;;  %v13243_v52 = vld [vmem:[#allocation8 + $0x984] ss:$16 sps:$4 sm:$0xff]  }
 0x39c   : > { %9985 = vmatpush1.bf16.msra.mxu0 %v13202_v25  ;;  %v13226_v25 = vld [vmem:[#allocation8 + $0x3c8] ss:$16 sps:$4 sm:$0xff]  }
 0x39d   : > { %8583 = vmatmul.mubr.bf16.gmra.mxu1 %v16082_v23  ;;  %9986 = vmatprep.subr.bf16.mxu0 %v13210_v33  ;;  %v16096_v44 = vpop.f32.mrf.mxu0 }
 0x39e   : > { %8592 = vmatprep.mubr.bf16.mxu1 %v16086_v15  ;;  %8765 = vmatpush1.bf16.msra.mxu1 %v13193_v19  ;;  %17915 = vst [vmem:[#allocation70_spill] sm:$0xff] %v16096_v44  ;;  %v13241_v19 = vld [vmem:[#allocation8 + $0x980] ss:$16 sps:$4 sm:$0xff]  }
 0x39f   : > { %8766 = vmatprep.subr.bf16.mxu1 %v13201_v22  ;;  %8706 = vmatmul.mubr.bf16.gmra.mxu0 %v15997_v3  ;;  %v16100_v40 = vpop.f32.mrf.mxu0  ;;  %v16102_v3 = vld [vmem:[#allocation2 + $0x44] ss:$280 sps:$4 sm:$0xff]   ;;  %v6263_v22 = vld [vmem:[#allocation2 + $0x90] sm:$0xff] }
 0x3a0   : > { %8715 = vmatprep.mubr.bf16.mxu0 %v16000_v37  ;;  %9987 = vmatpush1.bf16.msra.mxu0 %v13208_v57  ;;  %17916 = vst [vmem:[#allocation71_spill] sm:$0xff] %v16100_v40 }
 0x3a1   : > { %9988 = vmatprep.subr.bf16.mxu0 %v13219_v51  ;;  %v16105_v37 = vpop.f32.mrf.mxu0  ;;  %v13249_v51 = vld [vmem:[#allocation8 + $0x964] ss:$16 sps:$4 sm:$0xff]  }
 0x3a2   : > { %8767 = vmatpush1.bf16.msra.mxu1 %v13199_v26  ;;  %17917 = vst [vmem:[#allocation22_spill] sm:$0xff] %v16105_v37  ;;  %v13232_v26 = vld [vmem:[#allocation8 + $0x3a8] ss:$16 sps:$4 sm:$0xff]  }
 0x3a3   : > { %8768 = vmatprep.subr.bf16.mxu1 %v13207_v56  ;;  %v16109_v13 = vpop.f32.mrf.mxu0  ;;  %v16128_v56 = vcombine.low %v6257_v7, %v6259_v14 }
 0x3a4   : > { %9989 = vmatpush1.bf16.msra.mxu0 %v13217_v6  ;;  %17918 = vst [vmem:[#allocation23_spill] sm:$0xff] %v16109_v13  ;;  %v6261_v6 = vld [vmem:[#allocation2 + $0x10] sm:$0xff] }
 0x3a5   : > { %8593 = vmatmul.mubr.bf16.gmra.mxu1 %v16098_v32  ;;  %9990 = vmatprep.subr.bf16.mxu0 %v13225_v16  ;;  %v8967_v16 = vrot.slane %v8871_v53, 5 }
 0x3a6   : > { %8602 = vmatprep.mubr.bf16.mxu1 %v16102_v3  ;;  %8769 = vmatpush1.bf16.msra.mxu1 %v13205_v21  ;;  %v16130_v21 = vcombine.high %v6261_v6, %v6263_v22 }
 0x3a7   : > { %8770 = vmatprep.subr.bf16.mxu1 %v13216_v10  ;;  %8716 = vmatmul.mubr.bf16.gmra.mxu0 %v16005_v17  ;;  %v16116_v17 = vcombine.high %v6257_v7, %v6259_v14  ;;  %v13247_v10 = vld [vmem:[#allocation8 + $0x960] ss:$16 sps:$4 sm:$0xff]   ;;  %v8973_v14 = vrot.slane %v8967_v16, 4 }
 0x3a8   : > { %8725 = vmatprep.mubr.bf16.mxu0 %v16008_v27  ;;  %9991 = vmatpush2.bf16.msra.mxu0 %v13223_v24  ;;  %v16114_v48 = vpop.f32.mrf.mxu0  ;;  %v13258_v24 = vld [vmem:[#allocation8 + $0x944] ss:$16 sps:$4 sm:$0xff]  }
 0x3a9   : > { %9992 = vmatprep.subr.bf16.mxu0 %v13231_v18  ;;  %17919 = vst [vmem:[#allocation21_spill] sm:$0xff] %v16114_v48  ;;  %v13238_v18 = vld [vmem:[#allocation8 + $0x388] ss:$16 sps:$4 sm:$0xff]   ;;  %v8869_v7 = vld [vmem:[#allocation2 + $0xb0] sm:$0xee] }
 0x3aa   : > { %8771 = vmatpush1.bf16.msra.mxu1 %v13214_v12  ;;  %v16119_v27 = vpop.f32.mrf.mxu0  ;;  %v11837_v53 = vrot.slane %v8869_v7, 9 }
 0x3ab   : > { %8772 = vmatprep.subr.bf16.mxu1 %v13222_v9  ;;  %17920 = vst [vmem:[#allocation55_spill] sm:$0xff] %v16119_v27  ;;  %v8873_v9 = vld [vmem:[#allocation2 + $0x20] sm:$0x11]  ;;  %v13286_v27 = vld [vmem:[#allocation8 + $0x8a8] ss:$16 sps:$4 sm:$0xff]  }
 0x3ac   : > { %9993 = vmatpush2.bf16.msra.mxu0 %v13229_v30  ;;  %v16123_v33 = vpop.f32.mrf.mxu0  ;;  %v13246_v30 = vld [vmem:[#allocation8 + $0x36c] ss:$16 sps:$4 sm:$0xff]  }
 0x3ad   : > { %8603 = vmatmul.mubr.bf16.gmra.mxu1 %v16112_v43  ;;  %9994 = vmatprep.subr.bf16.mxu0 %v13237_v58  ;;  %17921 = vst [vmem:[#allocation57_spill] sm:$0xff] %v16123_v33 }
 0x3ae   : > { %8612 = vmatprep.mubr.bf16.mxu1 %v16116_v17  ;;  %8773 = vmatpush2.bf16.msra.mxu1 %v13220_v49  ;;  %v16126_v57 = vpop.f32.mrf.mxu0  ;;  %v13256_v49 = vld [vmem:[#allocation8 + $0x940] ss:$16 sps:$4 sm:$0xff]  }
 0x3af   : > { %8774 = vmatprep.subr.bf16.mxu1 %v13228_v63  ;;  %8726 = vmatmul.mubr.bf16.gmra.mxu0 %v16013_v61  ;;  %17922 = vst [vmem:[#allocation24_spill] sm:$0xff] %v16126_v57  ;;  %v13240_v61 = vld [vmem:[#allocation8 + $0x38c] ss:$16 sps:$4 sm:$0xff]  }
 0x3b0   : > { %8735 = vmatprep.mubr.bf16.mxu0 %v16016_v28  ;;  %9995 = vmatpush2.bf16.msra.mxu0 %v13235_v42  ;;  %v16132_v28 = vpop.f32.mrf.mxu0  ;;  %v8877_v63 = vld [vmem:[#allocation2 + $0x68] sm:$0xff]  ;;  %v13264_v42 = vld [vmem:[#allocation8 + $0x924] ss:$16 sps:$4 sm:$0xff]  }
 0x3b1   : > { %9996 = vmatprep.subr.bf16.mxu0 %v13243_v52  ;;  %17923 = vst [vmem:[#allocation25_spill] sm:$0xff] %v16132_v28  ;;  %v8974_v52 = vrot.slane %v8873_v9, 5 }
 0x3b2   : > { %8775 = vmatpush2.bf16.msra.mxu1 %v13226_v25  ;;  %v16136_v12 = vpop.f32.mrf.mxu0  ;;  %v13244_v25 = vld [vmem:[#allocation8 + $0x368] ss:$16 sps:$4 sm:$0xff]  }
 0x3b3   : > { %8776 = vmatprep.subr.bf16.mxu1 %v13234_v36  ;;  %17924 = vst [vmem:[#allocation26_spill] sm:$0xff] %v16136_v12  ;;  %v13274_v12 = vld [vmem:[#allocation8 + $0x8e8] ss:$16 sps:$4 sm:$0xff]  }
 0x3b4   : > { %9997 = vmatpush2.bf16.msra.mxu0 %v13241_v19  ;;  %v16140_v58 = vpop.f32.mrf.mxu0  ;;  %v16144_v19 = vcombine.low %v6261_v6, %v6263_v22  ;;  %v8968_v22 = vsel %vm14641_vm5, %v11837_v53, %v8967_v16  ;;  %v13270_v6 = vld [vmem:[#allocation8 + $0x904] ss:$16 sps:$4 sm:$0xff]  }
 0x3b5   : > { %8613 = vmatmul.mubr.bf16.gmra.mxu1 %v16128_v56  ;;  %9998 = vmatprep.subr.bf16.mxu0 %v13249_v51  ;;  %17925 = vst [vmem:[#allocation59_spill] sm:$0xff] %v16140_v58  ;;  %v8875_v16 = vld [vmem:[#allocation2 + $0x30] sm:$0xee]  ;;  %v13406_v51 = vld [vmem:[#allocation8 + $0xb48] ss:$16 sps:$4 sm:$0xff]  }
 0x3b6   : > { %8622 = vmatprep.mubr.bf16.mxu1 %v16130_v21  ;;  %8777 = vmatpush2.bf16.msra.mxu1 %v13232_v26  ;;  %v16142_v36 = vpop.f32.mrf.mxu0  ;;  %v8981_v26 = vrot.slane %v8877_v63, 5  ;;  %v13268_v63 = vld [vmem:[#allocation8 + $0x900] ss:$16 sps:$4 sm:$0xff]  }
 0x3b7   : > { %8778 = vmatprep.subr.bf16.mxu1 %v13240_v61  ;;  %8736 = vmatmul.mubr.bf16.gmra.mxu0 %v16021_v20  ;;  %17926 = vst [vmem:[#allocation27_spill] sm:$0xff] %v16142_v36  ;;  %v13255_v20 = vld [vmem:[#allocation8 + $0x34c] ss:$16 sps:$4 sm:$0xff]  }
 0x3b8   : > { %8745 = vmatprep.mubr.bf16.mxu0 %v16024_v5  ;;  %9999 = vmatpush2.bf16.msra.mxu0 %v13247_v10  ;;  %v8975_v5 = vsel %vm14641_vm5, %v8973_v14, %v8974_v52  ;;  %v16148_v61 = vld [vmem:[#allocation2 + $0x11c] ss:$-24 sps:$4 sm:$0xff]   ;;  %v13262_v10 = vld [vmem:[#allocation8 + $0x920] ss:$16 sps:$4 sm:$0xff]   ;;  %v8987_v7 = vrot.slane %v8981_v26, 4 }
 0x3b9   : > { %10000 = vmatprep.subr.bf16.mxu0 %v13258_v24  ;;  %v16156_v9 = vcombine.high %v8968_v22, %v8975_v5  ;;  %v13261_v14 = vld [vmem:[#allocation8 + $0x32c] ss:$16 sps:$4 sm:$0xff]  }
 0x3ba   : > { %8779 = vmatpush2.bf16.msra.mxu1 %v13238_v18  ;;  %v13253_v18 = vld [vmem:[#allocation8 + $0x348] ss:$16 sps:$4 sm:$0xff]  }
 0x3bb   : > { %8780 = vmatprep.subr.bf16.mxu1 %v13246_v30  ;;  %v16151_v24 = vpop.f32.mrf.mxu0  ;;  %v8879_v30 = vld [vmem:[#allocation2 + $0xa8] sm:$0x11] }
 0x3bc   : > { %10001 = vmatpush2.bf16.msra.mxu0 %v13256_v49  ;;  %17928 = vst [vmem:[#allocation61_spill] sm:$0xff] %v16151_v24  ;;  %v8988_v53 = vrot.slane %v8879_v30, 5  ;;  %v13259_v24 = vld [vmem:[#allocation8 + $0x328] ss:$16 sps:$4 sm:$0xff]  }
 0x3bd   : > { %8623 = vmatmul.mubr.bf16.gmra.mxu1 %v16144_v19  ;;  %10002 = vmatprep.subr.bf16.mxu0 %v13264_v42  ;;  %v16159_v49 = vpop.f32.mrf.mxu0  ;;  %v8883_v42 = vld [vmem:[#allocation2 + $0xe0] sm:$0xff] }
 0x3be   : > { %8632 = vmatprep.mubr.bf16.mxu1 %v16148_v61  ;;  %8781 = vmatpush2.bf16.msra.mxu1 %v13244_v25  ;;  %17929 = vst [vmem:[#allocation63_spill] sm:$0xff] %v16159_v49  ;;  %v13276_v25 = vld [vmem:[#allocation8 + $0x8ec] ss:$16 sps:$4 sm:$0xff]   ;;  %v11839_v49 = vrot.slane %v8875_v16, 9  ;;  %v8995_v58 = vrot.slane %v8883_v42, 5 }
 0x3bf   : > { %8782 = vmatprep.subr.bf16.mxu1 %v13255_v20  ;;  %8746 = vmatmul.mubr.bf16.gmra.mxu0 %v16031_v41  ;;  %v16162_v52 = vpop.f32.mrf.mxu0  ;;  %v16164_v20 = vld [vmem:[#allocation2 + $0x118] ss:$-24 sps:$4 sm:$0xff]   ;;  %v13267_v41 = vld [vmem:[#allocation8 + $0x30c] ss:$16 sps:$4 sm:$0xff]  }
 0x3c0   : > { %10003 = vmatpush2.bf16.msra.mxu0 %v13262_v10  ;;  %10006 = vmatprep.mubr.bf16.mxu0 %v16156_v9  ;;  %17930 = vst [vmem:[#allocation64_spill] sm:$0xff] %v16162_v52  ;;  %v8989_v10 = vsel %vm14641_vm5, %v8987_v7, %v8988_v53  ;;  %v13265_v16 = vld [vmem:[#allocation8 + $0x308] ss:$16 sps:$4 sm:$0xff]   ;;  %v8885_v7 = vld [vmem:[#allocation2 + $0x140] sm:$0x11]  ;;  %v9001_v42 = vrot.slane %v8995_v58, 4 }
 0x3c1   : > { %10004 = vmatprep.subr.bf16.mxu0 %v13270_v6  ;;  %v16166_v36 = vpop.f32.mrf.mxu0  ;;  %v16171_v6 = vcombine.low %v8968_v22, %v8975_v5  ;;  %v13273_v5 = vld [vmem:[#allocation8 + $0xae4] ss:$16 sps:$4 sm:$0xff]   ;;  %v13288_v53 = vld [vmem:[#allocation8 + $0x8ac] ss:$16 sps:$4 sm:$0xff]  }
 0x3c2   : > { %8783 = vmatpush2.bf16.msra.mxu1 %v13253_v18  ;;  %17931 = vst [vmem:[#allocation28_spill] sm:$0xff] %v16166_v36  ;;  %v8982_v18 = vsel %vm14641_vm5, %v11839_v49, %v8981_v26  ;;  %v13280_v26 = vld [vmem:[#allocation8 + $0x8c8] ss:$16 sps:$4 sm:$0xff]  }
 0x3c3   : > { %8784 = vmatprep.subr.bf16.mxu1 %v13261_v14  ;;  %v16173_v30 = vpop.f32.mrf.mxu0  ;;  %v13282_v14 = vld [vmem:[#allocation8 + $0x8cc] ss:$16 sps:$4 sm:$0xff]   ;;  %v16178_v36 = vcombine.high %v8982_v18, %v8989_v10 }
 0x3c4   : > { %10005 = vmatpush2.bf16.msra.mxu0 %v13268_v63  ;;  %17932 = vst [vmem:[#allocation29_spill] sm:$0xff] %v16173_v30  ;;  %v16180_v63 = vpop.f32.mrf.mxu1  ;;  %v8889_v49 = vld [vmem:[#allocation2 + $0x58] sm:$0xff]  ;;  %v13271_v30 = vld [vmem:[#allocation8 + $0xae0] ss:$16 sps:$4 sm:$0xff]  }
 0x3c5   : > { %8633 = vmatmul.mubr.bf16.gmra.mxu1 %v16164_v20  ;;  %10200 = vmatprep.subr.bf16.mxu0 %v13276_v25  ;;  %v16183_v22 = vpop.f32.mrf.mxu0  ;;  %v9009_v33 = vrot.slane %v8889_v49, 5 }
 0x3c6   : > { %8785 = vmatpush2.bf16.msra.mxu1 %v13259_v24  ;;  %8788 = vmatprep.mubr.bf16.mxu1 %v16042_v54  ;;  %17933 = vst [vmem:[#allocation67_spill] sm:$0xff] %v16183_v22  ;;  %v8881_v24 = vld [vmem:[#allocation2 + $0x130] sm:$0xee]  ;;  %v16186_v54 = vpop.f32.mrf.mxu1 }
 0x3c7   : > { %8786 = vmatprep.subr.bf16.mxu1 %v13267_v41  ;;  %10007 = vmatmul.mubr.bf16.vlgmr.msra.gmra.mxu0 %v16171_v6  ;;  %v16188_v25 = vpop.f32.mrf.mxu0  ;;  %v9002_v41 = vrot.slane %v8885_v7, 5  ;;  %v13279_v22 = vld [vmem:[#allocation8 + $0xac4] ss:$16 sps:$4 sm:$0xff]   ;;  %v11841_v57 = vrot.slane %v8881_v24, 9 }
 0x3c8   : > { %10016 = vmatprep.mubr.bf16.mxu0 %v16178_v36  ;;  %10201 = vmatpush1.bf16.msra.mxu0 %v13274_v12  ;;  %17934 = vst [vmem:[#allocation31_spill] sm:$0xff] %v16188_v25  ;;  %v16190_v52 = vpop.f32.mrf.mxu1 }
 0x3c9   : > { %10202 = vmatprep.subr.bf16.mxu0 %v13282_v14  ;;  %v16192_v28 = vpop.f32.mrf.mxu0  ;;  %v9003_v12 = vsel %vm14641_vm5, %v9001_v42, %v9002_v41  ;;  %v16197_v14 = vcombine.low %v8982_v18, %v8989_v10  ;;  %v13277_v42 = vld [vmem:[#allocation8 + $0xac0] ss:$16 sps:$4 sm:$0xff]   ;;  %v9015_v18 = vrot.slane %v9009_v33, 4 }
 0x3ca   : > { %8787 = vmatpush2.bf16.msra.mxu1 %v13265_v16  ;;  %17935 = vst [vmem:[#allocation32_spill] sm:$0xff] %v16192_v28  ;;  %v16199_v7 = vpop.f32.mrf.mxu1  ;;  %v13294_v28 = vld [vmem:[#allocation8 + $0x88c] ss:$16 sps:$4 sm:$0xff]  }
 0x3cb   : > { %10087 = vmatprep.subr.bf16.mxu1 %v13273_v5  ;;  %v16201_v16 = vpop.f32.mrf.mxu0  ;;  %v8996_v5 = vsel %vm14641_vm5, %v11841_v57, %v8995_v58  ;;  %v13292_v57 = vld [vmem:[#allocation8 + $0x888] ss:$16 sps:$4 sm:$0xff]   ;;  %v8887_v58 = vld [vmem:[#allocation2 + $0xc0] sm:$0xee] }
 0x3cc   : > { %10203 = vmatpush1.bf16.msra.mxu0 %v13280_v26  ;;  %17936 = vst [vmem:[#allocation33_spill] sm:$0xff] %v16201_v16  ;;  %v16206_v24 = vcombine.high %v8996_v5, %v9003_v12  ;;  %v8891_v26 = vld [vmem:[#allocation2 + $0xb8] sm:$0x11]  ;;  %v11843_v48 = vrot.slane %v8887_v58, 9 }
 0x3cd   : > { %8789 = vmatmul.mubr.bf16.vlgmr.msra.gmra.mxu1 %v16056_v1  ;;  %10204 = vmatprep.subr.bf16.mxu0 %v13288_v53  ;;  %v13285_v1 = vld [vmem:[#allocation8 + $0xaa4] ss:$16 sps:$4 sm:$0xff]   ;;  %v16209_v10 = vpop.f32.mrf.mxu0  ;;  %v13300_v53 = vld [vmem:[#allocation8 + $0x86c] ss:$16 sps:$4 sm:$0xff]   ;;  %v9016_v41 = vrot.slane %v8891_v26, 5 }
 0x3ce   : > { %8798 = vmatprep.mubr.bf16.mxu1 %v16058_v2  ;;  %10088 = vmatpush1.bf16.msra.mxu1 %v13271_v30  ;;  %17937 = vst [vmem:[#allocation35_spill] sm:$0xff] %v16209_v10  ;;  %v16211_v49 = vpop.f32.mrf.mxu1  ;;  %v8895_v2 = vld [vmem:[#allocation2] sm:$0xff]  ;;  %v9010_v26 = vsel %vm14641_vm5, %v11843_v48, %v9009_v33  ;;  %v13304_v48 = vld [vmem:[#allocation8 + $0x848] ss:$16 sps:$4 sm:$0xff]  }
 0x3cf   : > { %10089 = vmatprep.subr.bf16.mxu1 %v13279_v22  ;;  %10017 = vmatmul.mubr.bf16.gmra.mxu0 %v16197_v14  ;;  %v16214_v30 = vpop.f32.mrf.mxu0  ;;  %v13283_v22 = vld [vmem:[#allocation8 + $0xaa0] ss:$16 sps:$4 sm:$0xff]   ;;  %v13291_v10 = vld [vmem:[#allocation8 + $0xa84] ss:$16 sps:$4 sm:$0xff]   ;;  %v9023_v13 = vrot.slane %v8895_v2, 5 }
 0x3d0   : > { %10026 = vmatprep.mubr.bf16.mxu0 %v16206_v24  ;;  %10205 = vmatpush1.bf16.msra.mxu0 %v13286_v27  ;;  %17938 = vst [vmem:[#allocation36_spill] sm:$0xff] %v16214_v30  ;;  %v16216_v16 = vpop.f32.mrf.mxu1  ;;  %v9017_v27 = vsel %vm14641_vm5, %v9015_v18, %v9016_v41  ;;  %v13298_v30 = vld [vmem:[#allocation8 + $0x868] ss:$16 sps:$4 sm:$0xff]   ;;  %v13289_v18 = vld [vmem:[#allocation8 + $0xa80] ss:$16 sps:$4 sm:$0xff]  }
 0x3d1   : > { %10206 = vmatprep.subr.bf16.mxu0 %v13294_v28  ;;  %v16218_v25 = vpop.f32.mrf.mxu0  ;;  %v16225_v28 = vcombine.low %v8996_v5, %v9003_v12  ;;  %v16234_v2 = vcombine.high %v9010_v26, %v9017_v27  ;;  %v9029_v5 = vrot.slane %v9023_v13, 4  ;;  %v8893_v33 = vld [vmem:[#allocation2 + $0x18] sm:$0xee] }
 0x3d2   : > { %10090 = vmatpush1.bf16.msra.mxu1 %v13277_v42  ;;  %17939 = vst [vmem:[#allocation37_spill] sm:$0xff] %v16218_v25  ;;  %v16222_v37 = vpop.f32.mrf.mxu1  ;;  %v11845_v44 = vrot.slane %v8893_v33, 9 }
 0x3d3   : > { %10091 = vmatprep.subr.bf16.mxu1 %v13285_v1  ;;  %v13306_v1 = vld [vmem:[#allocation8 + $0x84c] ss:$16 sps:$4 sm:$0xff]  }
 0x3d4   : > { %10207 = vmatpush1.bf16.msra.mxu0 %v13292_v57  ;;  %v16227_v42 = vpop.f32.mrf.mxu0  ;;  %v16232_v58 = vpop.f32.mrf.mxu1  ;;  %v8897_v57 = vld [vmem:[#allocation2 + $0x148] sm:$0x11] }
 0x3d5   : > { %8799 = vmatmul.mubr.bf16.gmra.mxu1 %v16070_v50  ;;  %17940 = vst [vmem:[#allocation40_spill] sm:$0xff] %v16227_v42  ;;  %10208 = vmatprep.subr.bf16.mxu0 %v13300_v53  ;;  %v13297_v50 = vld [vmem:[#allocation8 + $0xa64] ss:$16 sps:$4 sm:$0xff]   ;;  %v9030_v42 = vrot.slane %v8897_v57, 5 }
 0x3d6   : > { %8808 = vmatprep.mubr.bf16.mxu1 %v16072_v31  ;;  %10092 = vmatpush1.bf16.msra.mxu1 %v13283_v22  ;;  %v16237_v12 = vpop.f32.mrf.mxu0  ;;  %v8901_v31 = vld [vmem:[#allocation2 + $0xf0] sm:$0xff]  ;;  %v13312_v22 = vld [vmem:[#allocation8 + $0x82c] ss:$16 sps:$4 sm:$0xff]  }
 0x3d7   : > { %10093 = vmatprep.subr.bf16.mxu1 %v13291_v10  ;;  %10027 = vmatmul.mubr.bf16.gmra.mxu0 %v16225_v28  ;;  %17941 = vst [vmem:[#allocation41_spill] sm:$0xff] %v16237_v12  ;;  %v13295_v10 = vld [vmem:[#allocation8 + $0xa60] ss:$16 sps:$4 sm:$0xff]   ;;  %v13303_v12 = vld [vmem:[#allocation8 + $0xa44] ss:$16 sps:$4 sm:$0xff]   ;;  %v9037_v0 = vrot.slane %v8901_v31, 5 }
 0x3d8   : > { %10036 = vmatprep.mubr.bf16.mxu0 %v16234_v2  ;;  %10209 = vmatpush1.bf16.msra.mxu0 %v13298_v30  ;;  %v16242_v41 = vpop.f32.mrf.mxu0  ;;  %v9031_v30 = vsel %vm14641_vm5, %v9029_v5, %v9030_v42  ;;  %v13301_v42 = vld [vmem:[#allocation8 + $0xa40] ss:$16 sps:$4 sm:$0xff]  }
 0x3d9   : > { %v16240_v53 = vpop.f32.mrf.mxu1  ;;  %17942 = vst [vmem:[#allocation42_spill] sm:$0xff] %v16242_v41  ;;  %10210 = vmatprep.subr.bf16.mxu0 %v13306_v1  ;;  %v16251_v1 = vcombine.low %v9010_v26, %v9017_v27  ;;  %v13309_v27 = vld [vmem:[#allocation8 + $0xa24] ss:$16 sps:$4 sm:$0xff]   ;;  %v9043_v33 = vrot.slane %v9037_v0, 4 }
 0x3da   : > { %10094 = vmatpush1.bf16.msra.mxu1 %v13289_v18  ;;  %v16246_v40 = vpop.f32.mrf.mxu0  ;;  %v13315_v41 = vld [vmem:[#allocation8 + $0xa04] ss:$16 sps:$4 sm:$0xff]  }
 0x3db   : > { %10095 = vmatprep.subr.bf16.mxu1 %v13297_v50  ;;  %v16244_v25 = vpop.f32.mrf.mxu1  ;;  %17943 = vst [vmem:[#allocation44_spill] sm:$0xff] %v16246_v40  ;;  %17944 = vst [vmem:[#allocation45_spill] sm:$0xff] %v16251_v1  ;;  %v9024_v50 = vsel %vm14641_vm5, %v11845_v44, %v9023_v13  ;;  %v13318_v40 = vld [vmem:[#allocation8 + $0x80c] ss:$16 sps:$4 sm:$0xff]   ;;  %v13316_v44 = vld [vmem:[#allocation8 + $0x808] ss:$16 sps:$4 sm:$0xff]  }
 0x3dc   : > { %10211 = vmatpush1.bf16.msra.mxu0 %v13304_v48  ;;  %v16255_v18 = vpop.f32.mrf.mxu0  ;;  %v16260_v5 = vcombine.high %v9024_v50, %v9031_v30  ;;  %v8903_v48 = vld [vmem:[#allocation2 + $0x60] sm:$0x11]  ;;  %v8899_v13 = vld [vmem:[#allocation2 + $0x50] sm:$0xee] }
 0x3dd   : > { %8809 = vmatmul.mubr.bf16.gmra.mxu1 %v16082_v23  ;;  %v16253_v57 = vpop.f32.mrf.mxu1  ;;  %17945 = vst [vmem:[#allocation46_spill] sm:$0xff] %v16255_v18  ;;  %10212 = vmatprep.subr.bf16.mxu0 %v13312_v22  ;;  %v13324_v22 = vld [vmem:[#allocation8 + $0x9ec] ss:$16 sps:$4 sm:$0xff]  }
 0x3de   : > { %8818 = vmatprep.mubr.bf16.mxu1 %v16086_v15  ;;  %10096 = vmatpush1.bf16.msra.mxu1 %v13295_v10  ;;  %17946 = vst [vmem:[#allocation48_spill] sm:$0xff] %v16260_v5  ;;  %v16265_v26 = vpop.f32.mrf.mxu0  ;;  %v8907_v15 = vld [vmem:[#allocation2 + $0x150] sm:$0xff]  ;;  %v9044_v10 = vrot.slane %v8903_v48, 5 }
 0x3df   : > { %10097 = vmatprep.subr.bf16.mxu1 %v13303_v12  ;;  %v16262_v23 = vpop.f32.mrf.mxu1  ;;  %10037 = vmatmul.mubr.bf16.gmra.mxu0 %v16251_v1  ;;  %17947 = vst [vmem:[#allocation49_spill] sm:$0xff] %v16265_v26  ;;  %v13307_v12 = vld [vmem:[#allocation8 + $0xa20] ss:$16 sps:$4 sm:$0xff]   ;;  %v11847_v26 = vrot.slane %v8899_v13, 9  ;;  %v13322_v1 = vld [vmem:[#allocation8 + $0x9e8] ss:$16 sps:$4 sm:$0xff]  }
 0x3e0   : > { %10046 = vmatprep.mubr.bf16.mxu0 %v16260_v5  ;;  %10213 = vmatpush1.bf16.msra.mxu0 %v13310_v34  ;;  %v16268_v31 = vpop.f32.mrf.mxu0  ;;  %v9045_v34 = vsel %vm14641_vm5, %v9043_v33, %v9044_v10  ;;  %v9051_v5 = vrot.slane %v8907_v15, 5  ;;  %v13313_v33 = vld [vmem:[#allocation8 + $0xa00] ss:$16 sps:$4 sm:$0xff]  }
 0x3e1   : > { %17948 = vst [vmem:[#allocation50_spill] sm:$0xff] %v16268_v31  ;;  %10214 = vmatprep.subr.bf16.mxu0 %v13318_v40  ;;  %v16270_v18 = vpop.f32.mrf.mxu1  ;;  %v16277_v40 = vcombine.low %v9024_v50, %v9031_v30  ;;  %v13327_v31 = vld [vmem:[#allocation8 + $0xbc4] ss:$16 sps:$4 sm:$0xff]  }
 0x3e2   : > { %10098 = vmatpush1.bf16.msra.mxu1 %v13301_v42  ;;  %v16272_v59 = vpop.f32.mrf.mxu0  ;;  %v9057_v50 = vrot.slane %v9051_v5, 4 }
 0x3e3   : > { %10099 = vmatprep.subr.bf16.mxu1 %v13309_v27  ;;  %17949 = vst [vmem:[#allocation52_spill] sm:$0xff] %v16272_v59  ;;  %17950 = vst [vmem:[#allocation53_spill] sm:$0xff] %v16277_v40  ;;  %v16279_v48 = vpop.f32.mrf.mxu1  ;;  %v9038_v27 = vsel %vm14641_vm5, %v11847_v26, %v9037_v0  ;;  %v13330_v59 = vld [vmem:[#allocation8 + $0x9cc] ss:$16 sps:$4 sm:$0xff]   ;;  %v13328_v0 = vld [vmem:[#allocation8 + $0x9c8] ss:$16 sps:$4 sm:$0xff]  }
 0x3e4   : > { %10215 = vmatpush1.bf16.msra.mxu0 %v13316_v44  ;;  %v16281_v42 = vpop.f32.mrf.mxu0  ;;  %v16286_v13 = vcombine.high %v9038_v27, %v9045_v34  ;;  %v8909_v44 = vld [vmem:[#allocation2 + $0x80] sm:$0x11]  ;;  %v8905_v26 = vld [vmem:[#allocation2 + $0xd8] sm:$0xee] }
 0x3e5   : > { %8819 = vmatmul.mubr.bf16.gmra.mxu1 %v16098_v32  ;;  %17951 = vst [vmem:[#allocation54_spill] sm:$0xff] %v16281_v42  ;;  %10216 = vmatprep.subr.bf16.mxu0 %v13324_v22  ;;  %v16288_v15 = vpop.f32.mrf.mxu1  ;;  %v13321_v32 = vld [vmem:[#allocation8 + $0xbe4] ss:$16 sps:$4 sm:$0xff]   ;;  %v9058_v42 = vrot.slane %v8909_v44, 5 }
 0x3e6   : > { %8828 = vmatprep.mubr.bf16.mxu1 %v16102_v3  ;;  %10100 = vmatpush1.bf16.msra.mxu1 %v13307_v12  ;;  %17952 = vst [vmem:[#allocation58_spill] sm:$0xff] %v16286_v13  ;;  %17953 = vst [vmem:[#allocation60_spill] sm:$0xff] %v16288_v15  ;;  %v16291_v30 = vpop.f32.mrf.mxu0  ;;  %v8913_v3 = vld [vmem:[#allocation2 + $0x108] sm:$0xff] }
 0x3e7   : > { %10101 = vmatprep.subr.bf16.mxu1 %v13315_v41  ;;  %10047 = vmatmul.mubr.bf16.gmra.mxu0 %v16277_v40  ;;  %17954 = vst [vmem:[#allocation62_spill] sm:$0xff] %v16291_v30  ;;  %v16294_v22 = vpop.f32.mrf.mxu1  ;;  %v13336_v12 = vld [vmem:[#allocation8 + $0x9ac] ss:$16 sps:$4 sm:$0xff]   ;;  %v13319_v41 = vld [vmem:[#allocation8 + $0xbe0] ss:$16 sps:$4 sm:$0xff]   ;;  %v11849_v30 = vrot.slane %v8905_v26, 9 }
 0x3e8   : > { %10056 = vmatprep.mubr.bf16.mxu0 %v16286_v13  ;;  %10217 = vmatpush2.bf16.msra.mxu0 %v13322_v1  ;;  %17955 = vst [vmem:[#allocation43_spill] sm:$0xff] %v16294_v22  ;;  %v16296_v10 = vpop.f32.mrf.mxu0  ;;  %v9059_v1 = vsel %vm14641_vm5, %v9057_v50, %v9058_v42  ;;  %v9065_v13 = vrot.slane %v8913_v3, 5  ;;  %v13334_v22 = vld [vmem:[#allocation8 + $0x9a8] ss:$16 sps:$4 sm:$0xff]   ;;  %v13325_v50 = vld [vmem:[#allocation8 + $0xbc0] ss:$16 sps:$4 sm:$0xff]  }
 0x3e9   : > { %17956 = vst [vmem:[#allocation68_spill] sm:$0xff] %v16296_v10  ;;  %10218 = vmatprep.subr.bf16.mxu0 %v13330_v59  ;;  %v16305_v59 = vcombine.low %v9038_v27, %v9045_v34 }
 0x3ea   : > { %10102 = vmatpush1.bf16.msra.mxu1 %v13313_v33  ;;  %v16298_v40 = vpop.f32.mrf.mxu0  ;;  %v9052_v33 = vsel %vm14641_vm5, %v11849_v30, %v9051_v5  ;;  %v9071_v27 = vrot.slane %v9065_v13, 4  ;;  %v8911_v5 = vld [vmem:[#allocation2 + $0xf8] sm:$0xee] }
 0x3eb   : > { %10103 = vmatprep.subr.bf16.mxu1 %v13321_v32  ;;  %17957 = vst [vmem:[#allocation39_spill] sm:$0xff] %v16298_v40  ;;  %v16302_v15 = vpop.f32.mrf.mxu1  ;;  %17958 = vst [vmem:[#allocation47_spill] sm:$0xff] %v16305_v59  ;;  %v13342_v32 = vld [vmem:[#allocation8 + $0x98c] ss:$16 sps:$4 sm:$0xff]   ;;  %v16314_v26 = vcombine.high %v9052_v33, %v9059_v1  ;;  %v13339_v40 = vld [vmem:[#allocation8 + $0xb84] ss:$16 sps:$4 sm:$0xff]  }
 0x3ec   : > { %10219 = vmatpush2.bf16.msra.mxu0 %v13328_v0  ;;  %v16307_v44 = vpop.f32.mrf.mxu0  ;;  %v8915_v0 = vld [vmem:[#allocation2 + $0x170] sm:$0x11]  ;;  %v11851_v10 = vrot.slane %v8911_v5, 9 }
 0x3ed   : > { %8829 = vmatmul.mubr.bf16.gmra.mxu1 %v16112_v43  ;;  %17959 = vst [vmem:[#allocation38_spill] sm:$0xff] %v16307_v44  ;;  %10220 = vmatprep.subr.bf16.mxu0 %v13336_v12  ;;  %v16312_v42 = vpop.f32.mrf.mxu1  ;;  %17960 = vst [vmem:[#allocation72_spill] sm:$0xff] %v16314_v26  ;;  %v13333_v43 = vld [vmem:[#allocation8 + $0xba4] ss:$16 sps:$4 sm:$0xff]   ;;  %v13348_v12 = vld [vmem:[#allocation8 + $0x96c] ss:$16 sps:$4 sm:$0xff]  }
 0x3ee   : > { %8838 = vmatprep.mubr.bf16.mxu1 %v16116_v17  ;;  %10104 = vmatpush2.bf16.msra.mxu1 %v13319_v41  ;;  %v16317_v34 = vpop.f32.mrf.mxu0  ;;  %v13340_v17 = vld [vmem:[#allocation8 + $0x988] ss:$16 sps:$4 sm:$0xff]   ;;  %v9072_v41 = vrot.slane %v8915_v0, 5  ;;  %v13331_v44 = vld [vmem:[#allocation8 + $0xba0] ss:$16 sps:$4 sm:$0xff]   ;;  %v9066_v0 = vsel %vm14641_vm5, %v11851_v10, %v9065_v13 }
 0x3ef   : > { %10105 = vmatprep.subr.bf16.mxu1 %v13327_v31  ;;  %10057 = vmatmul.mubr.bf16.gmra.mxu0 %v16305_v59  ;;  %17961 = vst [vmem:[#allocation73_spill] sm:$0xff] %v16317_v34  ;;  %v16319_v3 = vpop.f32.mrf.mxu1  ;;  %v13337_v5 = vld [vmem:[#allocation8 + $0xb80] ss:$16 sps:$4 sm:$0xff]   ;;  %v13352_v13 = vld [vmem:[#allocation8 + $0x948] ss:$16 sps:$4 sm:$0xff]  }
 0x3f0   : > { %10066 = vmatprep.mubr.bf16.mxu0 %v16314_v26  ;;  %10221 = vmatpush2.bf16.msra.mxu0 %v13334_v22  ;;  %v16322_v30 = vpop.f32.mrf.mxu0  ;;  %v9073_v26 = vsel %vm14641_vm5, %v9071_v27, %v9072_v41  ;;  %v13346_v22 = vld [vmem:[#allocation8 + $0x968] ss:$16 sps:$4 sm:$0xff]  }
 0x3f1   : > { %17962 = vst [vmem:[#allocation74_spill] sm:$0xff] %v16322_v30  ;;  %10222 = vmatprep.subr.bf16.mxu0 %v13342_v32  ;;  %v16324_v31 = vpop.f32.mrf.mxu1  ;;  %v16333_v32 = vcombine.low %v9052_v33, %v9059_v1  ;;  %v16340_v27 = vcombine.high %v9066_v0, %v9073_v26  ;;  %v8874_v30 = vld [vmem:[#allocation2 + $0xa0] sm:$0x11] }
 0x3f2   : > { %10106 = vmatpush2.bf16.msra.mxu1 %v13325_v50  ;;  %v16326_v34 = vpop.f32.mrf.mxu0 }
 0x3f3   : > { %10107 = vmatprep.subr.bf16.mxu1 %v13333_v43  ;;  %17963 = vst [vmem:[#allocation75_spill] sm:$0xff] %v16326_v34  ;;  %17964 = vst [vmem:[#allocation76_spill] sm:$0xff] %v16333_v32  ;;  %v13354_v43 = vld [vmem:[#allocation8 + $0x94c] ss:$16 sps:$4 sm:$0xff]  }
 0x3f4   : > { %10223 = vmatpush2.bf16.msra.mxu0 %v13340_v17  ;;  %v16335_v50 = vpop.f32.mrf.mxu0  ;;  %17966 = vst [vmem:[#allocation78_spill] sm:$0xff] %v16340_v27  ;;  %v8872_v17 = vld [vmem:[#allocation2 + $0xe8] sm:$0xff] }
 0x3f5   : > { %v16330_v59 = vpop.f32.mrf.mxu1  ;;  %8839 = vmatmul.mubr.bf16.gmra.mxu1 %v16128_v56  ;;  %17965 = vst [vmem:[#allocation77_spill] sm:$0xff] %v16335_v50  ;;  %10224 = vmatprep.subr.bf16.mxu0 %v13348_v12  ;;  %v13345_v56 = vld [vmem:[#allocation8 + $0xb64] ss:$16 sps:$4 sm:$0xff]   ;;  %v8971_v33 = vrot.slane %v8872_v17, 5  ;;  %v13343_v12 = vld [vmem:[#allocation8 + $0xb60] ss:$16 sps:$4 sm:$0xff]  }
 0x3f6   : > { %8848 = vmatprep.mubr.bf16.mxu1 %v16130_v21  ;;  %10108 = vmatpush2.bf16.msra.mxu1 %v13331_v44  ;;  %v16345_v1 = vpop.f32.mrf.mxu0  ;;  %v13360_v44 = vld [vmem:[#allocation8 + $0x92c] ss:$16 sps:$4 sm:$0xff]  }
 0x3f7   : > { %v16342_v41 = vpop.f32.mrf.mxu1  ;;  %10109 = vmatprep.subr.bf16.mxu1 %v13339_v40  ;;  %10067 = vmatmul.mubr.bf16.gmra.mxu0 %v16333_v32  ;;  %17967 = vst [vmem:[#allocation79_spill] sm:$0xff] %v16345_v1  ;;  %v13351_v40 = vld [vmem:[#allocation8 + $0xb44] ss:$16 sps:$4 sm:$0xff]   ;;  %v13358_v1 = vld [vmem:[#allocation8 + $0x928] ss:$16 sps:$4 sm:$0xff]  }
 0x3f8   : > { %10076 = vmatprep.mubr.bf16.mxu0 %v16340_v27  ;;  %10225 = vmatpush2.bf16.msra.mxu0 %v13346_v22  ;;  %v16350_v21 = vpop.f32.mrf.mxu0  ;;  %v16359_v27 = vcombine.low %v9066_v0, %v9073_v26  ;;  %v13366_v17 = vld [vmem:[#allocation8 + $0x90c] ss:$16 sps:$4 sm:$0xff]   ;;  %v13357_v32 = vld [vmem:[#allocation8 + $0xb24] ss:$16 sps:$4 sm:$0xff]   ;;  %v13364_v0 = vld [vmem:[#allocation8 + $0x908] ss:$16 sps:$4 sm:$0xff]  }
 0x3f9   : > { %v16348_v10 = vpop.f32.mrf.mxu1  ;;  %17968 = vst [vmem:[#allocation80_spill] sm:$0xff] %v16350_v21  ;;  %10226 = vmatprep.subr.bf16.mxu0 %v13354_v43  ;;  %v8870_v21 = vld [vmem:[#allocation2 + $0x110] sm:$0xee] }
 0x3fa   : > { %10110 = vmatpush2.bf16.msra.mxu1 %v13337_v5  ;;  %v16354_v34 = vpop.f32.mrf.mxu0  ;;  %17970 = vst [vmem:[#allocation82_spill] sm:$0xff] %v16359_v27  ;;  %v8976_v5 = vrot.slane %v8971_v33, 4 }
 0x3fb   : > { %v16352_v50 = vpop.f32.mrf.mxu1  ;;  %10111 = vmatprep.subr.bf16.mxu1 %v13345_v56  ;;  %17969 = vst [vmem:[#allocation81_spill] sm:$0xff] %v16354_v34  ;;  %v13349_v56 = vld [vmem:[#allocation8 + $0xb40] ss:$16 sps:$4 sm:$0xff]   ;;  %v8878_v34 = vld [vmem:[#allocation2 + $0x98] sm:$0xff] }
 0x3fc   : > { %10227 = vmatpush2.bf16.msra.mxu0 %v13352_v13  ;;  %v16361_v43 = vpop.f32.mrf.mxu0 }
 0x3fd   : > { %v16356_v22 = vpop.f32.mrf.mxu1  ;;  %8849 = vmatmul.mubr.bf16.gmra.mxu1 %v16144_v19  ;;  %17971 = vst [vmem:[#allocation83_spill] sm:$0xff] %v16361_v43  ;;  %10228 = vmatprep.subr.bf16.mxu0 %v13360_v44  ;;  %v8977_v19 = vrot.slane %v8874_v30, 5 }
 0x3fe   : > { %8858 = vmatprep.mubr.bf16.mxu1 %v16148_v61  ;;  %10112 = vmatpush2.bf16.msra.mxu1 %v13343_v12  ;;  %v16367_v26 = vpop.f32.mrf.mxu0  ;;  %v11838_v61 = vrot.slane %v8870_v21, 9  ;;  %v8880_v21 = vld [vmem:[#allocation2 + $0x70] sm:$0x11] }
 0x3ff   : > { %v16364_v13 = vpop.f32.mrf.mxu1  ;;  %10113 = vmatprep.subr.bf16.mxu1 %v13351_v40  ;;  %10077 = vmatmul.mubr.bf16.gmra.mxu0 %v16359_v27  ;;  %17973 = vst [vmem:[#allocation85_spill] sm:$0xff] %v16367_v26  ;;  %v8978_v12 = vsel %vm14641_vm5, %v8976_v5, %v8977_v19  ;;  %v8985_v40 = vrot.slane %v8878_v34, 5  ;;  %v13355_v27 = vld [vmem:[#allocation8 + $0xb20] ss:$16 sps:$4 sm:$0xff]  }
 0x400   : > { %17972 = vst [vmem:[#allocation84_spill] sm:$0xff] %v16364_v13  ;;  %10229 = vmatpush2.bf16.msra.mxu0 %v13358_v1  ;;  %10232 = vmatprep.mubr.bf16.mxu0 %v16156_v9  ;;  %v16374_v43 = vpop.f32.mrf.mxu0  ;;  %v8972_v30 = vsel %vm14641_vm5, %v11838_v61, %v8971_v33  ;;  %v13363_v9 = vld [vmem:[#allocation8 + $0xb04] ss:$16 sps:$4 sm:$0xff]   ;;  %v8876_v33 = vld [vmem:[#allocation2 + $0xc8] sm:$0xee] }
 0x401   : > { %v16370_v44 = vpop.f32.mrf.mxu1  ;;  %17974 = vst [vmem:[#allocation86_spill] sm:$0xff] %v16374_v43  ;;  %10230 = vmatprep.subr.bf16.mxu0 %v13366_v17  ;;  %v16382_v26 = vcombine.high %v8972_v30, %v8978_v12  ;;  %v8990_v34 = vrot.slane %v8985_v40, 4  ;;  %v7313_v17 = vadd.f32 %v16180_v63, %v16028_v38  ;;  %v13369_v61 = vld [vmem:[#allocation8 + $0xaec] ss:$16 sps:$4 sm:$0xff]   ;;  %v11840_v63 = vrot.slane %v8876_v33, 9 }
 0x402   : > { %10114 = vmatpush2.bf16.msra.mxu1 %v13349_v56  ;;  %v16380_v1 = vpop.f32.mrf.mxu0  ;;  %v16390_v56 = vld [vmem:[#allocation2 + $0x38] sm:$0xff] }
 0x403   : > { %v16376_v13 = vpop.f32.mrf.mxu1  ;;  %10115 = vmatprep.subr.bf16.mxu1 %v13357_v32  ;;  %17975 = vst [vmem:[#allocation87_spill] sm:$0xff] %v16380_v1  ;;  %17976 = vst [vmem:[#allocation88_spill] sm:$0xff] %v16382_v26  ;;  %v13361_v32 = vld [vmem:[#allocation8 + $0xb00] ss:$16 sps:$4 sm:$0xff]   ;;  %v8991_v1 = vrot.slane %v8880_v21, 5 }
 0x404   : > { %10231 = vmatpush2.bf16.msra.mxu0 %v13364_v0  ;;  %v13367_v21 = vld [vmem:[#allocation8 + $0xae8] ss:$16 sps:$4 sm:$0xff]  }
 0x405   : > { %v16384_v5 = vpop.f32.mrf.mxu1  ;;  %8859 = vmatmul.mubr.bf16.gmra.mxu1 %v16164_v20  ;;  %v7315_v20 = vadd.f32 %v16186_v54, %v16033_v45  ;;  %v16409_v45 = vcombine.low %v8972_v30, %v8978_v12 }
 0x406   : > { %10116 = vmatpush2.bf16.msra.mxu1 %v13355_v27  ;;  %10119 = vmatprep.mubr.bf16.mxu1 %v16382_v26  ;;  %v8992_v27 = vsel %vm14641_vm5, %v8990_v34, %v8991_v1  ;;  %v13372_v1 = vld [vmem:[#allocation8 + $0xacc] ss:$16 sps:$4 sm:$0xff]   ;;  %v7319_v34 = vadd.f32 %v16199_v7, %v16040_v29 }
 0x407   : > { %v16392_v19 = vpop.f32.mrf.mxu1  ;;  %10117 = vmatprep.subr.bf16.mxu1 %v13363_v9  ;;  %v8451_v0 = vpop.f32.mrf.mxu0  ;;  %10233 = vmatmul.mubr.bf16.vlgmr.msra.gmra.mxu0 %v16171_v6  ;;  %v8999_v9 = vrot.slane %v16390_v56, 5  ;;  %v7317_v6 = vadd.f32 %v16190_v52, %v16037_v55  ;;  %v8886_v52 = vld [vmem:[#allocation2 + $0x88] sm:$0x11]  ;;  %v8882_v29 = vld [vmem:[#allocation2 + $0x78] sm:$0xee] }
 0x408   : > { %17977 = vst [vmem:[#allocation89_spill] sm:$0xff] %v16392_v19  ;;  %v16397_v43 = vadd.f32 %v8451_v0, %v7313_v17  ;;  %10242 = vmatprep.mubr.bf16.mxu0 %v16178_v36  ;;  %v8986_v36 = vsel %vm14641_vm5, %v11840_v63, %v8985_v40  ;;  %v13370_v40 = vld [vmem:[#allocation8 + $0xac8] ss:$16 sps:$4 sm:$0xff]   ;;  %v9005_v63 = vrot.slane %v8886_v52, 5 }
 0x409   : > { %v16400_v38 = vpop.f32.mrf.mxu1  ;;  %v8453_v26 = vpop.f32.mrf.mxu0  ;;  %v16417_v33 = vcombine.high %v8986_v36, %v8992_v27  ;;  %v9004_v30 = vrot.slane %v8999_v9, 4  ;;  %v16429_v7 = vld [vmem:[#allocation2 + $0x8] sm:$0xff] }
 0x40a   : > { %10118 = vmatpush2.bf16.msra.mxu1 %v13361_v32  ;;  %v16407_v19 = vadd.f32 %v8453_v26, %v7315_v20  ;;  %v7323_v32 = vadd.f32 %v16211_v49, %v16044_v39  ;;  %v13375_v20 = vld [vmem:[#allocation8 + $0xaac] ss:$16 sps:$4 sm:$0xff]   ;;  %v7325_v39 = vadd.f32 %v16216_v16, %v16048_v46  ;;  %v13373_v52 = vld [vmem:[#allocation8 + $0xaa8] ss:$16 sps:$4 sm:$0xff]   ;;  %v16448_v46 = vcombine.low %v8986_v36, %v8992_v27 }
 0x40b   : > { %v16411_v54 = vpop.f32.mrf.mxu1  ;;  %10313 = vmatprep.subr.bf16.mxu1 %v13369_v61  ;;  %v8455_v17 = vpop.f32.mrf.mxu0 }
 0x40c   : > { %v16419_v55 = vadd.f32 %v8455_v17, %v7317_v6  ;;  %v9006_v17 = vsel %vm14641_vm5, %v9004_v30, %v9005_v63  ;;  %v13378_v30 = vld [vmem:[#allocation8 + $0xa8c] ss:$16 sps:$4 sm:$0xff]  }
 0x40d   : > { %v16421_v26 = vpop.f32.mrf.mxu1  ;;  %10120 = vmatmul.mubr.bf16.vlgmr.msra.gmra.mxu1 %v16409_v45  ;;  %v8457_v12 = vpop.f32.mrf.mxu0 }
 0x40e   : > { %10129 = vmatprep.mubr.bf16.mxu1 %v16417_v33  ;;  %10314 = vmatpush1.bf16.msra.mxu1 %v13367_v21  ;;  %v16427_v56 = vadd.f32 %v8457_v12, %v7319_v34  ;;  %v11842_v21 = vrot.slane %v8882_v29, 9  ;;  %v7329_v29 = vadd.f32 %v16232_v58, %v16054_v35  ;;  %v8888_v35 = vld [vmem:[#allocation2 + $0x168] sm:$0xee]  ;;  %v16468_v58 = vld [vmem:[#allocation2 + $0x158] sm:$0xff] }
 0x40f   : > { %v16431_v0 = vpop.f32.mrf.mxu1  ;;  %10315 = vmatprep.subr.bf16.mxu1 %v13372_v1  ;;  %v8461_v61 = vpop.f32.mrf.mxu0  ;;  %10243 = vmatmul.mubr.bf16.gmra.mxu0 %v16197_v14  ;;  %v9013_v1 = vrot.slane %v16429_v7, 5  ;;  %v7327_v14 = vadd.f32 %v16222_v37, %v16052_v11  ;;  %v8892_v37 = vld [vmem:[#allocation2 + $0x138] sm:$0x11] }
 0x410   : > { %v16436_v49 = vadd.f32 %v8461_v61, %v7323_v32  ;;  %10252 = vmatprep.mubr.bf16.mxu0 %v16206_v24  ;;  %v9000_v24 = vsel %vm14641_vm5, %v11842_v21, %v8999_v9  ;;  %v7333_v61 = vadd.f32 %v16240_v53, %v16061_v8  ;;  %v13376_v9 = vld [vmem:[#allocation8 + $0xa88] ss:$16 sps:$4 sm:$0xff]   ;;  %v13381_v21 = vld [vmem:[#allocation8 + $0xa6c] ss:$16 sps:$4 sm:$0xff]   ;;  %v7335_v8 = vadd.f32 %v16244_v25, %v16065_v4 }
 0x411   : > { %v16439_v6 = vpop.f32.mrf.mxu1  ;;  %v8463_v34 = vpop.f32.mrf.mxu0  ;;  %v16456_v7 = vcombine.high %v9000_v24, %v9006_v17  ;;  %v9018_v36 = vrot.slane %v9013_v1, 4  ;;  %v16487_v4 = vcombine.low %v9000_v24, %v9006_v17 }
 0x412   : > { %10316 = vmatpush1.bf16.msra.mxu1 %v13370_v40  ;;  %v16446_v12 = vadd.f32 %v8463_v34, %v7325_v39  ;;  %v9019_v34 = vrot.slane %v8892_v37, 5  ;;  %v13379_v37 = vld [vmem:[#allocation8 + $0xa68] ss:$16 sps:$4 sm:$0xff]  }
 0x413   : > { %v16450_v16 = vpop.f32.mrf.mxu1  ;;  %10317 = vmatprep.subr.bf16.mxu1 %v13375_v20  ;;  %v8465_v32 = vpop.f32.mrf.mxu0 }
 0x414   : > { %v16458_v11 = vadd.f32 %v8465_v32, %v7327_v14  ;;  %v9020_v32 = vsel %vm14641_vm5, %v9018_v36, %v9019_v34  ;;  %v13384_v36 = vld [vmem:[#allocation8 + $0xa4c] ss:$16 sps:$4 sm:$0xff]  }
 0x415   : > { %v16460_v40 = vpop.f32.mrf.mxu1  ;;  %10130 = vmatmul.mubr.bf16.gmra.mxu1 %v16448_v46  ;;  %v8467_v27 = vpop.f32.mrf.mxu0 }
 0x416   : > { %10139 = vmatprep.mubr.bf16.mxu1 %v16456_v7  ;;  %10318 = vmatpush1.bf16.msra.mxu1 %v13373_v52  ;;  %v16466_v20 = vadd.f32 %v8467_v27, %v7329_v29  ;;  %v11844_v52 = vrot.slane %v8888_v35, 9  ;;  %v7339_v35 = vadd.f32 %v16262_v23, %v16075_v62  ;;  %v8894_v62 = vld [vmem:[#allocation2 + $0x40] sm:$0xee]  ;;  %v16507_v23 = vld [vmem:[#allocation2 + $0x128] sm:$0xff] }
 0x417   : > { %v16470_v63 = vpop.f32.mrf.mxu1  ;;  %10319 = vmatprep.subr.bf16.mxu1 %v13378_v30  ;;  %v8471_v39 = vpop.f32.mrf.mxu0  ;;  %10253 = vmatmul.mubr.bf16.gmra.mxu0 %v16225_v28  ;;  %v9027_v30 = vrot.slane %v16468_v58, 5  ;;  %v7337_v28 = vadd.f32 %v16253_v57, %v16068_v47  ;;  %v8898_v57 = vld [vmem:[#allocation2 + $0x178] sm:$0x11] }
 0x418   : > { %v16475_v53 = vadd.f32 %v8471_v39, %v7333_v61  ;;  %10262 = vmatprep.mubr.bf16.mxu0 %v16234_v2  ;;  %v9014_v2 = vsel %vm14641_vm5, %v11844_v52, %v9013_v1  ;;  %v7343_v39 = vadd.f32 %v16270_v18, %v16080_v60  ;;  %v13382_v1 = vld [vmem:[#allocation8 + $0xa48] ss:$16 sps:$4 sm:$0xff]   ;;  %v17983_v52 = vld [vmem:[#allocation45_spill] sm:$0xff] }
 0x419   : > { %v16478_v14 = vpop.f32.mrf.mxu1  ;;  %v8473_v29 = vpop.f32.mrf.mxu0  ;;  %v16495_v58 = vcombine.high %v9014_v2, %v9020_v32  ;;  %v9032_v24 = vrot.slane %v9027_v30, 4 }
 0x41a   : > { %17978 = vst [vmem:[#allocation90_spill] sm:$0xff] %v16475_v53  ;;  %10320 = vmatpush1.bf16.msra.mxu1 %v13376_v9  ;;  %v16485_v27 = vadd.f32 %v8473_v29, %v7335_v8  ;;  %v13387_v29 = vld [vmem:[#allocation8 + $0xa2c] ss:$16 sps:$4 sm:$0xff]  }
 0x41b   : > { %v16489_v25 = vpop.f32.mrf.mxu1  ;;  %10321 = vmatprep.subr.bf16.mxu1 %v13381_v21  ;;  %v8475_v61 = vpop.f32.mrf.mxu0  ;;  %17980 = vst [vmem:[#allocation92_spill] sm:$0xff] %v16495_v58 }
 0x41c   : > { %17979 = vst [vmem:[#allocation91_spill] sm:$0xff] %v16485_v27  ;;  %v16497_v47 = vadd.f32 %v8475_v61, %v7337_v28  ;;  %v9033_v28 = vrot.slane %v8898_v57, 5  ;;  %v17984_v61 = vld [vmem:[#allocation51_spill] sm:$0xff]  ;;  %v17987_v27 = vld [vmem:[#allocation56_spill] sm:$0xff] }
 0x41d   : > { %v16499_v9 = vpop.f32.mrf.mxu1  ;;  %10140 = vmatmul.mubr.bf16.gmra.mxu1 %v16487_v4  ;;  %v8477_v17 = vpop.f32.mrf.mxu0  ;;  %v7345_v60 = vadd.f32 %v16279_v48, %v17984_v61  ;;  %v13385_v57 = vld [vmem:[#allocation8 + $0xa28] ss:$16 sps:$4 sm:$0xff]   ;;  %v16526_v48 = vcombine.low %v9014_v2, %v9020_v32  ;;  %v17992_v61 = vld [vmem:[#allocation43_spill] sm:$0xff] }
 0x41e   : > { %17981 = vst [vmem:[#allocation93_spill] sm:$0xff] %v16497_v47  ;;  %10149 = vmatprep.mubr.bf16.mxu1 %v16495_v58  ;;  %10322 = vmatpush1.bf16.msra.mxu1 %v13379_v37  ;;  %v16505_v21 = vadd.f32 %v8477_v17, %v7339_v35  ;;  %v17986_v37 = vld [vmem:[#allocation48_spill] sm:$0xff]  ;;  %v11846_v17 = vrot.slane %v8894_v62, 9 }
 0x41f   : > { %v16509_v34 = vpop.f32.mrf.mxu1  ;;  %10323 = vmatprep.subr.bf16.mxu1 %v13384_v36  ;;  %v8481_v8 = vpop.f32.mrf.mxu0  ;;  %10263 = vmatmul.mubr.bf16.gmra.mxu0 %v17983_v52  ;;  %v9041_v36 = vrot.slane %v16507_v23, 5  ;;  %v17988_v52 = vld [vmem:[#allocation60_spill] sm:$0xff]  ;;  %17990 = vst [vmem:[#allocation48_spill] sm:$0xff] %v16526_v48 }
 0x420   : > { %17982 = vst [vmem:[#allocation94_spill] sm:$0xff] %v16505_v21  ;;  %v16514_v18 = vadd.f32 %v8481_v8, %v7343_v39  ;;  %10272 = vmatprep.mubr.bf16.mxu0 %v17986_v37  ;;  %v9034_v21 = vsel %vm14641_vm5, %v9032_v24, %v9033_v28  ;;  %v7347_v58 = vadd.f32 %v17988_v52, %v17987_v27  ;;  %v13390_v24 = vld [vmem:[#allocation8 + $0xa0c] ss:$16 sps:$4 sm:$0xff]   ;;  %v17991_v28 = vld [vmem:[#allocation65_spill] sm:$0xff] }
 0x421   : > { %v16517_v35 = vpop.f32.mrf.mxu1  ;;  %v8483_v47 = vpop.f32.mrf.mxu0  ;;  %v9028_v62 = vsel %vm14641_vm5, %v11846_v17, %v9027_v30  ;;  %v7349_v23 = vadd.f32 %v17992_v61, %v17991_v28  ;;  %v9046_v2 = vrot.slane %v9041_v36, 4  ;;  %v13388_v30 = vld [vmem:[#allocation8 + $0xa08] ss:$16 sps:$4 sm:$0xff]   ;;  %v16546_v28 = vld [vmem:[#allocation2 + $0x90] sm:$0xff] }
 0x422   : > { %17985 = vst [vmem:[#allocation45_spill] sm:$0xff] %v16514_v18  ;;  %10324 = vmatpush1.bf16.msra.mxu1 %v13382_v1  ;;  %v16524_v53 = vadd.f32 %v8483_v47, %v7345_v60  ;;  %v16534_v37 = vcombine.high %v9028_v62, %v9034_v21  ;;  %v8904_v1 = vld [vmem:[#allocation2 + $0x28] sm:$0x11]  ;;  %v8900_v52 = vld [vmem:[#allocation2 + $0x48] sm:$0xee]  ;;  %v17998_v61 = vld [vmem:[#allocation53_spill] sm:$0xff] }
 0x423   : > { %v16528_v39 = vpop.f32.mrf.mxu1  ;;  %10325 = vmatprep.subr.bf16.mxu1 %v13387_v29  ;;  %v8485_v8 = vpop.f32.mrf.mxu0  ;;  %v17995_v29 = vld [vmem:[#allocation70_spill] sm:$0xff]  ;;  %v17999_v18 = vld [vmem:[#allocation71_spill] sm:$0xff] }
 0x424   : > { %17989 = vst [vmem:[#allocation51_spill] sm:$0xff] %v16524_v53  ;;  %17993 = vst [vmem:[#allocation56_spill] sm:$0xff] %v16534_v37  ;;  %v16536_v27 = vadd.f32 %v8485_v8, %v7347_v58  ;;  %v7353_v60 = vadd.f32 %v16302_v15, %v17995_v29  ;;  %v9047_v53 = vrot.slane %v8904_v1, 5  ;;  %v7355_v15 = vadd.f32 %v16312_v42, %v17999_v18  ;;  %v13391_v1 = vld [vmem:[#allocation8 + $0xbe8] ss:$16 sps:$4 sm:$0xff]  }
 0x425   : > { %v16538_v47 = vpop.f32.mrf.mxu1  ;;  %10150 = vmatmul.mubr.bf16.gmra.mxu1 %v16526_v48  ;;  %v8487_v32 = vpop.f32.mrf.mxu0  ;;  %v18002_v48 = vld [vmem:[#allocation22_spill] sm:$0xff]  ;;  %v16565_v42 = vcombine.low %v9028_v62, %v9034_v21 }
 0x426   : > { %17994 = vst [vmem:[#allocation60_spill] sm:$0xff] %v16536_v27  ;;  %10159 = vmatprep.mubr.bf16.mxu1 %v16534_v37  ;;  %10326 = vmatpush1.bf16.msra.mxu1 %v13385_v57  ;;  %v16544_v17 = vadd.f32 %v8487_v32, %v7349_v23  ;;  %v13393_v27 = vld [vmem:[#allocation8 + $0xbec] ss:$16 sps:$4 sm:$0xff]   ;;  %v11848_v32 = vrot.slane %v8900_v52, 9 }
 0x427   : > { %v16548_v58 = vpop.f32.mrf.mxu1  ;;  %10327 = vmatprep.subr.bf16.mxu1 %v13390_v24  ;;  %v8491_v8 = vpop.f32.mrf.mxu0  ;;  %10273 = vmatmul.mubr.bf16.gmra.mxu0 %v17998_v61  ;;  %v18001_v57 = vld [vmem:[#allocation58_spill] sm:$0xff]  ;;  %v9055_v24 = vrot.slane %v16546_v28, 5  ;;  %v7357_v61 = vadd.f32 %v16319_v3, %v18002_v48  ;;  %18004 = vst [vmem:[#allocation71_spill] sm:$0xff] %v16565_v42  ;;  %v8910_v48 = vld [vmem:[#allocation2 + $0x160] sm:$0x11] }
 0x428   : > { %17996 = vst [vmem:[#allocation65_spill] sm:$0xff] %v16544_v17  ;;  %17997 = vst [vmem:[#allocation43_spill] sm:$0xff] %v16548_v58  ;;  %v16553_v29 = vadd.f32 %v8491_v8, %v7353_v60  ;;  %10282 = vmatprep.mubr.bf16.mxu0 %v18001_v57  ;;  %v9048_v17 = vsel %vm14641_vm5, %v9046_v2, %v9047_v53  ;;  %v9042_v60 = vsel %vm14641_vm5, %v11848_v32, %v9041_v36  ;;  %v13396_v53 = vld [vmem:[#allocation8 + $0xbcc] ss:$16 sps:$4 sm:$0xff]   ;;  %v18005_v2 = vld [vmem:[#allocation23_spill] sm:$0xff] }
 0x429   : > { %v16556_v23 = vpop.f32.mrf.mxu1  ;;  %v8493_v37 = vpop.f32.mrf.mxu0  ;;  %v7359_v28 = vadd.f32 %v16324_v31, %v18005_v2  ;;  %v16573_v8 = vcombine.high %v9042_v60, %v9048_v17  ;;  %v9060_v62 = vrot.slane %v9055_v24, 4  ;;  %v13394_v36 = vld [vmem:[#allocation8 + $0xbc8] ss:$16 sps:$4 sm:$0xff]   ;;  %v8906_v31 = vld [vmem:[#allocation2 + $0x10] sm:$0xee]  ;;  %v8914_v57 = vld [vmem:[#allocation2 + $0x100] sm:$0xff] }
 0x42a   : > { %18000 = vst [vmem:[#allocation70_spill] sm:$0xff] %v16553_v29  ;;  %10328 = vmatpush1.bf16.msra.mxu1 %v13388_v30  ;;  %v16563_v58 = vadd.f32 %v8493_v37, %v7355_v15  ;;  %v13399_v2 = vld [vmem:[#allocation8 + $0xbac] ss:$16 sps:$4 sm:$0xff]  }
 0x42b   : > { %v16567_v18 = vpop.f32.mrf.mxu1  ;;  %10329 = vmatprep.subr.bf16.mxu1 %v13393_v27  ;;  %v8495_v52 = vpop.f32.mrf.mxu0  ;;  %18006 = vst [vmem:[#allocation58_spill] sm:$0xff] %v16573_v8  ;;  %v18008_v27 = vld [vmem:[#allocation21_spill] sm:$0xff] }
 0x42c   : > { %18003 = vst [vmem:[#allocation53_spill] sm:$0xff] %v16563_v58  ;;  %v16575_v3 = vadd.f32 %v8495_v52, %v7357_v61  ;;  %v7363_v30 = vadd.f32 %v16330_v59, %v18008_v27  ;;  %v18010_v52 = vld [vmem:[#allocation47_spill] sm:$0xff]  ;;  %v18013_v27 = vld [vmem:[#allocation72_spill] sm:$0xff] }
 0x42d   : > { %v16577_v37 = vpop.f32.mrf.mxu1  ;;  %10160 = vmatmul.mubr.bf16.gmra.mxu1 %v16565_v42  ;;  %v8497_v21 = vpop.f32.mrf.mxu0  ;;  %v18011_v58 = vld [vmem:[#allocation55_spill] sm:$0xff] }
 0x42e   : > { %18007 = vst [vmem:[#allocation22_spill] sm:$0xff] %v16575_v3  ;;  %10169 = vmatprep.mubr.bf16.mxu1 %v16573_v8  ;;  %10330 = vmatpush2.bf16.msra.mxu1 %v13391_v1  ;;  %v16583_v15 = vadd.f32 %v8497_v21, %v7359_v28  ;;  %v9061_v3 = vrot.slane %v8910_v48, 5  ;;  %v7365_v29 = vadd.f32 %v16342_v41, %v18011_v58  ;;  %v11850_v28 = vrot.slane %v8906_v31, 9  ;;  %v18014_v8 = vld [vmem:[#allocation57_spill] sm:$0xff]  ;;  %v13397_v48 = vld [vmem:[#allocation8 + $0xba8] ss:$16 sps:$4 sm:$0xff]  }
 0x42f   : > { %v16585_v32 = vpop.f32.mrf.mxu1  ;;  %10331 = vmatprep.subr.bf16.mxu1 %v13396_v53  ;;  %v8501_v61 = vpop.f32.mrf.mxu0  ;;  %10283 = vmatmul.mubr.bf16.gmra.mxu0 %v18010_v52  ;;  %v9069_v53 = vrot.slane %v8914_v57, 5  ;;  %v7367_v52 = vadd.f32 %v16348_v10, %v18014_v8  ;;  %v16601_v41 = vcombine.low %v9042_v60, %v9048_v17  ;;  %v8916_v8 = vld [vmem:[#allocation2 + $0xd0] sm:$0x11] }
 0x430   : > { %18009 = vst [vmem:[#allocation23_spill] sm:$0xff] %v16583_v15  ;;  %v16590_v59 = vadd.f32 %v8501_v61, %v7363_v30  ;;  %10292 = vmatprep.mubr.bf16.mxu0 %v18013_v27  ;;  %v9062_v21 = vsel %vm14641_vm5, %v9060_v62, %v9061_v3  ;;  %v9056_v30 = vsel %vm14641_vm5, %v11850_v28, %v9055_v24  ;;  %v13402_v61 = vld [vmem:[#allocation8 + $0xb8c] ss:$16 sps:$4 sm:$0xff]   ;;  %v13400_v24 = vld [vmem:[#allocation8 + $0xb88] ss:$16 sps:$4 sm:$0xff]  }
 0x431   : > { %v16593_v1 = vpop.f32.mrf.mxu1  ;;  %v8503_v15 = vpop.f32.mrf.mxu0  ;;  %18016 = vst [vmem:[#allocation55_spill] sm:$0xff] %v16601_v41  ;;  %v18017_v3 = vld [vmem:[#allocation24_spill] sm:$0xff]  ;;  %v16609_v57 = vcombine.high %v9056_v30, %v9062_v21  ;;  %v9074_v60 = vrot.slane %v9069_v53, 4 }
 0x432   : > { %18012 = vst [vmem:[#allocation21_spill] sm:$0xff] %v16590_v59  ;;  %10332 = vmatpush2.bf16.msra.mxu1 %v13394_v36  ;;  %v16599_v42 = vadd.f32 %v8503_v15, %v7365_v29  ;;  %v7369_v62 = vadd.f32 %v16352_v50, %v18017_v3  ;;  %v18020_v36 = vld [vmem:[#allocation25_spill] sm:$0xff]  ;;  %v8912_v50 = vld [vmem:[#allocation2 + $0x118] sm:$0xee]  ;;  %v9075_v3 = vrot.slane %v8916_v8, 5 }
 0x433   : > { %v16603_v58 = vpop.f32.mrf.mxu1  ;;  %10333 = vmatprep.subr.bf16.mxu1 %v13399_v2  ;;  %v8505_v31 = vpop.f32.mrf.mxu0  ;;  %18018 = vst [vmem:[#allocation72_spill] sm:$0xff] %v16609_v57  ;;  %v7373_v15 = vadd.f32 %v16356_v22, %v18020_v36  ;;  %v18025_v22 = vld [vmem:[#allocation78_spill] sm:$0xff] }
 0x434   : > { %18015 = vst [vmem:[#allocation47_spill] sm:$0xff] %v16599_v42  ;;  %v16611_v10 = vadd.f32 %v8505_v31, %v7367_v52  ;;  %v18022_v52 = vld [vmem:[#allocation76_spill] sm:$0xff] }
 0x435   : > { %v16613_v29 = vpop.f32.mrf.mxu1  ;;  %10170 = vmatmul.mubr.bf16.gmra.mxu1 %v16601_v41  ;;  %v8507_v17 = vpop.f32.mrf.mxu0  ;;  %v13405_v31 = vld [vmem:[#allocation8 + $0xb6c] ss:$16 sps:$4 sm:$0xff]  }
 0x436   : > { %18019 = vst [vmem:[#allocation57_spill] sm:$0xff] %v16611_v10  ;;  %10179 = vmatprep.mubr.bf16.mxu1 %v16609_v57  ;;  %10334 = vmatpush2.bf16.msra.mxu1 %v13397_v48  ;;  %v16619_v2 = vadd.f32 %v8507_v17, %v7369_v62  ;;  %v18023_v10 = vld [vmem:[#allocation26_spill] sm:$0xff]  ;;  %v18024_v42 = vld [vmem:[#allocation84_spill] sm:$0xff]  ;;  %v11852_v62 = vrot.slane %v8912_v50, 9  ;;  %v9076_v17 = vsel %vm14641_vm5, %v9074_v60, %v9075_v3 }
 0x437   : > { %v16621_v27 = vpop.f32.mrf.mxu1  ;;  %10335 = vmatprep.subr.bf16.mxu1 %v13402_v61  ;;  %v8511_v28 = vpop.f32.mrf.mxu0  ;;  %10293 = vmatmul.mubr.bf16.gmra.mxu0 %v18022_v52  ;;  %v7375_v59 = vadd.f32 %v18024_v42, %v18023_v10  ;;  %v18026_v61 = vld [vmem:[#allocation59_spill] sm:$0xff]  ;;  %v13403_v52 = vld [vmem:[#allocation8 + $0xb68] ss:$16 sps:$4 sm:$0xff]   ;;  %v16637_v57 = vcombine.low %v9056_v30, %v9062_v21  ;;  %v13408_v50 = vld [vmem:[#allocation8 + $0xb4c] ss:$16 sps:$4 sm:$0xff]  }
 0x438   : > { %18021 = vst [vmem:[#allocation24_spill] sm:$0xff] %v16619_v2  ;;  %v16626_v41 = vadd.f32 %v8511_v28, %v7373_v15  ;;  %10302 = vmatprep.mubr.bf16.mxu0 %v18025_v22  ;;  %v7377_v2 = vadd.f32 %v16370_v44, %v18026_v61  ;;  %v9070_v10 = vsel %vm14641_vm5, %v11852_v62, %v9069_v53  ;;  %v18027_v28 = vld [vmem:[#allocation27_spill] sm:$0xff]  ;;  %v18029_v21 = vld [vmem:[#allocation61_spill] sm:$0xff]  ;;  %v13411_v22 = vld [vmem:[#allocation8 + $0xb2c] ss:$16 sps:$4 sm:$0xff]  }
 0x439   : > { %v16629_v48 = vpop.f32.mrf.mxu1  ;;  %v8513_v36 = vpop.f32.mrf.mxu0  ;;  %v7379_v60 = vadd.f32 %v16376_v13, %v18027_v28  ;;  %v16645_v3 = vcombine.high %v9070_v10, %v9076_v17  ;;  %v7383_v30 = vadd.f32 %v16384_v5, %v18029_v21  ;;  %v18032_v62 = vld [vmem:[#allocation63_spill] sm:$0xff]  ;;  %v18034_v21 = vld [vmem:[#allocation64_spill] sm:$0xff] }
 0x43a   : > { %10336 = vmatpush2.bf16.msra.mxu1 %v13400_v24  ;;  %v16635_v8 = vadd.f32 %v8513_v36, %v7375_v59  ;;  %v18033_v36 = vld [vmem:[#allocation89_spill] sm:$0xff] }
 0x43b   : > { %v16639_v42 = vpop.f32.mrf.mxu1  ;;  %10337 = vmatprep.subr.bf16.mxu1 %v13405_v31  ;;  %v8515_v15 = vpop.f32.mrf.mxu0  ;;  %v7385_v61 = vadd.f32 %v18033_v36, %v18032_v62  ;;  %v18036_v62 = vld [vmem:[#allocation28_spill] sm:$0xff] }
 0x43c   : > { %v16647_v44 = vadd.f32 %v8515_v15, %v7377_v2  ;;  %v18031_v2 = vld [vmem:[#allocation82_spill] sm:$0xff] }
 0x43d   : > { %v16649_v24 = vpop.f32.mrf.mxu1  ;;  %10180 = vmatmul.mubr.bf16.gmra.mxu1 %v16637_v57  ;;  %v8517_v59 = vpop.f32.mrf.mxu0 }
 0x43e   : > { %18028 = vst [vmem:[#allocation25_spill] sm:$0xff] %v16647_v44  ;;  %10189 = vmatprep.mubr.bf16.mxu1 %v16645_v3  ;;  %10338 = vmatpush2.bf16.msra.mxu1 %v13403_v52  ;;  %v16655_v53 = vadd.f32 %v8517_v59, %v7379_v60  ;;  %v7387_v52 = vadd.f32 %v16400_v38, %v18034_v21  ;;  %v13409_v60 = vld [vmem:[#allocation8 + $0xb28] ss:$16 sps:$4 sm:$0xff]   ;;  %v13414_v44 = vld [vmem:[#allocation8 + $0xb0c] ss:$16 sps:$4 sm:$0xff]   ;;  %v18040_v21 = vld [vmem:[#allocation67_spill] sm:$0xff] }
 0x43f   : > { %v16657_v31 = vpop.f32.mrf.mxu1  ;;  %10339 = vmatprep.subr.bf16.mxu1 %v13408_v50  ;;  %v8521_v13 = vpop.f32.mrf.mxu0  ;;  %10303 = vmatmul.mubr.bf16.gmra.mxu0 %v18031_v2  ;;  %v16670_v50 = vcombine.low %v9070_v10, %v9076_v17  ;;  %v18039_v17 = vld [vmem:[#allocation88_spill] sm:$0xff] }
 0x440   : > { %18030 = vst [vmem:[#allocation76_spill] sm:$0xff] %v16655_v53  ;;  %v16662_v15 = vadd.f32 %v8521_v13, %v7383_v30  ;;  %v7389_v30 = vadd.f32 %v16411_v54, %v18036_v62  ;;  %v13412_v10 = vld [vmem:[#allocation8 + $0xb08] ss:$16 sps:$4 sm:$0xff]  }
 0x441   : > { %v16664_v28 = vpop.f32.mrf.mxu1  ;;  %v8523_v5 = vpop.f32.mrf.mxu0 }
 0x442   : > { %10340 = vmatpush2.bf16.msra.mxu1 %v13406_v51  ;;  %v16668_v59 = vadd.f32 %v8523_v5, %v7385_v61  ;;  %v18038_v51 = vld [vmem:[#allocation29_spill] sm:$0xff] }
 0x443   : > { %v16672_v53 = vpop.f32.mrf.mxu1  ;;  %10341 = vmatprep.subr.bf16.mxu1 %v13411_v22  ;;  %v8525_v2 = vpop.f32.mrf.mxu0  ;;  %v7539_v61 = vadd.f32 %v16421_v26, %v18038_v51  ;;  %v18042_v51 = vld [vmem:[#allocation32_spill] sm:$0xff] }
 0x444   : > { %18035 = vst [vmem:[#allocation26_spill] sm:$0xff] %v16668_v59  ;;  %v16676_v13 = vadd.f32 %v8525_v2, %v7387_v52  ;;  %v7541_v52 = vadd.f32 %v16431_v0, %v18040_v21  ;;  %v18041_v59 = vld [vmem:[#allocation31_spill] sm:$0xff] }
 0x445   : > { %v16678_v36 = vpop.f32.mrf.mxu1  ;;  %10190 = vmatmul.mubr.bf16.gmra.mxu1 %v16670_v50  ;;  %v8527_v38 = vpop.f32.mrf.mxu0  ;;  %v7543_v26 = vadd.f32 %v16439_v6, %v18041_v59 }
 0x446   : > { %18037 = vst [vmem:[#allocation84_spill] sm:$0xff] %v16676_v13  ;;  %10342 = vmatpush2.bf16.msra.mxu1 %v13409_v60  ;;  %10345 = vmatprep.mubr.bf16.mxu1 %v18039_v17  ;;  %v16684_v22 = vadd.f32 %v8527_v38, %v7389_v30 }
 0x447   : > { %v16686_v5 = vpop.f32.mrf.mxu1  ;;  %10343 = vmatprep.subr.bf16.mxu1 %v13414_v44  ;;  %v8677_v54 = vpop.f32.mrf.mxu0  ;;  %v7545_v44 = vadd.f32 %v16450_v16, %v18042_v51 }
 0x448   : > { %v16690_v2 = vadd.f32 %v8677_v54, %v7539_v61  ;;  %v18043_v54 = vld [vmem:[#allocation33_spill] sm:$0xff] }
 0x449   : > { %v16692_v62 = vpop.f32.mrf.mxu1  ;;  %v8679_v13 = vpop.f32.mrf.mxu0  ;;  %v7549_v21 = vadd.f32 %v16460_v40, %v18043_v54  ;;  %v18045_v40 = vld [vmem:[#allocation36_spill] sm:$0xff]  ;;  %v18046_v54 = vld [vmem:[#allocation37_spill] sm:$0xff] }
 0x44a   : > { %10344 = vmatpush2.bf16.msra.mxu1 %v13412_v10  ;;  %v16696_v60 = vadd.f32 %v8679_v13, %v7541_v52  ;;  %v18044_v52 = vld [vmem:[#allocation35_spill] sm:$0xff] }
 0x44b   : > { %v16698_v30 = vpop.f32.mrf.mxu1  ;;  %v8681_v38 = vpop.f32.mrf.mxu0  ;;  %v7551_v16 = vadd.f32 %v16470_v63, %v18044_v52  ;;  %v7555_v63 = vadd.f32 %v16489_v25, %v18046_v54 }
 0x44c   : > { %v16702_v17 = vadd.f32 %v8681_v38, %v7543_v26 }
 0x44d   : > { %v8564_v0 = vpop.f32.mrf.mxu1  ;;  %10346 = vmatmul.mubr.bf16.vlgmr.msra.gmra.mxu1 %v16409_v45  ;;  %v8683_v61 = vpop.f32.mrf.mxu0 }
 0x44e   : > { %v16708_v6 = vadd.f32 %v8564_v0, %v16397_v43  ;;  %10355 = vmatprep.mubr.bf16.mxu1 %v16417_v33  ;;  %v16711_v59 = vadd.f32 %v8683_v61, %v7545_v44  ;;  %v7553_v43 = vadd.f32 %v16478_v14, %v18045_v40  ;;  %v18047_v14 = vld [vmem:[#allocation40_spill] sm:$0xff] }
 0x44f   : > { %v8566_v13 = vpop.f32.mrf.mxu1  ;;  %v8687_v10 = vpop.f32.mrf.mxu0 }
 0x450   : > { %v16716_v26 = vadd.f32 %v8566_v13, %v16407_v19  ;;  %v16718_v45 = vadd.f32 %v8687_v10, %v7549_v21 }
 0x451   : > { %v8568_v38 = vpop.f32.mrf.mxu1  ;;  %v8689_v51 = vpop.f32.mrf.mxu0 }
 0x452   : > { %v16723_v0 = vadd.f32 %v8568_v38, %v16419_v55  ;;  %v16725_v33 = vadd.f32 %v8689_v51, %v7551_v16  ;;  %v7559_v55 = vadd.f32 %v16499_v9, %v18047_v14  ;;  %v18049_v9 = vld [vmem:[#allocation42_spill] sm:$0xff] }
 0x453   : > { %v8570_v44 = vpop.f32.mrf.mxu1  ;;  %v8691_v61 = vpop.f32.mrf.mxu0 }
 0x454   : > { %v16730_v19 = vadd.f32 %v8570_v44, %v16427_v56  ;;  %v16732_v21 = vadd.f32 %v8691_v61, %v7553_v43  ;;  %v18048_v56 = vld [vmem:[#allocation41_spill] sm:$0xff] }
 0x455   : > { %v8574_v13 = vpop.f32.mrf.mxu1  ;;  %10356 = vmatmul.mubr.bf16.gmra.mxu1 %v16448_v46  ;;  %v8693_v10 = vpop.f32.mrf.mxu0  ;;  %v7561_v51 = vadd.f32 %v16509_v34, %v18048_v56  ;;  %v18054_v56 = vld [vmem:[#allocation92_spill] sm:$0xff] }
 0x456   : > { %v16738_v52 = vadd.f32 %v8574_v13, %v16436_v49  ;;  %10365 = vmatprep.mubr.bf16.mxu1 %v16456_v7  ;;  %v16741_v16 = vadd.f32 %v8693_v10, %v7555_v63  ;;  %v7563_v49 = vadd.f32 %v16517_v35, %v18049_v9  ;;  %v18050_v13 = vld [vmem:[#allocation44_spill] sm:$0xff]  ;;  %v18051_v35 = vld [vmem:[#allocation46_spill] sm:$0xff] }
 0x457   : > { %v8576_v25 = vpop.f32.mrf.mxu1  ;;  %v8697_v38 = vpop.f32.mrf.mxu0  ;;  %v7565_v34 = vadd.f32 %v16528_v39, %v18050_v13 }
 0x458   : > { %v16746_v40 = vadd.f32 %v8576_v25, %v16446_v12  ;;  %v16748_v46 = vadd.f32 %v8697_v38, %v7559_v55  ;;  %v18052_v25 = vld [vmem:[#allocation90_spill] sm:$0xff] }
 0x459   : > { %v8578_v43 = vpop.f32.mrf.mxu1  ;;  %v8699_v44 = vpop.f32.mrf.mxu0 }
 0x45a   : > { %v16753_v61 = vadd.f32 %v8578_v43, %v16458_v11  ;;  %v16755_v7 = vadd.f32 %v8699_v44, %v7561_v51  ;;  %v7569_v11 = vadd.f32 %v16538_v47, %v18051_v35  ;;  %v18056_v44 = vld [vmem:[#allocation43_spill] sm:$0xff]  ;;  %v18059_v47 = vld [vmem:[#allocation50_spill] sm:$0xff]  ;;  %v18060_v35 = vld [vmem:[#allocation93_spill] sm:$0xff] }
 0x45b   : > { %v8580_v54 = vpop.f32.mrf.mxu1  ;;  %v8701_v63 = vpop.f32.mrf.mxu0 }
 0x45c   : > { %v16760_v12 = vadd.f32 %v8580_v54, %v16466_v20  ;;  %v16762_v10 = vadd.f32 %v8701_v63, %v7563_v49  ;;  %v18055_v20 = vld [vmem:[#allocation49_spill] sm:$0xff]  ;;  %v18057_v49 = vld [vmem:[#allocation91_spill] sm:$0xff] }
 0x45d   : > { %v8584_v14 = vpop.f32.mrf.mxu1  ;;  %10366 = vmatmul.mubr.bf16.gmra.mxu1 %v16487_v4  ;;  %v8703_v55 = vpop.f32.mrf.mxu0  ;;  %v7571_v9 = vadd.f32 %v18056_v44, %v18055_v20  ;;  %v18063_v44 = vld [vmem:[#allocation94_spill] sm:$0xff] }
 0x45e   : > { %v16768_v38 = vadd.f32 %v8584_v14, %v18052_v25  ;;  %10375 = vmatprep.mubr.bf16.mxu1 %v18054_v56  ;;  %v16771_v51 = vadd.f32 %v8703_v55, %v7565_v34  ;;  %v7573_v14 = vadd.f32 %v16556_v23, %v18059_v47  ;;  %v18066_v23 = vld [vmem:[#allocation54_spill] sm:$0xff]  ;;  %v18067_v47 = vld [vmem:[#allocation45_spill] sm:$0xff] }
 0x45f   : > { %v8586_v39 = vpop.f32.mrf.mxu1  ;;  %v8707_v43 = vpop.f32.mrf.mxu0 }
 0x460   : > { %18053 = vst [vmem:[#allocation78_spill] sm:$0xff] %v16768_v38  ;;  %v16776_v54 = vadd.f32 %v8586_v39, %v18057_v49  ;;  %v16778_v4 = vadd.f32 %v8707_v43, %v7569_v11  ;;  %v18062_v38 = vld [vmem:[#allocation52_spill] sm:$0xff] }
 0x461   : > { %v8588_v63 = vpop.f32.mrf.mxu1  ;;  %v8709_v13 = vpop.f32.mrf.mxu0  ;;  %v7575_v20 = vadd.f32 %v16567_v18, %v18062_v38  ;;  %v18065_v49 = vld [vmem:[#allocation48_spill] sm:$0xff] }
 0x462   : > { %18058 = vst [vmem:[#allocation59_spill] sm:$0xff] %v16776_v54  ;;  %v16783_v25 = vadd.f32 %v8588_v63, %v18060_v35  ;;  %v16785_v34 = vadd.f32 %v8709_v13, %v7571_v9  ;;  %v7579_v63 = vadd.f32 %v16577_v37, %v18066_v23  ;;  %v18069_v13 = vld [vmem:[#allocation56_spill] sm:$0xff] }
 0x463   : > { %v8590_v55 = vpop.f32.mrf.mxu1  ;;  %v8711_v56 = vpop.f32.mrf.mxu0  ;;  %v18073_v37 = vld [vmem:[#allocation68_spill] sm:$0xff] }
 0x464   : > { %18061 = vst [vmem:[#allocation27_spill] sm:$0xff] %v16783_v25  ;;  %v16790_v39 = vadd.f32 %v8590_v55, %v18063_v44  ;;  %v16792_v11 = vadd.f32 %v8711_v56, %v7573_v14  ;;  %v18070_v55 = vld [vmem:[#allocation62_spill] sm:$0xff]  ;;  %v18071_v56 = vld [vmem:[#allocation51_spill] sm:$0xff]  ;;  %v18074_v23 = vld [vmem:[#allocation60_spill] sm:$0xff] }
 0x465   : > { %v8594_v43 = vpop.f32.mrf.mxu1  ;;  %10376 = vmatmul.mubr.bf16.gmra.mxu1 %v18065_v49  ;;  %v8713_v54 = vpop.f32.mrf.mxu0  ;;  %v7581_v14 = vadd.f32 %v16585_v32, %v18070_v55  ;;  %v18077_v55 = vld [vmem:[#allocation65_spill] sm:$0xff] }
 0x466   : > { %18064 = vst [vmem:[#allocation61_spill] sm:$0xff] %v16790_v39  ;;  %v16798_v9 = vadd.f32 %v8594_v43, %v18067_v47  ;;  %10385 = vmatprep.mubr.bf16.mxu1 %v18069_v13  ;;  %v16801_v35 = vadd.f32 %v8713_v54, %v7575_v20  ;;  %v7583_v43 = vadd.f32 %v16593_v1, %v18073_v37  ;;  %v18080_v1 = vld [vmem:[#allocation38_spill] sm:$0xff] }
 0x467   : > { %v8596_v18 = vpop.f32.mrf.mxu1  ;;  %v8717_v38 = vpop.f32.mrf.mxu0  ;;  %v18081_v37 = vld [vmem:[#allocation70_spill] sm:$0xff] }
 0x468   : > { %18068 = vst [vmem:[#allocation82_spill] sm:$0xff] %v16798_v9  ;;  %v16806_v44 = vadd.f32 %v8596_v18, %v18071_v56  ;;  %v16808_v49 = vadd.f32 %v8717_v38, %v7579_v63  ;;  %v18076_v9 = vld [vmem:[#allocation39_spill] sm:$0xff] }
 0x469   : > { %v8598_v39 = vpop.f32.mrf.mxu1  ;;  %v8719_v25 = vpop.f32.mrf.mxu0  ;;  %v7585_v32 = vadd.f32 %v16603_v58, %v18076_v9  ;;  %v18079_v56 = vld [vmem:[#allocation71_spill] sm:$0xff] }
 0x46a   : > { %18072 = vst [vmem:[#allocation63_spill] sm:$0xff] %v16806_v44  ;;  %v16813_v47 = vadd.f32 %v8598_v39, %v18074_v23  ;;  %v16815_v54 = vadd.f32 %v8719_v25, %v7581_v14  ;;  %v7589_v39 = vadd.f32 %v16613_v29, %v18080_v1  ;;  %v18083_v14 = vld [vmem:[#allocation58_spill] sm:$0xff] }
 0x46b   : > { %v8600_v20 = vpop.f32.mrf.mxu1  ;;  %v8721_v13 = vpop.f32.mrf.mxu0  ;;  %v18087_v29 = vld [vmem:[#allocation74_spill] sm:$0xff] }
 0x46c   : > { %18075 = vst [vmem:[#allocation89_spill] sm:$0xff] %v16813_v47  ;;  %v16820_v18 = vadd.f32 %v8600_v20, %v18077_v55  ;;  %v16822_v63 = vadd.f32 %v8721_v13, %v7583_v43  ;;  %v18084_v20 = vld [vmem:[#allocation73_spill] sm:$0xff]  ;;  %v18088_v1 = vld [vmem:[#allocation22_spill] sm:$0xff] }
 0x46d   : > { %v8604_v38 = vpop.f32.mrf.mxu1  ;;  %10386 = vmatmul.mubr.bf16.gmra.mxu1 %v18079_v56  ;;  %v8723_v44 = vpop.f32.mrf.mxu0  ;;  %v7591_v43 = vadd.f32 %v16621_v27, %v18084_v20  ;;  %v18085_v13 = vld [vmem:[#allocation53_spill] sm:$0xff]  ;;  %v18091_v20 = vld [vmem:[#allocation23_spill] sm:$0xff] }
 0x46e   : > { %18078 = vst [vmem:[#allocation64_spill] sm:$0xff] %v16820_v18  ;;  %v16828_v25 = vadd.f32 %v8604_v38, %v18081_v37  ;;  %10395 = vmatprep.mubr.bf16.mxu1 %v18083_v14  ;;  %v16831_v23 = vadd.f32 %v8723_v44, %v7585_v32  ;;  %v7593_v38 = vadd.f32 %v16629_v48, %v18087_v29  ;;  %v18094_v48 = vld [vmem:[#allocation77_spill] sm:$0xff] }
 0x46f   : > { %v8606_v58 = vpop.f32.mrf.mxu1  ;;  %v8727_v9 = vpop.f32.mrf.mxu0  ;;  %v18095_v29 = vld [vmem:[#allocation21_spill] sm:$0xff] }
 0x470   : > { %18082 = vst [vmem:[#allocation28_spill] sm:$0xff] %v16828_v25  ;;  %v16836_v55 = vadd.f32 %v8606_v58, %v18085_v13  ;;  %v16838_v56 = vadd.f32 %v8727_v9, %v7589_v39  ;;  %v18090_v25 = vld [vmem:[#allocation75_spill] sm:$0xff] }
 0x471   : > { %v8608_v18 = vpop.f32.mrf.mxu1  ;;  %v8729_v47 = vpop.f32.mrf.mxu0  ;;  %v7595_v27 = vadd.f32 %v16639_v42, %v18090_v25  ;;  %v18093_v13 = vld [vmem:[#allocation55_spill] sm:$0xff] }
 0x472   : > { %18086 = vst [vmem:[#allocation29_spill] sm:$0xff] %v16836_v55  ;;  %v16843_v37 = vadd.f32 %v8608_v18, %v18088_v1  ;;  %v16845_v44 = vadd.f32 %v8729_v47, %v7591_v43  ;;  %v7599_v18 = vadd.f32 %v16649_v24, %v18094_v48  ;;  %v18097_v43 = vld [vmem:[#allocation72_spill] sm:$0xff]  ;;  %v18101_v48 = vld [vmem:[#allocation57_spill] sm:$0xff] }
 0x473   : > { %v8610_v32 = vpop.f32.mrf.mxu1  ;;  %v8731_v14 = vpop.f32.mrf.mxu0  ;;  %v18100_v24 = vld [vmem:[#allocation80_spill] sm:$0xff] }
 0x474   : > { %18089 = vst [vmem:[#allocation88_spill] sm:$0xff] %v16843_v37  ;;  %v16850_v58 = vadd.f32 %v8610_v32, %v18091_v20  ;;  %v16852_v39 = vadd.f32 %v8731_v14, %v7593_v38  ;;  %v18098_v32 = vld [vmem:[#allocation79_spill] sm:$0xff] }
 0x475   : > { %v8614_v9 = vpop.f32.mrf.mxu1  ;;  %10396 = vmatmul.mubr.bf16.gmra.mxu1 %v18093_v13  ;;  %v8733_v55 = vpop.f32.mrf.mxu0  ;;  %v7601_v38 = vadd.f32 %v16657_v31, %v18098_v32  ;;  %v18099_v14 = vld [vmem:[#allocation47_spill] sm:$0xff]  ;;  %v18103_v32 = vld [vmem:[#allocation24_spill] sm:$0xff] }
 0x476   : > { %18092 = vst [vmem:[#allocation67_spill] sm:$0xff] %v16850_v58  ;;  %v16858_v47 = vadd.f32 %v8614_v9, %v18095_v29  ;;  %10405 = vmatprep.mubr.bf16.mxu1 %v18097_v43  ;;  %v16861_v1 = vadd.f32 %v8733_v55, %v7595_v27  ;;  %v7603_v9 = vadd.f32 %v16664_v28, %v18100_v24  ;;  %v18104_v28 = vld [vmem:[#allocation83_spill] sm:$0xff]  ;;  %v18105_v24 = vld [vmem:[#allocation85_spill] sm:$0xff] }
 0x477   : > { %v8616_v42 = vpop.f32.mrf.mxu1  ;;  %v8737_v25 = vpop.f32.mrf.mxu0 }
 0x478   : > { %18096 = vst [vmem:[#allocation31_spill] sm:$0xff] %v16858_v47  ;;  %v16866_v20 = vadd.f32 %v8616_v42, %v18099_v14  ;;  %v16868_v13 = vadd.f32 %v8737_v25, %v7599_v18  ;;  %v18102_v47 = vld [vmem:[#allocation81_spill] sm:$0xff] }
 0x479   : > { %v8618_v58 = vpop.f32.mrf.mxu1  ;;  %v8739_v37 = vpop.f32.mrf.mxu0  ;;  %v7605_v31 = vadd.f32 %v16672_v53, %v18102_v47 }
 0x47a   : > { %v16873_v29 = vadd.f32 %v8618_v58, %v18101_v48  ;;  %v16875_v55 = vadd.f32 %v8739_v37, %v7601_v38  ;;  %v7609_v58 = vadd.f32 %v16678_v36, %v18104_v28  ;;  %v18106_v36 = vld [vmem:[#allocation86_spill] sm:$0xff]  ;;  %v18108_v28 = vld [vmem:[#allocation87_spill] sm:$0xff] }
 0x47b   : > { %v8620_v27 = vpop.f32.mrf.mxu1  ;;  %v8741_v43 = vpop.f32.mrf.mxu0 }
 0x47c   : > { %v16880_v42 = vadd.f32 %v8620_v27, %v18103_v32  ;;  %v16882_v18 = vadd.f32 %v8741_v43, %v7603_v9  ;;  %v7611_v9 = vadd.f32 %v16686_v5, %v18105_v24  ;;  %v18107_v32 = vld [vmem:[#allocation25_spill] sm:$0xff]  ;;  %v7615_v5 = vadd.f32 %v16698_v30, %v18108_v28  ;;  %v18109_v24 = vld [vmem:[#allocation76_spill] sm:$0xff] }
 0x47d   : > { %v8624_v25 = vpop.f32.mrf.mxu1  ;;  %10406 = vmatmul.mubr.bf16.gmra.mxu1 %v16637_v57  ;;  %v8743_v14 = vpop.f32.mrf.mxu0 }
 0x47e   : > { %v16888_v37 = vadd.f32 %v8624_v25, %v16626_v41  ;;  %10415 = vmatprep.mubr.bf16.mxu1 %v16645_v3  ;;  %v16891_v38 = vadd.f32 %v8743_v14, %v7605_v31  ;;  %v7613_v41 = vadd.f32 %v16692_v62, %v18106_v36  ;;  %v18110_v36 = vld [vmem:[#allocation26_spill] sm:$0xff] }
 0x47f   : > { %v8626_v53 = vpop.f32.mrf.mxu1  ;;  %v8747_v47 = vpop.f32.mrf.mxu0 }
 0x480   : > { %v16896_v48 = vadd.f32 %v8626_v53, %v16635_v8  ;;  %v16898_v57 = vadd.f32 %v8747_v47, %v7609_v58 }
 0x481   : > { %v8628_v27 = vpop.f32.mrf.mxu1  ;;  %v8749_v43 = vpop.f32.mrf.mxu0 }
 0x482   : > { %v16903_v25 = vadd.f32 %v8628_v27, %v18107_v32  ;;  %v16905_v3 = vadd.f32 %v8749_v43, %v7611_v9 }
 0x483   : > { %v8630_v31 = vpop.f32.mrf.mxu1  ;;  %v8751_v14 = vpop.f32.mrf.mxu0 }
 0x484   : > { %v16910_v8 = vadd.f32 %v8630_v31, %v18109_v24  ;;  %v16912_v58 = vadd.f32 %v8751_v14, %v7613_v41  ;;  %v18112_v41 = vld [vmem:[#allocation84_spill] sm:$0xff] }
 0x485   : > { %v8634_v53 = vpop.f32.mrf.mxu1  ;;  %10416 = vmatmul.mubr.bf16.gmra.mxu1 %v16670_v50  ;;  %v8753_v47 = vpop.f32.mrf.mxu0 }
 0x486   : > { %v16916_v62 = vadd.f32 %v8634_v53, %v16662_v15  ;;  %v16918_v27 = vadd.f32 %v8753_v47, %v7615_v5 }
 0x487   : > { %v8636_v9 = vpop.f32.mrf.mxu1  ;;  %v16920_v43 = vpop.f32.mrf.mxu0 }
 0x488   : > { %v16923_v32 = vadd.f32 %v8636_v9, %v18110_v36 }
 0x489   : > { %v8638_v30 = vpop.f32.mrf.mxu1  ;;  %v16925_v31 = vpop.f32.mrf.mxu0 }
 0x48a   : > { %18111 = vst [vmem:[#allocation32_spill] sm:$0xff] %v16923_v32  ;;  %v16928_v14 = vadd.f32 %v8638_v30, %v18112_v41 }
 0x48b   : > { %v8640_v28 = vpop.f32.mrf.mxu1  ;;  %v16930_v50 = vpop.f32.mrf.mxu0 }
 0x48c   : > { %18113 = vst [vmem:[#allocation33_spill] sm:$0xff] %v16928_v14  ;;  %v16933_v15 = vadd.f32 %v8640_v28, %v16684_v22 }
 0x48d   : > { %v8790_v5 = vpop.f32.mrf.mxu1  ;;  %v16935_v24 = vpop.f32.mrf.mxu0 }
 0x48e   : > { %18114 = vst [vmem:[#allocation35_spill] sm:$0xff] %v16933_v15  ;;  %v16938_v53 = vadd.f32 %v8790_v5, %v16690_v2 }
 0x48f   : > { %v8792_v47 = vpop.f32.mrf.mxu1  ;;  %v16940_v9 = vpop.f32.mrf.mxu0 }
 0x490   : > { %18115 = vst [vmem:[#allocation36_spill] sm:$0xff] %v16938_v53  ;;  %v16943_v36 = vadd.f32 %v8792_v47, %v16696_v60 }
 0x491   : > { %v8794_v30 = vpop.f32.mrf.mxu1  ;;  %v16945_v41 = vpop.f32.mrf.mxu0 }
 0x492   : > { %18116 = vst [vmem:[#allocation37_spill] sm:$0xff] %v16943_v36  ;;  %v16948_v14 = vadd.f32 %v8794_v30, %v16702_v17 }
 0x493   : > { %v8796_v22 = vpop.f32.mrf.mxu1  ;;  %v16950_v28 = vpop.f32.mrf.mxu0 }
 0x494   : > { %18117 = vst [vmem:[#allocation40_spill] sm:$0xff] %v16948_v14  ;;  %v16953_v15 = vadd.f32 %v8796_v22, %v16711_v59 }
 0x495   : > { %v8800_v2 = vpop.f32.mrf.mxu1  ;;  %v16955_v5 = vpop.f32.mrf.mxu0 }
 0x496   : > { %18118 = vst [vmem:[#allocation41_spill] sm:$0xff] %v16953_v15  ;;  %v16958_v53 = vadd.f32 %v8800_v2, %v16718_v45 }
 0x497   : > { %v8802_v60 = vpop.f32.mrf.mxu1  ;;  %v16960_v47 = vpop.f32.mrf.mxu0 }
 0x498   : > { %18119 = vst [vmem:[#allocation42_spill] sm:$0xff] %v16958_v53  ;;  %v16963_v36 = vadd.f32 %v8802_v60, %v16725_v33 }
 0x499   : > { %v8804_v17 = vpop.f32.mrf.mxu1  ;;  %v16965_v30 = vpop.f32.mrf.mxu0 }
 0x49a   : > { %18120 = vst [vmem:[#allocation44_spill] sm:$0xff] %v16963_v36  ;;  %v16968_v14 = vadd.f32 %v8804_v17, %v16732_v21 }
 0x49b   : > { %v8806_v59 = vpop.f32.mrf.mxu1  ;;  %v16970_v22 = vpop.f32.mrf.mxu0 }
 0x49c   : > { %18121 = vst [vmem:[#allocation46_spill] sm:$0xff] %v16968_v14  ;;  %v16973_v15 = vadd.f32 %v8806_v59, %v16741_v16 }
 0x49d   : > { %v8810_v45 = vpop.f32.mrf.mxu1  ;;  %v16975_v2 = vpop.f32.mrf.mxu0 }
 0x49e   : > { %18122 = vst [vmem:[#allocation90_spill] sm:$0xff] %v16973_v15  ;;  %v16978_v53 = vadd.f32 %v8810_v45, %v16748_v46 }
 0x49f   : > { %v8812_v33 = vpop.f32.mrf.mxu1  ;;  %v16980_v60 = vpop.f32.mrf.mxu0 }
 0x4a0   : > { %18123 = vst [vmem:[#allocation92_spill] sm:$0xff] %v16978_v53  ;;  %v16983_v36 = vadd.f32 %v8812_v33, %v16755_v7 }
 0x4a1   : > { %v8814_v21 = vpop.f32.mrf.mxu1  ;;  %v16985_v17 = vpop.f32.mrf.mxu0 }
 0x4a2   : > { %18124 = vst [vmem:[#allocation49_spill] sm:$0xff] %v16983_v36  ;;  %v16988_v14 = vadd.f32 %v8814_v21, %v16762_v10 }
 0x4a3   : > { %v8816_v16 = vpop.f32.mrf.mxu1  ;;  %v16990_v59 = vpop.f32.mrf.mxu0 }
 0x4a4   : > { %18125 = vst [vmem:[#allocation43_spill] sm:$0xff] %v16988_v14  ;;  %v16993_v15 = vadd.f32 %v8816_v16, %v16771_v51 }
 0x4a5   : > { %v8820_v46 = vpop.f32.mrf.mxu1  ;;  %v16995_v45 = vpop.f32.mrf.mxu0 }
 0x4a6   : > { %18126 = vst [vmem:[#allocation91_spill] sm:$0xff] %v16993_v15  ;;  %v16998_v53 = vadd.f32 %v8820_v46, %v16778_v4 }
 0x4a7   : > { %v8822_v7 = vpop.f32.mrf.mxu1  ;;  %v17000_v33 = vpop.f32.mrf.mxu0 }
 0x4a8   : > { %18127 = vst [vmem:[#allocation50_spill] sm:$0xff] %v16998_v53  ;;  %v17003_v36 = vadd.f32 %v8822_v7, %v16785_v34 }
 0x4a9   : > { %v8824_v10 = vpop.f32.mrf.mxu1  ;;  %v17005_v21 = vpop.f32.mrf.mxu0 }
 0x4aa   : > { %18128 = vst [vmem:[#allocation93_spill] sm:$0xff] %v17003_v36  ;;  %v17008_v14 = vadd.f32 %v8824_v10, %v16792_v11 }
 0x4ab   : > { %v8826_v51 = vpop.f32.mrf.mxu1  ;;  %v17010_v16 = vpop.f32.mrf.mxu0 }
 0x4ac   : > { %18129 = vst [vmem:[#allocation52_spill] sm:$0xff] %v17008_v14  ;;  %v17013_v15 = vadd.f32 %v8826_v51, %v16801_v35 }
 0x4ad   : > { %v8830_v4 = vpop.f32.mrf.mxu1  ;;  %v17015_v46 = vpop.f32.mrf.mxu0 }
 0x4ae   : > { %18130 = vst [vmem:[#allocation94_spill] sm:$0xff] %v17013_v15  ;;  %v17018_v53 = vadd.f32 %v8830_v4, %v16808_v49 }
 0x4af   : > { %v8832_v34 = vpop.f32.mrf.mxu1  ;;  %v17020_v7 = vpop.f32.mrf.mxu0 }
 0x4b0   : > { %18131 = vst [vmem:[#allocation48_spill] sm:$0xff] %v17018_v53  ;;  %v17023_v36 = vadd.f32 %v8832_v34, %v16815_v54 }
 0x4b1   : > { %v8834_v11 = vpop.f32.mrf.mxu1  ;;  %v17025_v10 = vpop.f32.mrf.mxu0 }
 0x4b2   : > { %18132 = vst [vmem:[#allocation54_spill] sm:$0xff] %v17023_v36  ;;  %v17028_v14 = vadd.f32 %v8834_v11, %v16822_v63 }
 0x4b3   : > { %v8836_v35 = vpop.f32.mrf.mxu1  ;;  %v17030_v51 = vpop.f32.mrf.mxu0 }
 0x4b4   : > { %18133 = vst [vmem:[#allocation45_spill] sm:$0xff] %v17028_v14  ;;  %v17033_v15 = vadd.f32 %v8836_v35, %v16831_v23 }
 0x4b5   : > { %v8840_v49 = vpop.f32.mrf.mxu1  ;;  %v17035_v4 = vpop.f32.mrf.mxu0 }
 0x4b6   : > { %18134 = vst [vmem:[#allocation56_spill] sm:$0xff] %v17033_v15  ;;  %v17038_v53 = vadd.f32 %v8840_v49, %v16838_v56 }
 0x4b7   : > { %v8842_v54 = vpop.f32.mrf.mxu1  ;;  %v17040_v34 = vpop.f32.mrf.mxu0 }
 0x4b8   : > { %18135 = vst [vmem:[#allocation62_spill] sm:$0xff] %v17038_v53  ;;  %v17043_v36 = vadd.f32 %v8842_v54, %v16845_v44 }
 0x4b9   : > { %v8844_v63 = vpop.f32.mrf.mxu1  ;;  %v17045_v11 = vpop.f32.mrf.mxu0 }
 0x4ba   : > { %18136 = vst [vmem:[#allocation51_spill] sm:$0xff] %v17043_v36  ;;  %v17048_v14 = vadd.f32 %v8844_v63, %v16852_v39 }
 0x4bb   : > { %v8846_v23 = vpop.f32.mrf.mxu1  ;;  %v17050_v35 = vpop.f32.mrf.mxu0 }
 0x4bc   : > { %18137 = vst [vmem:[#allocation68_spill] sm:$0xff] %v17048_v14  ;;  %v17053_v15 = vadd.f32 %v8846_v23, %v16861_v1 }
 0x4bd   : > { %v8850_v56 = vpop.f32.mrf.mxu1  ;;  %v17055_v49 = vpop.f32.mrf.mxu0 }
 0x4be   : > { %18138 = vst [vmem:[#allocation60_spill] sm:$0xff] %v17053_v15  ;;  %v17058_v53 = vadd.f32 %v8850_v56, %v16868_v13 }
 0x4bf   : > { %v8852_v44 = vpop.f32.mrf.mxu1  ;;  %v17060_v54 = vpop.f32.mrf.mxu0 }
 0x4c0   : > { %18139 = vst [vmem:[#allocation39_spill] sm:$0xff] %v17058_v53  ;;  %v17063_v36 = vadd.f32 %v8852_v44, %v16875_v55 }
 0x4c1   : > { %v8854_v39 = vpop.f32.mrf.mxu1  ;;  %v17068_v32 = vpop.f32.mrf.mxu0 }
 0x4c2   : > { %18140 = vst [vmem:[#allocation65_spill] sm:$0xff] %v17063_v36  ;;  %v17066_v63 = vadd.f32 %v8854_v39, %v16882_v18  ;;  %v17086_v36 = vld [vmem:[#allocation12] sm:$0xf] }
 0x4c3   : > { %v8856_v14 = vpop.f32.mrf.mxu1  ;;  %v17076_v53 = vpop.f32.mrf.mxu0 }
 0x4c4   : > { %18141 = vst [vmem:[#allocation71_spill] sm:$0xff] %v17066_v63  ;;  %v17071_v1 = vadd.f32 %v8856_v14, %v16891_v38  ;;  %v17091_v14 = vld [vmem:[#allocation14] sm:$0xf] }
 0x4c5   : > { %v8860_v23 = vpop.f32.mrf.mxu1  ;;  %v17084_v63 = vpop.f32.mrf.mxu0  ;;  %18147 = vst [vmem:[#allocation74_spill] sm:$0xff] %v17091_v14 }
 0x4c6   : > { %18142 = vst [vmem:[#allocation38_spill] sm:$0xff] %v17071_v1  ;;  %v17074_v13 = vadd.f32 %v8860_v23, %v16898_v57 }
 0x4c7   : > { %v8862_v56 = vpop.f32.mrf.mxu1 }
 0x4c8   : > { %18143 = vst [vmem:[#allocation70_spill] sm:$0xff] %v17074_v13  ;;  %v17079_v55 = vadd.f32 %v8862_v56, %v16905_v3  ;;  %v18148_v13 = vld [vmem:[#allocation66_spill] sm:$0xff]  ;;  %v17098_v56 = vpop.f32.mrf.mxu0 }
 0x4c9   : > { %v8864_v44 = vpop.f32.mrf.mxu1  ;;  %v17096_v3 = vrot.slane %v17086_v36, %v18148_v13  ;;  %18149 = vst [vmem:[#allocation22_spill] sm:$0xff] %v17098_v56 }
 0x4ca   : > { %18144 = vst [vmem:[#allocation58_spill] sm:$0xff] %v17079_v55  ;;  %v17082_v18 = vadd.f32 %v8864_v44, %v16912_v58 }
 0x4cb   : > { %v8866_v39 = vpop.f32.mrf.mxu1 }
 0x4cc   : > { %18145 = vst [vmem:[#allocation73_spill] sm:$0xff] %v17082_v18  ;;  %v17089_v38 = vadd.f32 %v8866_v39, %v16918_v27  ;;  %v17103_v18 = vrot.slane %v17091_v14, %v18148_v13  ;;  %v18150_v39 = vld [vmem:[#allocation69_spill] sm:$0xff] }
 0x4cd   : > { %v10121_v57 = vpop.f32.mrf.mxu1  ;;  %v17114_v1 = vrot.slane %v17091_v14, %v18150_v39 }
 0x4ce   : > { %18146 = vst [vmem:[#allocation53_spill] sm:$0xff] %v17089_v38  ;;  %v10122_v23 = vadd.f32 %v10121_v57, %v16920_v43  ;;  %v17108_v38 = vrot.slane %v17086_v36, %v18150_v39 }
 0x4cf   : > { %v10123_v58 = vpop.f32.mrf.mxu1 }
 0x4d0   : > { %v10426_v44 = vadd.f32 %v10122_v23, %v16708_v6  ;;  %v10124_v27 = vadd.f32 %v10123_v58, %v16925_v31  ;;  %v17117_v23 = vpop.f32.mrf.mxu0 }
 0x4d1   : > { %v10125_v43 = vpop.f32.mrf.mxu1  ;;  %18151 = vst [vmem:[#allocation75_spill] sm:$0xff] %v17117_v23 }
 0x4d2   : > { %v10512_v57 = vmul.f32 %v17096_v3, %v10426_v44  ;;  %v10427_v55 = vadd.f32 %v10124_v27, %v16716_v26  ;;  %v10126_v6 = vadd.f32 %v10125_v43, %v16930_v50  ;;  %v13415_v26 = vld [vmem:[%s13975_s28] sm:$0xff]  ;;  %v17127_v23 = vpop.f32.mrf.mxu0 }
 0x4d3   : > { %v10127_v13 = vpop.f32.mrf.mxu1 }
 0x4d4   : > { %v10598_v31 = vadd.f32 %v17103_v18, %v10512_v57  ;;  %v10513_v58 = vmul.f32 %v17108_v38, %v10427_v55  ;;  %v10430_v15 = vadd.f32 %v10126_v6, %v16723_v0  ;;  %v10128_v44 = vadd.f32 %v10127_v13, %v16935_v24  ;;  %v13416_v0 = vld [vmem:[%s13975_s28 + $0x8] sm:$0xff] }
 0x4d5   : > { %v10131_v56 = vpop.f32.mrf.mxu1 }
 0x4d6   : > { %v10662_v27 = vadd.f32 %v13415_v26, %v10598_v31  ;;  %v10599_v39 = vadd.f32 %v17114_v1, %v10513_v58  ;;  %v10516_v50 = vmul.f32 %v17096_v3, %v10430_v15  ;;  %v10431_v43 = vadd.f32 %v10128_v44, %v16730_v19 }
 0x4d7   : > { %v10132_v57 = vadd.f32 %v10131_v56, %v16940_v9  ;;  %v10133_v55 = vpop.f32.mrf.mxu1  ;;  %v13417_v9 = vld [vmem:[%s13975_s28 + $0x20] sm:$0xff] }
 0x4d8   : > { %v10726_v14 = vmax.f32 %v10662_v27, 0.0  ;;  %v10663_v6 = vadd.f32 %v13416_v0, %v10599_v39  ;;  %v10602_v24 = vadd.f32 %v17103_v18, %v10516_v50  ;;  %v10517_v13 = vmul.f32 %v17108_v38, %v10431_v43  ;;  %v17143_v27 = vpop.f32.mrf.mxu0  ;;  %v13418_v43 = vld [vmem:[%s13975_s28 + $0x28] sm:$0xff] }
 0x4d9   : > { %v10434_v31 = vadd.f32 %v10132_v57, %v16738_v52  ;;  %v10134_v15 = vadd.f32 %v10133_v55, %v16945_v41  ;;  %v10135_v58 = vpop.f32.mrf.mxu1 }
 0x4da   : > { %10790 = vst [vmem:[%s17137_s8] sm:$0xff] %v10726_v14  ;;  %v10727_v19 = vmax.f32 %v10663_v6, 0.0  ;;  %v10666_v56 = vadd.f32 %v13417_v9, %v10602_v24  ;;  %v10603_v44 = vadd.f32 %v17114_v1, %v10517_v13  ;;  %v10136_v26 = vadd.f32 %v10135_v58, %v16950_v28 }
 0x4db   : > { %v10520_v52 = vmul.f32 %v17096_v3, %v10434_v31  ;;  %v10435_v41 = vadd.f32 %v10134_v15, %v16746_v40  ;;  %v10137_v39 = vpop.f32.mrf.mxu1  ;;  %v13419_v15 = vld [vmem:[%s13975_s28 + $0x40] sm:$0xff] }
 0x4dc   : > { %10791 = vst [vmem:[%s17137_s8 + $0x8] sm:$0xff] %v10727_v19  ;;  %v10730_v50 = vmax.f32 %v10666_v56, 0.0  ;;  %v10667_v14 = vadd.f32 %v13418_v43, %v10603_v44  ;;  %v10438_v57 = vadd.f32 %v10136_v26, %v16753_v61  ;;  %v10138_v55 = vadd.f32 %v10137_v39, %v16955_v5  ;;  %v17158_v61 = vpop.f32.mrf.mxu0  ;;  %v18152_v44 = vld [vmem:[#allocation78_spill] sm:$0xff] }
 0x4dd   : > { %v10606_v0 = vadd.f32 %v17103_v18, %v10520_v52  ;;  %v10521_v28 = vmul.f32 %v17108_v38, %v10435_v41  ;;  %v10141_v6 = vpop.f32.mrf.mxu1 }
 0x4de   : > { %10794 = vst [vmem:[%s17137_s8 + $0x20] sm:$0xff] %v10730_v50  ;;  %v10731_v24 = vmax.f32 %v10667_v14, 0.0  ;;  %v10524_v40 = vmul.f32 %v17096_v3, %v10438_v57  ;;  %v10439_v13 = vadd.f32 %v10138_v55, %v16760_v12  ;;  %v10142_v31 = vadd.f32 %v10141_v6, %v16960_v47  ;;  %v13420_v47 = vld [vmem:[%s13975_s28 + $0x48] sm:$0xff]  ;;  %v13421_v50 = vld [vmem:[%s13975_s28 + $0x60] sm:$0xff]  ;;  %v17172_v6 = vpop.f32.mrf.mxu0 }
 0x4df   : > { %v10670_v58 = vadd.f32 %v13419_v15, %v10606_v0  ;;  %v10607_v5 = vadd.f32 %v17114_v1, %v10521_v28  ;;  %v10143_v19 = vpop.f32.mrf.mxu1  ;;  %v18153_v55 = vld [vmem:[#allocation59_spill] sm:$0xff] }
 0x4e0   : > { %10795 = vst [vmem:[%s17137_s8 + $0x28] sm:$0xff] %v10731_v24  ;;  %v10610_v9 = vadd.f32 %v17103_v18, %v10524_v40  ;;  %v10525_v56 = vmul.f32 %v17108_v38, %v10439_v13  ;;  %v10442_v26 = vadd.f32 %v10142_v31, %v18152_v44  ;;  %v10144_v12 = vadd.f32 %v10143_v19, %v16965_v30  ;;  %v13422_v13 = vld [vmem:[%s13975_s28 + $0x68] sm:$0xff] }
 0x4e1   : > { %v10734_v52 = vmax.f32 %v10670_v58, 0.0  ;;  %v10671_v41 = vadd.f32 %v13420_v47, %v10607_v5  ;;  %v10145_v39 = vpop.f32.mrf.mxu1  ;;  %v18154_v5 = vld [vmem:[#allocation27_spill] sm:$0xff]  ;;  %v17185_v47 = vpop.f32.mrf.mxu0 }
 0x4e2   : > { %v10674_v43 = vadd.f32 %v13421_v50, %v10610_v9  ;;  %v10611_v14 = vadd.f32 %v17114_v1, %v10525_v56  ;;  %v10528_v57 = vmul.f32 %v17096_v3, %v10442_v26  ;;  %v10443_v0 = vadd.f32 %v10144_v12, %v18153_v55  ;;  %v13423_v26 = vld [vmem:[%s13975_s28 + $0x80] sm:$0xff]  ;;  %v18156_v55 = vld [vmem:[#allocation82_spill] sm:$0xff] }
 0x4e3   : > { %10798 = vst [vmem:[%s17137_s8 + $0x40] sm:$0xff] %v10734_v52  ;;  %v10735_v28 = vmax.f32 %v10671_v41, 0.0  ;;  %v10146_v30 = vadd.f32 %v10145_v39, %v16970_v22  ;;  %v10147_v24 = vpop.f32.mrf.mxu1  ;;  %v18155_v39 = vld [vmem:[#allocation61_spill] sm:$0xff] }
 0x4e4   : > { %v10738_v40 = vmax.f32 %v10674_v43, 0.0  ;;  %v10675_v31 = vadd.f32 %v13422_v13, %v10611_v14  ;;  %v10614_v15 = vadd.f32 %v17103_v18, %v10528_v57  ;;  %v10529_v58 = vmul.f32 %v17108_v38, %v10443_v0  ;;  %v13424_v14 = vld [vmem:[%s13975_s28 + $0x88] sm:$0xff] }
 0x4e5   : > { %10799 = vst [vmem:[%s17137_s8 + $0x48] sm:$0xff] %v10735_v28  ;;  %v10446_v19 = vadd.f32 %v10146_v30, %v18154_v5  ;;  %v10148_v9 = vadd.f32 %v10147_v24, %v16975_v2  ;;  %v10151_v56 = vpop.f32.mrf.mxu1  ;;  %v17199_v5 = vpop.f32.mrf.mxu0 }
 0x4e6   : > { %10802 = vst [vmem:[%s17137_s8 + $0x60] sm:$0xff] %v10738_v40  ;;  %v10739_v44 = vmax.f32 %v10675_v31, 0.0  ;;  %v10678_v22 = vadd.f32 %v13423_v26, %v10614_v15  ;;  %v10615_v12 = vadd.f32 %v17114_v1, %v10529_v58  ;;  %v10152_v52 = vadd.f32 %v10151_v56, %v16980_v60  ;;  %v18157_v31 = vld [vmem:[#allocation63_spill] sm:$0xff] }
 0x4e7   : > { %v10532_v41 = vmul.f32 %v17096_v3, %v10446_v19  ;;  %v10447_v50 = vadd.f32 %v10148_v9, %v18155_v39  ;;  %v10153_v43 = vpop.f32.mrf.mxu1  ;;  %v13425_v19 = vld [vmem:[%s13975_s28 + $0xa0] sm:$0xff] }
 0x4e8   : > { %10803 = vst [vmem:[%s17137_s8 + $0x68] sm:$0xff] %v10739_v44  ;;  %v10742_v2 = vmax.f32 %v10678_v22, 0.0  ;;  %v10679_v57 = vadd.f32 %v13424_v14, %v10615_v12  ;;  %v10450_v0 = vadd.f32 %v10152_v52, %v18156_v55  ;;  %v10154_v28 = vadd.f32 %v10153_v43, %v16985_v17  ;;  %v18158_v22 = vld [vmem:[#allocation89_spill] sm:$0xff]  ;;  %v13427_v43 = vld [vmem:[%s13975_s28 + $0xc0] sm:$0xff]  ;;  %v18159_v55 = vld [vmem:[#allocation64_spill] sm:$0xff] }
 0x4e9   : > { %v10618_v30 = vadd.f32 %v17103_v18, %v10532_v41  ;;  %v10533_v60 = vmul.f32 %v17108_v38, %v10447_v50  ;;  %v10155_v24 = vpop.f32.mrf.mxu1 }
 0x4ea   : > { %10806 = vst [vmem:[%s17137_s8 + $0x80] sm:$0xff] %v10742_v2  ;;  %v10743_v40 = vmax.f32 %v10679_v57, 0.0  ;;  %v10536_v13 = vmul.f32 %v17096_v3, %v10450_v0  ;;  %v10451_v15 = vadd.f32 %v10154_v28, %v18157_v31  ;;  %v10156_v58 = vadd.f32 %v10155_v24, %v16990_v59  ;;  %v13426_v59 = vld [vmem:[%s13975_s28 + $0xa8] sm:$0xff]  ;;  %v17213_v28 = vpop.f32.mrf.mxu0 }
 0x4eb   : > { %v10682_v9 = vadd.f32 %v13425_v19, %v10618_v30  ;;  %v10619_v17 = vadd.f32 %v17114_v1, %v10533_v60  ;;  %v10157_v56 = vpop.f32.mrf.mxu1 }
 0x4ec   : > { %10807 = vst [vmem:[%s17137_s8 + $0x88] sm:$0xff] %v10743_v40  ;;  %v10622_v44 = vadd.f32 %v17103_v18, %v10536_v13  ;;  %v10537_v26 = vmul.f32 %v17108_v38, %v10451_v15  ;;  %v10454_v12 = vadd.f32 %v10156_v58, %v18158_v22  ;;  %v10158_v52 = vadd.f32 %v10157_v56, %v16995_v45  ;;  %v13428_v40 = vld [vmem:[%s13975_s28 + $0xc8] sm:$0xff] }
 0x4ed   : > { %v10746_v41 = vmax.f32 %v10682_v9, 0.0  ;;  %v10683_v39 = vadd.f32 %v13426_v59, %v10619_v17  ;;  %v10161_v50 = vpop.f32.mrf.mxu1  ;;  %v18160_v58 = vld [vmem:[#allocation28_spill] sm:$0xff] }
 0x4ee   : > { %v10686_v2 = vadd.f32 %v13427_v43, %v10622_v44  ;;  %v10623_v14 = vadd.f32 %v17114_v1, %v10537_v26  ;;  %v10540_v57 = vmul.f32 %v17096_v3, %v10454_v12  ;;  %v10455_v0 = vadd.f32 %v10158_v52, %v18159_v55  ;;  %v13429_v44 = vld [vmem:[%s13975_s28 + $0xe0] sm:$0xff]  ;;  %v17227_v12 = vpop.f32.mrf.mxu0 }
 0x4ef   : > { %10810 = vst [vmem:[%s17137_s8 + $0xa0] sm:$0xff] %v10746_v41  ;;  %v10747_v45 = vmax.f32 %v10683_v39, 0.0  ;;  %v10162_v30 = vadd.f32 %v10161_v50, %v17000_v33  ;;  %v10163_v60 = vpop.f32.mrf.mxu1  ;;  %v18161_v41 = vld [vmem:[#allocation29_spill] sm:$0xff]  ;;  %v13430_v50 = vld [vmem:[%s13975_s28 + $0xe8] sm:$0xff] }
 0x4f0   : > { %v10750_v24 = vmax.f32 %v10686_v2, 0.0  ;;  %v10687_v13 = vadd.f32 %v13428_v40, %v10623_v14  ;;  %v10626_v31 = vadd.f32 %v17103_v18, %v10540_v57  ;;  %v10541_v15 = vmul.f32 %v17108_v38, %v10455_v0  ;;  %v18162_v2 = vld [vmem:[#allocation88_spill] sm:$0xff] }
 0x4f1   : > { %10811 = vst [vmem:[%s17137_s8 + $0xa8] sm:$0xff] %v10747_v45  ;;  %v10458_v19 = vadd.f32 %v10162_v30, %v18160_v58  ;;  %v10164_v9 = vadd.f32 %v10163_v60, %v17005_v21  ;;  %v10165_v17 = vpop.f32.mrf.mxu1  ;;  %v18163_v60 = vld [vmem:[#allocation67_spill] sm:$0xff] }
 0x4f2   : > { %10814 = vst [vmem:[%s17137_s8 + $0xc0] sm:$0xff] %v10750_v24  ;;  %v10751_v56 = vmax.f32 %v10687_v13, 0.0  ;;  %v10690_v33 = vadd.f32 %v13429_v44, %v10626_v31  ;;  %v10627_v26 = vadd.f32 %v17114_v1, %v10541_v15  ;;  %v10166_v22 = vadd.f32 %v10165_v17, %v17010_v16  ;;  %v17241_v13 = vpop.f32.mrf.mxu0  ;;  %v13431_v31 = vld [vmem:[%s13975_s28 + $0x100] sm:$0xff] }
 0x4f3   : > { %v10544_v52 = vmul.f32 %v17096_v3, %v10458_v19  ;;  %v10459_v59 = vadd.f32 %v10164_v9, %v18161_v41  ;;  %v10167_v39 = vpop.f32.mrf.mxu1  ;;  %v18164_v17 = vld [vmem:[#allocation31_spill] sm:$0xff] }
 0x4f4   : > { %10815 = vst [vmem:[%s17137_s8 + $0xc8] sm:$0xff] %v10751_v56  ;;  %v10754_v21 = vmax.f32 %v10690_v33, 0.0  ;;  %v10691_v43 = vadd.f32 %v13430_v50, %v10627_v26  ;;  %v10462_v14 = vadd.f32 %v10166_v22, %v18162_v2  ;;  %v10168_v57 = vadd.f32 %v10167_v39, %v17015_v46  ;;  %v17255_v50 = vpop.f32.mrf.mxu0 }
 0x4f5   : > { %v10630_v55 = vadd.f32 %v17103_v18, %v10544_v52  ;;  %v10545_v16 = vmul.f32 %v17108_v38, %v10459_v59  ;;  %v10171_v0 = vpop.f32.mrf.mxu1  ;;  %v13433_v52 = vld [vmem:[%s13975_s28 + $0x120] sm:$0xff] }
 0x4f6   : > { %10818 = vst [vmem:[%s17137_s8 + $0xe0] sm:$0xff] %v10754_v21  ;;  %v10755_v45 = vmax.f32 %v10691_v43, 0.0  ;;  %v10548_v30 = vmul.f32 %v17096_v3, %v10462_v14  ;;  %v10463_v24 = vadd.f32 %v10168_v57, %v18163_v60  ;;  %v10172_v40 = vadd.f32 %v10171_v0, %v17020_v7  ;;  %v13432_v7 = vld [vmem:[%s13975_s28 + $0x108] sm:$0xff] }
 0x4f7   : > { %v10694_v15 = vadd.f32 %v13431_v31, %v10630_v55  ;;  %v10631_v46 = vadd.f32 %v17114_v1, %v10545_v16  ;;  %v10173_v58 = vpop.f32.mrf.mxu1  ;;  %v13434_v57 = vld [vmem:[%s13975_s28 + $0x128] sm:$0xff] }
 0x4f8   : > { %10819 = vst [vmem:[%s17137_s8 + $0xe8] sm:$0xff] %v10755_v45  ;;  %v10634_v19 = vadd.f32 %v17103_v18, %v10548_v30  ;;  %v10549_v9 = vmul.f32 %v17108_v38, %v10463_v24  ;;  %v10466_v56 = vadd.f32 %v10172_v40, %v18164_v17  ;;  %v10174_v44 = vadd.f32 %v10173_v58, %v17025_v10  ;;  %v13435_v24 = vld [vmem:[%s13975_s28 + $0x140] sm:$0xff] }
 0x4f9   : > { %v10758_v33 = vmax.f32 %v10694_v15, 0.0  ;;  %v10695_v26 = vadd.f32 %v13432_v7, %v10631_v46  ;;  %v10175_v22 = vpop.f32.mrf.mxu1  ;;  %v17269_v15 = vpop.f32.mrf.mxu0 }
 0x4fa   : > { %v10698_v41 = vadd.f32 %v13433_v52, %v10634_v19  ;;  %v10635_v59 = vadd.f32 %v17114_v1, %v10549_v9  ;;  %v10552_v39 = vmul.f32 %v17096_v3, %v10466_v56  ;;  %v10467_v21 = vadd.f32 %v10174_v44, %v16866_v20 }
 0x4fb   : > { %10822 = vst [vmem:[%s17137_s8 + $0x100] sm:$0xff] %v10758_v33  ;;  %v10759_v10 = vmax.f32 %v10695_v26, 0.0  ;;  %v10176_v43 = vadd.f32 %v10175_v22, %v17030_v51  ;;  %v10177_v2 = vpop.f32.mrf.mxu1  ;;  %v17283_v52 = vpop.f32.mrf.mxu0 }
 0x4fc   : > { %v10762_v14 = vmax.f32 %v10698_v41, 0.0  ;;  %v10699_v55 = vadd.f32 %v13434_v57, %v10635_v59  ;;  %v10638_v16 = vadd.f32 %v17103_v18, %v10552_v39  ;;  %v10553_v0 = vmul.f32 %v17108_v38, %v10467_v21  ;;  %v13439_v57 = vld [vmem:[%s13975_s28 + $0x180] sm:$0xff] }
 0x4fd   : > { %10823 = vst [vmem:[%s17137_s8 + $0x108] sm:$0xff] %v10759_v10  ;;  %v10470_v20 = vadd.f32 %v10176_v43, %v16873_v29  ;;  %v10178_v45 = vadd.f32 %v10177_v2, %v17035_v4  ;;  %v10181_v30 = vpop.f32.mrf.mxu1  ;;  %v13436_v4 = vld [vmem:[%s13975_s28 + $0x148] sm:$0xff] }
 0x4fe   : > { %10826 = vst [vmem:[%s17137_s8 + $0x120] sm:$0xff] %v10762_v14  ;;  %v10763_v60 = vmax.f32 %v10699_v55, 0.0  ;;  %v10702_v51 = vadd.f32 %v13435_v24, %v10638_v16  ;;  %v10639_v40 = vadd.f32 %v17114_v1, %v10553_v0  ;;  %v10182_v31 = vadd.f32 %v10181_v30, %v17040_v34  ;;  %v13440_v24 = vld [vmem:[%s13975_s28 + $0x188] sm:$0xff] }
 0x4ff   : > { %v10556_v46 = vmul.f32 %v17096_v3, %v10470_v20  ;;  %v10471_v58 = vadd.f32 %v10178_v45, %v16880_v42  ;;  %v10183_v19 = vpop.f32.mrf.mxu1  ;;  %v17297_v45 = vpop.f32.mrf.mxu0 }
 0x500   : > { %10827 = vst [vmem:[%s17137_s8 + $0x128] sm:$0xff] %v10763_v60  ;;  %v10766_v29 = vmax.f32 %v10702_v51, 0.0  ;;  %v10703_v9 = vadd.f32 %v13436_v4, %v10639_v40  ;;  %v10474_v17 = vadd.f32 %v10182_v31, %v16888_v37  ;;  %v10184_v56 = vadd.f32 %v10183_v19, %v17045_v11  ;;  %v13437_v37 = vld [vmem:[%s13975_s28 + $0x160] sm:$0xff] }
 0x501   : > { %v10642_v44 = vadd.f32 %v17103_v18, %v10556_v46  ;;  %v10557_v34 = vmul.f32 %v17108_v38, %v10471_v58  ;;  %v10185_v33 = vpop.f32.mrf.mxu1 }
 0x502   : > { %10830 = vst [vmem:[%s17137_s8 + $0x140] sm:$0xff] %v10766_v29  ;;  %v10767_v7 = vmax.f32 %v10703_v9, 0.0  ;;  %v10560_v42 = vmul.f32 %v17096_v3, %v10474_v17  ;;  %v10475_v26 = vadd.f32 %v10184_v56, %v16896_v48  ;;  %v10186_v22 = vadd.f32 %v10185_v33, %v17050_v35  ;;  %v13438_v35 = vld [vmem:[%s13975_s28 + $0x168] sm:$0xff]  ;;  %v13441_v29 = vld [vmem:[%s13975_s28 + $0x1a0] sm:$0xff]  ;;  %v17311_v17 = vpop.f32.mrf.mxu0 }
 0x503   : > { %v10706_v41 = vadd.f32 %v13437_v37, %v10642_v44  ;;  %v10643_v11 = vadd.f32 %v17114_v1, %v10557_v34  ;;  %v10187_v59 = vpop.f32.mrf.mxu1  ;;  %v18165_v44 = vld [vmem:[#allocation32_spill] sm:$0xff] }
 0x504   : > { %10831 = vst [vmem:[%s17137_s8 + $0x148] sm:$0xff] %v10767_v7  ;;  %v10646_v39 = vadd.f32 %v17103_v18, %v10560_v42  ;;  %v10561_v21 = vmul.f32 %v17108_v38, %v10475_v26  ;;  %v10478_v10 = vadd.f32 %v10186_v22, %v16903_v25  ;;  %v10188_v48 = vadd.f32 %v10187_v59, %v17055_v49  ;;  %v18166_v42 = vld [vmem:[#allocation33_spill] sm:$0xff] }
 0x505   : > { %v10770_v43 = vmax.f32 %v10706_v41, 0.0  ;;  %v10707_v2 = vadd.f32 %v13438_v35, %v10643_v11  ;;  %v10191_v14 = vpop.f32.mrf.mxu1  ;;  %v18167_v11 = vld [vmem:[#allocation30_spill] sm:$0xff] }
 0x506   : > { %v10710_v55 = vadd.f32 %v13439_v57, %v10646_v39  ;;  %v10647_v16 = vadd.f32 %v17114_v1, %v10561_v21  ;;  %v10564_v0 = vmul.f32 %v17096_v3, %v10478_v10  ;;  %v10479_v20 = vadd.f32 %v10188_v48, %v16910_v8  ;;  %v18168_v10 = vld [vmem:[#allocation35_spill] sm:$0xff] }
 0x507   : > { %10834 = vst [vmem:[%s17137_s8 + $0x160] sm:$0xff] %v10770_v43  ;;  %v10771_v25 = vmax.f32 %v10707_v2, 0.0  ;;  %v10192_v49 = vadd.f32 %v10191_v14, %v17060_v54  ;;  %v10193_v30 = vpop.f32.mrf.mxu1  ;;  %v17323_v59 = vrot.slane %v17086_v36, %v18167_v11  ;;  %v18169_v43 = vld [vmem:[#allocation22_spill] sm:$0xff]  ;;  %v13443_v2 = vld [vmem:[%s13975_s28 + $0x1c0] sm:$0xff] }
 0x508   : > { %v10774_v60 = vmax.f32 %v10710_v55, 0.0  ;;  %v10711_v51 = vadd.f32 %v13440_v24, %v10647_v16  ;;  %v10650_v40 = vadd.f32 %v17103_v18, %v10564_v0  ;;  %v10565_v31 = vmul.f32 %v17108_v38, %v10479_v20  ;;  %v18170_v55 = vld [vmem:[#allocation74_spill] sm:$0xff]  ;;  %v18173_v24 = vld [vmem:[#allocation75_spill] sm:$0xff] }
 0x509   : > { %10835 = vst [vmem:[%s17137_s8 + $0x168] sm:$0xff] %v10771_v25  ;;  %v10482_v8 = vadd.f32 %v10192_v49, %v16916_v62  ;;  %v10194_v46 = vadd.f32 %v10193_v30, %v17068_v32  ;;  %v10195_v58 = vpop.f32.mrf.mxu1  ;;  %v13442_v32 = vld [vmem:[%s13975_s28 + $0x1a8] sm:$0xff]  ;;  %v17335_v16 = vrot.slane %v18170_v55, %v18167_v11  ;;  %v18171_v20 = vld [vmem:[#allocation34_spill] sm:$0xff] }
 0x50a   : > { %10838 = vst [vmem:[%s17137_s8 + $0x180] sm:$0xff] %v10774_v60  ;;  %v10775_v19 = vmax.f32 %v10711_v51, 0.0  ;;  %v10714_v54 = vadd.f32 %v13441_v29, %v10650_v40  ;;  %v10651_v4 = vadd.f32 %v17114_v1, %v10565_v31  ;;  %v10196_v9 = vadd.f32 %v10195_v58, %v17076_v53  ;;  %v18172_v30 = vld [vmem:[#allocation36_spill] sm:$0xff]  ;;  %v13445_v58 = vld [vmem:[%s13975_s28 + $0x1e0] sm:$0xff]  ;;  %v18174_v29 = vld [vmem:[#allocation37_spill] sm:$0xff] }
 0x50b   : > { %v10568_v56 = vmul.f32 %v17096_v3, %v10482_v8  ;;  %v10483_v34 = vadd.f32 %v10194_v46, %v18165_v44  ;;  %v10197_v33 = vpop.f32.mrf.mxu1  ;;  %v13444_v31 = vld [vmem:[%s13975_s28 + $0x1c8] sm:$0xff]  ;;  %v17349_v46 = vrot.slane %v18170_v55, %v18171_v20 }
 0x50c   : > { %10839 = vst [vmem:[%s17137_s8 + $0x188] sm:$0xff] %v10775_v19  ;;  %v10778_v62 = vmax.f32 %v10714_v54, 0.0  ;;  %v10715_v7 = vadd.f32 %v13442_v32, %v10651_v4  ;;  %v10486_v26 = vadd.f32 %v10196_v9, %v18166_v42  ;;  %v10198_v22 = vadd.f32 %v10197_v33, %v17084_v63  ;;  %v17329_v63 = vpop.f32.mrf.mxu0  ;;  %v13446_v33 = vld [vmem:[%s13975_s28 + $0x1e8] sm:$0xff] }
 0x50d   : > { %v10654_v37 = vadd.f32 %v17103_v18, %v10568_v56  ;;  %v10569_v53 = vmul.f32 %v17108_v38, %v10483_v34  ;;  %v10347_v41 = vpop.f32.mrf.mxu1 }
 0x50e   : > { %10842 = vst [vmem:[%s17137_s8 + $0x1a0] sm:$0xff] %v10778_v62  ;;  %v10779_v39 = vmax.f32 %v10715_v7, 0.0  ;;  %v10572_v21 = vmul.f32 %v17096_v3, %v10486_v26  ;;  %v10487_v48 = vadd.f32 %v10198_v22, %v18168_v10  ;;  %v10348_v35 = vadd.f32 %v10347_v41, %v18169_v43  ;;  %v17355_v4 = vpop.f32.mrf.mxu0  ;;  %v18175_v7 = vld [vmem:[#allocation40_spill] sm:$0xff]  ;;  %v18176_v10 = vld [vmem:[#allocation41_spill] sm:$0xff] }
 0x50f   : > { %v10718_v14 = vadd.f32 %v13443_v2, %v10654_v37  ;;  %v10655_v57 = vadd.f32 %v17114_v1, %v10569_v53  ;;  %v10349_v0 = vpop.f32.mrf.mxu1  ;;  %v17339_v3 = vrot.slane %v17086_v36, %v18171_v20  ;;  %v13447_v53 = vld [vmem:[%s13975_s28 + $0x10] sm:$0xff] }
 0x510   : > { %10843 = vst [vmem:[%s17137_s8 + $0x1a8] sm:$0xff] %v10779_v39  ;;  %v10658_v25 = vadd.f32 %v17103_v18, %v10572_v21  ;;  %v10573_v49 = vmul.f32 %v17108_v38, %v10487_v48  ;;  %v10428_v60 = vadd.f32 %v10348_v35, %v18172_v30  ;;  %v10350_v51 = vadd.f32 %v10349_v0, %v18173_v24  ;;  %v17369_v39 = vpop.f32.mrf.mxu0  ;;  %v13448_v35 = vld [vmem:[%s13975_s28 + $0x18] sm:$0xff]  ;;  %v18178_v30 = vld [vmem:[#allocation44_spill] sm:$0xff] }
 0x511   : > { %v10782_v40 = vmax.f32 %v10718_v14, 0.0  ;;  %v10719_v8 = vadd.f32 %v13444_v31, %v10655_v57  ;;  %v10351_v36 = vpop.f32.mrf.mxu1  ;;  %v18177_v14 = vld [vmem:[#allocation42_spill] sm:$0xff] }
 0x512   : > { %v10722_v19 = vadd.f32 %v13445_v58, %v10658_v25  ;;  %v10659_v18 = vadd.f32 %v17114_v1, %v10573_v49  ;;  %v10514_v38 = vmul.f32 %v17323_v59, %v10428_v60  ;;  %v10429_v54 = vadd.f32 %v10350_v51, %v18174_v29  ;;  %v17383_v51 = vpop.f32.mrf.mxu0 }
 0x513   : > { %10846 = vst [vmem:[%s17137_s8 + $0x1c0] sm:$0xff] %v10782_v40  ;;  %v10783_v9 = vmax.f32 %v10719_v8, 0.0  ;;  %v10352_v56 = vadd.f32 %v10351_v36, %v17127_v23  ;;  %v10353_v44 = vpop.f32.mrf.mxu1  ;;  %v13449_v40 = vld [vmem:[%s13975_s28 + $0x30] sm:$0xff] }
 0x514   : > { %v10786_v34 = vmax.f32 %v10722_v19, 0.0  ;;  %v10723_v62 = vadd.f32 %v13446_v33, %v10659_v18  ;;  %v10600_v32 = vadd.f32 %v17335_v16, %v10514_v38  ;;  %v10515_v1 = vmul.f32 %v17339_v3, %v10429_v54  ;;  %v18179_v19 = vld [vmem:[#allocation46_spill] sm:$0xff] }
 0x515   : > { %10847 = vst [vmem:[%s17137_s8 + $0x1c8] sm:$0xff] %v10783_v9  ;;  %v10432_v42 = vadd.f32 %v10352_v56, %v18175_v7  ;;  %v10354_v26 = vadd.f32 %v10353_v44, %v17143_v27  ;;  %v10357_v22 = vpop.f32.mrf.mxu1  ;;  %v13451_v56 = vld [vmem:[%s13975_s28 + $0x50] sm:$0xff] }
 0x516   : > { %10850 = vst [vmem:[%s17137_s8 + $0x1e0] sm:$0xff] %v10786_v34  ;;  %v10787_v37 = vmax.f32 %v10723_v62, 0.0  ;;  %v10664_v23 = vadd.f32 %v13447_v53, %v10600_v32  ;;  %v10601_v41 = vadd.f32 %v17349_v46, %v10515_v1  ;;  %v10358_v11 = vadd.f32 %v10357_v22, %v17158_v61  ;;  %v18180_v62 = vld [vmem:[#allocation90_spill] sm:$0xff]  ;;  %v17397_v1 = vpop.f32.mrf.mxu0 }
 0x517   : > { %v10518_v21 = vmul.f32 %v17323_v59, %v10432_v42  ;;  %v10433_v48 = vadd.f32 %v10354_v26, %v18176_v10  ;;  %v10359_v43 = vpop.f32.mrf.mxu1  ;;  %v13452_v22 = vld [vmem:[%s13975_s28 + $0x58] sm:$0xff] }
 0x518   : > { %10851 = vst [vmem:[%s17137_s8 + $0x1e8] sm:$0xff] %v10787_v37  ;;  %v10728_v27 = vmax.f32 %v10664_v23, 0.0  ;;  %v10665_v2 = vadd.f32 %v13448_v35, %v10601_v41  ;;  %v10436_v57 = vadd.f32 %v10358_v11, %v18177_v14  ;;  %v10360_v55 = vadd.f32 %v10359_v43, %v17172_v6  ;;  %v18181_v41 = vld [vmem:[#allocation92_spill] sm:$0xff]  ;;  %v13453_v43 = vld [vmem:[%s13975_s28 + $0x70] sm:$0xff] }
 0x519   : > { %v10604_v0 = vadd.f32 %v17335_v16, %v10518_v21  ;;  %v10519_v61 = vmul.f32 %v17339_v3, %v10433_v48  ;;  %v10361_v20 = vpop.f32.mrf.mxu1 }
 0x51a   : > { %10792 = vst [vmem:[%s17137_s8 + $0x10] sm:$0xff] %v10728_v27  ;;  %v10729_v25 = vmax.f32 %v10665_v2, 0.0  ;;  %v10522_v49 = vmul.f32 %v17323_v59, %v10436_v57  ;;  %v10437_v60 = vadd.f32 %v10360_v55, %v18178_v30  ;;  %v10362_v24 = vadd.f32 %v10361_v20, %v17185_v47  ;;  %v13450_v47 = vld [vmem:[%s13975_s28 + $0x38] sm:$0xff]  ;;  %v17411_v2 = vpop.f32.mrf.mxu0  ;;  %v18182_v57 = vld [vmem:[#allocation49_spill] sm:$0xff] }
 0x51b   : > { %v10668_v31 = vadd.f32 %v13449_v40, %v10604_v0  ;;  %v10605_v6 = vadd.f32 %v17349_v46, %v10519_v61  ;;  %v10363_v8 = vpop.f32.mrf.mxu1  ;;  %v13454_v61 = vld [vmem:[%s13975_s28 + $0x78] sm:$0xff] }
 0x51c   : > { %10793 = vst [vmem:[%s17137_s8 + $0x18] sm:$0xff] %v10729_v25  ;;  %v10608_v36 = vadd.f32 %v17335_v16, %v10522_v49  ;;  %v10523_v58 = vmul.f32 %v17339_v3, %v10437_v60  ;;  %v10440_v18 = vadd.f32 %v10362_v24, %v18179_v19  ;;  %v10364_v38 = vadd.f32 %v10363_v8, %v17199_v5  ;;  %v18183_v25 = vld [vmem:[#allocation43_spill] sm:$0xff]  ;;  %v13455_v19 = vld [vmem:[%s13975_s28 + $0x90] sm:$0xff] }
 0x51d   : > { %v10732_v29 = vmax.f32 %v10668_v31, 0.0  ;;  %v10669_v54 = vadd.f32 %v13450_v47, %v10605_v6  ;;  %v10367_v9 = vpop.f32.mrf.mxu1  ;;  %v18184_v6 = vld [vmem:[#allocation91_spill] sm:$0xff] }
 0x51e   : > { %v10672_v44 = vadd.f32 %v13451_v56, %v10608_v36  ;;  %v10609_v34 = vadd.f32 %v17349_v46, %v10523_v58  ;;  %v10526_v33 = vmul.f32 %v17323_v59, %v10440_v18  ;;  %v10441_v32 = vadd.f32 %v10364_v38, %v18180_v62  ;;  %v17425_v58 = vpop.f32.mrf.mxu0  ;;  %v13457_v62 = vld [vmem:[%s13975_s28 + $0xb0] sm:$0xff] }
 0x51f   : > { %10796 = vst [vmem:[%s17137_s8 + $0x30] sm:$0xff] %v10732_v29  ;;  %v10733_v5 = vmax.f32 %v10669_v54, 0.0  ;;  %v10368_v7 = vadd.f32 %v10367_v9, %v17213_v28  ;;  %v10369_v42 = vpop.f32.mrf.mxu1  ;;  %v18185_v54 = vld [vmem:[#allocation50_spill] sm:$0xff] }
 0x520   : > { %v10736_v26 = vmax.f32 %v10672_v44, 0.0  ;;  %v10673_v37 = vadd.f32 %v13452_v22, %v10609_v34  ;;  %v10612_v53 = vadd.f32 %v17335_v16, %v10526_v33  ;;  %v10527_v23 = vmul.f32 %v17339_v3, %v10441_v32  ;;  %v17439_v22 = vpop.f32.mrf.mxu0 }
 0x521   : > { %10797 = vst [vmem:[%s17137_s8 + $0x38] sm:$0xff] %v10733_v5  ;;  %v10444_v11 = vadd.f32 %v10368_v7, %v18181_v41  ;;  %v10370_v21 = vadd.f32 %v10369_v42, %v17227_v12  ;;  %v10371_v10 = vpop.f32.mrf.mxu1  ;;  %v18186_v42 = vld [vmem:[#allocation93_spill] sm:$0xff]  ;;  %v13458_v41 = vld [vmem:[%s13975_s28 + $0xb8] sm:$0xff] }
 0x522   : > { %10800 = vst [vmem:[%s17137_s8 + $0x50] sm:$0xff] %v10736_v26  ;;  %v10737_v48 = vmax.f32 %v10673_v37, 0.0  ;;  %v10676_v28 = vadd.f32 %v13453_v43, %v10612_v53  ;;  %v10613_v27 = vadd.f32 %v17349_v46, %v10527_v23  ;;  %v10372_v35 = vadd.f32 %v10371_v10, %v17241_v13 }
 0x523   : > { %v10530_v14 = vmul.f32 %v17323_v59, %v10444_v11  ;;  %v10445_v55 = vadd.f32 %v10370_v21, %v18182_v57  ;;  %v10373_v0 = vpop.f32.mrf.mxu1 }
 0x524   : > { %10801 = vst [vmem:[%s17137_s8 + $0x58] sm:$0xff] %v10737_v48  ;;  %v10740_v12 = vmax.f32 %v10676_v28, 0.0  ;;  %v10677_v20 = vadd.f32 %v13454_v61, %v10613_v27  ;;  %v10448_v49 = vadd.f32 %v10372_v35, %v18183_v25  ;;  %v10374_v30 = vadd.f32 %v10373_v0, %v17255_v50  ;;  %v18187_v48 = vld [vmem:[#allocation52_spill] sm:$0xff]  ;;  %v17453_v0 = vpop.f32.mrf.mxu0  ;;  %v18188_v61 = vld [vmem:[#allocation94_spill] sm:$0xff] }
 0x525   : > { %v10616_v60 = vadd.f32 %v17335_v16, %v10530_v14  ;;  %v10531_v13 = vmul.f32 %v17339_v3, %v10445_v55  ;;  %v10377_v24 = vpop.f32.mrf.mxu1  ;;  %v13459_v14 = vld [vmem:[%s13975_s28 + $0xd0] sm:$0xff] }
 0x526   : > { %10804 = vst [vmem:[%s17137_s8 + $0x70] sm:$0xff] %v10740_v12  ;;  %v10741_v40 = vmax.f32 %v10677_v20, 0.0  ;;  %v10534_v31 = vmul.f32 %v17323_v59, %v10448_v49  ;;  %v10449_v8 = vadd.f32 %v10374_v30, %v18184_v6  ;;  %v10378_v36 = vadd.f32 %v10377_v24, %v17269_v15  ;;  %v13456_v15 = vld [vmem:[%s13975_s28 + $0x98] sm:$0xff] }
 0x527   : > { %v10680_v18 = vadd.f32 %v13455_v19, %v10616_v60  ;;  %v10617_v50 = vadd.f32 %v17349_v46, %v10531_v13  ;;  %v10379_v38 = vpop.f32.mrf.mxu1  ;;  %v13460_v49 = vld [vmem:[%s13975_s28 + $0xd8] sm:$0xff]  ;;  %v18189_v60 = vld [vmem:[#allocation48_spill] sm:$0xff] }
 0x528   : > { %10805 = vst [vmem:[%s17137_s8 + $0x78] sm:$0xff] %v10741_v40  ;;  %v10620_v29 = vadd.f32 %v17335_v16, %v10534_v31  ;;  %v10535_v47 = vmul.f32 %v17339_v3, %v10449_v8  ;;  %v10452_v9 = vadd.f32 %v10378_v36, %v18185_v54  ;;  %v10380_v56 = vadd.f32 %v10379_v38, %v17283_v52  ;;  %v18190_v36 = vld [vmem:[#allocation54_spill] sm:$0xff]  ;;  %v13461_v38 = vld [vmem:[%s13975_s28 + $0xf0] sm:$0xff] }
 0x529   : > { %v10744_v44 = vmax.f32 %v10680_v18, 0.0  ;;  %v10681_v34 = vadd.f32 %v13456_v15, %v10617_v50  ;;  %v10381_v33 = vpop.f32.mrf.mxu1  ;;  %v17467_v50 = vpop.f32.mrf.mxu0 }
 0x52a   : > { %v10684_v32 = vadd.f32 %v13457_v62, %v10620_v29  ;;  %v10621_v5 = vadd.f32 %v17349_v46, %v10535_v47  ;;  %v10538_v7 = vmul.f32 %v17323_v59, %v10452_v9  ;;  %v10453_v26 = vadd.f32 %v10380_v56, %v18186_v42  ;;  %v18191_v56 = vld [vmem:[#allocation45_spill] sm:$0xff] }
 0x52b   : > { %10808 = vst [vmem:[%s17137_s8 + $0x90] sm:$0xff] %v10744_v44  ;;  %v10745_v52 = vmax.f32 %v10681_v34, 0.0  ;;  %v10382_v37 = vadd.f32 %v10381_v33, %v17297_v45  ;;  %v10383_v53 = vpop.f32.mrf.mxu1 }
 0x52c   : > { %v10748_v23 = vmax.f32 %v10684_v32, 0.0  ;;  %v10685_v11 = vadd.f32 %v13458_v41, %v10621_v5  ;;  %v10624_v21 = vadd.f32 %v17335_v16, %v10538_v7  ;;  %v10539_v10 = vmul.f32 %v17339_v3, %v10453_v26  ;;  %v13463_v32 = vld [vmem:[%s13975_s28 + $0x110] sm:$0xff]  ;;  %v18192_v26 = vld [vmem:[#allocation56_spill] sm:$0xff] }
 0x52d   : > { %10809 = vst [vmem:[%s17137_s8 + $0x98] sm:$0xff] %v10745_v52  ;;  %v10456_v43 = vadd.f32 %v10382_v37, %v18187_v48  ;;  %v10384_v28 = vadd.f32 %v10383_v53, %v17311_v17  ;;  %v10387_v27 = vpop.f32.mrf.mxu1  ;;  %v10298_v37 = vpop.f32.mrf.mxu0 }
 0x52e   : > { %10812 = vst [vmem:[%s17137_s8 + $0xb0] sm:$0xff] %v10748_v23  ;;  %v10749_v35 = vmax.f32 %v10685_v11, 0.0  ;;  %v10688_v45 = vadd.f32 %v13459_v14, %v10624_v21  ;;  %v10625_v57 = vadd.f32 %v17349_v46, %v10539_v10  ;;  %v10388_v55 = vadd.f32 %v10387_v27, %v17329_v63  ;;  %v13464_v11 = vld [vmem:[%s13975_s28 + $0x118] sm:$0xff] }
 0x52f   : > { %v10542_v12 = vmul.f32 %v17323_v59, %v10456_v43  ;;  %v10457_v20 = vadd.f32 %v10384_v28, %v18188_v61  ;;  %v10389_v25 = vpop.f32.mrf.mxu1  ;;  %v18193_v43 = vld [vmem:[#allocation62_spill] sm:$0xff] }
 0x530   : > { %10813 = vst [vmem:[%s17137_s8 + $0xb8] sm:$0xff] %v10749_v35  ;;  %v10752_v17 = vmax.f32 %v10688_v45, 0.0  ;;  %v10689_v30 = vadd.f32 %v13460_v49, %v10625_v57  ;;  %v10460_v13 = vadd.f32 %v10388_v55, %v18189_v60  ;;  %v10390_v24 = vadd.f32 %v10389_v25, %v17355_v4  ;;  %v13465_v45 = vld [vmem:[%s13975_s28 + $0x130] sm:$0xff]  ;;  %v18195_v60 = vld [vmem:[#allocation68_spill] sm:$0xff] }
 0x531   : > { %v10628_v40 = vadd.f32 %v17335_v16, %v10542_v12  ;;  %v10543_v63 = vmul.f32 %v17339_v3, %v10457_v20  ;;  %v10391_v31 = vpop.f32.mrf.mxu1  ;;  %v10300_v12 = vpop.f32.mrf.mxu0  ;;  %v18194_v20 = vld [vmem:[#allocation51_spill] sm:$0xff] }
 0x532   : > { %10816 = vst [vmem:[%s17137_s8 + $0xd0] sm:$0xff] %v10752_v17  ;;  %v10753_v6 = vmax.f32 %v10689_v30, 0.0  ;;  %v10546_v8 = vmul.f32 %v17323_v59, %v10460_v13  ;;  %v10461_v19 = vadd.f32 %v10390_v24, %v18190_v36  ;;  %v10392_v18 = vadd.f32 %v10391_v31, %v17369_v39  ;;  %v13462_v39 = vld [vmem:[%s13975_s28 + $0xf8] sm:$0xff] }
 0x533   : > { %v10692_v29 = vadd.f32 %v13461_v38, %v10628_v40  ;;  %v10629_v4 = vadd.f32 %v17349_v46, %v10543_v63  ;;  %v10393_v47 = vpop.f32.mrf.mxu1  ;;  %v13467_v38 = vld [vmem:[%s13975_s28 + $0x150] sm:$0xff] }
 0x534   : > { %10817 = vst [vmem:[%s17137_s8 + $0xd8] sm:$0xff] %v10753_v6  ;;  %v10632_v54 = vadd.f32 %v17335_v16, %v10546_v8  ;;  %v10547_v9 = vmul.f32 %v17339_v3, %v10461_v19  ;;  %v10464_v44 = vadd.f32 %v10392_v18, %v18191_v56  ;;  %v10394_v15 = vadd.f32 %v10393_v47, %v17383_v51  ;;  %v18196_v8 = vld [vmem:[#allocation60_spill] sm:$0xff]  ;;  %v10304_v18 = vpop.f32.mrf.mxu0 }
 0x535   : > { %v10756_v34 = vmax.f32 %v10692_v29, 0.0  ;;  %v10693_v33 = vadd.f32 %v13462_v39, %v10629_v4  ;;  %v10397_v62 = vpop.f32.mrf.mxu1 }
 0x536   : > { %v10696_v5 = vadd.f32 %v13463_v32, %v10632_v54  ;;  %v10633_v7 = vadd.f32 %v17349_v46, %v10547_v9  ;;  %v10550_v42 = vmul.f32 %v17323_v59, %v10464_v44  ;;  %v10465_v52 = vadd.f32 %v10394_v15, %v18192_v26  ;;  %v18197_v9 = vld [vmem:[#allocation39_spill] sm:$0xff]  ;;  %v10306_v26 = vpop.f32.mrf.mxu0 }
 0x537   : > { %10820 = vst [vmem:[%s17137_s8 + $0xf0] sm:$0xff] %v10756_v34  ;;  %v10757_v53 = vmax.f32 %v10693_v33, 0.0  ;;  %v10398_v51 = vadd.f32 %v10397_v62, %v17397_v1  ;;  %v10399_v23 = vpop.f32.mrf.mxu1  ;;  %v13468_v34 = vld [vmem:[%s13975_s28 + $0x158] sm:$0xff]  ;;  %v13469_v33 = vld [vmem:[%s13975_s28 + $0x170] sm:$0xff] }
 0x538   : > { %v10760_v41 = vmax.f32 %v10696_v5, 0.0  ;;  %v10697_v21 = vadd.f32 %v13464_v11, %v10633_v7  ;;  %v10636_v10 = vadd.f32 %v17335_v16, %v10550_v42  ;;  %v10551_v48 = vmul.f32 %v17339_v3, %v10465_v52  ;;  %v18198_v7 = vld [vmem:[#allocation65_spill] sm:$0xff] }
 0x539   : > { %10821 = vst [vmem:[%s17137_s8 + $0xf8] sm:$0xff] %v10757_v53  ;;  %v10468_v28 = vadd.f32 %v10398_v51, %v18193_v43  ;;  %v10400_v27 = vadd.f32 %v10399_v23, %v17411_v2  ;;  %v10401_v35 = vpop.f32.mrf.mxu1  ;;  %v13466_v2 = vld [vmem:[%s13975_s28 + $0x138] sm:$0xff] }
 0x53a   : > { %10824 = vst [vmem:[%s17137_s8 + $0x110] sm:$0xff] %v10760_v41  ;;  %v10761_v14 = vmax.f32 %v10697_v21, 0.0  ;;  %v10700_v1 = vadd.f32 %v13465_v45, %v10636_v10  ;;  %v10637_v57 = vadd.f32 %v17349_v46, %v10551_v48  ;;  %v10402_v55 = vadd.f32 %v10401_v35, %v17425_v58  ;;  %v13470_v23 = vld [vmem:[%s13975_s28 + $0x178] sm:$0xff]  ;;  %v18199_v10 = vld [vmem:[#allocation71_spill] sm:$0xff]  ;;  %v13471_v35 = vld [vmem:[%s13975_s28 + $0x190] sm:$0xff] }
 0x53b   : > { %v10554_v61 = vmul.f32 %v17323_v59, %v10468_v28  ;;  %v10469_v25 = vadd.f32 %v10400_v27, %v18194_v20  ;;  %v10403_v17 = vpop.f32.mrf.mxu1 }
 0x53c   : > { %10825 = vst [vmem:[%s17137_s8 + $0x118] sm:$0xff] %v10761_v14  ;;  %v10764_v49 = vmax.f32 %v10700_v1, 0.0  ;;  %v10701_v30 = vadd.f32 %v13466_v2, %v10637_v57  ;;  %v10472_v13 = vadd.f32 %v10402_v55, %v18195_v60  ;;  %v10404_v24 = vadd.f32 %v10403_v17, %v17439_v22  ;;  %v10308_v1 = vpop.f32.mrf.mxu0  ;;  %v18200_v55 = vld [vmem:[#allocation38_spill] sm:$0xff] }
 0x53d   : > { %v10640_v40 = vadd.f32 %v17335_v16, %v10554_v61  ;;  %v10555_v58 = vmul.f32 %v17339_v3, %v10469_v25  ;;  %v10407_v63 = vpop.f32.mrf.mxu1  ;;  %v13472_v17 = vld [vmem:[%s13975_s28 + $0x198] sm:$0xff] }
 0x53e   : > { %10828 = vst [vmem:[%s17137_s8 + $0x130] sm:$0xff] %v10764_v49  ;;  %v10765_v31 = vmax.f32 %v10701_v30, 0.0  ;;  %v10558_v6 = vmul.f32 %v17323_v59, %v10472_v13  ;;  %v10473_v36 = vadd.f32 %v10404_v24, %v18196_v8  ;;  %v10408_v19 = vadd.f32 %v10407_v63, %v17453_v0  ;;  %v18201_v49 = vld [vmem:[#allocation70_spill] sm:$0xff]  ;;  %v10310_v8 = vpop.f32.mrf.mxu0 }
 0x53f   : > { %v10704_v29 = vadd.f32 %v13467_v38, %v10640_v40  ;;  %v10641_v22 = vadd.f32 %v17349_v46, %v10555_v58  ;;  %v10409_v4 = vpop.f32.mrf.mxu1  ;;  %v18202_v63 = vld [vmem:[#allocation58_spill] sm:$0xff] }
 0x540   : > { %10829 = vst [vmem:[%s17137_s8 + $0x138] sm:$0xff] %v10765_v31  ;;  %v10644_v47 = vadd.f32 %v17335_v16, %v10558_v6  ;;  %v10559_v54 = vmul.f32 %v17339_v3, %v10473_v36  ;;  %v10476_v56 = vadd.f32 %v10408_v19, %v18197_v9  ;;  %v10410_v44 = vadd.f32 %v10409_v4, %v17467_v50  ;;  %v13473_v36 = vld [vmem:[%s13975_s28 + $0x1b0] sm:$0xff] }
 0x541   : > { %v10768_v15 = vmax.f32 %v10704_v29, 0.0  ;;  %v10705_v0 = vadd.f32 %v13468_v34, %v10641_v22  ;;  %v10411_v39 = vpop.f32.mrf.mxu1  ;;  %v18203_v4 = vld [vmem:[#allocation73_spill] sm:$0xff] }
 0x542   : > { %v10708_v62 = vadd.f32 %v13469_v33, %v10644_v47  ;;  %v10645_v32 = vadd.f32 %v17349_v46, %v10559_v54  ;;  %v10562_v5 = vmul.f32 %v17323_v59, %v10476_v56  ;;  %v10477_v42 = vadd.f32 %v10410_v44, %v18198_v7  ;;  %v13474_v56 = vld [vmem:[%s13975_s28 + $0x1b8] sm:$0xff]  ;;  %v18204_v33 = vld [vmem:[#allocation53_spill] sm:$0xff] }
 0x543   : > { %10832 = vst [vmem:[%s17137_s8 + $0x150] sm:$0xff] %v10768_v15  ;;  %v10769_v52 = vmax.f32 %v10705_v0, 0.0  ;;  %v10412_v50 = vadd.f32 %v10411_v39, %v10298_v37  ;;  %v10413_v53 = vpop.f32.mrf.mxu1  ;;  %v13475_v15 = vld [vmem:[%s13975_s28 + $0x1d0] sm:$0xff]  ;;  %v13476_v7 = vld [vmem:[%s13975_s28 + $0x1d8] sm:$0xff] }
 0x544   : > { %v10772_v51 = vmax.f32 %v10708_v62, 0.0  ;;  %v10709_v41 = vadd.f32 %v13470_v23, %v10645_v32  ;;  %v10648_v11 = vadd.f32 %v17335_v16, %v10562_v5  ;;  %v10563_v21 = vmul.f32 %v17339_v3, %v10477_v42 }
 0x545   : > { %10833 = vst [vmem:[%s17137_s8 + $0x158] sm:$0xff] %v10769_v52  ;;  %v10480_v48 = vadd.f32 %v10412_v50, %v18199_v10  ;;  %v10414_v43 = vadd.f32 %v10413_v53, %v10300_v12  ;;  %v10417_v28 = vpop.f32.mrf.mxu1  ;;  %v13477_v50 = vld [vmem:[%s13975_s28 + $0x1f0] sm:$0xff] }
 0x546   : > { %10836 = vst [vmem:[%s17137_s8 + $0x170] sm:$0xff] %v10772_v51  ;;  %v10773_v27 = vmax.f32 %v10709_v41, 0.0  ;;  %v10712_v14 = vadd.f32 %v13471_v35, %v10648_v11  ;;  %v10649_v37 = vadd.f32 %v17349_v46, %v10563_v21  ;;  %v10418_v45 = vadd.f32 %v10417_v28, %v10304_v18  ;;  %v13478_v41 = vld [vmem:[%s13975_s28 + $0x1f8] sm:$0xff] }
 0x547   : > { %v10566_v57 = vmul.f32 %v17323_v59, %v10480_v48  ;;  %v10481_v61 = vadd.f32 %v10414_v43, %v18200_v55  ;;  %v10419_v20 = vpop.f32.mrf.mxu1 }
 0x548   : > { %10837 = vst [vmem:[%s17137_s8 + $0x178] sm:$0xff] %v10773_v27  ;;  %v10776_v25 = vmax.f32 %v10712_v14, 0.0  ;;  %v10713_v12 = vadd.f32 %v13472_v17, %v10649_v37  ;;  %v10484_v2 = vadd.f32 %v10418_v45, %v18201_v49  ;;  %v10420_v30 = vadd.f32 %v10419_v20, %v10306_v26 }
 0x549   : > { %v10652_v60 = vadd.f32 %v17335_v16, %v10566_v57  ;;  %v10567_v13 = vmul.f32 %v17339_v3, %v10481_v61  ;;  %v10421_v24 = vpop.f32.mrf.mxu1 }
 0x54a   : > { %10840 = vst [vmem:[%s17137_s8 + $0x190] sm:$0xff] %v10776_v25  ;;  %v10777_v40 = vmax.f32 %v10713_v12, 0.0  ;;  %v10570_v58 = vmul.f32 %v17323_v59, %v10484_v2  ;;  %v10485_v31 = vadd.f32 %v10420_v30, %v18202_v63  ;;  %v10422_v6 = vadd.f32 %v10421_v24, %v10308_v1 }
 0x54b   : > { %v10716_v19 = vadd.f32 %v13473_v36, %v10652_v60  ;;  %v10653_v18 = vadd.f32 %v17349_v46, %v10567_v13  ;;  %v10423_v38 = vpop.f32.mrf.mxu1 }
 0x54c   : > { %10841 = vst [vmem:[%s17137_s8 + $0x198] sm:$0xff] %v10777_v40  ;;  %v10656_v29 = vadd.f32 %v17335_v16, %v10570_v58  ;;  %v10571_v22 = vmul.f32 %v17339_v3, %v10485_v31  ;;  %v10488_v47 = vadd.f32 %v10422_v6, %v18203_v4  ;;  %v10424_v54 = vadd.f32 %v10423_v38, %v10310_v8 }
 0x54d   : > { %v10780_v9 = vmax.f32 %v10716_v19, 0.0  ;;  %v10717_v44 = vadd.f32 %v13474_v56, %v10653_v18 }
 0x54e   : > { %v10720_v34 = vadd.f32 %v13475_v15, %v10656_v29  ;;  %v10657_v0 = vadd.f32 %v17349_v46, %v10571_v22  ;;  %v10574_v39 = vmul.f32 %v17323_v59, %v10488_v47  ;;  %v10489_v62 = vadd.f32 %v10424_v54, %v18204_v33 }
 0x54f   : > { %10844 = vst [vmem:[%s17137_s8 + $0x1b0] sm:$0xff] %v10780_v9  ;;  %v10781_v32 = vmax.f32 %v10717_v44, 0.0 }
 0x550   : > { %v10784_v5 = vmax.f32 %v10720_v34, 0.0  ;;  %v10721_v42 = vadd.f32 %v13476_v7, %v10657_v0  ;;  %v10660_v26 = vadd.f32 %v17335_v16, %v10574_v39  ;;  %v10575_v52 = vmul.f32 %v17339_v3, %v10489_v62 }
 0x551   : > { %10845 = vst [vmem:[%s17137_s8 + $0x1b8] sm:$0xff] %v10781_v32 }
 0x552   : > { %10848 = vst [vmem:[%s17137_s8 + $0x1d0] sm:$0xff] %v10784_v5  ;;  %v10785_v59 = vmax.f32 %v10721_v42, 0.0  ;;  %v10724_v53 = vadd.f32 %v13477_v50, %v10660_v26  ;;  %v10661_v51 = vadd.f32 %v17349_v46, %v10575_v52 }
 0x554   : > { %10849 = vst [vmem:[%s17137_s8 + $0x1d8] sm:$0xff] %v10785_v59  ;;  %v10788_v23 = vmax.f32 %v10724_v53, 0.0  ;;  %v10725_v11 = vadd.f32 %v13478_v41, %v10661_v51 }
 0x556   : > { %10852 = vst [vmem:[%s17137_s8 + $0x1f0] sm:$0xff] %v10788_v23  ;;  %v10789_v16 = vmax.f32 %v10725_v11, 0.0 }
 0x558   : > { %10853 = vst [vmem:[%s17137_s8 + $0x1f8] sm:$0xff] %v10789_v16 }
 0x559   : > { %13676 = shalt.err (!%p13673_p3)
}
 0x55a   : > { %s13677_s23 = scalar_lea.hbm %s17562_s9, 8192  ;;  %s13681_s28 = scalar_lea.hbm %s17616_s7, 16384 }
 0x55b   : > { %p13678_p6 = scmp.ne.s32.totalorder %s17562_s9, %s13677_s23  ;;  %p13682_p11 = scmp.lt.s32.totalorder %s17562_s9, %s17616_s7 }
 0x55c   : > { %p13683_p7 = scmp.lt.s32.totalorder %s13681_s28, %s13677_s23 }
 0x55d   : > { %p13679_p10 = pnand %p13678_p6, %p18205_p5 }
 0x55e   : > { %p13684_p13 = por %p13683_p7, %p13682_p11 }
 0x55f   : > { %p13680_p12 = pneg %p13679_p10 }
 0x561   : > { %p13685_p2 = pnand %p13684_p13, %p13680_p12 }
 0x563   : > { %13688 = shalt.err (!%p13685_p2)
}
 0x564   : > { %s13753_s29 = smov 512   ;;  %s13754_s14 = smov 32  }
 0x565   : > { %12113 = dma.vmem_to_hbm [thread:$0]  (%p18205_p5), %s17564_s17, 8192, %s17562_s9, %s10855_s15, %s13753_s29, %s13753_s29, %s13754_s14  }
 0x566 PF: > { %s10884_s30 = sand.u32 1, %s13727_s24   ;;  %p18206_p9 = scmp.ne.s32.totalorder %s17675_s20, 0 }
 0x567   : > { %p18207_p8 = scmp.ge.s32.totalorder %s13739_s27, 2  ;;  %s10885_s13 = scalar_lea.sflag [#allocation5], %s10884_s30 }
 0x569   : > { %p12139_p4 = pnand %p18207_p8, %p18206_p9 }
 0x56b   : > { %p12140_p0 = pneg %p12139_p4 }
 0x56d   : > { %13722 = dma.done.wait (%p12140_p0), %s10885_s13, 8192  }
 0x56e   : > { %13724 = vsyncadd (%p12140_p0), %s10885_s13, 4294959104  ;;  %p23_p1 = scmp.ge.s32.totalorder %s13897_s11, 4   ;;  %s18208_s24 = smov %s13731_s25 }
 0x56f   : > { %s18209_s25 = smov %s13735_s26  ;;  %s18210_s26 = smov %s13908_s12 }
 0x570   : > { %s18211_s27 = smov %s13897_s11  ;;  %25 = sbr.rel (!%p23_p1) target bundleno = 10 (0xa), region = 121 }
 0x575   :  { %10890 = vsyncpa [#allocation4], 1 }
 0x576   :  { %10892 = vsyncpa [#allocation4 + $0x1], 1 }
 0x577   :  { %10893 = vsyncpa [#allocation7], 1 }
 0x578   :  { %10894 = vsyncpa [#allocation10], 1 }
 0x579   :  { %10895 = vsyncpa [#allocation13], 1 }
 0x57a   :  { %10896 = vsyncpa [#allocation5], 1 }
 0x57b   :  { %10898 = vsyncpa [#allocation5 + $0x1], 1 }

</bundles_post_ra>
